<compile_context>
chip_gen: v7x
topology: tpu7x:2x2x1
jax: 0.10.0
libtpu: 0.0.40
codegen_flags: <defaults>
</compile_context>

<pallas_src>
import jax
import jax.numpy as jnp
from jax.experimental import pallas as pl
from jax.experimental.pallas import tpu as pltpu

PACK = 64                    # batch rows packed per lane-dense super-row (64*10 = 640 lanes)
ALIGN = PACK * 8             # Pallas path handles multiples of 512 rows (sublane-aligned)
TARGET_TILE_ROWS = 1024      # packed rows per grid step (= 65536 batch rows, ~2.5 MiB of x)
MIN_PALLAS_BATCH = 32768     # below this, fused XLA beats kernel dispatch cost


def mlp_kernel(xp_ref, w1b_ref, b1_ref, w2b_ref, b2_ref, op_ref):
    # xp: (tile_r, PACK*10) lane-dense packed activations.
    xp = xp_ref[...]
    # Layer 1 on the MXU against the block-diagonal kron(I, W1): (tile_r, PACK*5)
    h = jnp.dot(xp, w1b_ref[...], preferred_element_type=jnp.float32)
    h = jnp.maximum(h + b1_ref[...], 0.0)            # bias (1, PACK*5) broadcasts over sublanes
    # Layer 2 against kron(I, W2): (tile_r, PACK*2) = (tile_r, 128) -> lane-dense store.
    y = jnp.dot(h, w2b_ref[...], preferred_element_type=jnp.float32)
    op_ref[...] = (y + b2_ref[...]).astype(op_ref.dtype)


def _choose_tile_rows(n_rows: int) -> int:
    """Packed-row tile: multi-MiB per step, multiple of 8, even #steps when tiled."""
    if n_rows <= TARGET_TILE_ROWS:
        return n_rows                                 # single step; block == full array
    n_tiles = 2 * pl.cdiv(n_rows, 2 * TARGET_TILE_ROWS)   # even -> balanced v7x 2-TC split
    tile = pl.cdiv(n_rows, n_tiles)
    return ((tile + 7) // 8) * 8                      # sublane-aligned


@jax.jit
def _sample_net_forward_pallas(x, w1, b1, w2, b2):
    """Pallas path. x: (B, 10) f32 with B % 512 == 0; w1: (10,5); b1:(5,); w2:(5,2); b2:(2,)."""
    B, F = x.shape
    H = w1.shape[1]
    O = w2.shape[1]
    assert B % ALIGN == 0, "Pallas path requires a 512-row-aligned batch"

    n_rows = B // PACK
    # Free row-major views / tiny weight expansions (all inside this jit).
    x_p = x.reshape(n_rows, PACK * F)                     # (n_rows, 640), zero-copy reshape
    eye = jnp.eye(PACK, dtype=x.dtype)
    w1_blk = jnp.kron(eye, w1)                            # (640, 320) block-diagonal
    w2_blk = jnp.kron(eye, w2)                            # (320, 128) block-diagonal
    b1_t = jnp.tile(b1, PACK).reshape(1, PACK * H)        # (1, 320)
    b2_t = jnp.tile(b2, PACK).reshape(1, PACK * O)        # (1, 128)

    tile_r = _choose_tile_rows(n_rows)
    n_tiles = pl.cdiv(n_rows, tile_r)

    cost = pl.CostEstimate(
        flops=2 * B * (F * H + H * O),
        transcendentals=0,
        bytes_accessed=B * (F + O) * 4
        + (PACK * F * PACK * H + PACK * H + PACK * H * PACK * O + PACK * O) * 4,
    )

    y_p = pl.pallas_call(
        mlp_kernel,
        out_shape=jax.ShapeDtypeStruct((n_rows, PACK * O), jnp.float32),
        grid=(n_tiles,),
        in_specs=[
            pl.BlockSpec((tile_r, PACK * F), lambda i: (i, 0)),    # streamed packed x tile
            pl.BlockSpec((PACK * F, PACK * H), lambda i: (0, 0)),  # resident kron(I, W1)
            pl.BlockSpec((1, PACK * H), lambda i: (0, 0)),         # resident tiled b1
            pl.BlockSpec((PACK * H, PACK * O), lambda i: (0, 0)),  # resident kron(I, W2)
            pl.BlockSpec((1, PACK * O), lambda i: (0, 0)),         # resident tiled b2
        ],
        out_specs=pl.BlockSpec((tile_r, PACK * O), lambda i: (i, 0)),
        compiler_params=pltpu.CompilerParams(
            dimension_semantics=("parallel",),     # v7x: the two TCs split batch tiles
            vmem_limit_bytes=40 * 1024 * 1024,     # ~12 MiB actual footprint; <64 MiB v7x VMEM
        ),
        cost_estimate=cost,
    )(x_p, w1_blk, b1_t, w2_blk, b2_t)

    return y_p.reshape(B, O)                               # zero-copy reshape back to (B, 2)


def _xla_forward(x, w1, b1, w2, b2):
    """Fused-XLA reference / small-batch fallback (same math as the PyTorch forward)."""
    return jnp.maximum(x @ w1 + b1, 0.0) @ w2 + b2


def sample_net_forward(x, w1, b1, w2, b2):
    """Dispatch: tiny batches -> fused XLA; large batches -> Pallas on the aligned
    prefix plus a small XLA call on the ragged tail (no jnp.pad copies)."""
    B = x.shape[0]
    if B < MIN_PALLAS_BATCH:
        return _xla_forward(x, w1, b1, w2, b2)
    B_main = (B // ALIGN) * ALIGN
    if B_main == B:
        return _sample_net_forward_pallas(x, w1, b1, w2, b2)
    # Ragged batch: one prefix slice (small one-time copy) + tiny XLA tail call.
    y_main = _sample_net_forward_pallas(x[:B_main], w1, b1, w2, b2)
    y_tail = _xla_forward(x[B_main:], w1, b1, w2, b2)
    return jnp.concatenate([y_main, y_tail], axis=0)


def init_params(key):
    """Deterministic init matching nn.Linear shapes (fc1: 10->5, fc2: 5->2)."""
    k1, k2, k3, k4 = jax.random.split(key, 4)
    lim1 = 1.0 / jnp.sqrt(10.0)
    lim2 = 1.0 / jnp.sqrt(5.0)
    w1 = jax.random.uniform(k1, (10, 5), jnp.float32, -lim1, lim1)   # [in, out]
    b1 = jax.random.uniform(k2, (5,), jnp.float32, -lim1, lim1)
    w2 = jax.random.uniform(k3, (5, 2), jnp.float32, -lim2, lim2)
    b2 = jax.random.uniform(k4, (2,), jnp.float32, -lim2, lim2)
    return w1, b1, w2, b2


if __name__ == "__main__":
    key = jax.random.PRNGKey(0)
    k_params, k_x = jax.random.split(key)
    w1, b1, w2, b2 = init_params(k_params)

    # Main check: batch big enough for two pipelined grid steps (even -> both
    # v7x TensorCores get work).  131072 x 10 f32 is still only ~5 MiB.
    B = 131072
    x = jax.random.normal(k_x, (B, 10), jnp.float32)

    out = jax.block_until_ready(_sample_net_forward_pallas(x, w1, b1, w2, b2))
    ref = _xla_forward(x, w1, b1, w2, b2)
    assert out.shape == (B, 2)
    assert jnp.allclose(out, ref, atol=1e-5, rtol=1e-5)

    # Dispatch wrapper: ragged batch (Pallas on aligned prefix + XLA tail).
    x_rag = x[: 32768 + 100]
    out_rag = jax.block_until_ready(sample_net_forward(x_rag, w1, b1, w2, b2))
    ref_rag = _xla_forward(x_rag, w1, b1, w2, b2)
    assert jnp.allclose(out_rag, ref_rag, atol=1e-5, rtol=1e-5)

    # Dispatch wrapper: tiny batch -> fused XLA fallback.
    out_small = jax.block_until_ready(sample_net_forward(x[:8], w1, b1, w2, b2))
    ref_small = _xla_forward(x[:8], w1, b1, w2, b2)
    assert jnp.allclose(out_small, ref_small, atol=1e-5, rtol=1e-5)

    print("KERNEL_OK")
</pallas_src>

<mosaic_0001>
module attributes {stable_mosaic.version = 11 : i64} {
  func.func @mlp_kernel(%arg0: i32, %arg1: memref<1024x640xf32, #tpu.memory_space<vmem>>, %arg2: memref<640x320xf32, #tpu.memory_space<vmem>>, %arg3: memref<1x320xf32, #tpu.memory_space<vmem>>, %arg4: memref<320x128xf32, #tpu.memory_space<vmem>>, %arg5: memref<1x128xf32, #tpu.memory_space<vmem>>, %arg6: memref<1024x128xf32, #tpu.memory_space<vmem>>) attributes {dimension_semantics = [#tpu.dimension_semantics<parallel>], iteration_bounds = array<i64: 2>, scalar_prefetch = 0 : i64, scratch_operands = 0 : i64, tpu.core_type = #tpu.core_type<tc>, window_params = [{transform_indices = @transform_0, window_bounds = array<i64: 1024, 640>}, {pipeline_mode = #tpu.pipeline_mode<synchronous>, transform_indices = @transform_1, window_bounds = array<i64: 640, 320>}, {pipeline_mode = #tpu.pipeline_mode<synchronous>, transform_indices = @transform_2, window_bounds = array<i64: 1, 320>}, {pipeline_mode = #tpu.pipeline_mode<synchronous>, transform_indices = @transform_3, window_bounds = array<i64: 320, 128>}, {pipeline_mode = #tpu.pipeline_mode<synchronous>, transform_indices = @transform_4, window_bounds = array<i64: 1, 128>}, {transform_indices = @transform_5, window_bounds = array<i64: 1024, 128>}]} {
    %c0 = arith.constant 0 : index
    %c0_0 = arith.constant 0 : index
    %0 = vector.load %arg1[%c0, %c0_0] : memref<1024x640xf32, #tpu.memory_space<vmem>>, vector<1024x640xf32>
    %c0_1 = arith.constant 0 : index
    %c0_2 = arith.constant 0 : index
    %1 = vector.load %arg2[%c0_1, %c0_2] : memref<640x320xf32, #tpu.memory_space<vmem>>, vector<640x320xf32>
    %cst = arith.constant dense<0.000000e+00> : vector<1024x320xf32>
    %2 = tpu.matmul %0, %1, %cst {dimension_numbers = #tpu.dot_dimension_numbers<[1], [0], [0], [1], [0, 0, 1, 1], [], []>} : vector<1024x640xf32>, vector<640x320xf32>, vector<1024x320xf32> -> vector<1024x320xf32>
    %c0_3 = arith.constant 0 : index
    %c0_4 = arith.constant 0 : index
    %3 = vector.load %arg3[%c0_3, %c0_4] : memref<1x320xf32, #tpu.memory_space<vmem>>, vector<1x320xf32>
    %4 = vector.broadcast %3 : vector<1x320xf32> to vector<1024x320xf32>
    %5 = arith.addf %2, %4 : vector<1024x320xf32>
    %cst_5 = arith.constant 0.000000e+00 : f32
    %6 = vector.broadcast %cst_5 : f32 to vector<1024x320xf32>
    %7 = arith.maximumf %5, %6 : vector<1024x320xf32>
    %c0_6 = arith.constant 0 : index
    %c0_7 = arith.constant 0 : index
    %8 = vector.load %arg4[%c0_6, %c0_7] : memref<320x128xf32, #tpu.memory_space<vmem>>, vector<320x128xf32>
    %cst_8 = arith.constant dense<0.000000e+00> : vector<1024x128xf32>
    %9 = tpu.matmul %7, %8, %cst_8 {dimension_numbers = #tpu.dot_dimension_numbers<[1], [0], [0], [1], [0, 0, 1, 1], [], []>} : vector<1024x320xf32>, vector<320x128xf32>, vector<1024x128xf32> -> vector<1024x128xf32>
    %c0_9 = arith.constant 0 : index
    %c0_10 = arith.constant 0 : index
    %10 = vector.load %arg5[%c0_9, %c0_10] : memref<1x128xf32, #tpu.memory_space<vmem>>, vector<1x128xf32>
    %11 = vector.broadcast %10 : vector<1x128xf32> to vector<1024x128xf32>
    %12 = arith.addf %9, %11 : vector<1024x128xf32>
    %c0_11 = arith.constant 0 : index
    %c0_12 = arith.constant 0 : index
    %13 = vector.load %arg6[%c0_11, %c0_12] : memref<1024x128xf32, #tpu.memory_space<vmem>>, vector<1024x128xf32>
    tpu.vector_store %arg6[%c0_11, %c0_12], %12 {strides = array<i32>} : memref<1024x128xf32, #tpu.memory_space<vmem>>, vector<1024x128xf32>,
    return
  }
  func.func @transform_0(%arg0: i32) -> (i32, i32) {
    %c0_i32 = arith.constant 0 : i32
    %c0_i32_0 = arith.constant 0 : i32
    return %arg0, %c0_i32 : i32, i32
  }
  func.func @transform_1(%arg0: i32) -> (i32, i32) {
    %c0_i32 = arith.constant 0 : i32
    %c0_i32_0 = arith.constant 0 : i32
    %c0_i32_1 = arith.constant 0 : i32
    return %c0_i32, %c0_i32_0 : i32, i32
  }
  func.func @transform_2(%arg0: i32) -> (i32, i32) {
    %c0_i32 = arith.constant 0 : i32
    %c0_i32_0 = arith.constant 0 : i32
    %c0_i32_1 = arith.constant 0 : i32
    return %c0_i32, %c0_i32_0 : i32, i32
  }
  func.func @transform_3(%arg0: i32) -> (i32, i32) {
    %c0_i32 = arith.constant 0 : i32
    %c0_i32_0 = arith.constant 0 : i32
    %c0_i32_1 = arith.constant 0 : i32
    return %c0_i32, %c0_i32_0 : i32, i32
  }
  func.func @transform_4(%arg0: i32) -> (i32, i32) {
    %c0_i32 = arith.constant 0 : i32
    %c0_i32_0 = arith.constant 0 : i32
    %c0_i32_1 = arith.constant 0 : i32
    return %c0_i32, %c0_i32_0 : i32, i32
  }
  func.func @transform_5(%arg0: i32) -> (i32, i32) {
    %c0_i32 = arith.constant 0 : i32
    %c0_i32_0 = arith.constant 0 : i32
    return %arg0, %c0_i32 : i32, i32
  }
}

</mosaic_0001>

<bundles_post_ra>
// kernel: tile.13
= control target key start
LH: loop header
LB: loop body
LE: loop exit
PB: predicated region body
PF: predicated region fallthrough
CT: control target
= control target key end

     0   :  { %s64_s0 = inlined_call_operand.vmem [shape: f32[5], index: 0, kind: input, shape index: {}]   ;;  %s65_s1 = inlined_call_operand.vmem [shape: f32[64,5], index: 1, kind: output, shape index: {}]  }
   0x1   :  { %v4_v0 = vld [vmem:[%s64_s0] ss:$0 sm:$0xff] }
   0x2   :  { %5 = vst [vmem:[%s65_s1] sm:$0xff] %v4_v0  ;;  %20 = vst [vmem:[%s65_s1 + $0x8] sm:$0xff] %v4_v0 }
   0x3   :  { %21 = vst [vmem:[%s65_s1 + $0x10] sm:$0xff] %v4_v0  ;;  %22 = vst [vmem:[%s65_s1 + $0x18] sm:$0xff] %v4_v0 }
   0x4   :  { %23 = vst [vmem:[%s65_s1 + $0x20] sm:$0xff] %v4_v0  ;;  %24 = vst [vmem:[%s65_s1 + $0x28] sm:$0xff] %v4_v0 }
   0x5   :  { %25 = vst [vmem:[%s65_s1 + $0x30] sm:$0xff] %v4_v0  ;;  %26 = vst [vmem:[%s65_s1 + $0x38] sm:$0xff] %v4_v0 }

// kernel: tile.14
= control target key start
LH: loop header
LB: loop body
LE: loop exit
PB: predicated region body
PF: predicated region fallthrough
CT: control target
= control target key end

     0   :  { %vm9_vm0 = vcmask 7168   ;;  %vm23_vm1 = vcmask 23552   ;;  %s583_s14 = smov 127   ;;  %s584_s15 = smov 122   ;;  %vm3_vm2 = vcmask 39936   ;;  %vm13_vm3 = vcmask 31744   ;;  %s863_s0 = inlined_call_operand.vmem [shape: f32[64,5], index: 0, kind: input, shape index: {}]   ;;  %s864_s1 = inlined_call_operand.vmem [shape: f32[1,320], index: 1, kind: output, shape index: {}]  }
   0x1   :  { %v453_v0 = vld [vmem:[%s863_s0 + $0x33] sm:$0x1]   ;;  %v457_v3 = vld [vmem:[%s863_s0 + $0x32] sm:$0x1]   ;;  %v455_v4 = vld [vmem:[%s863_s0 + $0x19] sm:$0x1]  }
   0x2   :  { %v454_v1 = vld [vmem:[%s863_s0 + $0x33] sm:$0x1]   ;;  %34 = vrot.lane.b32.xlu1 %v457_v3, %s584_s15  ;;  %v456_v5 = vld [vmem:[%s863_s0 + $0x19] sm:$0x1]   ;;  %v458_v7 = vld [vmem:[%s863_s0 + $0x18] sm:$0x1]  }
   0x3   :  { %v10_v2 = vsel %vm9_vm0, %v454_v1, %v453_v0  ;;  %v24_v6 = vsel %vm23_vm1, %v456_v5, %v455_v4  ;;  %s585_s20 = smov 125   ;;  %s586_s21 = smov 120   ;;  %v459_v8 = vld [vmem:[%s863_s0 + $0x31] sm:$0x1]   ;;  %v460_v9 = vld [vmem:[%s863_s0 + $0x17] sm:$0x1]  }
   0x4   :  { %11 = vrot.lane.b32.xlu0 %v10_v2, %s583_s14  ;;  %s587_s26 = smov 117   ;;  %s588_s27 = smov 115   ;;  %v461_v10 = vld [vmem:[%s863_s0 + $0x30] sm:$0x1]   ;;  %v462_v11 = vld [vmem:[%s863_s0 + $0x16] sm:$0x1]  }
   0x5   :  { %s589_s3 = smov 112   ;;  %s590_s4 = smov 110   ;;  %v463_v12 = vld [vmem:[%s863_s0 + $0x2f] sm:$0x1]   ;;  %v464_v13 = vld [vmem:[%s863_s0 + $0x15] sm:$0x1]  }
   0x6   :  { %41 = vrot.lane.b32.xlu1 %v458_v7, %s586_s21  ;;  %s591_s9 = smov 107   ;;  %s592_s10 = smov 105   ;;  %v465_v14 = vld [vmem:[%s863_s0 + $0x2e] sm:$0x1]   ;;  %v466_v15 = vld [vmem:[%s863_s0 + $0x14] sm:$0x1]  }
   0x7   :  { %s593_s15 = smov 102   ;;  %s594_s16 = smov 100   ;;  %v467_v16 = vld [vmem:[%s863_s0 + $0x2d] sm:$0x1]   ;;  %v468_v17 = vld [vmem:[%s863_s0 + $0x13] sm:$0x1]  }
   0x8   :  { %25 = vrot.lane.b32.xlu0 %v24_v6, %s585_s20  ;;  %s595_s21 = smov 97   ;;  %s596_s22 = smov 95   ;;  %v469_v18 = vld [vmem:[%s863_s0 + $0x2c] sm:$0x1]   ;;  %v470_v19 = vld [vmem:[%s863_s0 + $0x12] sm:$0x1]  }
   0x9   :  { %s598_s28 = smov 90   ;;  %v471_v20 = vld [vmem:[%s863_s0 + $0x2b] sm:$0x1]   ;;  %v472_v21 = vld [vmem:[%s863_s0 + $0x11] sm:$0x1]   ;;  %s599_s6 = smov 87  }
   0xa   :  { %54 = vrot.lane.b32.xlu1 %v460_v9, %s588_s27  ;;  %s597_s27 = smov 92   ;;  %v2_v22 = vld [vmem:[%s863_s0] sm:$0x1]   ;;  %s600_s7 = smov 85   ;;  %v473_v23 = vld [vmem:[%s863_s0 + $0x2a] sm:$0x1]  }
   0xb   :  { %4 = vst.msk [vmem:[#allocation0] sm:$0x1] %vm3_vm2, %v2_v22   ;;  %v474_v24 = vld [vmem:[%s863_s0 + $0x10] sm:$0x1]   ;;  %s601_s12 = smov 82   ;;  %s602_s13 = smov 80  }
   0xc   :  { %47 = vrot.lane.b32.xlu0 %v459_v8, %s587_s26  ;;  %v475_v25 = vld [vmem:[%s863_s0 + $0x29] sm:$0x1]   ;;  %v476_v26 = vld [vmem:[%s863_s0 + $0xf] sm:$0x1]   ;;  %s603_s18 = smov 77   ;;  %s604_s19 = smov 75  }
   0xd   :  { %v477_v27 = vld [vmem:[%s863_s0 + $0x28] sm:$0x1]   ;;  %v478_v28 = vld [vmem:[%s863_s0 + $0xe] sm:$0x1]   ;;  %s605_s24 = smov 72   ;;  %s606_s25 = smov 70  }
   0xe   :  { %67 = vrot.lane.b32.xlu1 %v462_v11, %s590_s4  ;;  %v479_v29 = vld [vmem:[%s863_s0 + $0x27] sm:$0x1]   ;;  %v480_v30 = vld [vmem:[%s863_s0 + $0xd] sm:$0x1]   ;;  %s607_s30 = smov 67   ;;  %s608_s2 = smov 65  }
   0xf   :  { %v481_v31 = vld [vmem:[%s863_s0 + $0x26] sm:$0x1]   ;;  %v482_v32 = vld [vmem:[%s863_s0 + $0xc] sm:$0x1]   ;;  %s610_s8 = smov 60   ;;  %s612_s14 = smov 57  }
  0x10   :  { %60 = vrot.lane.b32.xlu0 %v461_v10, %s589_s3  ;;  %v483_v33 = vld [vmem:[%s863_s0 + $0x3f] sm:$0x1]   ;;  %v484_v34 = vld [vmem:[%s863_s0 + $0x25] sm:$0x1]   ;;  %v485_v35 = vld [vmem:[%s863_s0 + $0xb] sm:$0x1]  }
  0x11   :  { %v486_v36 = vld [vmem:[%s863_s0 + $0x3e] sm:$0x1]   ;;  %s614_s20 = smov 54   ;;  %v487_v37 = vld [vmem:[%s863_s0 + $0x24] sm:$0x1]   ;;  %s616_s26 = smov 50  }
  0x12   :  { %80 = vrot.lane.b32.xlu1 %v464_v13, %s592_s10  ;;  %v488_v38 = vld [vmem:[%s863_s0 + $0xa] sm:$0x1]   ;;  %v489_v39 = vld [vmem:[%s863_s0 + $0x3d] sm:$0x1]   ;;  %v490_v40 = vld [vmem:[%s863_s0 + $0x23] sm:$0x1]  }
  0x13   :  { %s618_s3 = smov 47   ;;  %v491_v41 = vld [vmem:[%s863_s0 + $0x9] sm:$0x1]   ;;  %v492_v42 = vld [vmem:[%s863_s0 + $0x3c] sm:$0x1]   ;;  %s628_s4 = smov 30  }
  0x14   :  { %73 = vrot.lane.b32.xlu0 %v463_v12, %s591_s9  ;;  %s620_s9 = smov 44   ;;  %v493_v43 = vld [vmem:[%s863_s0 + $0x22] sm:$0x1]   ;;  %v494_v44 = vld [vmem:[%s863_s0 + $0x8] sm:$0x1]   ;;  %s630_s10 = smov 27  }
  0x15   :  { %v495_v45 = vld [vmem:[%s863_s0 + $0x3b] sm:$0x1]   ;;  %v496_v46 = vld [vmem:[%s863_s0 + $0x21] sm:$0x1]   ;;  %v497_v47 = vld [vmem:[%s863_s0 + $0x7] sm:$0x1]  }
  0x16   :  { %93 = vrot.lane.b32.xlu1 %v466_v15, %s594_s16  ;;  %v498_v48 = vld [vmem:[%s863_s0 + $0x3a] sm:$0x1]   ;;  %v499_v49 = vld [vmem:[%s863_s0 + $0x20] sm:$0x1]   ;;  %v500_v50 = vld [vmem:[%s863_s0 + $0x6] sm:$0x1]  }
  0x17   :  { %v501_v51 = vld [vmem:[%s863_s0 + $0x39] sm:$0x1]   ;;  %v502_v52 = vld [vmem:[%s863_s0 + $0x1f] sm:$0x1]   ;;  %v503_v53 = vld [vmem:[%s863_s0 + $0x5] sm:$0x1]  }
  0x18   :  { %86 = vrot.lane.b32.xlu0 %v465_v14, %s593_s15  ;;  %s622_s15 = smov 40   ;;  %v504_v54 = vld [vmem:[%s863_s0 + $0x38] sm:$0x1]   ;;  %s632_s16 = smov 24   ;;  %v505_v55 = vld [vmem:[%s863_s0 + $0x1e] sm:$0x1]  }
  0x19   :  { %v506_v56 = vld [vmem:[%s863_s0 + $0x4] sm:$0x1]   ;;  %v507_v57 = vld [vmem:[%s863_s0 + $0x37] sm:$0x1]   ;;  %v508_v58 = vld [vmem:[%s863_s0 + $0x1d] sm:$0x1]  }
  0x1a   :  { %106 = vrot.lane.b32.xlu1 %v468_v17, %s596_s22  ;;  %s634_s22 = smov 20   ;;  %v509_v59 = vld [vmem:[%s863_s0 + $0x3] sm:$0x1]   ;;  %v510_v60 = vld [vmem:[%s863_s0 + $0x36] sm:$0x1]   ;;  %s638_s5 = smov 14  }
  0x1b   :  { %v511_v61 = vld [vmem:[%s863_s0 + $0x1c] sm:$0x1]   ;;  %v512_v62 = vld [vmem:[%s863_s0 + $0x2] sm:$0x1]   ;;  %vm16_vm4 = vcmask 1048568   ;;  %s640_s11 = smov 10  }
  0x1c   :  { %99 = vrot.lane.b32.xlu0 %v467_v16, %s595_s21  ;;  %s624_s21 = smov 37   ;;  %v513_v63 = vld [vmem:[%s863_s0 + $0x35] sm:$0x1]   ;;  %v514_v0 = vld [vmem:[%s863_s0 + $0x1b] sm:$0x1]   ;;  %vm27_vm5 = vcmask 15360  }
  0x1d   :  { %vm30_vm6 = vcmask 1048552   ;;  %s642_s17 = smov 7   ;;  %v515_v3 = vld [vmem:[%s863_s0 + $0x1] sm:$0x1]   ;;  %vm36_vm7 = vcmask 1040336   ;;  %vm43_vm8 = vcmask 1023936  }
  0x1e   :  { %119 = vrot.lane.b32.xlu1 %v470_v19, %s598_s28  ;;  %s636_s28 = smov 17   ;;  %v516_v4 = vld [vmem:[%s863_s0 + $0x34] sm:$0x1]   ;;  %vm49_vm9 = vcmask 999336   ;;  %s644_s23 = smov 4   ;;  %vm56_vm10 = vcmask 982936  }
  0x1f   :  { %v517_v7 = vld [vmem:[%s863_s0 + $0x1a] sm:$0x1]   ;;  %s645_s0 = smov 2   ;;  %vm62_vm11 = vcmask 958336   ;;  %vm69_vm12 = vcmask 941936   ;;  %vm75_vm13 = vcmask 917336  }
  0x20   :  { %112 = vrot.lane.b32.xlu0 %v469_v18, %s597_s27  ;;  %s626_s27 = smov 34   ;;  %vm82_vm14 = vcmask 900936   ;;  %vm88_vm15 = vcmask 876336   ;;  %vm95_vm0 = vcmask 859936   ;;  %vm101_vm1 = vcmask 835336  }
  0x21   :  { %vm108_vm2 = vcmask 818936  }
  0x22   :  { %132 = vrot.lane.b32.xlu1 %v472_v21, %s600_s7  ;;  %s609_s7 = smov 62  }
  0x24   :  { %125 = vrot.lane.b32.xlu0 %v471_v20, %s599_s6 }
  0x26   :  { %145 = vrot.lane.b32.xlu1 %v474_v24, %s602_s13  ;;  %s611_s13 = smov 59  }
  0x28   :  { %138 = vrot.lane.b32.xlu0 %v473_v23, %s601_s12 }
  0x2a   :  { %158 = vrot.lane.b32.xlu1 %v476_v26, %s604_s19  ;;  %s613_s19 = smov 55  }
  0x2c   :  { %151 = vrot.lane.b32.xlu0 %v475_v25, %s603_s18 }
  0x2e   :  { %171 = vrot.lane.b32.xlu1 %v478_v28, %s606_s25  ;;  %s615_s25 = smov 52  }
  0x30   :  { %164 = vrot.lane.b32.xlu0 %v477_v27, %s605_s24 }
  0x32   :  { %184 = vrot.lane.b32.xlu1 %v480_v30, %s608_s2  ;;  %s617_s2 = smov 49  }
  0x34   :  { %177 = vrot.lane.b32.xlu0 %v479_v29, %s607_s30 }
  0x36   :  { %197 = vrot.lane.b32.xlu1 %v482_v32, %s610_s8  ;;  %s619_s8 = smov 45  }
  0x38   :  { %190 = vrot.lane.b32.xlu0 %v481_v31, %s609_s7 }
  0x3a   :  { %210 = vrot.lane.b32.xlu1 %v484_v34, %s612_s14  ;;  %s621_s14 = smov 42  }
  0x3c   :  { %203 = vrot.lane.b32.xlu0 %v483_v33, %s611_s13 }
  0x3e   :  { %223 = vrot.lane.b32.xlu1 %v486_v36, %s614_s20  ;;  %s623_s20 = smov 39  }
  0x40   :  { %217 = vrot.lane.b32.xlu0 %v485_v35, %s613_s19 }
  0x42   :  { %237 = vrot.lane.b32.xlu1 %v488_v38, %s616_s26  ;;  %s625_s26 = smov 35  }
  0x44   :  { %230 = vrot.lane.b32.xlu0 %v487_v37, %s615_s25 }
  0x46   :  { %250 = vrot.lane.b32.xlu1 %v490_v40, %s618_s3  ;;  %s627_s3 = smov 32  }
  0x48   :  { %243 = vrot.lane.b32.xlu0 %v489_v39, %s617_s2 }
  0x4a   :  { %263 = vrot.lane.b32.xlu1 %v492_v42, %s620_s9  ;;  %s629_s9 = smov 29  }
  0x4c   :  { %257 = vrot.lane.b32.xlu0 %v491_v41, %s619_s8 }
  0x4e   :  { %277 = vrot.lane.b32.xlu1 %v494_v44, %s622_s15  ;;  %s631_s15 = smov 25  }
  0x50   :  { %270 = vrot.lane.b32.xlu0 %v493_v43, %s621_s14 }
  0x52   :  { %290 = vrot.lane.b32.xlu1 %v496_v46, %s624_s21  ;;  %s633_s21 = smov 22  }
  0x54   :  { %283 = vrot.lane.b32.xlu0 %v495_v45, %s623_s20 }
  0x56   :  { %303 = vrot.lane.b32.xlu1 %v498_v48, %s626_s27  ;;  %s635_s27 = smov 19  }
  0x58   :  { %297 = vrot.lane.b32.xlu0 %v497_v47, %s625_s26 }
  0x5a   :  { %317 = vrot.lane.b32.xlu1 %v500_v50, %s628_s4  ;;  %s637_s4 = smov 15  }
  0x5c   :  { %310 = vrot.lane.b32.xlu0 %v499_v49, %s627_s3 }
  0x5e   :  { %330 = vrot.lane.b32.xlu1 %v502_v52, %s630_s10  ;;  %s639_s10 = smov 12  }
  0x60   :  { %323 = vrot.lane.b32.xlu0 %v501_v51, %s629_s9 }
  0x62   :  { %343 = vrot.lane.b32.xlu1 %v504_v54, %s632_s16  ;;  %s641_s16 = smov 9  }
  0x64   :  { %337 = vrot.lane.b32.xlu0 %v503_v53, %s631_s15 }
  0x66   :  { %357 = vrot.lane.b32.xlu1 %v506_v56, %s634_s22  ;;  %s643_s22 = smov 5  }
  0x68   :  { %350 = vrot.lane.b32.xlu0 %v505_v55, %s633_s21 }
  0x6a   :  { %370 = vrot.lane.b32.xlu1 %v508_v58, %s636_s28 }
  0x6c   :  { %363 = vrot.lane.b32.xlu0 %v507_v57, %s635_s27 }
  0x6e   :  { %383 = vrot.lane.b32.xlu1 %v510_v60, %s638_s5 }
  0x70   :  { %377 = vrot.lane.b32.xlu0 %v509_v59, %s637_s4 }
  0x72   :  { %397 = vrot.lane.b32.xlu1 %v512_v62, %s640_s11 }
  0x74   :  { %390 = vrot.lane.b32.xlu0 %v511_v61, %s639_s10  ;;  %v35_v2 = vpop.permute.xlu1 %34  }
  0x76   :  { %v12_v1 = vpop.permute.xlu0 %11   ;;  %410 = vrot.lane.b32.xlu1 %v514_v0, %s642_s17 }
  0x77   :  { %15 = vst.msk [vmem:[#allocation0 + $0x10] sm:$0x1] %vm13_vm3, %v12_v1   ;;  %vm114_vm3 = vcmask 794336  }
  0x78   :  { %18 = vst.msk [vmem:[#allocation0 + $0x8] sm:$0x1] %vm16_vm4, %v12_v1   ;;  %403 = vrot.lane.b32.xlu0 %v513_v63, %s641_s16  ;;  %v42_v6 = vpop.permute.xlu1 %41   ;;  %vm121_vm4 = vcmask 777936  }
  0x7a   :  { %v26_v5 = vpop.permute.xlu0 %25   ;;  %423 = vrot.lane.b32.xlu1 %v516_v4, %s644_s23 }
  0x7b   :  { %29 = vst.msk [vmem:[#allocation0 + $0x8] sm:$0x1] %vm27_vm5, %v26_v5   ;;  %vm127_vm5 = vcmask 753336  }
  0x7c   :  { %31 = vst.msk [vmem:[#allocation0] sm:$0x1] %vm30_vm6, %v26_v5   ;;  %417 = vrot.lane.b32.xlu0 %v515_v3, %s643_s22  ;;  %v55_v9 = vpop.permute.xlu1 %54   ;;  %vm134_vm6 = vcmask 736936  }
  0x7d   :  { %38 = vst.msk [vmem:[#allocation0 + $0x8] sm:$0x1] %vm36_vm7, %v35_v2   ;;  %vm140_vm7 = vcmask 712336  }
  0x7e   :  { %44 = vst.msk [vmem:[#allocation0] sm:$0x1] %vm43_vm8, %v42_v6   ;;  %v48_v8 = vpop.permute.xlu0 %47   ;;  %vm147_vm8 = vcmask 695936  }
  0x7f   :  { %51 = vst.msk [vmem:[#allocation0 + $0x8] sm:$0x1] %vm49_vm9, %v48_v8   ;;  %vm153_vm9 = vcmask 671336  }
  0x80   :  { %57 = vst.msk [vmem:[#allocation0] sm:$0x1] %vm56_vm10, %v55_v9   ;;  %430 = vrot.lane.b32.xlu0 %v517_v7, %s645_s0  ;;  %v68_v11 = vpop.permute.xlu1 %67   ;;  %vm160_vm10 = vcmask 654936  }
  0x81   :  { %70 = vst.msk [vmem:[#allocation0] sm:$0x1] %vm69_vm12, %v68_v11   ;;  %vm173_vm12 = vcmask 613936  }
  0x82   :  { %v61_v10 = vpop.permute.xlu0 %60  }
  0x83   :  { %64 = vst.msk [vmem:[#allocation0 + $0x8] sm:$0x1] %vm62_vm11, %v61_v10   ;;  %vm166_vm11 = vcmask 630336  }
  0x84   :  { %v81_v13 = vpop.permute.xlu1 %80  }
  0x85   :  { %83 = vst.msk [vmem:[#allocation0] sm:$0x1] %vm82_vm14, %v81_v13   ;;  %vm186_vm14 = vcmask 572936  }
  0x86   :  { %v74_v12 = vpop.permute.xlu0 %73  }
  0x87   :  { %77 = vst.msk [vmem:[#allocation0 + $0x8] sm:$0x1] %vm75_vm13, %v74_v12   ;;  %vm179_vm13 = vcmask 589336  }
  0x88   :  { %v94_v15 = vpop.permute.xlu1 %93  }
  0x89   :  { %96 = vst.msk [vmem:[#allocation0] sm:$0x1] %vm95_vm0, %v94_v15   ;;  %vm199_vm0 = vcmask 531936  }
  0x8a   :  { %v87_v14 = vpop.permute.xlu0 %86  }
  0x8b   :  { %90 = vst.msk [vmem:[#allocation0 + $0x8] sm:$0x1] %vm88_vm15, %v87_v14   ;;  %vm192_vm15 = vcmask 548336  }
  0x8c   :  { %v107_v17 = vpop.permute.xlu1 %106  }
  0x8d   :  { %109 = vst.msk [vmem:[#allocation0] sm:$0x1] %vm108_vm2, %v107_v17   ;;  %vm212_vm2 = vcmask 507336  }
  0x8e   :  { %v100_v16 = vpop.permute.xlu0 %99  }
  0x8f   :  { %103 = vst.msk [vmem:[#allocation0 + $0x8] sm:$0x1] %vm101_vm1, %v100_v16   ;;  %vm205_vm1 = vcmask 523736  }
  0x90   :  { %v120_v19 = vpop.permute.xlu1 %119  }
  0x91   :  { %122 = vst.msk [vmem:[#allocation0] sm:$0x1] %vm121_vm4, %v120_v19   ;;  %vm225_vm4 = vcmask 482736  }
  0x92   :  { %v113_v18 = vpop.permute.xlu0 %112  }
  0x93   :  { %116 = vst.msk [vmem:[#allocation0 + $0x8] sm:$0x1] %vm114_vm3, %v113_v18   ;;  %vm219_vm3 = vcmask 490936  }
  0x94   :  { %v133_v21 = vpop.permute.xlu1 %132  }
  0x95   :  { %135 = vst.msk [vmem:[#allocation0] sm:$0x1] %vm134_vm6, %v133_v21   ;;  %vm239_vm6 = vcmask 449936  }
  0x96   :  { %v126_v20 = vpop.permute.xlu0 %125  }
  0x97   :  { %129 = vst.msk [vmem:[#allocation0 + $0x8] sm:$0x1] %vm127_vm5, %v126_v20   ;;  %vm232_vm5 = vcmask 466336  }
  0x98   :  { %v146_v23 = vpop.permute.xlu1 %145  }
  0x99   :  { %148 = vst.msk [vmem:[#allocation0] sm:$0x1] %vm147_vm8, %v146_v23   ;;  %vm252_vm8 = vcmask 425336  }
  0x9a   :  { %v139_v22 = vpop.permute.xlu0 %138  }
  0x9b   :  { %142 = vst.msk [vmem:[#allocation0 + $0x8] sm:$0x1] %vm140_vm7, %v139_v22   ;;  %vm245_vm7 = vcmask 441736  }
  0x9c   :  { %v159_v25 = vpop.permute.xlu1 %158  }
  0x9d   :  { %161 = vst.msk [vmem:[#allocation0] sm:$0x1] %vm160_vm10, %v159_v25   ;;  %vm265_vm10 = vcmask 400736  }
  0x9e   :  { %v152_v24 = vpop.permute.xlu0 %151  }
  0x9f   :  { %155 = vst.msk [vmem:[#allocation0 + $0x8] sm:$0x1] %vm153_vm9, %v152_v24   ;;  %vm259_vm9 = vcmask 408936  }
  0xa0   :  { %v172_v27 = vpop.permute.xlu1 %171  }
  0xa1   :  { %174 = vst.msk [vmem:[#allocation0] sm:$0x1] %vm173_vm12, %v172_v27   ;;  %vm279_vm12 = vcmask 367936  }
  0xa2   :  { %v165_v26 = vpop.permute.xlu0 %164  }
  0xa3   :  { %168 = vst.msk [vmem:[#allocation0 + $0x8] sm:$0x1] %vm166_vm11, %v165_v26   ;;  %vm272_vm11 = vcmask 384336  }
  0xa4   :  { %v185_v29 = vpop.permute.xlu1 %184  }
  0xa5   :  { %187 = vst.msk [vmem:[#allocation0] sm:$0x1] %vm186_vm14, %v185_v29   ;;  %vm292_vm14 = vcmask 343336  }
  0xa6   :  { %v178_v28 = vpop.permute.xlu0 %177  }
  0xa7   :  { %181 = vst.msk [vmem:[#allocation0 + $0x8] sm:$0x1] %vm179_vm13, %v178_v28   ;;  %vm285_vm13 = vcmask 359736  }
  0xa8   :  { %v198_v31 = vpop.permute.xlu1 %197  }
  0xa9   :  { %200 = vst.msk [vmem:[#allocation0] sm:$0x1] %vm199_vm0, %v198_v31   ;;  %vm305_vm0 = vcmask 318736  }
  0xaa   :  { %v191_v30 = vpop.permute.xlu0 %190  }
  0xab   :  { %194 = vst.msk [vmem:[#allocation0 + $0x8] sm:$0x1] %vm192_vm15, %v191_v30   ;;  %vm299_vm15 = vcmask 326936  }
  0xac   :  { %v211_v33 = vpop.permute.xlu1 %210  }
  0xad   :  { %214 = vst.msk [vmem:[#allocation0 + $0x8] sm:$0x1] %vm212_vm2, %v211_v33   ;;  %vm319_vm2 = vcmask 285936  }
  0xae   :  { %v204_v32 = vpop.permute.xlu0 %203  }
  0xaf   :  { %207 = vst.msk [vmem:[#allocation0 + $0x10] sm:$0x1] %vm205_vm1, %v204_v32   ;;  %vm312_vm1 = vcmask 302336  }
  0xb0   :  { %v224_v35 = vpop.permute.xlu1 %223  }
  0xb1   :  { %227 = vst.msk [vmem:[#allocation0 + $0x10] sm:$0x1] %vm225_vm4, %v224_v35   ;;  %vm332_vm4 = vcmask 261336  }
  0xb2   :  { %v218_v34 = vpop.permute.xlu0 %217  }
  0xb3   :  { %220 = vst.msk [vmem:[#allocation0] sm:$0x1] %vm219_vm3, %v218_v34   ;;  %vm325_vm3 = vcmask 277736  }
  0xb4   :  { %v238_v37 = vpop.permute.xlu1 %237  }
  0xb5   :  { %240 = vst.msk [vmem:[#allocation0] sm:$0x1] %vm239_vm6, %v238_v37   ;;  %vm345_vm6 = vcmask 236736  }
  0xb6   :  { %v231_v36 = vpop.permute.xlu0 %230  }
  0xb7   :  { %234 = vst.msk [vmem:[#allocation0 + $0x8] sm:$0x1] %vm232_vm5, %v231_v36   ;;  %vm339_vm5 = vcmask 244936  }
  0xb8   :  { %v251_v39 = vpop.permute.xlu1 %250  }
  0xb9   :  { %254 = vst.msk [vmem:[#allocation0 + $0x8] sm:$0x1] %vm252_vm8, %v251_v39   ;;  %vm359_vm8 = vcmask 203936  }
  0xba   :  { %v244_v38 = vpop.permute.xlu0 %243  }
  0xbb   :  { %247 = vst.msk [vmem:[#allocation0 + $0x10] sm:$0x1] %vm245_vm7, %v244_v38   ;;  %vm352_vm7 = vcmask 220336  }
  0xbc   :  { %v264_v41 = vpop.permute.xlu1 %263  }
  0xbd   :  { %267 = vst.msk [vmem:[#allocation0 + $0x10] sm:$0x1] %vm265_vm10, %v264_v41   ;;  %vm372_vm10 = vcmask 179336  }
  0xbe   :  { %v258_v40 = vpop.permute.xlu0 %257  }
  0xbf   :  { %260 = vst.msk [vmem:[#allocation0] sm:$0x1] %vm259_vm9, %v258_v40   ;;  %vm365_vm9 = vcmask 195736  }
  0xc0   :  { %v278_v43 = vpop.permute.xlu1 %277  }
  0xc1   :  { %280 = vst.msk [vmem:[#allocation0] sm:$0x1] %vm279_vm12, %v278_v43   ;;  %vm385_vm12 = vcmask 154736  }
  0xc2   :  { %v271_v42 = vpop.permute.xlu0 %270  }
  0xc3   :  { %274 = vst.msk [vmem:[#allocation0 + $0x8] sm:$0x1] %vm272_vm11, %v271_v42   ;;  %vm379_vm11 = vcmask 162936  }
  0xc4   :  { %v291_v45 = vpop.permute.xlu1 %290  }
  0xc5   :  { %294 = vst.msk [vmem:[#allocation0 + $0x8] sm:$0x1] %vm292_vm14, %v291_v45   ;;  %vm399_vm14 = vcmask 121936  }
  0xc6   :  { %v284_v44 = vpop.permute.xlu0 %283  }
  0xc7   :  { %287 = vst.msk [vmem:[#allocation0 + $0x10] sm:$0x1] %vm285_vm13, %v284_v44   ;;  %vm392_vm13 = vcmask 138336  }
  0xc8   :  { %v304_v47 = vpop.permute.xlu1 %303  }
  0xc9   :  { %307 = vst.msk [vmem:[#allocation0 + $0x10] sm:$0x1] %vm305_vm0, %v304_v47   ;;  %vm412_vm0 = vcmask 97336  }
  0xca   :  { %v298_v46 = vpop.permute.xlu0 %297  }
  0xcb   :  { %300 = vst.msk [vmem:[#allocation0] sm:$0x1] %vm299_vm15, %v298_v46   ;;  %vm405_vm15 = vcmask 113736  }
  0xcc   :  { %v318_v49 = vpop.permute.xlu1 %317  }
  0xcd   :  { %320 = vst.msk [vmem:[#allocation0] sm:$0x1] %vm319_vm2, %v318_v49   ;;  %vm425_vm2 = vcmask 72736  }
  0xce   :  { %v311_v48 = vpop.permute.xlu0 %310  }
  0xcf   :  { %314 = vst.msk [vmem:[#allocation0 + $0x8] sm:$0x1] %vm312_vm1, %v311_v48   ;;  %vm419_vm1 = vcmask 80936  }
  0xd0   :  { %v331_v51 = vpop.permute.xlu1 %330  }
  0xd1   :  { %334 = vst.msk [vmem:[#allocation0 + $0x8] sm:$0x1] %vm332_vm4, %v331_v51  }
  0xd2   :  { %v324_v50 = vpop.permute.xlu0 %323  }
  0xd3   :  { %327 = vst.msk [vmem:[#allocation0 + $0x10] sm:$0x1] %vm325_vm3, %v324_v50   ;;  %vm432_vm3 = vcmask 56336  }
  0xd4   :  { %v344_v53 = vpop.permute.xlu1 %343  }
  0xd5   :  { %347 = vst.msk [vmem:[#allocation0 + $0x10] sm:$0x1] %vm345_vm6, %v344_v53  }
  0xd6   :  { %v338_v52 = vpop.permute.xlu0 %337  }
  0xd7   :  { %340 = vst.msk [vmem:[#allocation0] sm:$0x1] %vm339_vm5, %v338_v52  }
  0xd8   :  { %v358_v55 = vpop.permute.xlu1 %357  }
  0xd9   :  { %360 = vst.msk [vmem:[#allocation0] sm:$0x1] %vm359_vm8, %v358_v55  }
  0xda   :  { %v351_v54 = vpop.permute.xlu0 %350  }
  0xdb   :  { %354 = vst.msk [vmem:[#allocation0 + $0x8] sm:$0x1] %vm352_vm7, %v351_v54  }
  0xdc   :  { %v371_v57 = vpop.permute.xlu1 %370  }
  0xdd   :  { %374 = vst.msk [vmem:[#allocation0 + $0x8] sm:$0x1] %vm372_vm10, %v371_v57  }
  0xde   :  { %v364_v56 = vpop.permute.xlu0 %363  }
  0xdf   :  { %367 = vst.msk [vmem:[#allocation0 + $0x10] sm:$0x1] %vm365_vm9, %v364_v56  }
  0xe0   :  { %v384_v59 = vpop.permute.xlu1 %383  }
  0xe1   :  { %387 = vst.msk [vmem:[#allocation0 + $0x10] sm:$0x1] %vm385_vm12, %v384_v59  }
  0xe2   :  { %v378_v58 = vpop.permute.xlu0 %377  }
  0xe3   :  { %380 = vst.msk [vmem:[#allocation0] sm:$0x1] %vm379_vm11, %v378_v58  }
  0xe4   :  { %v398_v61 = vpop.permute.xlu1 %397  }
  0xe5   :  { %400 = vst.msk [vmem:[#allocation0] sm:$0x1] %vm399_vm14, %v398_v61  }
  0xe6   :  { %v391_v60 = vpop.permute.xlu0 %390  }
  0xe7   :  { %394 = vst.msk [vmem:[#allocation0 + $0x8] sm:$0x1] %vm392_vm13, %v391_v60  }
  0xe8   :  { %v411_v63 = vpop.permute.xlu1 %410  }
  0xe9   :  { %414 = vst.msk [vmem:[#allocation0 + $0x8] sm:$0x1] %vm412_vm0, %v411_v63  }
  0xea   :  { %v404_v62 = vpop.permute.xlu0 %403  }
  0xeb   :  { %407 = vst.msk [vmem:[#allocation0 + $0x10] sm:$0x1] %vm405_vm15, %v404_v62  }
  0xec   :  { %v424_v1 = vpop.permute.xlu1 %423  }
  0xed   :  { %427 = vst.msk [vmem:[#allocation0 + $0x10] sm:$0x1] %vm425_vm2, %v424_v1  }
  0xee   :  { %v418_v0 = vpop.permute.xlu0 %417  }
  0xef   :  { %420 = vst.msk [vmem:[#allocation0] sm:$0x1] %vm419_vm1, %v418_v0  }
  0xf2   :  { %v431_v2 = vpop.permute.xlu0 %430  }
  0xf3   :  { %434 = vst.msk [vmem:[#allocation0 + $0x8] sm:$0x1] %vm432_vm3, %v431_v2  }
  0xf4   :  { %v447_v4 = vld [vmem:[#allocation0 + $0x10] sm:$0x1] }
  0xf5   :  { %519 = vst [vmem:[%s864_s1 + $0x2] sm:$0x1] %v447_v4 }
  0xf6   :  { %v438_v3 = vld [vmem:[#allocation0] sm:$0x1] }
  0xf7   :  { %440 = vst [vmem:[%s864_s1] sm:$0x1] %v438_v3 }
  0xfa   :  { %v442_v5 = vld [vmem:[#allocation0 + $0x8] sm:$0x1] }
  0xfb   :  { %518 = vst [vmem:[%s864_s1 + $0x1] sm:$0x1] %v442_v5 }

// kernel: tile.18
= control target key start
LH: loop header
LB: loop body
LE: loop exit
PB: predicated region body
PF: predicated region fallthrough
CT: control target
= control target key end

     0   :  { %s64_s0 = inlined_call_operand.vmem [shape: f32[2], index: 0, kind: input, shape index: {}]   ;;  %s65_s1 = inlined_call_operand.vmem [shape: f32[64,2], index: 1, kind: output, shape index: {}]  }
   0x1   :  { %v4_v0 = vld [vmem:[%s64_s0] ss:$0 sm:$0xff] }
   0x2   :  { %5 = vst [vmem:[%s65_s1] sm:$0xff] %v4_v0  ;;  %20 = vst [vmem:[%s65_s1 + $0x8] sm:$0xff] %v4_v0 }
   0x3   :  { %21 = vst [vmem:[%s65_s1 + $0x10] sm:$0xff] %v4_v0  ;;  %22 = vst [vmem:[%s65_s1 + $0x18] sm:$0xff] %v4_v0 }
   0x4   :  { %23 = vst [vmem:[%s65_s1 + $0x20] sm:$0xff] %v4_v0  ;;  %24 = vst [vmem:[%s65_s1 + $0x28] sm:$0xff] %v4_v0 }
   0x5   :  { %25 = vst [vmem:[%s65_s1 + $0x30] sm:$0xff] %v4_v0  ;;  %26 = vst [vmem:[%s65_s1 + $0x38] sm:$0xff] %v4_v0 }

// kernel: tile.19
= control target key start
LH: loop header
LB: loop body
LE: loop exit
PB: predicated region body
PF: predicated region fallthrough
CT: control target
= control target key end

     0   :  { %s515_s10 = smov 126   ;;  %s516_s11 = smov 122   ;;  %vm3_vm0 = vcmask 15360   ;;  %vm9_vm1 = vcmask 1048560   ;;  %vm21_vm2 = vcmask 1015760   ;;  %vm15_vm3 = vcmask 1032160   ;;  %s783_s0 = inlined_call_operand.vmem [shape: f32[64,2], index: 0, kind: input, shape index: {}]   ;;  %s784_s1 = inlined_call_operand.vmem [shape: f32[1,128], index: 1, kind: output, shape index: {}]  }
   0x1   :  { %v389_v0 = vld [vmem:[%s783_s0 + $0x3f] sm:$0x1]   ;;  %v391_v1 = vld [vmem:[%s783_s0 + $0x3d] sm:$0x1]   ;;  %v390_v2 = vld [vmem:[%s783_s0 + $0x3e] sm:$0x1]  }
   0x2   :  { %7 = vrot.lane.b32.xlu0 %v389_v0, %s515_s10  ;;  %19 = vrot.lane.b32.xlu1 %v391_v1, %s516_s11  ;;  %v392_v3 = vld [vmem:[%s783_s0 + $0x3c] sm:$0x1]   ;;  %s517_s16 = smov 124   ;;  %s518_s17 = smov 120   ;;  %v393_v4 = vld [vmem:[%s783_s0 + $0x3b] sm:$0x1]  }
   0x3   :  { %v394_v5 = vld [vmem:[%s783_s0 + $0x3a] sm:$0x1]   ;;  %s519_s22 = smov 118   ;;  %s520_s23 = smov 116   ;;  %v395_v6 = vld [vmem:[%s783_s0 + $0x39] sm:$0x1]  }
   0x4   :  { %v396_v7 = vld [vmem:[%s783_s0 + $0x38] sm:$0x1]   ;;  %s521_s28 = smov 114   ;;  %s522_s29 = smov 112   ;;  %v397_v8 = vld [vmem:[%s783_s0 + $0x37] sm:$0x1]  }
   0x5   :  { %v398_v9 = vld [vmem:[%s783_s0 + $0x36] sm:$0x1]   ;;  %s523_s5 = smov 110   ;;  %s524_s6 = smov 108   ;;  %v399_v10 = vld [vmem:[%s783_s0 + $0x35] sm:$0x1]  }
   0x6   :  { %13 = vrot.lane.b32.xlu0 %v390_v2, %s517_s16  ;;  %25 = vrot.lane.b32.xlu1 %v392_v3, %s518_s17  ;;  %v400_v11 = vld [vmem:[%s783_s0 + $0x34] sm:$0x1]   ;;  %s525_s11 = smov 106   ;;  %s526_s12 = smov 104   ;;  %v401_v12 = vld [vmem:[%s783_s0 + $0x33] sm:$0x1]  }
   0x7   :  { %v402_v13 = vld [vmem:[%s783_s0 + $0x32] sm:$0x1]   ;;  %s527_s17 = smov 102   ;;  %s528_s18 = smov 100   ;;  %v403_v14 = vld [vmem:[%s783_s0 + $0x31] sm:$0x1]  }
   0x8   :  { %v404_v15 = vld [vmem:[%s783_s0 + $0x30] sm:$0x1]   ;;  %v2_v16 = vld [vmem:[%s783_s0] sm:$0x1]   ;;  %s529_s25 = smov 98   ;;  %s530_s26 = smov 96  }
   0x9   :  { %v405_v17 = vld [vmem:[%s783_s0 + $0x2f] sm:$0x1]   ;;  %v406_v18 = vld [vmem:[%s783_s0 + $0x2e] sm:$0x1]   ;;  %4 = vst.msk [vmem:[#allocation0] sm:$0x1] %vm3_vm0, %v2_v16  }
   0xa   :  { %31 = vrot.lane.b32.xlu0 %v393_v4, %s519_s22  ;;  %37 = vrot.lane.b32.xlu1 %v394_v5, %s520_s23  ;;  %s531_s2 = smov 94   ;;  %s532_s3 = smov 92   ;;  %v407_v19 = vld [vmem:[%s783_s0 + $0x2d] sm:$0x1]   ;;  %v408_v20 = vld [vmem:[%s783_s0 + $0x2c] sm:$0x1]  }
   0xb   :  { %s533_s8 = smov 90   ;;  %s534_s9 = smov 88   ;;  %v409_v21 = vld [vmem:[%s783_s0 + $0x2b] sm:$0x1]   ;;  %v410_v22 = vld [vmem:[%s783_s0 + $0x2a] sm:$0x1]  }
   0xc   :  { %s535_s14 = smov 86   ;;  %s536_s15 = smov 84   ;;  %v411_v23 = vld [vmem:[%s783_s0 + $0x29] sm:$0x1]   ;;  %v412_v24 = vld [vmem:[%s783_s0 + $0x28] sm:$0x1]  }
   0xd   :  { %s537_s20 = smov 82   ;;  %s538_s21 = smov 80   ;;  %v413_v25 = vld [vmem:[%s783_s0 + $0x27] sm:$0x1]   ;;  %v414_v26 = vld [vmem:[%s783_s0 + $0x26] sm:$0x1]  }
   0xe   :  { %43 = vrot.lane.b32.xlu0 %v395_v6, %s521_s28  ;;  %49 = vrot.lane.b32.xlu1 %v396_v7, %s522_s29  ;;  %s540_s27 = smov 76   ;;  %v415_v27 = vld [vmem:[%s783_s0 + $0x25] sm:$0x1]   ;;  %v416_v28 = vld [vmem:[%s783_s0 + $0x24] sm:$0x1]   ;;  %s542_s4 = smov 72  }
   0xf   :  { %v417_v29 = vld [vmem:[%s783_s0 + $0x23] sm:$0x1]   ;;  %v418_v30 = vld [vmem:[%s783_s0 + $0x22] sm:$0x1]   ;;  %s544_s10 = smov 68   ;;  %s546_s16 = smov 64  }
  0x10   :  { %v419_v31 = vld [vmem:[%s783_s0 + $0x21] sm:$0x1]   ;;  %v420_v32 = vld [vmem:[%s783_s0 + $0x20] sm:$0x1]   ;;  %v421_v33 = vld [vmem:[%s783_s0 + $0x1f] sm:$0x1]  }
  0x11   :  { %v422_v34 = vld [vmem:[%s783_s0 + $0x1e] sm:$0x1]   ;;  %s548_s22 = smov 60   ;;  %v423_v35 = vld [vmem:[%s783_s0 + $0x1d] sm:$0x1]   ;;  %s550_s28 = smov 56  }
  0x12   :  { %55 = vrot.lane.b32.xlu0 %v397_v8, %s523_s5  ;;  %61 = vrot.lane.b32.xlu1 %v398_v9, %s524_s6  ;;  %v424_v36 = vld [vmem:[%s783_s0 + $0x1c] sm:$0x1]   ;;  %v425_v37 = vld [vmem:[%s783_s0 + $0x1b] sm:$0x1]   ;;  %s552_s5 = smov 52   ;;  %s558_s23 = smov 40  }
  0x13   :  { %v426_v38 = vld [vmem:[%s783_s0 + $0x1a] sm:$0x1]   ;;  %v427_v39 = vld [vmem:[%s783_s0 + $0x19] sm:$0x1]   ;;  %v428_v40 = vld [vmem:[%s783_s0 + $0x18] sm:$0x1]  }
  0x14   :  { %v429_v41 = vld [vmem:[%s783_s0 + $0x17] sm:$0x1]   ;;  %v430_v42 = vld [vmem:[%s783_s0 + $0x16] sm:$0x1]   ;;  %v431_v43 = vld [vmem:[%s783_s0 + $0x15] sm:$0x1]  }
  0x15   :  { %v432_v44 = vld [vmem:[%s783_s0 + $0x14] sm:$0x1]   ;;  %v433_v45 = vld [vmem:[%s783_s0 + $0x13] sm:$0x1]   ;;  %v434_v46 = vld [vmem:[%s783_s0 + $0x12] sm:$0x1]  }
  0x16   :  { %67 = vrot.lane.b32.xlu0 %v399_v10, %s525_s11  ;;  %73 = vrot.lane.b32.xlu1 %v400_v11, %s526_s12  ;;  %s554_s11 = smov 48   ;;  %s560_s29 = smov 36   ;;  %v435_v47 = vld [vmem:[%s783_s0 + $0x11] sm:$0x1]   ;;  %v436_v48 = vld [vmem:[%s783_s0 + $0x10] sm:$0x1]  }
  0x17   :  { %s562_s6 = smov 32   ;;  %v437_v49 = vld [vmem:[%s783_s0 + $0xf] sm:$0x1]   ;;  %v438_v50 = vld [vmem:[%s783_s0 + $0xe] sm:$0x1]   ;;  %s564_s12 = smov 28  }
  0x18   :  { %v439_v51 = vld [vmem:[%s783_s0 + $0xd] sm:$0x1]   ;;  %v440_v52 = vld [vmem:[%s783_s0 + $0xc] sm:$0x1]   ;;  %v441_v53 = vld [vmem:[%s783_s0 + $0xb] sm:$0x1]  }
  0x19   :  { %v442_v54 = vld [vmem:[%s783_s0 + $0xa] sm:$0x1]   ;;  %s568_s24 = smov 20   ;;  %v443_v55 = vld [vmem:[%s783_s0 + $0x9] sm:$0x1]   ;;  %s570_s30 = smov 16  }
  0x1a   :  { %79 = vrot.lane.b32.xlu0 %v401_v12, %s527_s17  ;;  %85 = vrot.lane.b32.xlu1 %v402_v13, %s528_s18  ;;  %s556_s17 = smov 44   ;;  %s566_s18 = smov 24   ;;  %v444_v56 = vld [vmem:[%s783_s0 + $0x8] sm:$0x1]   ;;  %v445_v57 = vld [vmem:[%s783_s0 + $0x7] sm:$0x1]  }
  0x1b   :  { %v446_v58 = vld [vmem:[%s783_s0 + $0x6] sm:$0x1]   ;;  %s572_s7 = smov 12   ;;  %v447_v59 = vld [vmem:[%s783_s0 + $0x5] sm:$0x1]   ;;  %s574_s13 = smov 8  }
  0x1c   :  { %v448_v60 = vld [vmem:[%s783_s0 + $0x4] sm:$0x1]   ;;  %v449_v63 = vld [vmem:[%s783_s0 + $0x3] sm:$0x1]   ;;  %v450_v0 = vld [vmem:[%s783_s0 + $0x2] sm:$0x1]  }
  0x1d   :  { %vm27_vm4 = vcmask 999360   ;;  %vm33_vm5 = vcmask 982960   ;;  %s576_s19 = smov 4   ;;  %v451_v3 = vld [vmem:[%s783_s0 + $0x1] sm:$0x1]   ;;  %vm39_vm6 = vcmask 966560  }
  0x1e   :  { %91 = vrot.lane.b32.xlu0 %v403_v14, %s529_s25  ;;  %97 = vrot.lane.b32.xlu1 %v404_v15, %s530_s26  ;;  %s539_s26 = smov 78   ;;  %s577_s0 = smov 2   ;;  %vm45_vm7 = vcmask 950160   ;;  %vm51_vm8 = vcmask 933760   ;;  %vm57_vm9 = vcmask 917360   ;;  %vm63_vm10 = vcmask 900960  }
  0x1f   :  { %vm69_vm11 = vcmask 884560   ;;  %vm75_vm12 = vcmask 868160   ;;  %vm81_vm13 = vcmask 851760   ;;  %vm87_vm14 = vcmask 835360  }
  0x20   :  { %vm93_vm15 = vcmask 818960   ;;  %vm99_vm0 = vcmask 802560  }
  0x22   :  { %103 = vrot.lane.b32.xlu0 %v405_v17, %s531_s2  ;;  %109 = vrot.lane.b32.xlu1 %v406_v18, %s532_s3  ;;  %s541_s3 = smov 74  }
  0x26   :  { %115 = vrot.lane.b32.xlu0 %v407_v19, %s533_s8  ;;  %121 = vrot.lane.b32.xlu1 %v408_v20, %s534_s9  ;;  %s543_s9 = smov 70  }
  0x2a   :  { %127 = vrot.lane.b32.xlu0 %v409_v21, %s535_s14  ;;  %133 = vrot.lane.b32.xlu1 %v410_v22, %s536_s15  ;;  %s545_s15 = smov 66  }
  0x2e   :  { %139 = vrot.lane.b32.xlu0 %v411_v23, %s537_s20  ;;  %145 = vrot.lane.b32.xlu1 %v412_v24, %s538_s21  ;;  %s547_s21 = smov 62  }
  0x32   :  { %151 = vrot.lane.b32.xlu0 %v413_v25, %s539_s26  ;;  %157 = vrot.lane.b32.xlu1 %v414_v26, %s540_s27  ;;  %s549_s27 = smov 58  }
  0x36   :  { %163 = vrot.lane.b32.xlu0 %v415_v27, %s541_s3  ;;  %169 = vrot.lane.b32.xlu1 %v416_v28, %s542_s4  ;;  %s551_s4 = smov 54  }
  0x3a   :  { %175 = vrot.lane.b32.xlu0 %v417_v29, %s543_s9  ;;  %181 = vrot.lane.b32.xlu1 %v418_v30, %s544_s10  ;;  %s553_s10 = smov 50  }
  0x3e   :  { %187 = vrot.lane.b32.xlu0 %v419_v31, %s545_s15  ;;  %193 = vrot.lane.b32.xlu1 %v420_v32, %s546_s16  ;;  %s555_s16 = smov 46  }
  0x42   :  { %199 = vrot.lane.b32.xlu0 %v421_v33, %s547_s21  ;;  %205 = vrot.lane.b32.xlu1 %v422_v34, %s548_s22  ;;  %s557_s22 = smov 42  }
  0x46   :  { %211 = vrot.lane.b32.xlu0 %v423_v35, %s549_s27  ;;  %217 = vrot.lane.b32.xlu1 %v424_v36, %s550_s28  ;;  %s559_s28 = smov 38  }
  0x4a   :  { %223 = vrot.lane.b32.xlu0 %v425_v37, %s551_s4  ;;  %229 = vrot.lane.b32.xlu1 %v426_v38, %s552_s5  ;;  %s561_s5 = smov 34  }
  0x4e   :  { %235 = vrot.lane.b32.xlu0 %v427_v39, %s553_s10  ;;  %241 = vrot.lane.b32.xlu1 %v428_v40, %s554_s11  ;;  %s563_s11 = smov 30  }
  0x52   :  { %247 = vrot.lane.b32.xlu0 %v429_v41, %s555_s16  ;;  %253 = vrot.lane.b32.xlu1 %v430_v42, %s556_s17  ;;  %s565_s17 = smov 26  }
  0x56   :  { %259 = vrot.lane.b32.xlu0 %v431_v43, %s557_s22  ;;  %265 = vrot.lane.b32.xlu1 %v432_v44, %s558_s23  ;;  %s567_s23 = smov 22  }
  0x5a   :  { %271 = vrot.lane.b32.xlu0 %v433_v45, %s559_s28  ;;  %277 = vrot.lane.b32.xlu1 %v434_v46, %s560_s29  ;;  %s569_s29 = smov 18  }
  0x5e   :  { %283 = vrot.lane.b32.xlu0 %v435_v47, %s561_s5  ;;  %289 = vrot.lane.b32.xlu1 %v436_v48, %s562_s6  ;;  %s571_s6 = smov 14  }
  0x62   :  { %295 = vrot.lane.b32.xlu0 %v437_v49, %s563_s11  ;;  %301 = vrot.lane.b32.xlu1 %v438_v50, %s564_s12  ;;  %s573_s12 = smov 10  }
  0x66   :  { %307 = vrot.lane.b32.xlu0 %v439_v51, %s565_s17  ;;  %313 = vrot.lane.b32.xlu1 %v440_v52, %s566_s18  ;;  %s575_s18 = smov 6  }
  0x6a   :  { %319 = vrot.lane.b32.xlu0 %v441_v53, %s567_s23  ;;  %325 = vrot.lane.b32.xlu1 %v442_v54, %s568_s24 }
  0x6e   :  { %331 = vrot.lane.b32.xlu0 %v443_v55, %s569_s29  ;;  %337 = vrot.lane.b32.xlu1 %v444_v56, %s570_s30 }
  0x72   :  { %343 = vrot.lane.b32.xlu0 %v445_v57, %s571_s6  ;;  %349 = vrot.lane.b32.xlu1 %v446_v58, %s572_s7 }
  0x74   :  { %v8_v61 = vpop.permute.xlu0 %7   ;;  %v20_v62 = vpop.permute.xlu1 %19  }
  0x75   :  { %10 = vst.msk [vmem:[#allocation0] sm:$0x1] %vm9_vm1, %v8_v61   ;;  %vm105_vm1 = vcmask 786160  }
  0x76   :  { %355 = vrot.lane.b32.xlu0 %v447_v59, %s573_s12  ;;  %361 = vrot.lane.b32.xlu1 %v448_v60, %s574_s13 }
  0x78   :  { %v14_v1 = vpop.permute.xlu0 %13   ;;  %v26_v2 = vpop.permute.xlu1 %25  }
  0x79   :  { %16 = vst.msk [vmem:[#allocation0] sm:$0x1] %vm15_vm3, %v14_v1   ;;  %vm117_vm3 = vcmask 753360  }
  0x7a   :  { %22 = vst.msk [vmem:[#allocation0] sm:$0x1] %vm21_vm2, %v20_v62   ;;  %367 = vrot.lane.b32.xlu0 %v449_v63, %s575_s18  ;;  %373 = vrot.lane.b32.xlu1 %v450_v0, %s576_s19  ;;  %vm111_vm2 = vcmask 769760  }
  0x7b   :  { %28 = vst.msk [vmem:[#allocation0] sm:$0x1] %vm27_vm4, %v26_v2   ;;  %vm123_vm4 = vcmask 736960  }
  0x7c   :  { %v32_v4 = vpop.permute.xlu0 %31   ;;  %v38_v5 = vpop.permute.xlu1 %37  }
  0x7d   :  { %34 = vst.msk [vmem:[#allocation0] sm:$0x1] %vm33_vm5, %v32_v4   ;;  %vm129_vm5 = vcmask 720560  }
  0x7e   :  { %379 = vrot.lane.b32.xlu0 %v451_v3, %s577_s0  ;;  %40 = vst.msk [vmem:[#allocation0] sm:$0x1] %vm39_vm6, %v38_v5   ;;  %vm135_vm6 = vcmask 704160  }
  0x80   :  { %v44_v6 = vpop.permute.xlu0 %43   ;;  %v50_v7 = vpop.permute.xlu1 %49  }
  0x81   :  { %46 = vst.msk [vmem:[#allocation0] sm:$0x1] %vm45_vm7, %v44_v6   ;;  %vm141_vm7 = vcmask 687760  }
  0x82   :  { %52 = vst.msk [vmem:[#allocation0] sm:$0x1] %vm51_vm8, %v50_v7   ;;  %vm147_vm8 = vcmask 671360  }
  0x84   :  { %v56_v8 = vpop.permute.xlu0 %55   ;;  %v62_v9 = vpop.permute.xlu1 %61  }
  0x85   :  { %58 = vst.msk [vmem:[#allocation0] sm:$0x1] %vm57_vm9, %v56_v8   ;;  %vm153_vm9 = vcmask 654960  }
  0x86   :  { %64 = vst.msk [vmem:[#allocation0] sm:$0x1] %vm63_vm10, %v62_v9   ;;  %vm159_vm10 = vcmask 638560  }
  0x88   :  { %v68_v10 = vpop.permute.xlu0 %67   ;;  %v74_v11 = vpop.permute.xlu1 %73  }
  0x89   :  { %70 = vst.msk [vmem:[#allocation0] sm:$0x1] %vm69_vm11, %v68_v10   ;;  %vm165_vm11 = vcmask 622160  }
  0x8a   :  { %76 = vst.msk [vmem:[#allocation0] sm:$0x1] %vm75_vm12, %v74_v11   ;;  %vm171_vm12 = vcmask 605760  }
  0x8c   :  { %v80_v12 = vpop.permute.xlu0 %79   ;;  %v86_v13 = vpop.permute.xlu1 %85  }
  0x8d   :  { %82 = vst.msk [vmem:[#allocation0] sm:$0x1] %vm81_vm13, %v80_v12   ;;  %vm177_vm13 = vcmask 589360  }
  0x8e   :  { %88 = vst.msk [vmem:[#allocation0] sm:$0x1] %vm87_vm14, %v86_v13   ;;  %vm183_vm14 = vcmask 572960  }
  0x90   :  { %v92_v14 = vpop.permute.xlu0 %91   ;;  %v98_v15 = vpop.permute.xlu1 %97  }
  0x91   :  { %94 = vst.msk [vmem:[#allocation0] sm:$0x1] %vm93_vm15, %v92_v14   ;;  %vm189_vm15 = vcmask 556560  }
  0x92   :  { %100 = vst.msk [vmem:[#allocation0] sm:$0x1] %vm99_vm0, %v98_v15   ;;  %vm195_vm0 = vcmask 540160  }
  0x94   :  { %v104_v16 = vpop.permute.xlu0 %103   ;;  %v110_v17 = vpop.permute.xlu1 %109  }
  0x95   :  { %106 = vst.msk [vmem:[#allocation0] sm:$0x1] %vm105_vm1, %v104_v16   ;;  %vm201_vm1 = vcmask 523760  }
  0x96   :  { %112 = vst.msk [vmem:[#allocation0] sm:$0x1] %vm111_vm2, %v110_v17   ;;  %vm207_vm2 = vcmask 507360  }
  0x98   :  { %v116_v18 = vpop.permute.xlu0 %115   ;;  %v122_v19 = vpop.permute.xlu1 %121  }
  0x99   :  { %118 = vst.msk [vmem:[#allocation0] sm:$0x1] %vm117_vm3, %v116_v18   ;;  %vm213_vm3 = vcmask 490960  }
  0x9a   :  { %124 = vst.msk [vmem:[#allocation0] sm:$0x1] %vm123_vm4, %v122_v19   ;;  %vm219_vm4 = vcmask 474560  }
  0x9c   :  { %v128_v20 = vpop.permute.xlu0 %127   ;;  %v134_v21 = vpop.permute.xlu1 %133  }
  0x9d   :  { %130 = vst.msk [vmem:[#allocation0] sm:$0x1] %vm129_vm5, %v128_v20   ;;  %vm225_vm5 = vcmask 458160  }
  0x9e   :  { %136 = vst.msk [vmem:[#allocation0] sm:$0x1] %vm135_vm6, %v134_v21   ;;  %vm231_vm6 = vcmask 441760  }
  0xa0   :  { %v140_v22 = vpop.permute.xlu0 %139   ;;  %v146_v23 = vpop.permute.xlu1 %145  }
  0xa1   :  { %142 = vst.msk [vmem:[#allocation0] sm:$0x1] %vm141_vm7, %v140_v22   ;;  %vm237_vm7 = vcmask 425360  }
  0xa2   :  { %148 = vst.msk [vmem:[#allocation0] sm:$0x1] %vm147_vm8, %v146_v23   ;;  %vm243_vm8 = vcmask 408960  }
  0xa4   :  { %v152_v24 = vpop.permute.xlu0 %151   ;;  %v158_v25 = vpop.permute.xlu1 %157  }
  0xa5   :  { %154 = vst.msk [vmem:[#allocation0] sm:$0x1] %vm153_vm9, %v152_v24   ;;  %vm249_vm9 = vcmask 392560  }
  0xa6   :  { %160 = vst.msk [vmem:[#allocation0] sm:$0x1] %vm159_vm10, %v158_v25   ;;  %vm255_vm10 = vcmask 376160  }
  0xa8   :  { %v164_v26 = vpop.permute.xlu0 %163   ;;  %v170_v27 = vpop.permute.xlu1 %169  }
  0xa9   :  { %166 = vst.msk [vmem:[#allocation0] sm:$0x1] %vm165_vm11, %v164_v26   ;;  %vm261_vm11 = vcmask 359760  }
  0xaa   :  { %172 = vst.msk [vmem:[#allocation0] sm:$0x1] %vm171_vm12, %v170_v27   ;;  %vm267_vm12 = vcmask 343360  }
  0xac   :  { %v176_v28 = vpop.permute.xlu0 %175   ;;  %v182_v29 = vpop.permute.xlu1 %181  }
  0xad   :  { %178 = vst.msk [vmem:[#allocation0] sm:$0x1] %vm177_vm13, %v176_v28   ;;  %vm273_vm13 = vcmask 326960  }
  0xae   :  { %184 = vst.msk [vmem:[#allocation0] sm:$0x1] %vm183_vm14, %v182_v29   ;;  %vm279_vm14 = vcmask 310560  }
  0xb0   :  { %v188_v30 = vpop.permute.xlu0 %187   ;;  %v194_v31 = vpop.permute.xlu1 %193  }
  0xb1   :  { %190 = vst.msk [vmem:[#allocation0] sm:$0x1] %vm189_vm15, %v188_v30   ;;  %vm285_vm15 = vcmask 294160  }
  0xb2   :  { %196 = vst.msk [vmem:[#allocation0] sm:$0x1] %vm195_vm0, %v194_v31   ;;  %vm291_vm0 = vcmask 277760  }
  0xb4   :  { %v200_v32 = vpop.permute.xlu0 %199   ;;  %v206_v33 = vpop.permute.xlu1 %205  }
  0xb5   :  { %202 = vst.msk [vmem:[#allocation0] sm:$0x1] %vm201_vm1, %v200_v32   ;;  %vm297_vm1 = vcmask 261360  }
  0xb6   :  { %208 = vst.msk [vmem:[#allocation0] sm:$0x1] %vm207_vm2, %v206_v33   ;;  %vm303_vm2 = vcmask 244960  }
  0xb8   :  { %v212_v34 = vpop.permute.xlu0 %211   ;;  %v218_v35 = vpop.permute.xlu1 %217  }
  0xb9   :  { %214 = vst.msk [vmem:[#allocation0] sm:$0x1] %vm213_vm3, %v212_v34   ;;  %vm309_vm3 = vcmask 228560  }
  0xba   :  { %220 = vst.msk [vmem:[#allocation0] sm:$0x1] %vm219_vm4, %v218_v35   ;;  %vm315_vm4 = vcmask 212160  }
  0xbc   :  { %v224_v36 = vpop.permute.xlu0 %223   ;;  %v230_v37 = vpop.permute.xlu1 %229  }
  0xbd   :  { %226 = vst.msk [vmem:[#allocation0] sm:$0x1] %vm225_vm5, %v224_v36   ;;  %vm321_vm5 = vcmask 195760  }
  0xbe   :  { %232 = vst.msk [vmem:[#allocation0] sm:$0x1] %vm231_vm6, %v230_v37   ;;  %vm327_vm6 = vcmask 179360  }
  0xc0   :  { %v236_v38 = vpop.permute.xlu0 %235   ;;  %v242_v39 = vpop.permute.xlu1 %241  }
  0xc1   :  { %238 = vst.msk [vmem:[#allocation0] sm:$0x1] %vm237_vm7, %v236_v38   ;;  %vm333_vm7 = vcmask 162960  }
  0xc2   :  { %244 = vst.msk [vmem:[#allocation0] sm:$0x1] %vm243_vm8, %v242_v39   ;;  %vm339_vm8 = vcmask 146560  }
  0xc4   :  { %v248_v40 = vpop.permute.xlu0 %247   ;;  %v254_v41 = vpop.permute.xlu1 %253  }
  0xc5   :  { %250 = vst.msk [vmem:[#allocation0] sm:$0x1] %vm249_vm9, %v248_v40   ;;  %vm345_vm9 = vcmask 130160  }
  0xc6   :  { %256 = vst.msk [vmem:[#allocation0] sm:$0x1] %vm255_vm10, %v254_v41   ;;  %vm351_vm10 = vcmask 113760  }
  0xc8   :  { %v260_v42 = vpop.permute.xlu0 %259   ;;  %v266_v43 = vpop.permute.xlu1 %265  }
  0xc9   :  { %262 = vst.msk [vmem:[#allocation0] sm:$0x1] %vm261_vm11, %v260_v42   ;;  %vm357_vm11 = vcmask 97360  }
  0xca   :  { %268 = vst.msk [vmem:[#allocation0] sm:$0x1] %vm267_vm12, %v266_v43   ;;  %vm363_vm12 = vcmask 80960  }
  0xcc   :  { %v272_v44 = vpop.permute.xlu0 %271   ;;  %v278_v45 = vpop.permute.xlu1 %277  }
  0xcd   :  { %274 = vst.msk [vmem:[#allocation0] sm:$0x1] %vm273_vm13, %v272_v44   ;;  %vm369_vm13 = vcmask 64560  }
  0xce   :  { %280 = vst.msk [vmem:[#allocation0] sm:$0x1] %vm279_vm14, %v278_v45   ;;  %vm375_vm14 = vcmask 48160  }
  0xd0   :  { %v284_v46 = vpop.permute.xlu0 %283   ;;  %v290_v47 = vpop.permute.xlu1 %289  }
  0xd1   :  { %286 = vst.msk [vmem:[#allocation0] sm:$0x1] %vm285_vm15, %v284_v46   ;;  %vm381_vm15 = vcmask 31760  }
  0xd2   :  { %292 = vst.msk [vmem:[#allocation0] sm:$0x1] %vm291_vm0, %v290_v47  }
  0xd4   :  { %v296_v48 = vpop.permute.xlu0 %295   ;;  %v302_v49 = vpop.permute.xlu1 %301  }
  0xd5   :  { %298 = vst.msk [vmem:[#allocation0] sm:$0x1] %vm297_vm1, %v296_v48  }
  0xd6   :  { %304 = vst.msk [vmem:[#allocation0] sm:$0x1] %vm303_vm2, %v302_v49  }
  0xd8   :  { %v308_v50 = vpop.permute.xlu0 %307   ;;  %v314_v51 = vpop.permute.xlu1 %313  }
  0xd9   :  { %310 = vst.msk [vmem:[#allocation0] sm:$0x1] %vm309_vm3, %v308_v50  }
  0xda   :  { %316 = vst.msk [vmem:[#allocation0] sm:$0x1] %vm315_vm4, %v314_v51  }
  0xdc   :  { %v320_v52 = vpop.permute.xlu0 %319   ;;  %v326_v53 = vpop.permute.xlu1 %325  }
  0xdd   :  { %322 = vst.msk [vmem:[#allocation0] sm:$0x1] %vm321_vm5, %v320_v52  }
  0xde   :  { %328 = vst.msk [vmem:[#allocation0] sm:$0x1] %vm327_vm6, %v326_v53  }
  0xe0   :  { %v332_v54 = vpop.permute.xlu0 %331   ;;  %v338_v55 = vpop.permute.xlu1 %337  }
  0xe1   :  { %334 = vst.msk [vmem:[#allocation0] sm:$0x1] %vm333_vm7, %v332_v54  }
  0xe2   :  { %340 = vst.msk [vmem:[#allocation0] sm:$0x1] %vm339_vm8, %v338_v55  }
  0xe4   :  { %v344_v56 = vpop.permute.xlu0 %343   ;;  %v350_v57 = vpop.permute.xlu1 %349  }
  0xe5   :  { %346 = vst.msk [vmem:[#allocation0] sm:$0x1] %vm345_vm9, %v344_v56  }
  0xe6   :  { %352 = vst.msk [vmem:[#allocation0] sm:$0x1] %vm351_vm10, %v350_v57  }
  0xe8   :  { %v356_v58 = vpop.permute.xlu0 %355   ;;  %v362_v59 = vpop.permute.xlu1 %361  }
  0xe9   :  { %358 = vst.msk [vmem:[#allocation0] sm:$0x1] %vm357_vm11, %v356_v58  }
  0xea   :  { %364 = vst.msk [vmem:[#allocation0] sm:$0x1] %vm363_vm12, %v362_v59  }
  0xec   :  { %v368_v60 = vpop.permute.xlu0 %367   ;;  %v374_v61 = vpop.permute.xlu1 %373  }
  0xed   :  { %370 = vst.msk [vmem:[#allocation0] sm:$0x1] %vm369_vm13, %v368_v60  }
  0xee   :  { %376 = vst.msk [vmem:[#allocation0] sm:$0x1] %vm375_vm14, %v374_v61  }
  0xf0   :  { %v380_v62 = vpop.permute.xlu0 %379  }
  0xf1   :  { %382 = vst.msk [vmem:[#allocation0] sm:$0x1] %vm381_vm15, %v380_v62  }
  0xf8   :  { %v386_v63 = vld [vmem:[#allocation0] sm:$0x1] }
  0xf9   :  { %388 = vst [vmem:[%s784_s1] sm:$0x1] %v386_v63 }

// kernel: _sample_net_forward_pallas.1
= control target key start
LH: loop header
LB: loop body
LE: loop exit
PB: predicated region body
PF: predicated region fallthrough
CT: control target
= control target key end

     0   :  { %s10610_s18 = smov 0   ;;  %s15310_s0 = inlined_call_operand.vmem [shape: f32[2048,640], index: 0, kind: input, shape index: {}]   ;;  %s15311_s1 = inlined_call_operand.vmem [shape: f32[640,320], index: 1, kind: input, shape index: {}]   ;;  %s15312_s2 = inlined_call_operand.vmem [shape: f32[1,320], index: 2, kind: input, shape index: {}]   ;;  %s15313_s3 = inlined_call_operand.vmem [shape: f32[320,128], index: 3, kind: input, shape index: {}]   ;;  %s15314_s4 = inlined_call_operand.vmem [shape: f32[1,128], index: 4, kind: input, shape index: {}]   ;;  %s15315_s5 = inlined_call_operand.vmem [shape: f32[2048,128], index: 5, kind: output, shape index: {}]  }
   0x1 LB: > { %s8152_s19 = sadd.s32 4294967295, %s10576_s18   ;;  %p8156_p0 = scmp.ge.s32.totalorder %s10576_s18, 1  ;;  %s10576_s18 = sphi %s10610_s18, %s15_s18  }
   0x2   : > { %p189_p1 = scmp.lt.s32.totalorder %s10576_s18, 3 }
   0x4   : > { %p190_p2 = pnand %p8156_p0, %p189_p1 }
   0x6   : > { %193 = sbr.rel (%p190_p2) target bundleno = 2085 (0x825), region = 40 }
   0xd   : > { %v872_v0 = vld [vmem:[%s15311_s1 + $0x8] sm:$0xff]  ;;  %v875_v1 = vld [vmem:[%s15311_s1 + $0x20] sm:$0xff]  ;;  %v873_v2 = vld [vmem:[%s15311_s1 + $0x10] sm:$0xff]  ;;  %v15316_v3 = vmov 0.0|0.0   ;;  %s8157_s13 = sshll.u32 %s8152_s19, 7  ;;  %vm6173_vm0 = vcmask 523264  }
   0xe   : > { %9164 = vmatprep.subr.bf16.mxu1 %v15316_v3  ;;  %v9004_v4 = vpack.c.bf16 %v875_v1, %v872_v0  ;;  %v876_v5 = vld [vmem:[%s15311_s1 + $0x28] sm:$0xff]  ;;  %v871_v6 = vld [vmem:[%s15311_s1] sm:$0xff]  ;;  %v874_v7 = vld [vmem:[%s15311_s1 + $0x18] sm:$0xff]  ;;  %p219_p3 = scmp.lt.s32.totalorder %s8157_s13, 255 }
   0xf   : > { %v9165_v8 = vpack.c.bf16 %v876_v5, %v873_v2  ;;  %v9006_v9 = vpack.c.bf16 %v874_v7, %v871_v6  ;;  %v878_v10 = vld [vmem:[%s15311_s1 + $0x38] sm:$0xff]  ;;  %v881_v11 = vld [vmem:[%s15311_s1 + $0x50] sm:$0xff]  ;;  %v879_v12 = vld [vmem:[%s15311_s1 + $0x40] sm:$0xff] }
  0x10   : > { %9005 = vmatprep.subr.bf16.mxu0 %v9004_v4  ;;  %v9008_v13 = vpack.c.bf16 %v881_v11, %v878_v10  ;;  %v882_v14 = vld [vmem:[%s15311_s1 + $0x58] sm:$0xff]  ;;  %v877_v15 = vld [vmem:[%s15311_s1 + $0x30] sm:$0xff]  ;;  %v880_v16 = vld [vmem:[%s15311_s1 + $0x48] sm:$0xff]  ;;  %s15832_s13 = smov (!%p219_p3, %s8157_s13), 255 }
  0x11   : > { %9166 = vmatpush1.bf16.msra.mxu1 %v9165_v8  ;;  %9007 = vmatpush1.bf16.msra.mxu0 %v9006_v9  ;;  %v9168_v17 = vpack.c.bf16 %v882_v14, %v879_v12  ;;  %v9010_v18 = vpack.c.bf16 %v880_v16, %v877_v15  ;;  %v884_v19 = vld [vmem:[%s15311_s1 + $0x68] sm:$0xff]  ;;  %v887_v20 = vld [vmem:[%s15311_s1 + $0x80] sm:$0xff]  ;;  %v885_v21 = vld [vmem:[%s15311_s1 + $0x70] sm:$0xff]  ;;  %s10508_s24 = smul.u32 40, %s15832_s13  ;;  %s8160_s7 = sshll.u32 %s15832_s13, 3 }
  0x12   : > { %9167 = vmatprep.subr.bf16.mxu1 %v15316_v3  ;;  %9009 = vmatprep.subr.bf16.mxu0 %v9008_v13  ;;  %v9012_v22 = vpack.c.bf16 %v887_v20, %v884_v19  ;;  %v888_v23 = vld [vmem:[%s15311_s1 + $0x88] sm:$0xff]  ;;  %v883_v24 = vld [vmem:[%s15311_s1 + $0x60] sm:$0xff]  ;;  %v886_v25 = vld [vmem:[%s15311_s1 + $0x78] sm:$0xff]  ;;  %s14759_s9 = scalar_lea.vmem %s15315_s5, %s8160_s7 }
  0x13   : > { %v890_v26 = vld [vmem:[%s15311_s1 + $0x98] sm:$0xff]  ;;  %v893_v27 = vld [vmem:[%s15311_s1 + $0xb0] sm:$0xff]  ;;  %v9171_v28 = vpack.c.bf16 %v888_v23, %v885_v21  ;;  %v9014_v29 = vpack.c.bf16 %v886_v25, %v883_v24  ;;  %v891_v30 = vld [vmem:[%s15311_s1 + $0xa0] sm:$0xff]  ;;  %s10797_s15 = scalar_lea.vmem %s15310_s0, %s10508_s24 }
  0x14   : > { %v9016_v31 = vpack.c.bf16 %v893_v27, %v890_v26  ;;  %v894_v32 = vld [vmem:[%s15311_s1 + $0xb8] sm:$0xff]  ;;  %v889_v33 = vld [vmem:[%s15311_s1 + $0x90] sm:$0xff]  ;;  %v892_v34 = vld [vmem:[%s15311_s1 + $0xa8] sm:$0xff] }
  0x15   : > { %9169 = vmatpush1.bf16.msra.mxu1 %v9168_v17  ;;  %9011 = vmatpush1.bf16.msra.mxu0 %v9010_v18  ;;  %v896_v35 = vld [vmem:[%s15311_s1 + $0xc8] sm:$0xff]  ;;  %v899_v36 = vld [vmem:[%s15311_s1 + $0xe0] sm:$0xff]  ;;  %v9174_v37 = vpack.c.bf16 %v894_v32, %v891_v30  ;;  %v9018_v38 = vpack.c.bf16 %v892_v34, %v889_v33  ;;  %v897_v39 = vld [vmem:[%s15311_s1 + $0xd0] sm:$0xff] }
  0x16   : > { %9170 = vmatprep.subr.bf16.mxu1 %v15316_v3  ;;  %9013 = vmatprep.subr.bf16.mxu0 %v9012_v22  ;;  %v9020_v40 = vpack.c.bf16 %v899_v36, %v896_v35  ;;  %v900_v41 = vld [vmem:[%s15311_s1 + $0xe8] sm:$0xff]  ;;  %v895_v42 = vld [vmem:[%s15311_s1 + $0xc0] sm:$0xff]  ;;  %v898_v43 = vld [vmem:[%s15311_s1 + $0xd8] sm:$0xff] }
  0x17   : > { %v902_v44 = vld [vmem:[%s15311_s1 + $0xf8] sm:$0xff]  ;;  %v905_v45 = vld [vmem:[%s15311_s1 + $0x110] sm:$0xff]  ;;  %v9177_v46 = vpack.c.bf16 %v900_v41, %v897_v39  ;;  %v9022_v47 = vpack.c.bf16 %v898_v43, %v895_v42  ;;  %v903_v48 = vld [vmem:[%s15311_s1 + $0x100] sm:$0xff] }
  0x18   : > { %v9024_v49 = vpack.c.bf16 %v905_v45, %v902_v44  ;;  %v906_v50 = vld [vmem:[%s15311_s1 + $0x118] sm:$0xff]  ;;  %v901_v51 = vld [vmem:[%s15311_s1 + $0xf0] sm:$0xff]  ;;  %v904_v52 = vld [vmem:[%s15311_s1 + $0x108] sm:$0xff] }
  0x19   : > { %9172 = vmatpush1.bf16.msra.mxu1 %v9171_v28  ;;  %9015 = vmatpush1.bf16.msra.mxu0 %v9014_v29  ;;  %v908_v53 = vld [vmem:[%s15311_s1 + $0x128] sm:$0xff]  ;;  %v911_v54 = vld [vmem:[%s15311_s1 + $0x140] sm:$0xff]  ;;  %v9180_v55 = vpack.c.bf16 %v906_v50, %v903_v48  ;;  %v9026_v56 = vpack.c.bf16 %v904_v52, %v901_v51  ;;  %v909_v57 = vld [vmem:[%s15311_s1 + $0x130] sm:$0xff] }
  0x1a   : > { %9173 = vmatprep.subr.bf16.mxu1 %v15316_v3  ;;  %9017 = vmatprep.subr.bf16.mxu0 %v9016_v31  ;;  %v9028_v58 = vpack.c.bf16 %v911_v54, %v908_v53  ;;  %v912_v59 = vld [vmem:[%s15311_s1 + $0x148] sm:$0xff]  ;;  %v907_v60 = vld [vmem:[%s15311_s1 + $0x120] sm:$0xff]  ;;  %v910_v61 = vld [vmem:[%s15311_s1 + $0x138] sm:$0xff] }
  0x1b   : > { %v914_v62 = vld [vmem:[%s15311_s1 + $0x158] sm:$0xff]  ;;  %v917_v63 = vld [vmem:[%s15311_s1 + $0x170] sm:$0xff]  ;;  %v9183_v0 = vpack.c.bf16 %v912_v59, %v909_v57  ;;  %v9030_v1 = vpack.c.bf16 %v910_v61, %v907_v60  ;;  %v915_v2 = vld [vmem:[%s15311_s1 + $0x160] sm:$0xff] }
  0x1c   : > { %v9032_v4 = vpack.c.bf16 %v917_v63, %v914_v62  ;;  %v918_v5 = vld [vmem:[%s15311_s1 + $0x178] sm:$0xff]  ;;  %v913_v6 = vld [vmem:[%s15311_s1 + $0x150] sm:$0xff]  ;;  %v916_v7 = vld [vmem:[%s15311_s1 + $0x168] sm:$0xff] }
  0x1d   : > { %9175 = vmatpush1.bf16.msra.mxu1 %v9174_v37  ;;  %9019 = vmatpush1.bf16.msra.mxu0 %v9018_v38  ;;  %v920_v8 = vld [vmem:[%s15311_s1 + $0x188] sm:$0xff]  ;;  %v923_v9 = vld [vmem:[%s15311_s1 + $0x1a0] sm:$0xff]  ;;  %v9186_v10 = vpack.c.bf16 %v918_v5, %v915_v2  ;;  %v9034_v11 = vpack.c.bf16 %v916_v7, %v913_v6  ;;  %v921_v12 = vld [vmem:[%s15311_s1 + $0x190] sm:$0xff] }
  0x1e   : > { %9176 = vmatprep.subr.bf16.mxu1 %v15316_v3  ;;  %9021 = vmatprep.subr.bf16.mxu0 %v9020_v40  ;;  %v9036_v13 = vpack.c.bf16 %v923_v9, %v920_v8  ;;  %v924_v14 = vld [vmem:[%s15311_s1 + $0x1a8] sm:$0xff]  ;;  %v919_v15 = vld [vmem:[%s15311_s1 + $0x180] sm:$0xff]  ;;  %v922_v16 = vld [vmem:[%s15311_s1 + $0x198] sm:$0xff] }
  0x1f   : > { %v926_v17 = vld [vmem:[%s15311_s1 + $0x1b8] sm:$0xff]  ;;  %v929_v18 = vld [vmem:[%s15311_s1 + $0x1d0] sm:$0xff]  ;;  %v9189_v19 = vpack.c.bf16 %v924_v14, %v921_v12  ;;  %v9038_v20 = vpack.c.bf16 %v922_v16, %v919_v15  ;;  %v927_v21 = vld [vmem:[%s15311_s1 + $0x1c0] sm:$0xff] }
  0x20   : > { %v232_v22 = vld [vmem:[%s10797_s15 + $0x8] sm:$0xff]  ;;  %v9040_v23 = vpack.c.bf16 %v929_v18, %v926_v17  ;;  %v930_v24 = vld [vmem:[%s15311_s1 + $0x1d8] sm:$0xff]  ;;  %v925_v25 = vld [vmem:[%s15311_s1 + $0x1b0] sm:$0xff] }
  0x21   : > { %9178 = vmatpush1.bf16.msra.mxu1 %v9177_v46  ;;  %9023 = vmatpush1.bf16.msra.mxu0 %v9022_v47  ;;  %v928_v26 = vld [vmem:[%s15311_s1 + $0x1c8] sm:$0xff]  ;;  %v935_v28 = vld [vmem:[%s15311_s1 + $0x200] sm:$0xff]  ;;  %v9192_v29 = vpack.c.bf16 %v930_v24, %v927_v21  ;;  %v933_v31 = vld [vmem:[%s15311_s1 + $0x1f0] sm:$0xff] }
  0x22   : > { %9179 = vmatprep.subr.bf16.mxu1 %v15316_v3  ;;  %9025 = vmatprep.subr.bf16.mxu0 %v9024_v49  ;;  %v932_v27 = vld [vmem:[%s15311_s1 + $0x1e8] sm:$0xff]  ;;  %v9042_v30 = vpack.c.bf16 %v928_v26, %v925_v25  ;;  %v931_v34 = vld [vmem:[%s15311_s1 + $0x1e0] sm:$0xff]  ;;  %v934_v35 = vld [vmem:[%s15311_s1 + $0x1f8] sm:$0xff] }
  0x23   : > { %3691 = vmatprep.mubr.f32.mxu1 %v232_v22  ;;  %1192 = vmatprep.mubr.f32.mxu0 %v232_v22  ;;  %v9044_v32 = vpack.c.bf16 %v935_v28, %v932_v27  ;;  %v936_v33 = vld [vmem:[%s15311_s1 + $0x208] sm:$0xff]  ;;  %v938_v36 = vld [vmem:[%s15311_s1 + $0x218] sm:$0xff]  ;;  %v941_v37 = vld [vmem:[%s15311_s1 + $0x230] sm:$0xff]  ;;  %v9046_v39 = vpack.c.bf16 %v934_v35, %v931_v34 }
  0x24   : > { %v9195_v38 = vpack.c.bf16 %v936_v33, %v933_v31  ;;  %v939_v40 = vld [vmem:[%s15311_s1 + $0x220] sm:$0xff]  ;;  %v9048_v41 = vpack.c.bf16 %v941_v37, %v938_v36  ;;  %v942_v42 = vld [vmem:[%s15311_s1 + $0x238] sm:$0xff]  ;;  %v937_v43 = vld [vmem:[%s15311_s1 + $0x210] sm:$0xff] }
  0x25   : > { %9181 = vmatpush1.bf16.msra.mxu1 %v9180_v55  ;;  %9027 = vmatpush1.bf16.msra.mxu0 %v9026_v56  ;;  %v940_v44 = vld [vmem:[%s15311_s1 + $0x228] sm:$0xff]  ;;  %v947_v46 = vld [vmem:[%s15311_s1 + $0x260] sm:$0xff]  ;;  %v9198_v47 = vpack.c.bf16 %v942_v42, %v939_v40  ;;  %v945_v49 = vld [vmem:[%s15311_s1 + $0x250] sm:$0xff] }
  0x26   : > { %9182 = vmatprep.subr.bf16.mxu1 %v15316_v3  ;;  %9029 = vmatprep.subr.bf16.mxu0 %v9028_v58  ;;  %v944_v45 = vld [vmem:[%s15311_s1 + $0x248] sm:$0xff]  ;;  %v9050_v48 = vpack.c.bf16 %v940_v44, %v937_v43  ;;  %v943_v52 = vld [vmem:[%s15311_s1 + $0x240] sm:$0xff]  ;;  %v946_v53 = vld [vmem:[%s15311_s1 + $0x258] sm:$0xff] }
  0x27   : > { %v9052_v50 = vpack.c.bf16 %v947_v46, %v944_v45  ;;  %v948_v51 = vld [vmem:[%s15311_s1 + $0x268] sm:$0xff]  ;;  %v950_v54 = vld [vmem:[%s15311_s1 + $0x278] sm:$0xff]  ;;  %v953_v55 = vld [vmem:[%s15311_s1 + $0x290] sm:$0xff]  ;;  %v9054_v57 = vpack.c.bf16 %v946_v53, %v943_v52 }
  0x28   : > { %v9201_v56 = vpack.c.bf16 %v948_v51, %v945_v49  ;;  %v951_v58 = vld [vmem:[%s15311_s1 + $0x280] sm:$0xff]  ;;  %v9056_v59 = vpack.c.bf16 %v953_v55, %v950_v54  ;;  %v954_v60 = vld [vmem:[%s15311_s1 + $0x298] sm:$0xff]  ;;  %v949_v61 = vld [vmem:[%s15311_s1 + $0x270] sm:$0xff] }
  0x29   : > { %9184 = vmatpush1.bf16.msra.mxu1 %v9183_v0  ;;  %9031 = vmatpush1.bf16.msra.mxu0 %v9030_v1  ;;  %v952_v62 = vld [vmem:[%s15311_s1 + $0x288] sm:$0xff]  ;;  %v959_v0 = vld [vmem:[%s15311_s1 + $0x2c0] sm:$0xff]  ;;  %v9204_v1 = vpack.c.bf16 %v954_v60, %v951_v58  ;;  %v958_v8 = vld [vmem:[%s15311_s1 + $0x2b8] sm:$0xff] }
  0x2a   : > { %9185 = vmatprep.subr.bf16.mxu1 %v15316_v3  ;;  %9033 = vmatprep.subr.bf16.mxu0 %v9032_v4  ;;  %v956_v63 = vld [vmem:[%s15311_s1 + $0x2a8] sm:$0xff]  ;;  %v9058_v2 = vpack.c.bf16 %v952_v62, %v949_v61  ;;  %v957_v4 = vld [vmem:[%s15311_s1 + $0x2b0] sm:$0xff]  ;;  %v955_v7 = vld [vmem:[%s15311_s1 + $0x2a0] sm:$0xff] }
  0x2b   : > { %v9060_v5 = vpack.c.bf16 %v959_v0, %v956_v63  ;;  %v960_v6 = vld [vmem:[%s15311_s1 + $0x2c8] sm:$0xff]  ;;  %v962_v9 = vld [vmem:[%s15311_s1 + $0x2d8] sm:$0xff]  ;;  %v9062_v12 = vpack.c.bf16 %v958_v8, %v955_v7  ;;  %v961_v16 = vld [vmem:[%s15311_s1 + $0x2d0] sm:$0xff] }
  0x2c   : > { %v966_v15 = vld [vmem:[%s15311_s1 + $0x2f8] sm:$0xff]  ;;  %v964_v17 = vld [vmem:[%s15311_s1 + $0x2e8] sm:$0xff]  ;;  %v969_v22 = vld [vmem:[%s15311_s1 + $0x310] sm:$0xff] }
  0x2d   : > { %9187 = vmatpush1.bf16.msra.mxu1 %v9186_v10  ;;  %9035 = vmatpush1.bf16.msra.mxu0 %v9034_v11  ;;  %v965_v10 = vld [vmem:[%s15311_s1 + $0x2f0] sm:$0xff]  ;;  %v9207_v11 = vpack.c.bf16 %v960_v6, %v957_v4  ;;  %v968_v18 = vld [vmem:[%s15311_s1 + $0x308] sm:$0xff]  ;;  %v9066_v21 = vpack.c.bf16 %v964_v17, %v961_v16  ;;  %v967_v25 = vld [vmem:[%s15311_s1 + $0x300] sm:$0xff] }
  0x2e   : > { %9188 = vmatprep.subr.bf16.mxu1 %v15316_v3  ;;  %9037 = vmatprep.subr.bf16.mxu0 %v9036_v13  ;;  %v963_v13 = vld [vmem:[%s15311_s1 + $0x2e0] sm:$0xff]  ;;  %v9064_v14 = vpack.c.bf16 %v965_v10, %v962_v9  ;;  %v972_v24 = vld [vmem:[%s15311_s1 + $0x328] sm:$0xff]  ;;  %v970_v26 = vld [vmem:[%s15311_s1 + $0x318] sm:$0xff] }
  0x2f   : > { %v974_v27 = vld [vmem:[%s15311_s1 + $0x338] sm:$0xff]  ;;  %v977_v28 = vld [vmem:[%s15311_s1 + $0x350] sm:$0xff]  ;;  %v9070_v31 = vpack.c.bf16 %v970_v26, %v967_v25  ;;  %v975_v33 = vld [vmem:[%s15311_s1 + $0x340] sm:$0xff] }
  0x30   : > { %v9072_v34 = vpack.c.bf16 %v977_v28, %v974_v27  ;;  %v978_v35 = vld [vmem:[%s15311_s1 + $0x358] sm:$0xff]  ;;  %v973_v36 = vld [vmem:[%s15311_s1 + $0x330] sm:$0xff]  ;;  %v976_v37 = vld [vmem:[%s15311_s1 + $0x348] sm:$0xff] }
  0x31   : > { %9190 = vmatpush1.bf16.msra.mxu1 %v9189_v19  ;;  %9039 = vmatpush1.bf16.msra.mxu0 %v9038_v20  ;;  %v971_v19 = vld [vmem:[%s15311_s1 + $0x320] sm:$0xff]  ;;  %v9210_v20 = vpack.c.bf16 %v966_v15, %v963_v13  ;;  %v236_v40 = vld [vmem:[%s10797_s15 + $0x28] sm:$0xff]  ;;  %v9216_v42 = vpack.c.bf16 %v978_v35, %v975_v33  ;;  %v9074_v43 = vpack.c.bf16 %v976_v37, %v973_v36  ;;  %v981_v44 = vld [vmem:[%s15311_s1 + $0x370] sm:$0xff] }
  0x32   : > { %9191 = vmatprep.subr.bf16.mxu1 %v15316_v3  ;;  %9041 = vmatprep.subr.bf16.mxu0 %v9040_v23  ;;  %v9068_v23 = vpack.c.bf16 %v971_v19, %v968_v18  ;;  %v984_v46 = vld [vmem:[%s15311_s1 + $0x388] sm:$0xff]  ;;  %v986_v49 = vld [vmem:[%s15311_s1 + $0x398] sm:$0xff]  ;;  %v241_v51 = vld [vmem:[%s10797_s15 + $0x50] sm:$0xff] }
  0x33   : > { %v247_v52 = vld [vmem:[%s10797_s15 + $0x80] sm:$0xff]  ;;  %v9219_v53 = vpack.c.bf16 %v984_v46, %v981_v44  ;;  %v985_v58 = vld [vmem:[%s15311_s1 + $0x390] sm:$0xff]  ;;  %v992_v60 = vld [vmem:[%s15311_s1 + $0x3c8] sm:$0xff] }
  0x34   : > { %v987_v55 = vld [vmem:[%s15311_s1 + $0x3a0] sm:$0xff]  ;;  %v246_v62 = vld [vmem:[%s10797_s15 + $0x78] sm:$0xff]  ;;  %v252_v63 = vld [vmem:[%s10797_s15 + $0xa8] sm:$0xff] }
  0x35   : > { %9193 = vmatpush1.bf16.msra.mxu1 %v9192_v29  ;;  %9043 = vmatpush1.bf16.msra.mxu0 %v9042_v30  ;;  %v231_v29 = vld [vmem:[%s10797_s15] sm:$0xff]  ;;  %v9213_v30 = vpack.c.bf16 %v972_v24, %v969_v22  ;;  %v994_v7 = vld [vmem:[%s15311_s1 + $0x3d8] sm:$0xff]  ;;  %v257_v9 = vld [vmem:[%s10797_s15 + $0xd0] sm:$0xff] }
  0x36   : > { %9194 = vmatprep.subr.bf16.mxu1 %v15316_v3  ;;  %9045 = vmatprep.subr.bf16.mxu0 %v9044_v32  ;;  %v237_v32 = vld [vmem:[%s10797_s15 + $0x30] sm:$0xff]  ;;  %v995_v61 = vld [vmem:[%s15311_s1 + $0x3e0] sm:$0xff]  ;;  %v262_v13 = vld [vmem:[%s10797_s15 + $0xf8] sm:$0xff] }
  0x37   : > { %v9084_v4 = vpack.c.bf16 %v995_v61, %v992_v60  ;;  %v991_v6 = vld [vmem:[%s15311_s1 + $0x3c0] sm:$0xff]  ;;  %v266_v16 = vld [vmem:[%s10797_s15 + $0x118] sm:$0xff]  ;;  %v272_v17 = vld [vmem:[%s10797_s15 + $0x148] sm:$0xff] }
  0x38   : > { %v251_v8 = vld [vmem:[%s10797_s15 + $0xa0] sm:$0xff]  ;;  %v277_v19 = vld [vmem:[%s10797_s15 + $0x170] sm:$0xff]  ;;  %v1002_v25 = vld [vmem:[%s15311_s1 + $0x418] sm:$0xff] }
  0x39   : > { %9196 = vmatpush1.bf16.msra.mxu1 %v9195_v38  ;;  %9047 = vmatpush1.bf16.msra.mxu0 %v9046_v39  ;;  %v980_v38 = vld [vmem:[%s15311_s1 + $0x368] sm:$0xff]  ;;  %v983_v39 = vld [vmem:[%s15311_s1 + $0x380] sm:$0xff]  ;;  %v1001_v22 = vld [vmem:[%s15311_s1 + $0x410] sm:$0xff] }
  0x3a   : > { %9197 = vmatprep.subr.bf16.mxu1 %v15316_v3  ;;  %9049 = vmatprep.subr.bf16.mxu0 %v9048_v41  ;;  %v242_v41 = vld [vmem:[%s10797_s15 + $0x58] sm:$0xff]  ;;  %v9076_v45 = vpack.c.bf16 %v983_v39, %v980_v38  ;;  %v267_v15 = vld [vmem:[%s10797_s15 + $0x120] sm:$0xff]  ;;  %v997_v26 = vld [vmem:[%s15311_s1 + $0x3f0] sm:$0xff] }
  0x3b   : > { %v271_v18 = vld [vmem:[%s10797_s15 + $0x140] sm:$0xff]  ;;  %v1000_v27 = vld [vmem:[%s15311_s1 + $0x408] sm:$0xff]  ;;  %v282_v28 = vld [vmem:[%s10797_s15 + $0x198] sm:$0xff] }
  0x3c   : > { %v286_v33 = vld [vmem:[%s10797_s15 + $0x1b8] sm:$0xff]  ;;  %v291_v35 = vld [vmem:[%s10797_s15 + $0x1e0] sm:$0xff]  ;;  %v297_v36 = vld [vmem:[%s10797_s15 + $0x210] sm:$0xff] }
  0x3d   : > { %9199 = vmatpush1.bf16.msra.mxu1 %v9198_v47  ;;  %9051 = vmatpush1.bf16.msra.mxu0 %v9050_v48  ;;  %v979_v47 = vld [vmem:[%s15311_s1 + $0x360] sm:$0xff]  ;;  %v982_v48 = vld [vmem:[%s15311_s1 + $0x378] sm:$0xff]  ;;  %v296_v37 = vld [vmem:[%s10797_s15 + $0x208] sm:$0xff] }
  0x3e   : > { %9200 = vmatprep.subr.bf16.mxu1 %v15316_v3  ;;  %9053 = vmatprep.subr.bf16.mxu0 %v9052_v50  ;;  %v989_v50 = vld [vmem:[%s15311_s1 + $0x3b0] sm:$0xff]  ;;  %v9078_v54 = vpack.c.bf16 %v982_v48, %v979_v47  ;;  %v302_v38 = vld [vmem:[%s10797_s15 + $0x238] sm:$0xff]  ;;  %v1004_v46 = vld [vmem:[%s15311_s1 + $0x428] sm:$0xff] }
  0x3f   : > { %v301_v39 = vld [vmem:[%s10797_s15 + $0x230] sm:$0xff]  ;;  %v1007_v47 = vld [vmem:[%s15311_s1 + $0x440] sm:$0xff] }
  0x40   : > { %v317_v44 = vld [vmem:[%s10797_s15 + $0x2b0] sm:$0xff]  ;;  %v331_v60 = vld [vmem:[%s10797_s15 + $0x320] sm:$0xff] }
  0x41   : > { %9202 = vmatpush1.bf16.msra.mxu1 %v9201_v56  ;;  %9055 = vmatpush1.bf16.msra.mxu0 %v9054_v57  ;;  %v9080_v56 = vpack.c.bf16 %v989_v50, %v986_v49  ;;  %v990_v57 = vld [vmem:[%s15311_s1 + $0x3b8] sm:$0xff]  ;;  %v1005_v48 = vld [vmem:[%s15311_s1 + $0x430] sm:$0xff]  ;;  %v9092_v49 = vpack.c.bf16 %v1007_v47, %v1004_v46  ;;  %v1008_v50 = vld [vmem:[%s15311_s1 + $0x448] sm:$0xff] }
  0x42   : > { %9203 = vmatprep.subr.bf16.mxu1 %v15316_v3  ;;  %9057 = vmatprep.subr.bf16.mxu0 %v9056_v59  ;;  %v988_v59 = vld [vmem:[%s15311_s1 + $0x3a8] sm:$0xff]  ;;  %v9222_v0 = vpack.c.bf16 %v990_v57, %v987_v55  ;;  %v327_v57 = vld [vmem:[%s10797_s15 + $0x300] sm:$0xff]  ;;  %v337_v61 = vld [vmem:[%s10797_s15 + $0x350] sm:$0xff] }
  0x43   : > { %v412_v46 = vld [vmem:[%s10797_s15 + $0x5a8] sm:$0xff]  ;;  %v411_v47 = vld [vmem:[%s10797_s15 + $0x5a0] sm:$0xff] }
  0x45   : > { %9205 = vmatpush1.bf16.msra.mxu1 %v9204_v1  ;;  %9059 = vmatpush1.bf16.msra.mxu0 %v9058_v2  ;;  %v9082_v1 = vpack.c.bf16 %v988_v59, %v985_v58  ;;  %v993_v2 = vld [vmem:[%s15311_s1 + $0x3d0] sm:$0xff]  ;;  %v326_v58 = vld [vmem:[%s10797_s15 + $0x2f8] sm:$0xff]  ;;  %v332_v59 = vld [vmem:[%s10797_s15 + $0x328] sm:$0xff] }
  0x46   : > { %9206 = vmatprep.subr.bf16.mxu1 %v15316_v3  ;;  %9061 = vmatprep.subr.bf16.mxu0 %v9060_v5  ;;  %v996_v5 = vld [vmem:[%s15311_s1 + $0x3e8] sm:$0xff] }
  0x47   : > { %v9225_v10 = vpack.c.bf16 %v996_v5, %v993_v2  ;;  %v346_v2 = vld [vmem:[%s10797_s15 + $0x398] sm:$0xff]  ;;  %v351_v5 = vld [vmem:[%s10797_s15 + $0x3c0] sm:$0xff] }
  0x49   : > { %9208 = vmatpush1.bf16.msra.mxu1 %v9207_v11  ;;  %9063 = vmatpush1.bf16.msra.mxu0 %v9062_v12  ;;  %v9086_v11 = vpack.c.bf16 %v994_v7, %v991_v6  ;;  %v256_v12 = vld [vmem:[%s10797_s15 + $0xc8] sm:$0xff]  ;;  %v357_v6 = vld [vmem:[%s10797_s15 + $0x3f0] sm:$0xff] }
  0x4a   : > { %9209 = vmatprep.subr.bf16.mxu1 %v15316_v3  ;;  %9065 = vmatprep.subr.bf16.mxu0 %v9064_v14  ;;  %v261_v14 = vld [vmem:[%s10797_s15 + $0xf0] sm:$0xff]  ;;  %v356_v7 = vld [vmem:[%s10797_s15 + $0x3e8] sm:$0xff] }
  0x4d   : > { %9211 = vmatpush1.bf16.msra.mxu1 %v9210_v20  ;;  %9067 = vmatpush1.bf16.msra.mxu0 %v9066_v21  ;;  %v276_v20 = vld [vmem:[%s10797_s15 + $0x168] sm:$0xff]  ;;  %v998_v21 = vld [vmem:[%s15311_s1 + $0x3f8] sm:$0xff] }
  0x4e   : > { %9212 = vmatprep.subr.bf16.mxu1 %v15316_v3  ;;  %9069 = vmatprep.subr.bf16.mxu0 %v9068_v23  ;;  %v999_v23 = vld [vmem:[%s15311_s1 + $0x400] sm:$0xff]  ;;  %v9088_v24 = vpack.c.bf16 %v1001_v22, %v998_v21  ;;  %v372_v21 = vld [vmem:[%s10797_s15 + $0x468] sm:$0xff] }
  0x4f   : > { %v371_v22 = vld [vmem:[%s10797_s15 + $0x460] sm:$0xff] }
  0x50   : > { %3692 = vmatmul.mubr.f32.vlgmr.msra.gmra.mrb[0].mxu1 %v231_v29  ;;  %1193 = vmatmul.mubr.f32.vlgmr.msra.gmra.mrb[0].mxu0 %v231_v29  ;;  %v9228_v29 = vpack.c.bf16 %v1002_v25, %v999_v23  ;;  %v377_v23 = vld [vmem:[%s10797_s15 + $0x490] sm:$0xff]  ;;  %v382_v25 = vld [vmem:[%s10797_s15 + $0x4b8] sm:$0xff] }
  0x51   : > { %9214 = vmatpush1.bf16.msra.mxu1 %v9213_v30  ;;  %9071 = vmatpush1.bf16.msra.mxu0 %v9070_v31  ;;  %v9090_v30 = vpack.c.bf16 %v1000_v27, %v997_v26  ;;  %v281_v31 = vld [vmem:[%s10797_s15 + $0x190] sm:$0xff]  ;;  %v387_v27 = vld [vmem:[%s10797_s15 + $0x4e0] sm:$0xff] }
  0x52   : > { %3696 = vmatprep.mubr.f32.mxu1 %v237_v32  ;;  %1198 = vmatprep.mubr.f32.mxu0 %v237_v32  ;;  %v287_v32 = vld [vmem:[%s10797_s15 + $0x1c0] sm:$0xff]  ;;  %v381_v26 = vld [vmem:[%s10797_s15 + $0x4b0] sm:$0xff] }
  0x53   : > { %9215 = vmatprep.subr.bf16.mxu1 %v15316_v3  ;;  %9073 = vmatprep.subr.bf16.mxu0 %v9072_v34  ;;  %v292_v34 = vld [vmem:[%s10797_s15 + $0x1e8] sm:$0xff] }
  0x54   : > { %3697 = vmatmul.mubr.f32.gmra.mrb[2].mxu1 %v236_v40  ;;  %1199 = vmatmul.mubr.f32.gmra.mrb[2].mxu0 %v236_v40  ;;  %v307_v40 = vld [vmem:[%s10797_s15 + $0x260] sm:$0xff] }
  0x55   : > { %3701 = vmatprep.mubr.f32.mxu1 %v242_v41  ;;  %1204 = vmatprep.mubr.f32.mxu0 %v242_v41  ;;  %v306_v41 = vld [vmem:[%s10797_s15 + $0x258] sm:$0xff] }
  0x56   : > { %9217 = vmatpush1.bf16.msra.mxu1 %v9216_v42  ;;  %9075 = vmatpush1.bf16.msra.mxu0 %v9074_v43  ;;  %v312_v42 = vld [vmem:[%s10797_s15 + $0x288] sm:$0xff]  ;;  %v311_v43 = vld [vmem:[%s10797_s15 + $0x280] sm:$0xff] }
  0x57   : > { %9218 = vmatprep.subr.bf16.mxu1 %v15316_v3  ;;  %9077 = vmatprep.subr.bf16.mxu0 %v9076_v45  ;;  %v316_v45 = vld [vmem:[%s10797_s15 + $0x2a8] sm:$0xff] }
  0x58   : > { %3702 = vmatmul.mubr.f32.gmra.mrb[4].mxu1 %v241_v51  ;;  %1205 = vmatmul.mubr.f32.gmra.mrb[4].mxu0 %v241_v51  ;;  %v1003_v51 = vld [vmem:[%s15311_s1 + $0x420] sm:$0xff] }
  0x59   : > { %3706 = vmatprep.mubr.f32.mxu1 %v247_v52  ;;  %1210 = vmatprep.mubr.f32.mxu0 %v247_v52  ;;  %v1006_v52 = vld [vmem:[%s15311_s1 + $0x438] sm:$0xff] }
  0x5a   : > { %9220 = vmatpush1.bf16.msra.mxu1 %v9219_v53  ;;  %9079 = vmatpush1.bf16.msra.mxu0 %v9078_v54  ;;  %v322_v53 = vld [vmem:[%s10797_s15 + $0x2d8] sm:$0xff]  ;;  %v9231_v54 = vpack.c.bf16 %v1008_v50, %v1005_v48  ;;  %v9094_v55 = vpack.c.bf16 %v1006_v52, %v1003_v51  ;;  %v417_v48 = vld [vmem:[%s10797_s15 + $0x5d0] sm:$0xff]  ;;  %v427_v52 = vld [vmem:[%s10797_s15 + $0x620] sm:$0xff] }
  0x5b   : > { %9221 = vmatprep.subr.bf16.mxu1 %v15316_v3  ;;  %9081 = vmatprep.subr.bf16.mxu0 %v9080_v56  ;;  %v321_v56 = vld [vmem:[%s10797_s15 + $0x2d0] sm:$0xff]  ;;  %v422_v50 = vld [vmem:[%s10797_s15 + $0x5f8] sm:$0xff] }
  0x5c   : > { %3707 = vmatmul.mubr.f32.gmra.mrb[6].mxu1 %v246_v62  ;;  %1211 = vmatmul.mubr.f32.gmra.mrb[6].mxu0 %v246_v62  ;;  %v336_v62 = vld [vmem:[%s10797_s15 + $0x348] sm:$0xff]  ;;  %v421_v51 = vld [vmem:[%s10797_s15 + $0x5f0] sm:$0xff] }
  0x5d   : > { %3711 = vmatprep.mubr.f32.mxu1 %v252_v63  ;;  %1216 = vmatprep.mubr.f32.mxu0 %v252_v63  ;;  %v342_v63 = vld [vmem:[%s10797_s15 + $0x378] sm:$0xff] }
  0x5e   : > { %9223 = vmatpush1.bf16.msra.mxu1 %v9222_v0  ;;  %9083 = vmatpush1.bf16.msra.mxu0 %v9082_v1  ;;  %v341_v0 = vld [vmem:[%s10797_s15 + $0x370] sm:$0xff]  ;;  %v347_v1 = vld [vmem:[%s10797_s15 + $0x3a0] sm:$0xff] }
  0x5f   : > { %9224 = vmatprep.subr.bf16.mxu1 %v15316_v3  ;;  %9085 = vmatprep.subr.bf16.mxu0 %v9084_v4  ;;  %v352_v4 = vld [vmem:[%s10797_s15 + $0x3c8] sm:$0xff] }
  0x60   : > { %3712 = vmatmul.mubr.f32.gmra.mrb[8].mxu1 %v251_v8  ;;  %1217 = vmatmul.mubr.f32.gmra.mrb[8].mxu0 %v251_v8  ;;  %v1010_v8 = vld [vmem:[%s15311_s1 + $0x458] sm:$0xff] }
  0x61   : > { %3716 = vmatprep.mubr.f32.mxu1 %v257_v9  ;;  %1222 = vmatprep.mubr.f32.mxu0 %v257_v9  ;;  %v1013_v9 = vld [vmem:[%s15311_s1 + $0x470] sm:$0xff] }
  0x62   : > { %9226 = vmatpush1.bf16.msra.mxu1 %v9225_v10  ;;  %9087 = vmatpush1.bf16.msra.mxu0 %v9086_v11  ;;  %v1011_v10 = vld [vmem:[%s15311_s1 + $0x460] sm:$0xff]  ;;  %v9096_v11 = vpack.c.bf16 %v1013_v9, %v1010_v8  ;;  %v452_v8 = vld [vmem:[%s10797_s15 + $0x6e8] sm:$0xff] }
  0x63   : > { %9227 = vmatprep.subr.bf16.mxu1 %v15316_v3  ;;  %9089 = vmatprep.subr.bf16.mxu0 %v9088_v24  ;;  %v376_v24 = vld [vmem:[%s10797_s15 + $0x488] sm:$0xff]  ;;  %v451_v9 = vld [vmem:[%s10797_s15 + $0x6e0] sm:$0xff] }
  0x64   : > { %3717 = vmatmul.mubr.f32.gmra.mrb[10].mxu1 %v256_v12  ;;  %1223 = vmatmul.mubr.f32.gmra.mrb[10].mxu0 %v256_v12  ;;  %v1014_v12 = vld [vmem:[%s15311_s1 + $0x478] sm:$0xff] }
  0x65   : > { %3721 = vmatprep.mubr.f32.mxu1 %v262_v13  ;;  %1228 = vmatprep.mubr.f32.mxu0 %v262_v13  ;;  %v1009_v13 = vld [vmem:[%s15311_s1 + $0x450] sm:$0xff] }
  0x66   : > { %9229 = vmatpush1.bf16.msra.mxu1 %v9228_v29  ;;  %9091 = vmatpush1.bf16.msra.mxu0 %v9090_v30  ;;  %v392_v29 = vld [vmem:[%s10797_s15 + $0x508] sm:$0xff]  ;;  %v391_v30 = vld [vmem:[%s10797_s15 + $0x500] sm:$0xff] }
  0x67   : > { %9230 = vmatprep.subr.bf16.mxu1 %v15316_v3  ;;  %9093 = vmatprep.subr.bf16.mxu0 %v9092_v49  ;;  %v416_v49 = vld [vmem:[%s10797_s15 + $0x5c8] sm:$0xff] }
  0x68   : > { %3722 = vmatmul.mubr.f32.gmra.mrb[12].mxu1 %v261_v14  ;;  %1229 = vmatmul.mubr.f32.gmra.mrb[12].mxu0 %v261_v14  ;;  %v1012_v14 = vld [vmem:[%s15311_s1 + $0x468] sm:$0xff] }
  0x69   : > { %3726 = vmatprep.mubr.f32.mxu1 %v267_v15  ;;  %1234 = vmatprep.mubr.f32.mxu0 %v267_v15  ;;  %v362_v15 = vld [vmem:[%s10797_s15 + $0x418] sm:$0xff] }
  0x6a   : > { %9232 = vmatpush1.bf16.msra.mxu1 %v9231_v54  ;;  %9095 = vmatpush1.bf16.msra.mxu0 %v9094_v55  ;;  %v432_v54 = vld [vmem:[%s10797_s15 + $0x648] sm:$0xff]  ;;  %v431_v55 = vld [vmem:[%s10797_s15 + $0x640] sm:$0xff] }
  0x6b   : > { %9233 = vmatprep.subr.bf16.mxu1 %v15316_v3  ;;  %9097 = vmatprep.subr.bf16.mxu0 %v9096_v11  ;;  %v456_v11 = vld [vmem:[%s10797_s15 + $0x708] sm:$0xff] }
  0x6c   : > { %3727 = vmatmul.mubr.f32.gmra.mrb[14].mxu1 %v266_v16  ;;  %1235 = vmatmul.mubr.f32.gmra.mrb[14].mxu0 %v266_v16  ;;  %v9234_v16 = vpack.c.bf16 %v1014_v12, %v1011_v10  ;;  %v457_v10 = vld [vmem:[%s10797_s15 + $0x710] sm:$0xff]  ;;  %v462_v12 = vld [vmem:[%s10797_s15 + $0x738] sm:$0xff] }
  0x6d   : > { %3731 = vmatprep.mubr.f32.mxu1 %v272_v17  ;;  %1240 = vmatprep.mubr.f32.mxu0 %v272_v17  ;;  %v9098_v17 = vpack.c.bf16 %v1012_v14, %v1009_v13  ;;  %v461_v13 = vld [vmem:[%s10797_s15 + $0x730] sm:$0xff]  ;;  %v467_v14 = vld [vmem:[%s10797_s15 + $0x760] sm:$0xff] }
  0x6e   : > { %9235 = vmatpush1.bf16.msra.mxu1 %v9234_v16  ;;  %v472_v16 = vld [vmem:[%s10797_s15 + $0x788] sm:$0xff] }
  0x6f   : > { %9099 = vmatpush1.bf16.msra.mxu0 %v9098_v17  ;;  %9236 = vmatprep.subr.bf16.mxu1 %v15316_v3  ;;  %v471_v17 = vld [vmem:[%s10797_s15 + $0x780] sm:$0xff] }
  0x70   : > { %3732 = vmatmul.mubr.f32.gmra.mrb[16].mxu1 %v271_v18  ;;  %1241 = vmatmul.mubr.f32.gmra.mrb[16].mxu0 %v271_v18  ;;  %v361_v18 = vld [vmem:[%s10797_s15 + $0x410] sm:$0xff] }
  0x71   : > { %3736 = vmatprep.mubr.f32.mxu1 %v277_v19  ;;  %1246 = vmatprep.mubr.f32.mxu0 %v277_v19  ;;  %v367_v19 = vld [vmem:[%s10797_s15 + $0x440] sm:$0xff] }
  0x74   : > { %3737 = vmatmul.mubr.f32.gmra.mrb[18].mxu1 %v276_v20  ;;  %1247 = vmatmul.mubr.f32.gmra.mrb[18].mxu0 %v276_v20  ;;  %v366_v20 = vld [vmem:[%s10797_s15 + $0x438] sm:$0xff] }
  0x75   : > { %3741 = vmatprep.mubr.f32.mxu1 %v282_v28  ;;  %1252 = vmatprep.mubr.f32.mxu0 %v282_v28  ;;  %v386_v28 = vld [vmem:[%s10797_s15 + $0x4d8] sm:$0xff] }
  0x78   : > { %3742 = vmatmul.mubr.f32.gmra.mrb[20].mxu1 %v281_v31  ;;  %1253 = vmatmul.mubr.f32.gmra.mrb[20].mxu0 %v281_v31  ;;  %v397_v31 = vld [vmem:[%s10797_s15 + $0x530] sm:$0xff] }
  0x79   : > { %3746 = vmatprep.mubr.f32.mxu1 %v287_v32  ;;  %1258 = vmatprep.mubr.f32.mxu0 %v287_v32  ;;  %v396_v32 = vld [vmem:[%s10797_s15 + $0x528] sm:$0xff] }
  0x7c   : > { %3747 = vmatmul.mubr.f32.gmra.mrb[22].mxu1 %v286_v33  ;;  %1259 = vmatmul.mubr.f32.gmra.mrb[22].mxu0 %v286_v33  ;;  %v1016_v33 = vld [vmem:[%s15311_s1 + $0x488] sm:$0xff] }
  0x7d   : > { %3751 = vmatprep.mubr.f32.mxu1 %v292_v34  ;;  %1264 = vmatprep.mubr.f32.mxu0 %v292_v34  ;;  %v1019_v34 = vld [vmem:[%s15311_s1 + $0x4a0] sm:$0xff] }
  0x80   : > { %3752 = vmatmul.mubr.f32.gmra.mrb[24].mxu1 %v291_v35  ;;  %1265 = vmatmul.mubr.f32.gmra.mrb[24].mxu0 %v291_v35  ;;  %v1017_v35 = vld [vmem:[%s15311_s1 + $0x490] sm:$0xff] }
  0x81   : > { %3756 = vmatprep.mubr.f32.mxu1 %v297_v36  ;;  %1270 = vmatprep.mubr.f32.mxu0 %v297_v36  ;;  %v9100_v36 = vpack.c.bf16 %v1019_v34, %v1016_v33  ;;  %v492_v33 = vld [vmem:[%s10797_s15 + $0x828] sm:$0xff]  ;;  %v491_v34 = vld [vmem:[%s10797_s15 + $0x820] sm:$0xff] }
  0x83   : > { %9101 = vmatprep.subr.bf16.mxu0 %v9100_v36  ;;  %v496_v36 = vld [vmem:[%s10797_s15 + $0x848] sm:$0xff] }
  0x84   : > { %3757 = vmatmul.mubr.f32.gmra.mrb[26].mxu1 %v296_v37  ;;  %1271 = vmatmul.mubr.f32.gmra.mrb[26].mxu0 %v296_v37  ;;  %v1020_v37 = vld [vmem:[%s15311_s1 + $0x4a8] sm:$0xff] }
  0x85   : > { %3761 = vmatprep.mubr.f32.mxu1 %v302_v38  ;;  %1276 = vmatprep.mubr.f32.mxu0 %v302_v38  ;;  %v1015_v38 = vld [vmem:[%s15311_s1 + $0x480] sm:$0xff] }
  0x88   : > { %3762 = vmatmul.mubr.f32.gmra.mrb[28].mxu1 %v301_v39  ;;  %1277 = vmatmul.mubr.f32.gmra.mrb[28].mxu0 %v301_v39  ;;  %v1018_v39 = vld [vmem:[%s15311_s1 + $0x498] sm:$0xff] }
  0x89   : > { %3766 = vmatprep.mubr.f32.mxu1 %v307_v40  ;;  %1282 = vmatprep.mubr.f32.mxu0 %v307_v40  ;;  %v402_v40 = vld [vmem:[%s10797_s15 + $0x558] sm:$0xff] }
  0x8c   : > { %3767 = vmatmul.mubr.f32.gmra.mrb[30].mxu1 %v306_v41  ;;  %1283 = vmatmul.mubr.f32.gmra.mrb[30].mxu0 %v306_v41  ;;  %v9237_v41 = vpack.c.bf16 %v1020_v37, %v1017_v35  ;;  %v497_v35 = vld [vmem:[%s10797_s15 + $0x850] sm:$0xff]  ;;  %v502_v37 = vld [vmem:[%s10797_s15 + $0x878] sm:$0xff] }
  0x8d   : > { %3771 = vmatprep.mubr.f32.mxu1 %v312_v42  ;;  %1288 = vmatprep.mubr.f32.mxu0 %v312_v42  ;;  %v9102_v42 = vpack.c.bf16 %v1018_v39, %v1015_v38  ;;  %v501_v38 = vld [vmem:[%s10797_s15 + $0x870] sm:$0xff]  ;;  %v507_v39 = vld [vmem:[%s10797_s15 + $0x8a0] sm:$0xff] }
  0x8e   : > { %9238 = vmatpush1.bf16.msra.mxu1 %v9237_v41  ;;  %v512_v41 = vld [vmem:[%s10797_s15 + $0x8c8] sm:$0xff] }
  0x8f   : > { %9103 = vmatpush1.bf16.msra.mxu0 %v9102_v42  ;;  %9239 = vmatprep.subr.bf16.mxu1 %v15316_v3  ;;  %v511_v42 = vld [vmem:[%s10797_s15 + $0x8c0] sm:$0xff] }
  0x90   : > { %3772 = vmatmul.mubr.f32.gmra.mrb[32].mxu1 %v311_v43  ;;  %1289 = vmatmul.mubr.f32.gmra.mrb[32].mxu0 %v311_v43  ;;  %v401_v43 = vld [vmem:[%s10797_s15 + $0x550] sm:$0xff] }
  0x91   : > { %3776 = vmatprep.mubr.f32.mxu1 %v317_v44  ;;  %1294 = vmatprep.mubr.f32.mxu0 %v317_v44  ;;  %v407_v44 = vld [vmem:[%s10797_s15 + $0x580] sm:$0xff] }
  0x94   : > { %3777 = vmatmul.mubr.f32.gmra.mrb[34].mxu1 %v316_v45  ;;  %1295 = vmatmul.mubr.f32.gmra.mrb[34].mxu0 %v316_v45  ;;  %v406_v45 = vld [vmem:[%s10797_s15 + $0x578] sm:$0xff] }
  0x95   : > { %3781 = vmatprep.mubr.f32.mxu1 %v322_v53  ;;  %1300 = vmatprep.mubr.f32.mxu0 %v322_v53  ;;  %v426_v53 = vld [vmem:[%s10797_s15 + $0x618] sm:$0xff] }
  0x98   : > { %3782 = vmatmul.mubr.f32.gmra.mrb[36].mxu1 %v321_v56  ;;  %1301 = vmatmul.mubr.f32.gmra.mrb[36].mxu0 %v321_v56  ;;  %v437_v56 = vld [vmem:[%s10797_s15 + $0x670] sm:$0xff] }
  0x99   : > { %3786 = vmatprep.mubr.f32.mxu1 %v327_v57  ;;  %1306 = vmatprep.mubr.f32.mxu0 %v327_v57  ;;  %v436_v57 = vld [vmem:[%s10797_s15 + $0x668] sm:$0xff] }
  0x9c   : > { %3787 = vmatmul.mubr.f32.gmra.mrb[38].mxu1 %v326_v58  ;;  %1307 = vmatmul.mubr.f32.gmra.mrb[38].mxu0 %v326_v58  ;;  %v1022_v58 = vld [vmem:[%s15311_s1 + $0x4b8] sm:$0xff] }
  0x9d   : > { %3791 = vmatprep.mubr.f32.mxu1 %v332_v59  ;;  %1312 = vmatprep.mubr.f32.mxu0 %v332_v59  ;;  %v1025_v59 = vld [vmem:[%s15311_s1 + $0x4d0] sm:$0xff] }
  0xa0   : > { %3792 = vmatmul.mubr.f32.gmra.mrb[40].mxu1 %v331_v60  ;;  %1313 = vmatmul.mubr.f32.gmra.mrb[40].mxu0 %v331_v60  ;;  %v1023_v60 = vld [vmem:[%s15311_s1 + $0x4c0] sm:$0xff] }
  0xa1   : > { %3796 = vmatprep.mubr.f32.mxu1 %v337_v61  ;;  %1318 = vmatprep.mubr.f32.mxu0 %v337_v61  ;;  %v9104_v61 = vpack.c.bf16 %v1025_v59, %v1022_v58  ;;  %v532_v58 = vld [vmem:[%s10797_s15 + $0x968] sm:$0xff]  ;;  %v531_v59 = vld [vmem:[%s10797_s15 + $0x960] sm:$0xff] }
  0xa3   : > { %9105 = vmatprep.subr.bf16.mxu0 %v9104_v61  ;;  %v536_v61 = vld [vmem:[%s10797_s15 + $0x988] sm:$0xff] }
  0xa4   : > { %3797 = vmatmul.mubr.f32.gmra.mrb[42].mxu1 %v336_v62  ;;  %1319 = vmatmul.mubr.f32.gmra.mrb[42].mxu0 %v336_v62  ;;  %v1026_v62 = vld [vmem:[%s15311_s1 + $0x4d8] sm:$0xff] }
  0xa5   : > { %3801 = vmatprep.mubr.f32.mxu1 %v342_v63  ;;  %1324 = vmatprep.mubr.f32.mxu0 %v342_v63  ;;  %v1021_v63 = vld [vmem:[%s15311_s1 + $0x4b0] sm:$0xff] }
  0xa8   : > { %3802 = vmatmul.mubr.f32.gmra.mrb[44].mxu1 %v341_v0  ;;  %1325 = vmatmul.mubr.f32.gmra.mrb[44].mxu0 %v341_v0  ;;  %v1024_v0 = vld [vmem:[%s15311_s1 + $0x4c8] sm:$0xff] }
  0xa9   : > { %3806 = vmatprep.mubr.f32.mxu1 %v347_v1  ;;  %1330 = vmatprep.mubr.f32.mxu0 %v347_v1  ;;  %v442_v1 = vld [vmem:[%s10797_s15 + $0x698] sm:$0xff] }
  0xac   : > { %3807 = vmatmul.mubr.f32.gmra.mrb[46].mxu1 %v346_v2  ;;  %1331 = vmatmul.mubr.f32.gmra.mrb[46].mxu0 %v346_v2  ;;  %v9240_v2 = vpack.c.bf16 %v1026_v62, %v1023_v60  ;;  %v537_v60 = vld [vmem:[%s10797_s15 + $0x990] sm:$0xff]  ;;  %v542_v62 = vld [vmem:[%s10797_s15 + $0x9b8] sm:$0xff] }
  0xad   : > { %3811 = vmatprep.mubr.f32.mxu1 %v352_v4  ;;  %1336 = vmatprep.mubr.f32.mxu0 %v352_v4  ;;  %v9106_v4 = vpack.c.bf16 %v1024_v0, %v1021_v63  ;;  %v541_v63 = vld [vmem:[%s10797_s15 + $0x9b0] sm:$0xff]  ;;  %v547_v0 = vld [vmem:[%s10797_s15 + $0x9e0] sm:$0xff] }
  0xae   : > { %9241 = vmatpush1.bf16.msra.mxu1 %v9240_v2  ;;  %v552_v2 = vld [vmem:[%s10797_s15 + $0xa08] sm:$0xff] }
  0xaf   : > { %9107 = vmatpush1.bf16.msra.mxu0 %v9106_v4  ;;  %9242 = vmatprep.subr.bf16.mxu1 %v15316_v3  ;;  %v551_v4 = vld [vmem:[%s10797_s15 + $0xa00] sm:$0xff] }
  0xb0   : > { %3812 = vmatmul.mubr.f32.gmra.mrb[48].mxu1 %v351_v5  ;;  %1337 = vmatmul.mubr.f32.gmra.mrb[48].mxu0 %v351_v5  ;;  %v441_v5 = vld [vmem:[%s10797_s15 + $0x690] sm:$0xff] }
  0xb1   : > { %3816 = vmatprep.mubr.f32.mxu1 %v357_v6  ;;  %1342 = vmatprep.mubr.f32.mxu0 %v357_v6  ;;  %v447_v6 = vld [vmem:[%s10797_s15 + $0x6c0] sm:$0xff] }
  0xb4   : > { %3817 = vmatmul.mubr.f32.gmra.mrb[50].mxu1 %v356_v7  ;;  %1343 = vmatmul.mubr.f32.gmra.mrb[50].mxu0 %v356_v7  ;;  %v446_v7 = vld [vmem:[%s10797_s15 + $0x6b8] sm:$0xff] }
  0xb5   : > { %3821 = vmatprep.mubr.f32.mxu1 %v362_v15  ;;  %1348 = vmatprep.mubr.f32.mxu0 %v362_v15  ;;  %v466_v15 = vld [vmem:[%s10797_s15 + $0x758] sm:$0xff] }
  0xb8   : > { %3822 = vmatmul.mubr.f32.gmra.mrb[52].mxu1 %v361_v18  ;;  %1349 = vmatmul.mubr.f32.gmra.mrb[52].mxu0 %v361_v18  ;;  %v477_v18 = vld [vmem:[%s10797_s15 + $0x7b0] sm:$0xff] }
  0xb9   : > { %3826 = vmatprep.mubr.f32.mxu1 %v367_v19  ;;  %1354 = vmatprep.mubr.f32.mxu0 %v367_v19  ;;  %v476_v19 = vld [vmem:[%s10797_s15 + $0x7a8] sm:$0xff] }
  0xbc   : > { %3827 = vmatmul.mubr.f32.gmra.mrb[54].mxu1 %v366_v20  ;;  %1355 = vmatmul.mubr.f32.gmra.mrb[54].mxu0 %v366_v20  ;;  %v1028_v20 = vld [vmem:[%s15311_s1 + $0x4e8] sm:$0xff] }
  0xbd   : > { %3831 = vmatprep.mubr.f32.mxu1 %v372_v21  ;;  %1360 = vmatprep.mubr.f32.mxu0 %v372_v21  ;;  %v1031_v21 = vld [vmem:[%s15311_s1 + $0x500] sm:$0xff] }
  0xc0   : > { %3832 = vmatmul.mubr.f32.gmra.mrb[56].mxu1 %v371_v22  ;;  %1361 = vmatmul.mubr.f32.gmra.mrb[56].mxu0 %v371_v22  ;;  %v1029_v22 = vld [vmem:[%s15311_s1 + $0x4f0] sm:$0xff] }
  0xc1   : > { %3836 = vmatprep.mubr.f32.mxu1 %v377_v23  ;;  %1366 = vmatprep.mubr.f32.mxu0 %v377_v23  ;;  %v9108_v23 = vpack.c.bf16 %v1031_v21, %v1028_v20  ;;  %v572_v20 = vld [vmem:[%s10797_s15 + $0xaa8] sm:$0xff]  ;;  %v571_v21 = vld [vmem:[%s10797_s15 + $0xaa0] sm:$0xff] }
  0xc3   : > { %9109 = vmatprep.subr.bf16.mxu0 %v9108_v23  ;;  %v576_v23 = vld [vmem:[%s10797_s15 + $0xac8] sm:$0xff] }
  0xc4   : > { %3837 = vmatmul.mubr.f32.gmra.mrb[58].mxu1 %v376_v24  ;;  %1367 = vmatmul.mubr.f32.gmra.mrb[58].mxu0 %v376_v24  ;;  %v1032_v24 = vld [vmem:[%s15311_s1 + $0x508] sm:$0xff] }
  0xc5   : > { %3841 = vmatprep.mubr.f32.mxu1 %v382_v25  ;;  %1372 = vmatprep.mubr.f32.mxu0 %v382_v25  ;;  %v1027_v25 = vld [vmem:[%s15311_s1 + $0x4e0] sm:$0xff] }
  0xc8   : > { %3842 = vmatmul.mubr.f32.gmra.mrb[60].mxu1 %v381_v26  ;;  %1373 = vmatmul.mubr.f32.gmra.mrb[60].mxu0 %v381_v26  ;;  %v1030_v26 = vld [vmem:[%s15311_s1 + $0x4f8] sm:$0xff] }
  0xc9   : > { %3846 = vmatprep.mubr.f32.mxu1 %v387_v27  ;;  %1378 = vmatprep.mubr.f32.mxu0 %v387_v27  ;;  %v482_v27 = vld [vmem:[%s10797_s15 + $0x7d8] sm:$0xff] }
  0xcc   : > { %3847 = vmatmul.mubr.f32.gmra.mrb[62].mxu1 %v386_v28  ;;  %1379 = vmatmul.mubr.f32.gmra.mrb[62].mxu0 %v386_v28  ;;  %v9243_v28 = vpack.c.bf16 %v1032_v24, %v1029_v22  ;;  %v577_v22 = vld [vmem:[%s10797_s15 + $0xad0] sm:$0xff]  ;;  %v582_v24 = vld [vmem:[%s10797_s15 + $0xaf8] sm:$0xff] }
  0xcd   : > { %3851 = vmatprep.mubr.f32.mxu1 %v392_v29  ;;  %1384 = vmatprep.mubr.f32.mxu0 %v392_v29  ;;  %v9110_v29 = vpack.c.bf16 %v1030_v26, %v1027_v25  ;;  %v581_v25 = vld [vmem:[%s10797_s15 + $0xaf0] sm:$0xff]  ;;  %v587_v26 = vld [vmem:[%s10797_s15 + $0xb20] sm:$0xff] }
  0xce   : > { %9244 = vmatpush1.bf16.msra.mxu1 %v9243_v28  ;;  %v592_v28 = vld [vmem:[%s10797_s15 + $0xb48] sm:$0xff] }
  0xcf   : > { %9111 = vmatpush1.bf16.msra.mxu0 %v9110_v29  ;;  %9245 = vmatprep.subr.bf16.mxu1 %v15316_v3  ;;  %v591_v29 = vld [vmem:[%s10797_s15 + $0xb40] sm:$0xff] }
  0xd0   : > { %3852 = vmatmul.mubr.f32.gmra.mrb[64].mxu1 %v391_v30  ;;  %1385 = vmatmul.mubr.f32.gmra.mrb[64].mxu0 %v391_v30  ;;  %v481_v30 = vld [vmem:[%s10797_s15 + $0x7d0] sm:$0xff] }
  0xd1   : > { %3856 = vmatprep.mubr.f32.mxu1 %v397_v31  ;;  %1390 = vmatprep.mubr.f32.mxu0 %v397_v31  ;;  %v487_v31 = vld [vmem:[%s10797_s15 + $0x800] sm:$0xff] }
  0xd4   : > { %3857 = vmatmul.mubr.f32.gmra.mrb[66].mxu1 %v396_v32  ;;  %1391 = vmatmul.mubr.f32.gmra.mrb[66].mxu0 %v396_v32  ;;  %v486_v32 = vld [vmem:[%s10797_s15 + $0x7f8] sm:$0xff] }
  0xd5   : > { %3861 = vmatprep.mubr.f32.mxu1 %v402_v40  ;;  %1396 = vmatprep.mubr.f32.mxu0 %v402_v40  ;;  %v506_v40 = vld [vmem:[%s10797_s15 + $0x898] sm:$0xff] }
  0xd8   : > { %3862 = vmatmul.mubr.f32.gmra.mrb[68].mxu1 %v401_v43  ;;  %1397 = vmatmul.mubr.f32.gmra.mrb[68].mxu0 %v401_v43  ;;  %v517_v43 = vld [vmem:[%s10797_s15 + $0x8f0] sm:$0xff] }
  0xd9   : > { %3866 = vmatprep.mubr.f32.mxu1 %v407_v44  ;;  %1402 = vmatprep.mubr.f32.mxu0 %v407_v44  ;;  %v516_v44 = vld [vmem:[%s10797_s15 + $0x8e8] sm:$0xff] }
  0xdc   : > { %3867 = vmatmul.mubr.f32.gmra.mrb[70].mxu1 %v406_v45  ;;  %1403 = vmatmul.mubr.f32.gmra.mrb[70].mxu0 %v406_v45  ;;  %v1034_v45 = vld [vmem:[%s15311_s1 + $0x518] sm:$0xff] }
  0xdd   : > { %3871 = vmatprep.mubr.f32.mxu1 %v412_v46  ;;  %1408 = vmatprep.mubr.f32.mxu0 %v412_v46  ;;  %v1037_v46 = vld [vmem:[%s15311_s1 + $0x530] sm:$0xff] }
  0xe0   : > { %3872 = vmatmul.mubr.f32.gmra.mrb[72].mxu1 %v411_v47  ;;  %1409 = vmatmul.mubr.f32.gmra.mrb[72].mxu0 %v411_v47  ;;  %v1035_v47 = vld [vmem:[%s15311_s1 + $0x520] sm:$0xff] }
  0xe1   : > { %3876 = vmatprep.mubr.f32.mxu1 %v417_v48  ;;  %1414 = vmatprep.mubr.f32.mxu0 %v417_v48  ;;  %v9112_v48 = vpack.c.bf16 %v1037_v46, %v1034_v45  ;;  %v612_v45 = vld [vmem:[%s10797_s15 + $0xbe8] sm:$0xff]  ;;  %v611_v46 = vld [vmem:[%s10797_s15 + $0xbe0] sm:$0xff] }
  0xe3   : > { %9113 = vmatprep.subr.bf16.mxu0 %v9112_v48  ;;  %v616_v48 = vld [vmem:[%s10797_s15 + $0xc08] sm:$0xff] }
  0xe4   : > { %3877 = vmatmul.mubr.f32.gmra.mrb[74].mxu1 %v416_v49  ;;  %1415 = vmatmul.mubr.f32.gmra.mrb[74].mxu0 %v416_v49  ;;  %v1038_v49 = vld [vmem:[%s15311_s1 + $0x538] sm:$0xff] }
  0xe5   : > { %3881 = vmatprep.mubr.f32.mxu1 %v422_v50  ;;  %1420 = vmatprep.mubr.f32.mxu0 %v422_v50  ;;  %v1033_v50 = vld [vmem:[%s15311_s1 + $0x510] sm:$0xff] }
  0xe8   : > { %3882 = vmatmul.mubr.f32.gmra.mrb[76].mxu1 %v421_v51  ;;  %1421 = vmatmul.mubr.f32.gmra.mrb[76].mxu0 %v421_v51  ;;  %v1036_v51 = vld [vmem:[%s15311_s1 + $0x528] sm:$0xff] }
  0xe9   : > { %3886 = vmatprep.mubr.f32.mxu1 %v427_v52  ;;  %1426 = vmatprep.mubr.f32.mxu0 %v427_v52  ;;  %v522_v52 = vld [vmem:[%s10797_s15 + $0x918] sm:$0xff] }
  0xec   : > { %3887 = vmatmul.mubr.f32.gmra.mrb[78].mxu1 %v426_v53  ;;  %1427 = vmatmul.mubr.f32.gmra.mrb[78].mxu0 %v426_v53  ;;  %v9246_v53 = vpack.c.bf16 %v1038_v49, %v1035_v47  ;;  %v617_v47 = vld [vmem:[%s10797_s15 + $0xc10] sm:$0xff]  ;;  %v622_v49 = vld [vmem:[%s10797_s15 + $0xc38] sm:$0xff] }
  0xed   : > { %3891 = vmatprep.mubr.f32.mxu1 %v432_v54  ;;  %1432 = vmatprep.mubr.f32.mxu0 %v432_v54  ;;  %v9114_v54 = vpack.c.bf16 %v1036_v51, %v1033_v50  ;;  %v621_v50 = vld [vmem:[%s10797_s15 + $0xc30] sm:$0xff]  ;;  %v627_v51 = vld [vmem:[%s10797_s15 + $0xc60] sm:$0xff] }
  0xee   : > { %9247 = vmatpush1.bf16.msra.mxu1 %v9246_v53  ;;  %v632_v53 = vld [vmem:[%s10797_s15 + $0xc88] sm:$0xff] }
  0xef   : > { %9115 = vmatpush1.bf16.msra.mxu0 %v9114_v54  ;;  %9248 = vmatprep.subr.bf16.mxu1 %v15316_v3  ;;  %v631_v54 = vld [vmem:[%s10797_s15 + $0xc80] sm:$0xff] }
  0xf0   : > { %3892 = vmatmul.mubr.f32.gmra.mrb[80].mxu1 %v431_v55  ;;  %1433 = vmatmul.mubr.f32.gmra.mrb[80].mxu0 %v431_v55  ;;  %v521_v55 = vld [vmem:[%s10797_s15 + $0x910] sm:$0xff] }
  0xf1   : > { %3896 = vmatprep.mubr.f32.mxu1 %v437_v56  ;;  %1438 = vmatprep.mubr.f32.mxu0 %v437_v56  ;;  %v527_v56 = vld [vmem:[%s10797_s15 + $0x940] sm:$0xff] }
  0xf4   : > { %3897 = vmatmul.mubr.f32.gmra.mrb[82].mxu1 %v436_v57  ;;  %1439 = vmatmul.mubr.f32.gmra.mrb[82].mxu0 %v436_v57  ;;  %v526_v57 = vld [vmem:[%s10797_s15 + $0x938] sm:$0xff] }
  0xf5   : > { %3901 = vmatprep.mubr.f32.mxu1 %v442_v1  ;;  %1444 = vmatprep.mubr.f32.mxu0 %v442_v1  ;;  %v546_v1 = vld [vmem:[%s10797_s15 + $0x9d8] sm:$0xff] }
  0xf8   : > { %3902 = vmatmul.mubr.f32.gmra.mrb[84].mxu1 %v441_v5  ;;  %1445 = vmatmul.mubr.f32.gmra.mrb[84].mxu0 %v441_v5  ;;  %v557_v5 = vld [vmem:[%s10797_s15 + $0xa30] sm:$0xff] }
  0xf9   : > { %3906 = vmatprep.mubr.f32.mxu1 %v447_v6  ;;  %1450 = vmatprep.mubr.f32.mxu0 %v447_v6  ;;  %v556_v6 = vld [vmem:[%s10797_s15 + $0xa28] sm:$0xff] }
  0xfc   : > { %3907 = vmatmul.mubr.f32.gmra.mrb[86].mxu1 %v446_v7  ;;  %1451 = vmatmul.mubr.f32.gmra.mrb[86].mxu0 %v446_v7  ;;  %v1040_v7 = vld [vmem:[%s15311_s1 + $0x548] sm:$0xff] }
  0xfd   : > { %3911 = vmatprep.mubr.f32.mxu1 %v452_v8  ;;  %1456 = vmatprep.mubr.f32.mxu0 %v452_v8  ;;  %v1043_v8 = vld [vmem:[%s15311_s1 + $0x560] sm:$0xff] }
 0x100   : > { %3912 = vmatmul.mubr.f32.gmra.mrb[88].mxu1 %v451_v9  ;;  %1457 = vmatmul.mubr.f32.gmra.mrb[88].mxu0 %v451_v9  ;;  %v1041_v9 = vld [vmem:[%s15311_s1 + $0x550] sm:$0xff] }
 0x101   : > { %3916 = vmatprep.mubr.f32.mxu1 %v457_v10  ;;  %1462 = vmatprep.mubr.f32.mxu0 %v457_v10  ;;  %v9116_v10 = vpack.c.bf16 %v1043_v8, %v1040_v7  ;;  %v652_v7 = vld [vmem:[%s10797_s15 + $0xd28] sm:$0xff]  ;;  %v651_v8 = vld [vmem:[%s10797_s15 + $0xd20] sm:$0xff] }
 0x103   : > { %9117 = vmatprep.subr.bf16.mxu0 %v9116_v10  ;;  %v656_v10 = vld [vmem:[%s10797_s15 + $0xd48] sm:$0xff] }
 0x104   : > { %3917 = vmatmul.mubr.f32.gmra.mrb[90].mxu1 %v456_v11  ;;  %1463 = vmatmul.mubr.f32.gmra.mrb[90].mxu0 %v456_v11  ;;  %v1044_v11 = vld [vmem:[%s15311_s1 + $0x568] sm:$0xff] }
 0x105   : > { %3921 = vmatprep.mubr.f32.mxu1 %v462_v12  ;;  %1468 = vmatprep.mubr.f32.mxu0 %v462_v12  ;;  %v1039_v12 = vld [vmem:[%s15311_s1 + $0x540] sm:$0xff] }
 0x108   : > { %3922 = vmatmul.mubr.f32.gmra.mrb[92].mxu1 %v461_v13  ;;  %1469 = vmatmul.mubr.f32.gmra.mrb[92].mxu0 %v461_v13  ;;  %v1042_v13 = vld [vmem:[%s15311_s1 + $0x558] sm:$0xff] }
 0x109   : > { %3926 = vmatprep.mubr.f32.mxu1 %v467_v14  ;;  %1474 = vmatprep.mubr.f32.mxu0 %v467_v14  ;;  %v562_v14 = vld [vmem:[%s10797_s15 + $0xa58] sm:$0xff] }
 0x10c   : > { %3927 = vmatmul.mubr.f32.gmra.mrb[94].mxu1 %v466_v15  ;;  %1475 = vmatmul.mubr.f32.gmra.mrb[94].mxu0 %v466_v15  ;;  %v9249_v15 = vpack.c.bf16 %v1044_v11, %v1041_v9  ;;  %v657_v9 = vld [vmem:[%s10797_s15 + $0xd50] sm:$0xff]  ;;  %v662_v11 = vld [vmem:[%s10797_s15 + $0xd78] sm:$0xff] }
 0x10d   : > { %3931 = vmatprep.mubr.f32.mxu1 %v472_v16  ;;  %1480 = vmatprep.mubr.f32.mxu0 %v472_v16  ;;  %v9118_v16 = vpack.c.bf16 %v1042_v13, %v1039_v12  ;;  %v661_v12 = vld [vmem:[%s10797_s15 + $0xd70] sm:$0xff]  ;;  %v667_v13 = vld [vmem:[%s10797_s15 + $0xda0] sm:$0xff] }
 0x10e   : > { %9250 = vmatpush1.bf16.msra.mxu1 %v9249_v15  ;;  %v672_v15 = vld [vmem:[%s10797_s15 + $0xdc8] sm:$0xff] }
 0x10f   : > { %9119 = vmatpush1.bf16.msra.mxu0 %v9118_v16  ;;  %9251 = vmatprep.subr.bf16.mxu1 %v15316_v3  ;;  %v671_v16 = vld [vmem:[%s10797_s15 + $0xdc0] sm:$0xff] }
 0x110   : > { %3932 = vmatmul.mubr.f32.gmra.mrb[96].mxu1 %v471_v17  ;;  %1481 = vmatmul.mubr.f32.gmra.mrb[96].mxu0 %v471_v17  ;;  %v561_v17 = vld [vmem:[%s10797_s15 + $0xa50] sm:$0xff] }
 0x111   : > { %3936 = vmatprep.mubr.f32.mxu1 %v477_v18  ;;  %1486 = vmatprep.mubr.f32.mxu0 %v477_v18  ;;  %v567_v18 = vld [vmem:[%s10797_s15 + $0xa80] sm:$0xff] }
 0x114   : > { %3937 = vmatmul.mubr.f32.gmra.mrb[98].mxu1 %v476_v19  ;;  %1487 = vmatmul.mubr.f32.gmra.mrb[98].mxu0 %v476_v19  ;;  %v566_v19 = vld [vmem:[%s10797_s15 + $0xa78] sm:$0xff] }
 0x115   : > { %3941 = vmatprep.mubr.f32.mxu1 %v482_v27  ;;  %1492 = vmatprep.mubr.f32.mxu0 %v482_v27  ;;  %v586_v27 = vld [vmem:[%s10797_s15 + $0xb18] sm:$0xff] }
 0x118   : > { %3942 = vmatmul.mubr.f32.gmra.mrb[100].mxu1 %v481_v30  ;;  %1493 = vmatmul.mubr.f32.gmra.mrb[100].mxu0 %v481_v30  ;;  %v597_v30 = vld [vmem:[%s10797_s15 + $0xb70] sm:$0xff] }
 0x119   : > { %3946 = vmatprep.mubr.f32.mxu1 %v487_v31  ;;  %1498 = vmatprep.mubr.f32.mxu0 %v487_v31  ;;  %v596_v31 = vld [vmem:[%s10797_s15 + $0xb68] sm:$0xff] }
 0x11c   : > { %3947 = vmatmul.mubr.f32.gmra.mrb[102].mxu1 %v486_v32  ;;  %1499 = vmatmul.mubr.f32.gmra.mrb[102].mxu0 %v486_v32  ;;  %v1046_v32 = vld [vmem:[%s15311_s1 + $0x578] sm:$0xff] }
 0x11d   : > { %3951 = vmatprep.mubr.f32.mxu1 %v492_v33  ;;  %1504 = vmatprep.mubr.f32.mxu0 %v492_v33  ;;  %v1049_v33 = vld [vmem:[%s15311_s1 + $0x590] sm:$0xff] }
 0x120   : > { %3952 = vmatmul.mubr.f32.gmra.mrb[104].mxu1 %v491_v34  ;;  %1505 = vmatmul.mubr.f32.gmra.mrb[104].mxu0 %v491_v34  ;;  %v1047_v34 = vld [vmem:[%s15311_s1 + $0x580] sm:$0xff] }
 0x121   : > { %3956 = vmatprep.mubr.f32.mxu1 %v497_v35  ;;  %1510 = vmatprep.mubr.f32.mxu0 %v497_v35  ;;  %v9120_v35 = vpack.c.bf16 %v1049_v33, %v1046_v32  ;;  %v692_v32 = vld [vmem:[%s10797_s15 + $0xe68] sm:$0xff]  ;;  %v691_v33 = vld [vmem:[%s10797_s15 + $0xe60] sm:$0xff] }
 0x123   : > { %9121 = vmatprep.subr.bf16.mxu0 %v9120_v35  ;;  %v696_v35 = vld [vmem:[%s10797_s15 + $0xe88] sm:$0xff] }
 0x124   : > { %3957 = vmatmul.mubr.f32.gmra.mrb[106].mxu1 %v496_v36  ;;  %1511 = vmatmul.mubr.f32.gmra.mrb[106].mxu0 %v496_v36  ;;  %v1050_v36 = vld [vmem:[%s15311_s1 + $0x598] sm:$0xff] }
 0x125   : > { %3961 = vmatprep.mubr.f32.mxu1 %v502_v37  ;;  %1516 = vmatprep.mubr.f32.mxu0 %v502_v37  ;;  %v1045_v37 = vld [vmem:[%s15311_s1 + $0x570] sm:$0xff] }
 0x128   : > { %3962 = vmatmul.mubr.f32.gmra.mrb[108].mxu1 %v501_v38  ;;  %1517 = vmatmul.mubr.f32.gmra.mrb[108].mxu0 %v501_v38  ;;  %v1048_v38 = vld [vmem:[%s15311_s1 + $0x588] sm:$0xff] }
 0x129   : > { %3966 = vmatprep.mubr.f32.mxu1 %v507_v39  ;;  %1522 = vmatprep.mubr.f32.mxu0 %v507_v39  ;;  %v602_v39 = vld [vmem:[%s10797_s15 + $0xb98] sm:$0xff] }
 0x12c   : > { %3967 = vmatmul.mubr.f32.gmra.mrb[110].mxu1 %v506_v40  ;;  %1523 = vmatmul.mubr.f32.gmra.mrb[110].mxu0 %v506_v40  ;;  %v9252_v40 = vpack.c.bf16 %v1050_v36, %v1047_v34  ;;  %v697_v34 = vld [vmem:[%s10797_s15 + $0xe90] sm:$0xff]  ;;  %v702_v36 = vld [vmem:[%s10797_s15 + $0xeb8] sm:$0xff] }
 0x12d   : > { %3971 = vmatprep.mubr.f32.mxu1 %v512_v41  ;;  %1528 = vmatprep.mubr.f32.mxu0 %v512_v41  ;;  %v9122_v41 = vpack.c.bf16 %v1048_v38, %v1045_v37  ;;  %v701_v37 = vld [vmem:[%s10797_s15 + $0xeb0] sm:$0xff]  ;;  %v707_v38 = vld [vmem:[%s10797_s15 + $0xee0] sm:$0xff] }
 0x12e   : > { %9253 = vmatpush1.bf16.msra.mxu1 %v9252_v40  ;;  %v712_v40 = vld [vmem:[%s10797_s15 + $0xf08] sm:$0xff] }
 0x12f   : > { %9123 = vmatpush1.bf16.msra.mxu0 %v9122_v41  ;;  %9254 = vmatprep.subr.bf16.mxu1 %v15316_v3  ;;  %v711_v41 = vld [vmem:[%s10797_s15 + $0xf00] sm:$0xff] }
 0x130   : > { %3972 = vmatmul.mubr.f32.gmra.mrb[112].mxu1 %v511_v42  ;;  %1529 = vmatmul.mubr.f32.gmra.mrb[112].mxu0 %v511_v42  ;;  %v601_v42 = vld [vmem:[%s10797_s15 + $0xb90] sm:$0xff] }
 0x131   : > { %3976 = vmatprep.mubr.f32.mxu1 %v517_v43  ;;  %1534 = vmatprep.mubr.f32.mxu0 %v517_v43  ;;  %v607_v43 = vld [vmem:[%s10797_s15 + $0xbc0] sm:$0xff] }
 0x134   : > { %3977 = vmatmul.mubr.f32.gmra.mrb[114].mxu1 %v516_v44  ;;  %1535 = vmatmul.mubr.f32.gmra.mrb[114].mxu0 %v516_v44  ;;  %v606_v44 = vld [vmem:[%s10797_s15 + $0xbb8] sm:$0xff] }
 0x135   : > { %3981 = vmatprep.mubr.f32.mxu1 %v522_v52  ;;  %1540 = vmatprep.mubr.f32.mxu0 %v522_v52  ;;  %v626_v52 = vld [vmem:[%s10797_s15 + $0xc58] sm:$0xff] }
 0x138   : > { %3982 = vmatmul.mubr.f32.gmra.mrb[116].mxu1 %v521_v55  ;;  %1541 = vmatmul.mubr.f32.gmra.mrb[116].mxu0 %v521_v55  ;;  %v637_v55 = vld [vmem:[%s10797_s15 + $0xcb0] sm:$0xff] }
 0x139   : > { %3986 = vmatprep.mubr.f32.mxu1 %v527_v56  ;;  %1546 = vmatprep.mubr.f32.mxu0 %v527_v56  ;;  %v636_v56 = vld [vmem:[%s10797_s15 + $0xca8] sm:$0xff] }
 0x13c   : > { %3987 = vmatmul.mubr.f32.gmra.mrb[118].mxu1 %v526_v57  ;;  %1547 = vmatmul.mubr.f32.gmra.mrb[118].mxu0 %v526_v57  ;;  %v1052_v57 = vld [vmem:[%s15311_s1 + $0x5a8] sm:$0xff] }
 0x13d   : > { %3991 = vmatprep.mubr.f32.mxu1 %v532_v58  ;;  %1552 = vmatprep.mubr.f32.mxu0 %v532_v58  ;;  %v1055_v58 = vld [vmem:[%s15311_s1 + $0x5c0] sm:$0xff] }
 0x140   : > { %3992 = vmatmul.mubr.f32.gmra.mrb[120].mxu1 %v531_v59  ;;  %1553 = vmatmul.mubr.f32.gmra.mrb[120].mxu0 %v531_v59  ;;  %v1053_v59 = vld [vmem:[%s15311_s1 + $0x5b0] sm:$0xff] }
 0x141   : > { %3996 = vmatprep.mubr.f32.mxu1 %v537_v60  ;;  %1558 = vmatprep.mubr.f32.mxu0 %v537_v60  ;;  %v9124_v60 = vpack.c.bf16 %v1055_v58, %v1052_v57  ;;  %v736_v57 = vld [vmem:[%s10797_s15 + $0xfc8] sm:$0xff]  ;;  %v742_v58 = vld [vmem:[%s10797_s15 + $0xff8] sm:$0xff] }
 0x143   : > { %9125 = vmatprep.subr.bf16.mxu0 %v9124_v60  ;;  %v747_v60 = vld [vmem:[%s10797_s15 + $0x1020] sm:$0xff] }
 0x144   : > { %3997 = vmatmul.mubr.f32.gmra.mrb[122].mxu1 %v536_v61  ;;  %1559 = vmatmul.mubr.f32.gmra.mrb[122].mxu0 %v536_v61  ;;  %v1056_v61 = vld [vmem:[%s15311_s1 + $0x5c8] sm:$0xff] }
 0x145   : > { %4001 = vmatprep.mubr.f32.mxu1 %v542_v62  ;;  %1564 = vmatprep.mubr.f32.mxu0 %v542_v62  ;;  %v1051_v62 = vld [vmem:[%s15311_s1 + $0x5a0] sm:$0xff] }
 0x148   : > { %4002 = vmatmul.mubr.f32.gmra.mrb[124].mxu1 %v541_v63  ;;  %1565 = vmatmul.mubr.f32.gmra.mrb[124].mxu0 %v541_v63  ;;  %v1054_v63 = vld [vmem:[%s15311_s1 + $0x5b8] sm:$0xff] }
 0x149   : > { %4006 = vmatprep.mubr.f32.mxu1 %v547_v0  ;;  %1570 = vmatprep.mubr.f32.mxu0 %v547_v0  ;;  %v642_v0 = vld [vmem:[%s10797_s15 + $0xcd8] sm:$0xff] }
 0x14c   : > { %4007 = vmatmul.mubr.f32.gmra.mrb[126].mxu1 %v546_v1  ;;  %1571 = vmatmul.mubr.f32.gmra.mrb[126].mxu0 %v546_v1  ;;  %v9255_v1 = vpack.c.bf16 %v1056_v61, %v1053_v59  ;;  %v741_v59 = vld [vmem:[%s10797_s15 + $0xff0] sm:$0xff]  ;;  %v746_v61 = vld [vmem:[%s10797_s15 + $0x1018] sm:$0xff] }
 0x14d   : > { %4011 = vmatprep.mubr.f32.mxu1 %v552_v2  ;;  %1576 = vmatprep.mubr.f32.mxu0 %v552_v2  ;;  %v9126_v2 = vpack.c.bf16 %v1054_v63, %v1051_v62  ;;  %v752_v62 = vld [vmem:[%s10797_s15 + $0x1048] sm:$0xff]  ;;  %v751_v63 = vld [vmem:[%s10797_s15 + $0x1040] sm:$0xff] }
 0x14e   : > { %9256 = vmatpush1.bf16.msra.mxu1 %v9255_v1  ;;  %v756_v1 = vld [vmem:[%s10797_s15 + $0x1068] sm:$0xff] }
 0x14f   : > { %9127 = vmatpush1.bf16.msra.mxu0 %v9126_v2  ;;  %9257 = vmatprep.subr.bf16.mxu1 %v15316_v3  ;;  %v762_v2 = vld [vmem:[%s10797_s15 + $0x1098] sm:$0xff] }
 0x150   : > { %4012 = vmatmul.mubr.f32.gmra.mrb[128].mxu1 %v551_v4  ;;  %1577 = vmatmul.mubr.f32.gmra.mrb[128].mxu0 %v551_v4  ;;  %v641_v4 = vld [vmem:[%s10797_s15 + $0xcd0] sm:$0xff] }
 0x151   : > { %4016 = vmatprep.mubr.f32.mxu1 %v557_v5  ;;  %1582 = vmatprep.mubr.f32.mxu0 %v557_v5  ;;  %v647_v5 = vld [vmem:[%s10797_s15 + $0xd00] sm:$0xff] }
 0x154   : > { %4017 = vmatmul.mubr.f32.gmra.mrb[130].mxu1 %v556_v6  ;;  %1583 = vmatmul.mubr.f32.gmra.mrb[130].mxu0 %v556_v6  ;;  %v646_v6 = vld [vmem:[%s10797_s15 + $0xcf8] sm:$0xff] }
 0x155   : > { %4021 = vmatprep.mubr.f32.mxu1 %v562_v14  ;;  %1588 = vmatprep.mubr.f32.mxu0 %v562_v14  ;;  %v666_v14 = vld [vmem:[%s10797_s15 + $0xd98] sm:$0xff] }
 0x158   : > { %4022 = vmatmul.mubr.f32.gmra.mrb[132].mxu1 %v561_v17  ;;  %1589 = vmatmul.mubr.f32.gmra.mrb[132].mxu0 %v561_v17  ;;  %v677_v17 = vld [vmem:[%s10797_s15 + $0xdf0] sm:$0xff] }
 0x159   : > { %4026 = vmatprep.mubr.f32.mxu1 %v567_v18  ;;  %1594 = vmatprep.mubr.f32.mxu0 %v567_v18  ;;  %v676_v18 = vld [vmem:[%s10797_s15 + $0xde8] sm:$0xff] }
 0x15c   : > { %4027 = vmatmul.mubr.f32.gmra.mrb[134].mxu1 %v566_v19  ;;  %1595 = vmatmul.mubr.f32.gmra.mrb[134].mxu0 %v566_v19  ;;  %v1058_v19 = vld [vmem:[%s15311_s1 + $0x5d8] sm:$0xff] }
 0x15d   : > { %4031 = vmatprep.mubr.f32.mxu1 %v572_v20  ;;  %1600 = vmatprep.mubr.f32.mxu0 %v572_v20  ;;  %v1061_v20 = vld [vmem:[%s15311_s1 + $0x5f0] sm:$0xff] }
 0x160   : > { %4032 = vmatmul.mubr.f32.gmra.mrb[136].mxu1 %v571_v21  ;;  %1601 = vmatmul.mubr.f32.gmra.mrb[136].mxu0 %v571_v21  ;;  %v1059_v21 = vld [vmem:[%s15311_s1 + $0x5e0] sm:$0xff] }
 0x161   : > { %4036 = vmatprep.mubr.f32.mxu1 %v577_v22  ;;  %1606 = vmatprep.mubr.f32.mxu0 %v577_v22  ;;  %v9128_v22 = vpack.c.bf16 %v1061_v20, %v1058_v19  ;;  %v802_v19 = vld [vmem:[%s10797_s15 + $0x11d8] sm:$0xff]  ;;  %v801_v20 = vld [vmem:[%s10797_s15 + $0x11d0] sm:$0xff] }
 0x163   : > { %9129 = vmatprep.subr.bf16.mxu0 %v9128_v22  ;;  %v806_v22 = vld [vmem:[%s10797_s15 + $0x11f8] sm:$0xff] }
 0x164   : > { %4037 = vmatmul.mubr.f32.gmra.mrb[138].mxu1 %v576_v23  ;;  %1607 = vmatmul.mubr.f32.gmra.mrb[138].mxu0 %v576_v23  ;;  %v1062_v23 = vld [vmem:[%s15311_s1 + $0x5f8] sm:$0xff] }
 0x165   : > { %4041 = vmatprep.mubr.f32.mxu1 %v582_v24  ;;  %1612 = vmatprep.mubr.f32.mxu0 %v582_v24  ;;  %v1057_v24 = vld [vmem:[%s15311_s1 + $0x5d0] sm:$0xff] }
 0x168   : > { %4042 = vmatmul.mubr.f32.gmra.mrb[140].mxu1 %v581_v25  ;;  %1613 = vmatmul.mubr.f32.gmra.mrb[140].mxu0 %v581_v25  ;;  %v1060_v25 = vld [vmem:[%s15311_s1 + $0x5e8] sm:$0xff] }
 0x169   : > { %4046 = vmatprep.mubr.f32.mxu1 %v587_v26  ;;  %1618 = vmatprep.mubr.f32.mxu0 %v587_v26  ;;  %v682_v26 = vld [vmem:[%s10797_s15 + $0xe18] sm:$0xff] }
 0x16c   : > { %4047 = vmatmul.mubr.f32.gmra.mrb[142].mxu1 %v586_v27  ;;  %1619 = vmatmul.mubr.f32.gmra.mrb[142].mxu0 %v586_v27  ;;  %v9258_v27 = vpack.c.bf16 %v1062_v23, %v1059_v21  ;;  %v807_v21 = vld [vmem:[%s10797_s15 + $0x1200] sm:$0xff]  ;;  %v812_v23 = vld [vmem:[%s10797_s15 + $0x1228] sm:$0xff] }
 0x16d   : > { %4051 = vmatprep.mubr.f32.mxu1 %v592_v28  ;;  %1624 = vmatprep.mubr.f32.mxu0 %v592_v28  ;;  %v9130_v28 = vpack.c.bf16 %v1060_v25, %v1057_v24  ;;  %v811_v24 = vld [vmem:[%s10797_s15 + $0x1220] sm:$0xff]  ;;  %v817_v25 = vld [vmem:[%s10797_s15 + $0x1250] sm:$0xff] }
 0x16e   : > { %9259 = vmatpush1.bf16.msra.mxu1 %v9258_v27  ;;  %v822_v27 = vld [vmem:[%s10797_s15 + $0x1278] sm:$0xff] }
 0x16f   : > { %9131 = vmatpush1.bf16.msra.mxu0 %v9130_v28  ;;  %v821_v28 = vld [vmem:[%s10797_s15 + $0x1270] sm:$0xff] }
 0x170   : > { %4052 = vmatmul.mubr.f32.gmra.mrb[144].mxu1 %v591_v29  ;;  %1625 = vmatmul.mubr.f32.gmra.mrb[144].mxu0 %v591_v29  ;;  %v681_v29 = vld [vmem:[%s10797_s15 + $0xe10] sm:$0xff] }
 0x171   : > { %4056 = vmatprep.mubr.f32.mxu1 %v597_v30  ;;  %1630 = vmatprep.mubr.f32.mxu0 %v597_v30  ;;  %v687_v30 = vld [vmem:[%s10797_s15 + $0xe40] sm:$0xff] }
 0x174   : > { %4057 = vmatmul.mubr.f32.gmra.mrb[146].mxu1 %v596_v31  ;;  %1631 = vmatmul.mubr.f32.gmra.mrb[146].mxu0 %v596_v31  ;;  %v686_v31 = vld [vmem:[%s10797_s15 + $0xe38] sm:$0xff] }
 0x175   : > { %4061 = vmatprep.mubr.f32.mxu1 %v602_v39  ;;  %1636 = vmatprep.mubr.f32.mxu0 %v602_v39  ;;  %v706_v39 = vld [vmem:[%s10797_s15 + $0xed8] sm:$0xff] }
 0x178   : > { %4062 = vmatmul.mubr.f32.gmra.mrb[148].mxu1 %v601_v42  ;;  %1637 = vmatmul.mubr.f32.gmra.mrb[148].mxu0 %v601_v42  ;;  %v717_v42 = vld [vmem:[%s10797_s15 + $0xf30] sm:$0xff] }
 0x179   : > { %4066 = vmatprep.mubr.f32.mxu1 %v607_v43  ;;  %1642 = vmatprep.mubr.f32.mxu0 %v607_v43  ;;  %v1065_v43 = vld [vmem:[%s15311_s1 + $0x610] sm:$0xff] }
 0x17c   : > { %4067 = vmatmul.mubr.f32.gmra.mrb[150].mxu1 %v606_v44  ;;  %1643 = vmatmul.mubr.f32.gmra.mrb[150].mxu0 %v606_v44  ;;  %v1068_v44 = vld [vmem:[%s15311_s1 + $0x628] sm:$0xff] }
 0x17d   : > { %4071 = vmatprep.mubr.f32.mxu1 %v612_v45  ;;  %1648 = vmatprep.mubr.f32.mxu0 %v612_v45  ;;  %v1064_v45 = vld [vmem:[%s15311_s1 + $0x608] sm:$0xff] }
 0x180   : > { %4072 = vmatmul.mubr.f32.gmra.mrb[152].mxu1 %v611_v46  ;;  %1649 = vmatmul.mubr.f32.gmra.mrb[152].mxu0 %v611_v46  ;;  %v716_v46 = vld [vmem:[%s10797_s15 + $0xf28] sm:$0xff] }
 0x181   : > { %4076 = vmatprep.mubr.f32.mxu1 %v617_v47  ;;  %1654 = vmatprep.mubr.f32.mxu0 %v617_v47  ;;  %v11442_v47 = vpack.c.bf16 %v1068_v44, %v1065_v43  ;;  %v862_v43 = vld [vmem:[%s10797_s15 + $0x13b8] sm:$0xff]  ;;  %v861_v44 = vld [vmem:[%s10797_s15 + $0x13b0] sm:$0xff] }
 0x183   : > { %9261 = vmatprep.subr.bf16.mxu1 %v11442_v47 }
 0x184   : > { %4077 = vmatmul.mubr.f32.gmra.mrb[154].mxu1 %v616_v48  ;;  %1655 = vmatmul.mubr.f32.gmra.mrb[154].mxu0 %v616_v48  ;;  %v1067_v48 = vld [vmem:[%s15311_s1 + $0x620] sm:$0xff] }
 0x185   : > { %4081 = vmatprep.mubr.f32.mxu1 %v622_v49  ;;  %1660 = vmatprep.mubr.f32.mxu0 %v622_v49  ;;  %v722_v49 = vld [vmem:[%s10797_s15 + $0xf58] sm:$0xff] }
 0x188   : > { %4082 = vmatmul.mubr.f32.gmra.mrb[156].mxu1 %v621_v50  ;;  %1661 = vmatmul.mubr.f32.gmra.mrb[156].mxu0 %v621_v50  ;;  %v9132_v50 = vpack.c.bf16 %v1067_v48, %v1064_v45  ;;  %v867_v45 = vld [vmem:[%s10797_s15 + $0x13e0] sm:$0xff]  ;;  %v234_v48 = vld [vmem:[%s10797_s15 + $0x18] sm:$0xff] }
 0x189   : > { %4086 = vmatprep.mubr.f32.mxu1 %v627_v51  ;;  %1666 = vmatprep.mubr.f32.mxu0 %v627_v51  ;;  %v721_v51 = vld [vmem:[%s10797_s15 + $0xf50] sm:$0xff] }
 0x18a   : > { %9133 = vmatprep.subr.bf16.mxu0 %v9132_v50  ;;  %v1066_v50 = vld [vmem:[%s15311_s1 + $0x618] sm:$0xff] }
 0x18c   : > { %4087 = vmatmul.mubr.f32.gmra.mrb[158].mxu1 %v626_v52  ;;  %1667 = vmatmul.mubr.f32.gmra.mrb[158].mxu0 %v626_v52  ;;  %v727_v52 = vld [vmem:[%s10797_s15 + $0xf80] sm:$0xff] }
 0x18d   : > { %4091 = vmatprep.mubr.f32.mxu1 %v632_v53  ;;  %1672 = vmatprep.mubr.f32.mxu0 %v632_v53  ;;  %v726_v53 = vld [vmem:[%s10797_s15 + $0xf78] sm:$0xff] }
 0x190   : > { %4092 = vmatmul.mubr.f32.gmra.mrb[160].mxu1 %v631_v54  ;;  %1673 = vmatmul.mubr.f32.gmra.mrb[160].mxu0 %v631_v54  ;;  %v732_v54 = vld [vmem:[%s10797_s15 + $0xfa8] sm:$0xff] }
 0x191   : > { %4096 = vmatprep.mubr.f32.mxu1 %v637_v55  ;;  %1678 = vmatprep.mubr.f32.mxu0 %v637_v55  ;;  %v731_v55 = vld [vmem:[%s10797_s15 + $0xfa0] sm:$0xff] }
 0x194   : > { %4097 = vmatmul.mubr.f32.gmra.mrb[162].mxu1 %v636_v56  ;;  %1679 = vmatmul.mubr.f32.gmra.mrb[162].mxu0 %v636_v56  ;;  %v737_v56 = vld [vmem:[%s10797_s15 + $0xfd0] sm:$0xff] }
 0x195   : > { %4101 = vmatprep.mubr.f32.mxu1 %v642_v0  ;;  %1684 = vmatprep.mubr.f32.mxu0 %v642_v0  ;;  %v757_v0 = vld [vmem:[%s10797_s15 + $0x1070] sm:$0xff] }
 0x198   : > { %4102 = vmatmul.mubr.f32.gmra.mrb[164].mxu1 %v641_v4  ;;  %1685 = vmatmul.mubr.f32.gmra.mrb[164].mxu0 %v641_v4  ;;  %v761_v4 = vld [vmem:[%s10797_s15 + $0x1090] sm:$0xff] }
 0x199   : > { %4106 = vmatprep.mubr.f32.mxu1 %v647_v5  ;;  %1690 = vmatprep.mubr.f32.mxu0 %v647_v5  ;;  %v767_v5 = vld [vmem:[%s10797_s15 + $0x10c0] sm:$0xff] }
 0x19c   : > { %4107 = vmatmul.mubr.f32.gmra.mrb[166].mxu1 %v646_v6  ;;  %1691 = vmatmul.mubr.f32.gmra.mrb[166].mxu0 %v646_v6  ;;  %v766_v6 = vld [vmem:[%s10797_s15 + $0x10b8] sm:$0xff] }
 0x19d   : > { %4111 = vmatprep.mubr.f32.mxu1 %v652_v7  ;;  %1696 = vmatprep.mubr.f32.mxu0 %v652_v7  ;;  %v772_v7 = vld [vmem:[%s10797_s15 + $0x10e8] sm:$0xff] }
 0x1a0   : > { %4112 = vmatmul.mubr.f32.gmra.mrb[168].mxu1 %v651_v8  ;;  %1697 = vmatmul.mubr.f32.gmra.mrb[168].mxu0 %v651_v8  ;;  %v771_v8 = vld [vmem:[%s10797_s15 + $0x10e0] sm:$0xff] }
 0x1a1   : > { %4116 = vmatprep.mubr.f32.mxu1 %v657_v9  ;;  %1702 = vmatprep.mubr.f32.mxu0 %v657_v9  ;;  %v777_v9 = vld [vmem:[%s10797_s15 + $0x1110] sm:$0xff] }
 0x1a4   : > { %4117 = vmatmul.mubr.f32.gmra.mrb[170].mxu1 %v656_v10  ;;  %1703 = vmatmul.mubr.f32.gmra.mrb[170].mxu0 %v656_v10  ;;  %v776_v10 = vld [vmem:[%s10797_s15 + $0x1108] sm:$0xff] }
 0x1a5   : > { %4121 = vmatprep.mubr.f32.mxu1 %v662_v11  ;;  %1708 = vmatprep.mubr.f32.mxu0 %v662_v11  ;;  %v782_v11 = vld [vmem:[%s10797_s15 + $0x1138] sm:$0xff] }
 0x1a8   : > { %4122 = vmatmul.mubr.f32.gmra.mrb[172].mxu1 %v661_v12  ;;  %1709 = vmatmul.mubr.f32.gmra.mrb[172].mxu0 %v661_v12  ;;  %v781_v12 = vld [vmem:[%s10797_s15 + $0x1130] sm:$0xff] }
 0x1a9   : > { %4126 = vmatprep.mubr.f32.mxu1 %v667_v13  ;;  %1714 = vmatprep.mubr.f32.mxu0 %v667_v13  ;;  %v787_v13 = vld [vmem:[%s10797_s15 + $0x1160] sm:$0xff] }
 0x1ac   : > { %4127 = vmatmul.mubr.f32.gmra.mrb[174].mxu1 %v666_v14  ;;  %1715 = vmatmul.mubr.f32.gmra.mrb[174].mxu0 %v666_v14  ;;  %v786_v14 = vld [vmem:[%s10797_s15 + $0x1158] sm:$0xff] }
 0x1ad   : > { %4131 = vmatprep.mubr.f32.mxu1 %v672_v15  ;;  %1720 = vmatprep.mubr.f32.mxu0 %v672_v15  ;;  %v792_v15 = vld [vmem:[%s10797_s15 + $0x1188] sm:$0xff] }
 0x1b0   : > { %4132 = vmatmul.mubr.f32.gmra.mrb[176].mxu1 %v671_v16  ;;  %1721 = vmatmul.mubr.f32.gmra.mrb[176].mxu0 %v671_v16  ;;  %v791_v16 = vld [vmem:[%s10797_s15 + $0x1180] sm:$0xff] }
 0x1b1   : > { %4136 = vmatprep.mubr.f32.mxu1 %v677_v17  ;;  %1726 = vmatprep.mubr.f32.mxu0 %v677_v17  ;;  %v797_v17 = vld [vmem:[%s10797_s15 + $0x11b0] sm:$0xff] }
 0x1b4   : > { %4137 = vmatmul.mubr.f32.gmra.mrb[178].mxu1 %v676_v18  ;;  %1727 = vmatmul.mubr.f32.gmra.mrb[178].mxu0 %v676_v18  ;;  %v796_v18 = vld [vmem:[%s10797_s15 + $0x11a8] sm:$0xff] }
 0x1b5   : > { %4141 = vmatprep.mubr.f32.mxu1 %v682_v26  ;;  %1732 = vmatprep.mubr.f32.mxu0 %v682_v26  ;;  %v816_v26 = vld [vmem:[%s10797_s15 + $0x1248] sm:$0xff] }
 0x1b8   : > { %4142 = vmatmul.mubr.f32.gmra.mrb[180].mxu1 %v681_v29  ;;  %1733 = vmatmul.mubr.f32.gmra.mrb[180].mxu0 %v681_v29  ;;  %v827_v29 = vld [vmem:[%s10797_s15 + $0x12a0] sm:$0xff] }
 0x1b9   : > { %4146 = vmatprep.mubr.f32.mxu1 %v687_v30  ;;  %1738 = vmatprep.mubr.f32.mxu0 %v687_v30  ;;  %v826_v30 = vld [vmem:[%s10797_s15 + $0x1298] sm:$0xff] }
 0x1bc   : > { %4147 = vmatmul.mubr.f32.gmra.mrb[182].mxu1 %v686_v31  ;;  %1739 = vmatmul.mubr.f32.gmra.mrb[182].mxu0 %v686_v31  ;;  %v832_v31 = vld [vmem:[%s10797_s15 + $0x12c8] sm:$0xff] }
 0x1bd   : > { %4151 = vmatprep.mubr.f32.mxu1 %v692_v32  ;;  %1744 = vmatprep.mubr.f32.mxu0 %v692_v32  ;;  %v831_v32 = vld [vmem:[%s10797_s15 + $0x12c0] sm:$0xff] }
 0x1c0   : > { %4152 = vmatmul.mubr.f32.gmra.mrb[184].mxu1 %v691_v33  ;;  %1745 = vmatmul.mubr.f32.gmra.mrb[184].mxu0 %v691_v33  ;;  %v837_v33 = vld [vmem:[%s10797_s15 + $0x12f0] sm:$0xff] }
 0x1c1   : > { %4156 = vmatprep.mubr.f32.mxu1 %v697_v34  ;;  %1750 = vmatprep.mubr.f32.mxu0 %v697_v34  ;;  %v836_v34 = vld [vmem:[%s10797_s15 + $0x12e8] sm:$0xff] }
 0x1c4   : > { %4157 = vmatmul.mubr.f32.gmra.mrb[186].mxu1 %v696_v35  ;;  %1751 = vmatmul.mubr.f32.gmra.mrb[186].mxu0 %v696_v35  ;;  %v842_v35 = vld [vmem:[%s10797_s15 + $0x1318] sm:$0xff] }
 0x1c5   : > { %4161 = vmatprep.mubr.f32.mxu1 %v702_v36  ;;  %1756 = vmatprep.mubr.f32.mxu0 %v702_v36  ;;  %v841_v36 = vld [vmem:[%s10797_s15 + $0x1310] sm:$0xff] }
 0x1c8   : > { %4162 = vmatmul.mubr.f32.gmra.mrb[188].mxu1 %v701_v37  ;;  %1757 = vmatmul.mubr.f32.gmra.mrb[188].mxu0 %v701_v37  ;;  %v847_v37 = vld [vmem:[%s10797_s15 + $0x1340] sm:$0xff] }
 0x1c9   : > { %4166 = vmatprep.mubr.f32.mxu1 %v707_v38  ;;  %1762 = vmatprep.mubr.f32.mxu0 %v707_v38  ;;  %v846_v38 = vld [vmem:[%s10797_s15 + $0x1338] sm:$0xff] }
 0x1cc   : > { %4167 = vmatmul.mubr.f32.gmra.mrb[190].mxu1 %v706_v39  ;;  %1763 = vmatmul.mubr.f32.gmra.mrb[190].mxu0 %v706_v39  ;;  %v852_v39 = vld [vmem:[%s10797_s15 + $0x1368] sm:$0xff] }
 0x1cd   : > { %4171 = vmatprep.mubr.f32.mxu1 %v712_v40  ;;  %1768 = vmatprep.mubr.f32.mxu0 %v712_v40  ;;  %v851_v40 = vld [vmem:[%s10797_s15 + $0x1360] sm:$0xff] }
 0x1d0   : > { %4172 = vmatmul.mubr.f32.gmra.mrb[192].mxu1 %v711_v41  ;;  %1769 = vmatmul.mubr.f32.gmra.mrb[192].mxu0 %v711_v41  ;;  %v857_v41 = vld [vmem:[%s10797_s15 + $0x1390] sm:$0xff] }
 0x1d1   : > { %4176 = vmatprep.mubr.f32.mxu1 %v717_v42  ;;  %1774 = vmatprep.mubr.f32.mxu0 %v717_v42  ;;  %v856_v42 = vld [vmem:[%s10797_s15 + $0x1388] sm:$0xff] }
 0x1d4   : > { %4177 = vmatmul.mubr.f32.gmra.mrb[194].mxu1 %v716_v46  ;;  %1775 = vmatmul.mubr.f32.gmra.mrb[194].mxu0 %v716_v46  ;;  %v866_v46 = vld [vmem:[%s10797_s15 + $0x13d8] sm:$0xff] }
 0x1d5   : > { %4181 = vmatprep.mubr.f32.mxu1 %v722_v49  ;;  %1780 = vmatprep.mubr.f32.mxu0 %v722_v49  ;;  %v1063_v49 = vld [vmem:[%s15311_s1 + $0x600] sm:$0xff] }
 0x1d8   : > { %4182 = vmatmul.mubr.f32.gmra.mrb[196].mxu1 %v721_v51  ;;  %1781 = vmatmul.mubr.f32.gmra.mrb[196].mxu0 %v721_v51  ;;  %v1071_v51 = vld [vmem:[%s15311_s1 + $0x640] sm:$0xff] }
 0x1d9   : > { %4186 = vmatprep.mubr.f32.mxu1 %v727_v52  ;;  %1786 = vmatprep.mubr.f32.mxu0 %v727_v52  ;;  %v1074_v52 = vld [vmem:[%s15311_s1 + $0x658] sm:$0xff] }
 0x1dc   : > { %4187 = vmatmul.mubr.f32.gmra.mrb[198].mxu1 %v726_v53  ;;  %1787 = vmatmul.mubr.f32.gmra.mrb[198].mxu0 %v726_v53  ;;  %v1070_v53 = vld [vmem:[%s15311_s1 + $0x638] sm:$0xff] }
 0x1dd   : > { %4191 = vmatprep.mubr.f32.mxu1 %v732_v54  ;;  %1792 = vmatprep.mubr.f32.mxu0 %v732_v54  ;;  %v1073_v54 = vld [vmem:[%s15311_s1 + $0x650] sm:$0xff] }
 0x1e0   : > { %4192 = vmatmul.mubr.f32.gmra.mrb[200].mxu1 %v731_v55  ;;  %1793 = vmatmul.mubr.f32.gmra.mrb[200].mxu0 %v731_v55  ;;  %v233_v55 = vld [vmem:[%s10797_s15 + $0x10] sm:$0xff] }
 0x1e1   : > { %4196 = vmatprep.mubr.f32.mxu1 %v737_v56  ;;  %1798 = vmatprep.mubr.f32.mxu0 %v737_v56  ;;  %v9134_v56 = vpack.c.bf16 %v1066_v50, %v1063_v49  ;;  %v324_v49 = vld [vmem:[%s10797_s15 + $0x2e8] sm:$0xff] }
 0x1e4   : > { %4197 = vmatmul.mubr.f32.gmra.mrb[202].mxu1 %v736_v57  ;;  %1799 = vmatmul.mubr.f32.gmra.mrb[202].mxu0 %v736_v57  ;;  %v239_v57 = vld [vmem:[%s10797_s15 + $0x40] sm:$0xff] }
 0x1e5   : > { %4201 = vmatprep.mubr.f32.mxu1 %v742_v58  ;;  %1804 = vmatprep.mubr.f32.mxu0 %v742_v58  ;;  %v9264_v58 = vpack.c.bf16 %v1074_v52, %v1071_v51  ;;  %v323_v52 = vld [vmem:[%s10797_s15 + $0x2e0] sm:$0xff] }
 0x1e8   : > { %4202 = vmatmul.mubr.f32.gmra.mrb[204].mxu1 %v741_v59  ;;  %1805 = vmatmul.mubr.f32.gmra.mrb[204].mxu0 %v741_v59  ;;  %v9136_v59 = vpack.c.bf16 %v1073_v54, %v1070_v53  ;;  %v329_v53 = vld [vmem:[%s10797_s15 + $0x310] sm:$0xff]  ;;  %v328_v54 = vld [vmem:[%s10797_s15 + $0x308] sm:$0xff] }
 0x1e9   : > { %4206 = vmatprep.mubr.f32.mxu1 %v747_v60  ;;  %1810 = vmatprep.mubr.f32.mxu0 %v747_v60  ;;  %v1069_v60 = vld [vmem:[%s15311_s1 + $0x630] sm:$0xff] }
 0x1ec   : > { %4207 = vmatmul.mubr.f32.gmra.mrb[206].mxu1 %v746_v61  ;;  %1811 = vmatmul.mubr.f32.gmra.mrb[206].mxu0 %v746_v61  ;;  %v1072_v61 = vld [vmem:[%s15311_s1 + $0x648] sm:$0xff] }
 0x1ed   : > { %4211 = vmatprep.mubr.f32.mxu1 %v752_v62  ;;  %1816 = vmatprep.mubr.f32.mxu0 %v752_v62  ;;  %v1077_v62 = vld [vmem:[%s15311_s1 + $0x670] sm:$0xff] }
 0x1f0   : > { %4212 = vmatmul.mubr.f32.gmra.mrb[208].mxu1 %v751_v63  ;;  %1817 = vmatmul.mubr.f32.gmra.mrb[208].mxu0 %v751_v63  ;;  %v1080_v63 = vld [vmem:[%s15311_s1 + $0x688] sm:$0xff] }
 0x1f1   : > { %4216 = vmatprep.mubr.f32.mxu1 %v757_v0  ;;  %1822 = vmatprep.mubr.f32.mxu0 %v757_v0  ;;  %v1076_v0 = vld [vmem:[%s15311_s1 + $0x668] sm:$0xff] }
 0x1f4   : > { %4217 = vmatmul.mubr.f32.gmra.mrb[210].mxu1 %v756_v1  ;;  %1823 = vmatmul.mubr.f32.gmra.mrb[210].mxu0 %v756_v1  ;;  %v238_v1 = vld [vmem:[%s10797_s15 + $0x38] sm:$0xff] }
 0x1f5   : > { %4221 = vmatprep.mubr.f32.mxu1 %v762_v2  ;;  %1828 = vmatprep.mubr.f32.mxu0 %v762_v2  ;;  %v1079_v2 = vld [vmem:[%s15311_s1 + $0x680] sm:$0xff] }
 0x1f8   : > { %4222 = vmatmul.mubr.f32.gmra.mrb[212].mxu1 %v761_v4  ;;  %1829 = vmatmul.mubr.f32.gmra.mrb[212].mxu0 %v761_v4  ;;  %v244_v4 = vld [vmem:[%s10797_s15 + $0x68] sm:$0xff] }
 0x1f9   : > { %4226 = vmatprep.mubr.f32.mxu1 %v767_v5  ;;  %1834 = vmatprep.mubr.f32.mxu0 %v767_v5  ;;  %v9138_v5 = vpack.c.bf16 %v1072_v61, %v1069_v60  ;;  %v343_v60 = vld [vmem:[%s10797_s15 + $0x380] sm:$0xff]  ;;  %v349_v61 = vld [vmem:[%s10797_s15 + $0x3b0] sm:$0xff] }
 0x1fc   : > { %4227 = vmatmul.mubr.f32.gmra.mrb[214].mxu1 %v766_v6  ;;  %1835 = vmatmul.mubr.f32.gmra.mrb[214].mxu0 %v766_v6  ;;  %v9268_v6 = vpack.c.bf16 %v1080_v63, %v1077_v62  ;;  %v348_v62 = vld [vmem:[%s10797_s15 + $0x3a8] sm:$0xff]  ;;  %v354_v63 = vld [vmem:[%s10797_s15 + $0x3d8] sm:$0xff] }
 0x1fd   : > { %4231 = vmatprep.mubr.f32.mxu1 %v772_v7  ;;  %1840 = vmatprep.mubr.f32.mxu0 %v772_v7  ;;  %v9140_v7 = vpack.c.bf16 %v1079_v2, %v1076_v0  ;;  %v353_v0 = vld [vmem:[%s10797_s15 + $0x3d0] sm:$0xff]  ;;  %v358_v2 = vld [vmem:[%s10797_s15 + $0x3f8] sm:$0xff] }
 0x200   : > { %4232 = vmatmul.mubr.f32.gmra.mrb[216].mxu1 %v771_v8  ;;  %1841 = vmatmul.mubr.f32.gmra.mrb[216].mxu0 %v771_v8  ;;  %v1078_v8 = vld [vmem:[%s15311_s1 + $0x678] sm:$0xff] }
 0x201   : > { %4236 = vmatprep.mubr.f32.mxu1 %v777_v9  ;;  %1846 = vmatprep.mubr.f32.mxu0 %v777_v9  ;;  %v243_v9 = vld [vmem:[%s10797_s15 + $0x60] sm:$0xff] }
 0x204   : > { %4237 = vmatmul.mubr.f32.gmra.mrb[218].mxu1 %v776_v10  ;;  %1847 = vmatmul.mubr.f32.gmra.mrb[218].mxu0 %v776_v10  ;;  %v249_v10 = vld [vmem:[%s10797_s15 + $0x90] sm:$0xff] }
 0x205   : > { %4241 = vmatprep.mubr.f32.mxu1 %v782_v11  ;;  %1852 = vmatprep.mubr.f32.mxu0 %v782_v11 }
 0x208   : > { %4242 = vmatmul.mubr.f32.gmra.mrb[220].mxu1 %v781_v12  ;;  %1853 = vmatmul.mubr.f32.gmra.mrb[220].mxu0 %v781_v12  ;;  %v248_v12 = vld [vmem:[%s10797_s15 + $0x88] sm:$0xff] }
 0x209   : > { %4246 = vmatprep.mubr.f32.mxu1 %v787_v13  ;;  %1858 = vmatprep.mubr.f32.mxu0 %v787_v13  ;;  %v254_v13 = vld [vmem:[%s10797_s15 + $0xb8] sm:$0xff] }
 0x20c   : > { %4247 = vmatmul.mubr.f32.gmra.mrb[222].mxu1 %v786_v14  ;;  %1859 = vmatmul.mubr.f32.gmra.mrb[222].mxu0 %v786_v14  ;;  %v253_v14 = vld [vmem:[%s10797_s15 + $0xb0] sm:$0xff] }
 0x20d   : > { %4251 = vmatprep.mubr.f32.mxu1 %v792_v15  ;;  %1864 = vmatprep.mubr.f32.mxu0 %v792_v15  ;;  %v259_v15 = vld [vmem:[%s10797_s15 + $0xe0] sm:$0xff] }
 0x210   : > { %4252 = vmatmul.mubr.f32.gmra.mrb[224].mxu1 %v791_v16  ;;  %1865 = vmatmul.mubr.f32.gmra.mrb[224].mxu0 %v791_v16  ;;  %v258_v16 = vld [vmem:[%s10797_s15 + $0xd8] sm:$0xff] }
 0x211   : > { %4256 = vmatprep.mubr.f32.mxu1 %v797_v17  ;;  %1870 = vmatprep.mubr.f32.mxu0 %v797_v17  ;;  %v264_v17 = vld [vmem:[%s10797_s15 + $0x108] sm:$0xff] }
 0x214   : > { %4257 = vmatmul.mubr.f32.gmra.mrb[226].mxu1 %v796_v18  ;;  %1871 = vmatmul.mubr.f32.gmra.mrb[226].mxu0 %v796_v18  ;;  %v263_v18 = vld [vmem:[%s10797_s15 + $0x100] sm:$0xff] }
 0x215   : > { %4261 = vmatprep.mubr.f32.mxu1 %v802_v19  ;;  %1876 = vmatprep.mubr.f32.mxu0 %v802_v19  ;;  %v269_v19 = vld [vmem:[%s10797_s15 + $0x130] sm:$0xff] }
 0x218   : > { %4262 = vmatmul.mubr.f32.gmra.mrb[228].mxu1 %v801_v20  ;;  %1877 = vmatmul.mubr.f32.gmra.mrb[228].mxu0 %v801_v20  ;;  %v268_v20 = vld [vmem:[%s10797_s15 + $0x128] sm:$0xff] }
 0x219   : > { %4266 = vmatprep.mubr.f32.mxu1 %v807_v21  ;;  %1882 = vmatprep.mubr.f32.mxu0 %v807_v21  ;;  %v274_v21 = vld [vmem:[%s10797_s15 + $0x158] sm:$0xff] }
 0x21c   : > { %4267 = vmatmul.mubr.f32.gmra.mrb[230].mxu1 %v806_v22  ;;  %1883 = vmatmul.mubr.f32.gmra.mrb[230].mxu0 %v806_v22  ;;  %v273_v22 = vld [vmem:[%s10797_s15 + $0x150] sm:$0xff] }
 0x21d   : > { %4271 = vmatprep.mubr.f32.mxu1 %v812_v23  ;;  %1888 = vmatprep.mubr.f32.mxu0 %v812_v23  ;;  %v279_v23 = vld [vmem:[%s10797_s15 + $0x180] sm:$0xff] }
 0x220   : > { %4272 = vmatmul.mubr.f32.gmra.mrb[232].mxu1 %v811_v24  ;;  %1889 = vmatmul.mubr.f32.gmra.mrb[232].mxu0 %v811_v24  ;;  %v278_v24 = vld [vmem:[%s10797_s15 + $0x178] sm:$0xff] }
 0x221   : > { %4276 = vmatprep.mubr.f32.mxu1 %v817_v25  ;;  %1894 = vmatprep.mubr.f32.mxu0 %v817_v25  ;;  %v284_v25 = vld [vmem:[%s10797_s15 + $0x1a8] sm:$0xff] }
 0x224   : > { %4277 = vmatmul.mubr.f32.gmra.mrb[234].mxu1 %v816_v26  ;;  %1895 = vmatmul.mubr.f32.gmra.mrb[234].mxu0 %v816_v26  ;;  %v283_v26 = vld [vmem:[%s10797_s15 + $0x1a0] sm:$0xff] }
 0x225   : > { %4281 = vmatprep.mubr.f32.mxu1 %v822_v27  ;;  %1900 = vmatprep.mubr.f32.mxu0 %v822_v27  ;;  %v289_v27 = vld [vmem:[%s10797_s15 + $0x1d0] sm:$0xff] }
 0x228   : > { %4282 = vmatmul.mubr.f32.gmra.mrb[236].mxu1 %v821_v28  ;;  %1901 = vmatmul.mubr.f32.gmra.mrb[236].mxu0 %v821_v28  ;;  %v288_v28 = vld [vmem:[%s10797_s15 + $0x1c8] sm:$0xff] }
 0x229   : > { %4286 = vmatprep.mubr.f32.mxu1 %v827_v29  ;;  %1906 = vmatprep.mubr.f32.mxu0 %v827_v29  ;;  %v294_v29 = vld [vmem:[%s10797_s15 + $0x1f8] sm:$0xff] }
 0x22c   : > { %4287 = vmatmul.mubr.f32.gmra.mrb[238].mxu1 %v826_v30  ;;  %1907 = vmatmul.mubr.f32.gmra.mrb[238].mxu0 %v826_v30  ;;  %v293_v30 = vld [vmem:[%s10797_s15 + $0x1f0] sm:$0xff] }
 0x22d   : > { %4291 = vmatprep.mubr.f32.mxu1 %v832_v31  ;;  %1912 = vmatprep.mubr.f32.mxu0 %v832_v31  ;;  %v299_v31 = vld [vmem:[%s10797_s15 + $0x220] sm:$0xff] }
 0x230   : > { %4292 = vmatmul.mubr.f32.gmra.mrb[240].mxu1 %v831_v32  ;;  %1913 = vmatmul.mubr.f32.gmra.mrb[240].mxu0 %v831_v32  ;;  %v298_v32 = vld [vmem:[%s10797_s15 + $0x218] sm:$0xff] }
 0x231   : > { %4296 = vmatprep.mubr.f32.mxu1 %v837_v33  ;;  %1918 = vmatprep.mubr.f32.mxu0 %v837_v33  ;;  %v304_v33 = vld [vmem:[%s10797_s15 + $0x248] sm:$0xff] }
 0x234   : > { %4297 = vmatmul.mubr.f32.gmra.mrb[242].mxu1 %v836_v34  ;;  %1919 = vmatmul.mubr.f32.gmra.mrb[242].mxu0 %v836_v34  ;;  %v303_v34 = vld [vmem:[%s10797_s15 + $0x240] sm:$0xff] }
 0x235   : > { %4301 = vmatprep.mubr.f32.mxu1 %v842_v35  ;;  %1924 = vmatprep.mubr.f32.mxu0 %v842_v35  ;;  %v309_v35 = vld [vmem:[%s10797_s15 + $0x270] sm:$0xff] }
 0x238   : > { %4302 = vmatmul.mubr.f32.gmra.mrb[244].mxu1 %v841_v36  ;;  %1925 = vmatmul.mubr.f32.gmra.mrb[244].mxu0 %v841_v36  ;;  %v308_v36 = vld [vmem:[%s10797_s15 + $0x268] sm:$0xff] }
 0x239   : > { %4306 = vmatprep.mubr.f32.mxu1 %v847_v37  ;;  %1930 = vmatprep.mubr.f32.mxu0 %v847_v37  ;;  %v314_v37 = vld [vmem:[%s10797_s15 + $0x298] sm:$0xff] }
 0x23c   : > { %4307 = vmatmul.mubr.f32.gmra.mrb[246].mxu1 %v846_v38  ;;  %1931 = vmatmul.mubr.f32.gmra.mrb[246].mxu0 %v846_v38  ;;  %v313_v38 = vld [vmem:[%s10797_s15 + $0x290] sm:$0xff] }
 0x23d   : > { %4311 = vmatprep.mubr.f32.mxu1 %v852_v39  ;;  %1936 = vmatprep.mubr.f32.mxu0 %v852_v39  ;;  %v319_v39 = vld [vmem:[%s10797_s15 + $0x2c0] sm:$0xff] }
 0x240   : > { %4312 = vmatmul.mubr.f32.gmra.mrb[248].mxu1 %v851_v40  ;;  %1937 = vmatmul.mubr.f32.gmra.mrb[248].mxu0 %v851_v40  ;;  %v318_v40 = vld [vmem:[%s10797_s15 + $0x2b8] sm:$0xff] }
 0x241   : > { %4316 = vmatprep.mubr.f32.mxu1 %v857_v41  ;;  %1942 = vmatprep.mubr.f32.mxu0 %v857_v41  ;;  %v1083_v41 = vld [vmem:[%s15311_s1 + $0x6a0] sm:$0xff] }
 0x244   : > { %4317 = vmatmul.mubr.f32.gmra.mrb[250].mxu1 %v856_v42  ;;  %1943 = vmatmul.mubr.f32.gmra.mrb[250].mxu0 %v856_v42  ;;  %v1086_v42 = vld [vmem:[%s15311_s1 + $0x6b8] sm:$0xff] }
 0x245   : > { %4321 = vmatprep.mubr.f32.mxu1 %v862_v43  ;;  %1948 = vmatprep.mubr.f32.mxu0 %v862_v43  ;;  %v1082_v43 = vld [vmem:[%s15311_s1 + $0x698] sm:$0xff] }
 0x248   : > { %4322 = vmatmul.mubr.f32.gmra.mrb[252].mxu1 %v861_v44  ;;  %1949 = vmatmul.mubr.f32.gmra.mrb[252].mxu0 %v861_v44  ;;  %v9272_v44 = vpack.c.bf16 %v1086_v42, %v1083_v41  ;;  %v433_v41 = vld [vmem:[%s10797_s15 + $0x650] sm:$0xff]  ;;  %v439_v42 = vld [vmem:[%s10797_s15 + $0x680] sm:$0xff] }
 0x249   : > { %4326 = vmatprep.mubr.f32.mxu1 %v867_v45  ;;  %1954 = vmatprep.mubr.f32.mxu0 %v867_v45  ;;  %v1085_v45 = vld [vmem:[%s15311_s1 + $0x6b0] sm:$0xff] }
 0x24a   : > { %v9144_v50 = vpack.c.bf16 %v1085_v45, %v1082_v43  ;;  %v438_v43 = vld [vmem:[%s10797_s15 + $0x678] sm:$0xff]  ;;  %v443_v45 = vld [vmem:[%s10797_s15 + $0x6a0] sm:$0xff] }
 0x24c   : > { %4327 = vmatmul.mubr.f32.gmra.mrb[254].mxu1 %v866_v46  ;;  %1955 = vmatmul.mubr.f32.gmra.mrb[254].mxu0 %v866_v46  ;;  %v1081_v46 = vld [vmem:[%s15311_s1 + $0x690] sm:$0xff] }
 0x24d   : > { %4396 = vmatprep.mubr.f32.mxu1 %v234_v48  ;;  %2025 = vmatprep.mubr.f32.mxu0 %v234_v48  ;;  %v1084_v48 = vld [vmem:[%s15311_s1 + $0x6a8] sm:$0xff] }
 0x24e   : > { %v9146_v51 = vpack.c.bf16 %v1084_v48, %v1081_v46  ;;  %v449_v46 = vld [vmem:[%s10797_s15 + $0x6d0] sm:$0xff]  ;;  %v448_v48 = vld [vmem:[%s10797_s15 + $0x6c8] sm:$0xff] }
 0x250   : > { %4397 = vmatmul.mubr.f32.vlgmr.msra.gmra.mrb[0].mxu1 %v233_v55  ;;  %2026 = vmatmul.mubr.f32.vlgmr.msra.gmra.mrb[0].mxu0 %v233_v55  ;;  %v334_v55 = vld [vmem:[%s10797_s15 + $0x338] sm:$0xff] }
 0x251   : > { %9263 = vmatpush3.bf16.msra.mxu1 %v11442_v47  ;;  %9135 = vmatpush1.bf16.msra.mxu0 %v9134_v56  ;;  %v1075_v47 = vld [vmem:[%s15311_s1 + $0x660] sm:$0xff]  ;;  %v333_v56 = vld [vmem:[%s10797_s15 + $0x330] sm:$0xff] }
 0x252   : > { %4401 = vmatprep.mubr.f32.mxu1 %v239_v57  ;;  %2031 = vmatprep.mubr.f32.mxu0 %v239_v57  ;;  %v9142_v11 = vpack.c.bf16 %v1078_v8, %v1075_v47  ;;  %v339_v57 = vld [vmem:[%s10797_s15 + $0x360] sm:$0xff]  ;;  %v374_v47 = vld [vmem:[%s10797_s15 + $0x478] sm:$0xff]  ;;  %v373_v8 = vld [vmem:[%s10797_s15 + $0x470] sm:$0xff] }
 0x253   : > { %9265 = vmatprep.subr.bf16.mxu1 %v9264_v58  ;;  %9137 = vmatprep.subr.bf16.mxu0 %v9136_v59  ;;  %v344_v59 = vld [vmem:[%s10797_s15 + $0x388] sm:$0xff] }
 0x254   : > { %4402 = vmatmul.mubr.f32.gmra.mrb[2].mxu1 %v238_v1  ;;  %2032 = vmatmul.mubr.f32.gmra.mrb[2].mxu0 %v238_v1  ;;  %v359_v1 = vld [vmem:[%s10797_s15 + $0x400] sm:$0xff] }
 0x255   : > { %4406 = vmatprep.mubr.f32.mxu1 %v244_v4  ;;  %2037 = vmatprep.mubr.f32.mxu0 %v244_v4  ;;  %v364_v4 = vld [vmem:[%s10797_s15 + $0x428] sm:$0xff] }
 0x256   : > { %9267 = vmatpush3.bf16.msra.mxu1 %v9264_v58  ;;  %9139 = vmatpush1.bf16.msra.mxu0 %v9138_v5  ;;  %v338_v58 = vld [vmem:[%s10797_s15 + $0x358] sm:$0xff]  ;;  %v363_v5 = vld [vmem:[%s10797_s15 + $0x420] sm:$0xff] }
 0x257   : > { %9269 = vmatprep.subr.bf16.mxu1 %v9268_v6  ;;  %9141 = vmatprep.subr.bf16.mxu0 %v9140_v7  ;;  %v368_v7 = vld [vmem:[%s10797_s15 + $0x448] sm:$0xff] }
 0x258   : > { %4407 = vmatmul.mubr.f32.gmra.mrb[4].mxu1 %v243_v9  ;;  %2038 = vmatmul.mubr.f32.gmra.mrb[4].mxu0 %v243_v9  ;;  %v379_v9 = vld [vmem:[%s10797_s15 + $0x4a0] sm:$0xff] }
 0x259   : > { %4411 = vmatprep.mubr.f32.mxu1 %v249_v10  ;;  %2043 = vmatprep.mubr.f32.mxu0 %v249_v10  ;;  %v378_v10 = vld [vmem:[%s10797_s15 + $0x498] sm:$0xff] }
 0x25a   : > { %9271 = vmatpush3.bf16.msra.mxu1 %v9268_v6  ;;  %9143 = vmatpush1.bf16.msra.mxu0 %v9142_v11  ;;  %v369_v6 = vld [vmem:[%s10797_s15 + $0x450] sm:$0xff]  ;;  %v384_v11 = vld [vmem:[%s10797_s15 + $0x4c8] sm:$0xff] }
 0x25b   : > { %9273 = vmatprep.subr.bf16.mxu1 %v9272_v44  ;;  %9145 = vmatprep.subr.bf16.mxu0 %v9144_v50  ;;  %v453_v50 = vld [vmem:[%s10797_s15 + $0x6f0] sm:$0xff] }
 0x25c   : > { %4412 = vmatmul.mubr.f32.gmra.mrb[6].mxu1 %v248_v12  ;;  %2044 = vmatmul.mubr.f32.gmra.mrb[6].mxu0 %v248_v12  ;;  %v383_v12 = vld [vmem:[%s10797_s15 + $0x4c0] sm:$0xff] }
 0x25d   : > { %4416 = vmatprep.mubr.f32.mxu1 %v254_v13  ;;  %2049 = vmatprep.mubr.f32.mxu0 %v254_v13  ;;  %v389_v13 = vld [vmem:[%s10797_s15 + $0x4f0] sm:$0xff] }
 0x25e   : > { %9275 = vmatpush3.bf16.msra.mxu1 %v9272_v44  ;;  %9147 = vmatpush1.bf16.msra.mxu0 %v9146_v51  ;;  %v444_v44 = vld [vmem:[%s10797_s15 + $0x6a8] sm:$0xff]  ;;  %v459_v51 = vld [vmem:[%s10797_s15 + $0x720] sm:$0xff] }
 0x260   : > { %4417 = vmatmul.mubr.f32.gmra.mrb[8].mxu1 %v253_v14  ;;  %2050 = vmatmul.mubr.f32.gmra.mrb[8].mxu0 %v253_v14  ;;  %v388_v14 = vld [vmem:[%s10797_s15 + $0x4e8] sm:$0xff] }
 0x261   : > { %4421 = vmatprep.mubr.f32.mxu1 %v259_v15  ;;  %2055 = vmatprep.mubr.f32.mxu0 %v259_v15  ;;  %v394_v15 = vld [vmem:[%s10797_s15 + $0x518] sm:$0xff] }
 0x264   : > { %4422 = vmatmul.mubr.f32.gmra.mrb[10].mxu1 %v258_v16  ;;  %2056 = vmatmul.mubr.f32.gmra.mrb[10].mxu0 %v258_v16  ;;  %v393_v16 = vld [vmem:[%s10797_s15 + $0x510] sm:$0xff] }
 0x265   : > { %4426 = vmatprep.mubr.f32.mxu1 %v264_v17  ;;  %2061 = vmatprep.mubr.f32.mxu0 %v264_v17  ;;  %v399_v17 = vld [vmem:[%s10797_s15 + $0x540] sm:$0xff] }
 0x268   : > { %4427 = vmatmul.mubr.f32.gmra.mrb[12].mxu1 %v263_v18  ;;  %2062 = vmatmul.mubr.f32.gmra.mrb[12].mxu0 %v263_v18  ;;  %v398_v18 = vld [vmem:[%s10797_s15 + $0x538] sm:$0xff] }
 0x269   : > { %4431 = vmatprep.mubr.f32.mxu1 %v269_v19  ;;  %2067 = vmatprep.mubr.f32.mxu0 %v269_v19  ;;  %v1089_v19 = vld [vmem:[%s15311_s1 + $0x6d0] sm:$0xff] }
 0x26c   : > { %4432 = vmatmul.mubr.f32.gmra.mrb[14].mxu1 %v268_v20  ;;  %2068 = vmatmul.mubr.f32.gmra.mrb[14].mxu0 %v268_v20  ;;  %v1092_v20 = vld [vmem:[%s15311_s1 + $0x6e8] sm:$0xff] }
 0x26d   : > { %4436 = vmatprep.mubr.f32.mxu1 %v274_v21  ;;  %2073 = vmatprep.mubr.f32.mxu0 %v274_v21  ;;  %v1088_v21 = vld [vmem:[%s15311_s1 + $0x6c8] sm:$0xff] }
 0x270   : > { %4437 = vmatmul.mubr.f32.gmra.mrb[16].mxu1 %v273_v22  ;;  %2074 = vmatmul.mubr.f32.gmra.mrb[16].mxu0 %v273_v22  ;;  %v9276_v22 = vpack.c.bf16 %v1092_v20, %v1089_v19 }
 0x271   : > { %4441 = vmatprep.mubr.f32.mxu1 %v279_v23  ;;  %2079 = vmatprep.mubr.f32.mxu0 %v279_v23  ;;  %v1091_v23 = vld [vmem:[%s15311_s1 + $0x6e0] sm:$0xff] }
 0x272   : > { %9277 = vmatprep.subr.bf16.mxu1 %v9276_v22 }
 0x273   : > { %9279 = vmatpush3.bf16.msra.mxu1 %v9276_v22  ;;  %v514_v22 = vld [vmem:[%s10797_s15 + $0x8d8] sm:$0xff] }
 0x274   : > { %4442 = vmatmul.mubr.f32.gmra.mrb[18].mxu1 %v278_v24  ;;  %2080 = vmatmul.mubr.f32.gmra.mrb[18].mxu0 %v278_v24  ;;  %v1087_v24 = vld [vmem:[%s15311_s1 + $0x6c0] sm:$0xff] }
 0x275   : > { %4446 = vmatprep.mubr.f32.mxu1 %v284_v25  ;;  %2085 = vmatprep.mubr.f32.mxu0 %v284_v25  ;;  %v1090_v25 = vld [vmem:[%s15311_s1 + $0x6d8] sm:$0xff] }
 0x278   : > { %4447 = vmatmul.mubr.f32.gmra.mrb[20].mxu1 %v283_v26  ;;  %2086 = vmatmul.mubr.f32.gmra.mrb[20].mxu0 %v283_v26  ;;  %v404_v26 = vld [vmem:[%s10797_s15 + $0x568] sm:$0xff] }
 0x279   : > { %4451 = vmatprep.mubr.f32.mxu1 %v289_v27  ;;  %2091 = vmatprep.mubr.f32.mxu0 %v289_v27  ;;  %v9148_v27 = vpack.c.bf16 %v1091_v23, %v1088_v21  ;;  %v508_v21 = vld [vmem:[%s10797_s15 + $0x8a8] sm:$0xff] }
 0x27b   : > { %9149 = vmatprep.subr.bf16.mxu0 %v9148_v27 }
 0x27c   : > { %4452 = vmatmul.mubr.f32.gmra.mrb[22].mxu1 %v288_v28  ;;  %2092 = vmatmul.mubr.f32.gmra.mrb[22].mxu0 %v288_v28  ;;  %v9150_v28 = vpack.c.bf16 %v1090_v25, %v1087_v24  ;;  %v513_v25 = vld [vmem:[%s10797_s15 + $0x8d0] sm:$0xff] }
 0x27d   : > { %4456 = vmatprep.mubr.f32.mxu1 %v294_v29  ;;  %2097 = vmatprep.mubr.f32.mxu0 %v294_v29  ;;  %v403_v29 = vld [vmem:[%s10797_s15 + $0x560] sm:$0xff] }
 0x27e   : > { %9151 = vmatpush1.bf16.msra.mxu0 %v9150_v28 }
 0x280   : > { %4457 = vmatmul.mubr.f32.gmra.mrb[24].mxu1 %v293_v30  ;;  %2098 = vmatmul.mubr.f32.gmra.mrb[24].mxu0 %v293_v30  ;;  %v409_v30 = vld [vmem:[%s10797_s15 + $0x590] sm:$0xff] }
 0x281   : > { %4461 = vmatprep.mubr.f32.mxu1 %v299_v31  ;;  %2103 = vmatprep.mubr.f32.mxu0 %v299_v31  ;;  %v408_v31 = vld [vmem:[%s10797_s15 + $0x588] sm:$0xff] }
 0x284   : > { %4462 = vmatmul.mubr.f32.gmra.mrb[26].mxu1 %v298_v32  ;;  %2104 = vmatmul.mubr.f32.gmra.mrb[26].mxu0 %v298_v32  ;;  %v414_v32 = vld [vmem:[%s10797_s15 + $0x5b8] sm:$0xff] }
 0x285   : > { %4466 = vmatprep.mubr.f32.mxu1 %v304_v33  ;;  %2109 = vmatprep.mubr.f32.mxu0 %v304_v33  ;;  %v413_v33 = vld [vmem:[%s10797_s15 + $0x5b0] sm:$0xff] }
 0x288   : > { %4467 = vmatmul.mubr.f32.gmra.mrb[28].mxu1 %v303_v34  ;;  %2110 = vmatmul.mubr.f32.gmra.mrb[28].mxu0 %v303_v34  ;;  %v419_v34 = vld [vmem:[%s10797_s15 + $0x5e0] sm:$0xff] }
 0x289   : > { %4471 = vmatprep.mubr.f32.mxu1 %v309_v35  ;;  %2115 = vmatprep.mubr.f32.mxu0 %v309_v35  ;;  %v418_v35 = vld [vmem:[%s10797_s15 + $0x5d8] sm:$0xff] }
 0x28c   : > { %4472 = vmatmul.mubr.f32.gmra.mrb[30].mxu1 %v308_v36  ;;  %2116 = vmatmul.mubr.f32.gmra.mrb[30].mxu0 %v308_v36  ;;  %v424_v36 = vld [vmem:[%s10797_s15 + $0x608] sm:$0xff] }
 0x28d   : > { %4476 = vmatprep.mubr.f32.mxu1 %v314_v37  ;;  %2121 = vmatprep.mubr.f32.mxu0 %v314_v37  ;;  %v423_v37 = vld [vmem:[%s10797_s15 + $0x600] sm:$0xff] }
 0x290   : > { %4477 = vmatmul.mubr.f32.gmra.mrb[32].mxu1 %v313_v38  ;;  %2122 = vmatmul.mubr.f32.gmra.mrb[32].mxu0 %v313_v38  ;;  %v429_v38 = vld [vmem:[%s10797_s15 + $0x630] sm:$0xff] }
 0x291   : > { %4481 = vmatprep.mubr.f32.mxu1 %v319_v39  ;;  %2127 = vmatprep.mubr.f32.mxu0 %v319_v39  ;;  %v428_v39 = vld [vmem:[%s10797_s15 + $0x628] sm:$0xff] }
 0x294   : > { %4482 = vmatmul.mubr.f32.gmra.mrb[34].mxu1 %v318_v40  ;;  %2128 = vmatmul.mubr.f32.gmra.mrb[34].mxu0 %v318_v40  ;;  %v434_v40 = vld [vmem:[%s10797_s15 + $0x658] sm:$0xff] }
 0x295   : > { %4486 = vmatprep.mubr.f32.mxu1 %v324_v49  ;;  %2133 = vmatprep.mubr.f32.mxu0 %v324_v49  ;;  %v454_v49 = vld [vmem:[%s10797_s15 + $0x6f8] sm:$0xff] }
 0x298   : > { %4487 = vmatmul.mubr.f32.gmra.mrb[36].mxu1 %v323_v52  ;;  %2134 = vmatmul.mubr.f32.gmra.mrb[36].mxu0 %v323_v52  ;;  %v458_v52 = vld [vmem:[%s10797_s15 + $0x718] sm:$0xff] }
 0x299   : > { %4491 = vmatprep.mubr.f32.mxu1 %v329_v53  ;;  %2139 = vmatprep.mubr.f32.mxu0 %v329_v53  ;;  %v464_v53 = vld [vmem:[%s10797_s15 + $0x748] sm:$0xff] }
 0x29c   : > { %4492 = vmatmul.mubr.f32.gmra.mrb[38].mxu1 %v328_v54  ;;  %2140 = vmatmul.mubr.f32.gmra.mrb[38].mxu0 %v328_v54  ;;  %v463_v54 = vld [vmem:[%s10797_s15 + $0x740] sm:$0xff] }
 0x29d   : > { %4496 = vmatprep.mubr.f32.mxu1 %v334_v55  ;;  %2145 = vmatprep.mubr.f32.mxu0 %v334_v55  ;;  %v469_v55 = vld [vmem:[%s10797_s15 + $0x770] sm:$0xff] }
 0x2a0   : > { %4497 = vmatmul.mubr.f32.gmra.mrb[40].mxu1 %v333_v56  ;;  %2146 = vmatmul.mubr.f32.gmra.mrb[40].mxu0 %v333_v56  ;;  %v468_v56 = vld [vmem:[%s10797_s15 + $0x768] sm:$0xff] }
 0x2a1   : > { %4501 = vmatprep.mubr.f32.mxu1 %v339_v57  ;;  %2151 = vmatprep.mubr.f32.mxu0 %v339_v57  ;;  %v474_v57 = vld [vmem:[%s10797_s15 + $0x798] sm:$0xff] }
 0x2a4   : > { %4502 = vmatmul.mubr.f32.gmra.mrb[42].mxu1 %v338_v58  ;;  %2152 = vmatmul.mubr.f32.gmra.mrb[42].mxu0 %v338_v58  ;;  %v473_v58 = vld [vmem:[%s10797_s15 + $0x790] sm:$0xff] }
 0x2a5   : > { %4506 = vmatprep.mubr.f32.mxu1 %v344_v59  ;;  %2157 = vmatprep.mubr.f32.mxu0 %v344_v59  ;;  %v479_v59 = vld [vmem:[%s10797_s15 + $0x7c0] sm:$0xff] }
 0x2a8   : > { %4507 = vmatmul.mubr.f32.gmra.mrb[44].mxu1 %v343_v60  ;;  %2158 = vmatmul.mubr.f32.gmra.mrb[44].mxu0 %v343_v60  ;;  %v478_v60 = vld [vmem:[%s10797_s15 + $0x7b8] sm:$0xff] }
 0x2a9   : > { %4511 = vmatprep.mubr.f32.mxu1 %v349_v61  ;;  %2163 = vmatprep.mubr.f32.mxu0 %v349_v61  ;;  %v1095_v61 = vld [vmem:[%s15311_s1 + $0x700] sm:$0xff] }
 0x2ac   : > { %4512 = vmatmul.mubr.f32.gmra.mrb[46].mxu1 %v348_v62  ;;  %2164 = vmatmul.mubr.f32.gmra.mrb[46].mxu0 %v348_v62  ;;  %v1098_v62 = vld [vmem:[%s15311_s1 + $0x718] sm:$0xff] }
 0x2ad   : > { %4516 = vmatprep.mubr.f32.mxu1 %v354_v63  ;;  %2169 = vmatprep.mubr.f32.mxu0 %v354_v63  ;;  %v1094_v63 = vld [vmem:[%s15311_s1 + $0x6f8] sm:$0xff] }
 0x2b0   : > { %4517 = vmatmul.mubr.f32.gmra.mrb[48].mxu1 %v353_v0  ;;  %2170 = vmatmul.mubr.f32.gmra.mrb[48].mxu0 %v353_v0  ;;  %v9280_v0 = vpack.c.bf16 %v1098_v62, %v1095_v61  ;;  %v558_v61 = vld [vmem:[%s10797_s15 + $0xa38] sm:$0xff] }
 0x2b1   : > { %4521 = vmatprep.mubr.f32.mxu1 %v359_v1  ;;  %2175 = vmatprep.mubr.f32.mxu0 %v359_v1  ;;  %v1097_v1 = vld [vmem:[%s15311_s1 + $0x710] sm:$0xff] }
 0x2b2   : > { %9281 = vmatprep.subr.bf16.mxu1 %v9280_v0 }
 0x2b3   : > { %9283 = vmatpush3.bf16.msra.mxu1 %v9280_v0  ;;  %v1104_v0 = vld [vmem:[%s15311_s1 + $0x748] sm:$0xff] }
 0x2b4   : > { %4522 = vmatmul.mubr.f32.gmra.mrb[50].mxu1 %v358_v2  ;;  %2176 = vmatmul.mubr.f32.gmra.mrb[50].mxu0 %v358_v2  ;;  %v1093_v2 = vld [vmem:[%s15311_s1 + $0x6f0] sm:$0xff] }
 0x2b5   : > { %4526 = vmatprep.mubr.f32.mxu1 %v364_v4  ;;  %2181 = vmatprep.mubr.f32.mxu0 %v364_v4  ;;  %v1096_v4 = vld [vmem:[%s15311_s1 + $0x708] sm:$0xff] }
 0x2b8   : > { %4527 = vmatmul.mubr.f32.gmra.mrb[52].mxu1 %v363_v5  ;;  %2182 = vmatmul.mubr.f32.gmra.mrb[52].mxu0 %v363_v5  ;;  %v484_v5 = vld [vmem:[%s10797_s15 + $0x7e8] sm:$0xff] }
 0x2b9   : > { %4531 = vmatprep.mubr.f32.mxu1 %v369_v6  ;;  %2187 = vmatprep.mubr.f32.mxu0 %v369_v6  ;;  %v9152_v6 = vpack.c.bf16 %v1097_v1, %v1094_v63  ;;  %v1101_v63 = vld [vmem:[%s15311_s1 + $0x730] sm:$0xff]  ;;  %v1100_v1 = vld [vmem:[%s15311_s1 + $0x728] sm:$0xff] }
 0x2bb   : > { %9153 = vmatprep.subr.bf16.mxu0 %v9152_v6  ;;  %v1102_v6 = vld [vmem:[%s15311_s1 + $0x738] sm:$0xff] }
 0x2bc   : > { %4532 = vmatmul.mubr.f32.gmra.mrb[54].mxu1 %v368_v7  ;;  %2188 = vmatmul.mubr.f32.gmra.mrb[54].mxu0 %v368_v7  ;;  %v9154_v7 = vpack.c.bf16 %v1096_v4, %v1093_v2  ;;  %v9284_v2 = vpack.c.bf16 %v1104_v0, %v1101_v63  ;;  %v1103_v4 = vld [vmem:[%s15311_s1 + $0x740] sm:$0xff]  ;;  %v613_v0 = vld [vmem:[%s10797_s15 + $0xbf0] sm:$0xff] }
 0x2bd   : > { %4536 = vmatprep.mubr.f32.mxu1 %v374_v47  ;;  %2193 = vmatprep.mubr.f32.mxu0 %v374_v47  ;;  %v483_v47 = vld [vmem:[%s10797_s15 + $0x7e0] sm:$0xff] }
 0x2be   : > { %9155 = vmatpush1.bf16.msra.mxu0 %v9154_v7  ;;  %v564_v7 = vld [vmem:[%s10797_s15 + $0xa68] sm:$0xff]  ;;  %9285 = vmatprep.subr.bf16.mxu1 %v9284_v2 }
 0x2bf   : > { %9287 = vmatpush3.bf16.msra.mxu1 %v9284_v2 }
 0x2c0   : > { %4537 = vmatmul.mubr.f32.gmra.mrb[56].mxu1 %v373_v8  ;;  %2194 = vmatmul.mubr.f32.gmra.mrb[56].mxu0 %v373_v8  ;;  %v489_v8 = vld [vmem:[%s10797_s15 + $0x810] sm:$0xff] }
 0x2c1   : > { %4541 = vmatprep.mubr.f32.mxu1 %v379_v9  ;;  %2199 = vmatprep.mubr.f32.mxu0 %v379_v9  ;;  %v488_v9 = vld [vmem:[%s10797_s15 + $0x808] sm:$0xff] }
 0x2c4   : > { %4542 = vmatmul.mubr.f32.gmra.mrb[58].mxu1 %v378_v10  ;;  %2200 = vmatmul.mubr.f32.gmra.mrb[58].mxu0 %v378_v10  ;;  %v494_v10 = vld [vmem:[%s10797_s15 + $0x838] sm:$0xff] }
 0x2c5   : > { %4546 = vmatprep.mubr.f32.mxu1 %v384_v11  ;;  %2205 = vmatprep.mubr.f32.mxu0 %v384_v11  ;;  %v493_v11 = vld [vmem:[%s10797_s15 + $0x830] sm:$0xff] }
 0x2c8   : > { %4547 = vmatmul.mubr.f32.gmra.mrb[60].mxu1 %v383_v12  ;;  %2206 = vmatmul.mubr.f32.gmra.mrb[60].mxu0 %v383_v12  ;;  %v499_v12 = vld [vmem:[%s10797_s15 + $0x860] sm:$0xff] }
 0x2c9   : > { %4551 = vmatprep.mubr.f32.mxu1 %v389_v13  ;;  %2211 = vmatprep.mubr.f32.mxu0 %v389_v13  ;;  %v498_v13 = vld [vmem:[%s10797_s15 + $0x858] sm:$0xff] }
 0x2cc   : > { %4552 = vmatmul.mubr.f32.gmra.mrb[62].mxu1 %v388_v14  ;;  %2212 = vmatmul.mubr.f32.gmra.mrb[62].mxu0 %v388_v14  ;;  %v504_v14 = vld [vmem:[%s10797_s15 + $0x888] sm:$0xff] }
 0x2cd   : > { %4556 = vmatprep.mubr.f32.mxu1 %v394_v15  ;;  %2217 = vmatprep.mubr.f32.mxu0 %v394_v15 }
 0x2d0   : > { %4557 = vmatmul.mubr.f32.gmra.mrb[64].mxu1 %v393_v16  ;;  %2218 = vmatmul.mubr.f32.gmra.mrb[64].mxu0 %v393_v16 }
 0x2d1   : > { %4561 = vmatprep.mubr.f32.mxu1 %v399_v17  ;;  %2223 = vmatprep.mubr.f32.mxu0 %v399_v17  ;;  %v503_v17 = vld [vmem:[%s10797_s15 + $0x880] sm:$0xff] }
 0x2d4   : > { %4562 = vmatmul.mubr.f32.gmra.mrb[66].mxu1 %v398_v18  ;;  %2224 = vmatmul.mubr.f32.gmra.mrb[66].mxu0 %v398_v18  ;;  %v509_v18 = vld [vmem:[%s10797_s15 + $0x8b0] sm:$0xff] }
 0x2d5   : > { %4566 = vmatprep.mubr.f32.mxu1 %v404_v26  ;;  %2229 = vmatprep.mubr.f32.mxu0 %v404_v26  ;;  %v519_v26 = vld [vmem:[%s10797_s15 + $0x900] sm:$0xff] }
 0x2d8   : > { %4567 = vmatmul.mubr.f32.gmra.mrb[68].mxu1 %v403_v29  ;;  %2230 = vmatmul.mubr.f32.gmra.mrb[68].mxu0 %v403_v29  ;;  %v518_v29 = vld [vmem:[%s10797_s15 + $0x8f8] sm:$0xff] }
 0x2d9   : > { %4571 = vmatprep.mubr.f32.mxu1 %v409_v30  ;;  %2235 = vmatprep.mubr.f32.mxu0 %v409_v30  ;;  %v524_v30 = vld [vmem:[%s10797_s15 + $0x928] sm:$0xff] }
 0x2dc   : > { %4572 = vmatmul.mubr.f32.gmra.mrb[70].mxu1 %v408_v31  ;;  %2236 = vmatmul.mubr.f32.gmra.mrb[70].mxu0 %v408_v31 }
 0x2dd   : > { %4576 = vmatprep.mubr.f32.mxu1 %v414_v32  ;;  %2241 = vmatprep.mubr.f32.mxu0 %v414_v32 }
 0x2e0   : > { %4577 = vmatmul.mubr.f32.gmra.mrb[72].mxu1 %v413_v33  ;;  %2242 = vmatmul.mubr.f32.gmra.mrb[72].mxu0 %v413_v33  ;;  %v523_v33 = vld [vmem:[%s10797_s15 + $0x920] sm:$0xff] }
 0x2e1   : > { %4581 = vmatprep.mubr.f32.mxu1 %v419_v34  ;;  %2247 = vmatprep.mubr.f32.mxu0 %v419_v34  ;;  %v529_v34 = vld [vmem:[%s10797_s15 + $0x950] sm:$0xff] }
 0x2e4   : > { %4582 = vmatmul.mubr.f32.gmra.mrb[74].mxu1 %v418_v35  ;;  %2248 = vmatmul.mubr.f32.gmra.mrb[74].mxu0 %v418_v35 }
 0x2e5   : > { %4586 = vmatprep.mubr.f32.mxu1 %v424_v36  ;;  %2253 = vmatprep.mubr.f32.mxu0 %v424_v36 }
 0x2e8   : > { %4587 = vmatmul.mubr.f32.gmra.mrb[76].mxu1 %v423_v37  ;;  %2254 = vmatmul.mubr.f32.gmra.mrb[76].mxu0 %v423_v37  ;;  %v528_v37 = vld [vmem:[%s10797_s15 + $0x948] sm:$0xff] }
 0x2e9   : > { %4591 = vmatprep.mubr.f32.mxu1 %v429_v38  ;;  %2259 = vmatprep.mubr.f32.mxu0 %v429_v38  ;;  %v534_v38 = vld [vmem:[%s10797_s15 + $0x978] sm:$0xff] }
 0x2ec   : > { %4592 = vmatmul.mubr.f32.gmra.mrb[78].mxu1 %v428_v39  ;;  %2260 = vmatmul.mubr.f32.gmra.mrb[78].mxu0 %v428_v39 }
 0x2ed   : > { %4596 = vmatprep.mubr.f32.mxu1 %v434_v40  ;;  %2265 = vmatprep.mubr.f32.mxu0 %v434_v40 }
 0x2f0   : > { %4597 = vmatmul.mubr.f32.gmra.mrb[80].mxu1 %v433_v41  ;;  %2266 = vmatmul.mubr.f32.gmra.mrb[80].mxu0 %v433_v41  ;;  %v533_v41 = vld [vmem:[%s10797_s15 + $0x970] sm:$0xff] }
 0x2f1   : > { %4601 = vmatprep.mubr.f32.mxu1 %v439_v42  ;;  %2271 = vmatprep.mubr.f32.mxu0 %v439_v42  ;;  %v539_v42 = vld [vmem:[%s10797_s15 + $0x9a0] sm:$0xff] }
 0x2f4   : > { %4602 = vmatmul.mubr.f32.gmra.mrb[82].mxu1 %v438_v43  ;;  %2272 = vmatmul.mubr.f32.gmra.mrb[82].mxu0 %v438_v43 }
 0x2f5   : > { %4606 = vmatprep.mubr.f32.mxu1 %v444_v44  ;;  %2277 = vmatprep.mubr.f32.mxu0 %v444_v44 }
 0x2f8   : > { %4607 = vmatmul.mubr.f32.gmra.mrb[84].mxu1 %v443_v45  ;;  %2278 = vmatmul.mubr.f32.gmra.mrb[84].mxu0 %v443_v45  ;;  %v538_v45 = vld [vmem:[%s10797_s15 + $0x998] sm:$0xff] }
 0x2f9   : > { %4611 = vmatprep.mubr.f32.mxu1 %v449_v46  ;;  %2283 = vmatprep.mubr.f32.mxu0 %v449_v46  ;;  %v544_v46 = vld [vmem:[%s10797_s15 + $0x9c8] sm:$0xff] }
 0x2fc   : > { %4612 = vmatmul.mubr.f32.gmra.mrb[86].mxu1 %v448_v48  ;;  %2284 = vmatmul.mubr.f32.gmra.mrb[86].mxu0 %v448_v48 }
 0x2fd   : > { %4616 = vmatprep.mubr.f32.mxu1 %v454_v49  ;;  %2289 = vmatprep.mubr.f32.mxu0 %v454_v49 }
 0x300   : > { %4617 = vmatmul.mubr.f32.gmra.mrb[88].mxu1 %v453_v50  ;;  %2290 = vmatmul.mubr.f32.gmra.mrb[88].mxu0 %v453_v50  ;;  %v543_v50 = vld [vmem:[%s10797_s15 + $0x9c0] sm:$0xff] }
 0x301   : > { %4621 = vmatprep.mubr.f32.mxu1 %v459_v51  ;;  %2295 = vmatprep.mubr.f32.mxu0 %v459_v51  ;;  %v549_v51 = vld [vmem:[%s10797_s15 + $0x9f0] sm:$0xff] }
 0x304   : > { %4622 = vmatmul.mubr.f32.gmra.mrb[90].mxu1 %v458_v52  ;;  %2296 = vmatmul.mubr.f32.gmra.mrb[90].mxu0 %v458_v52 }
 0x305   : > { %4626 = vmatprep.mubr.f32.mxu1 %v464_v53  ;;  %2301 = vmatprep.mubr.f32.mxu0 %v464_v53 }
 0x308   : > { %4627 = vmatmul.mubr.f32.gmra.mrb[92].mxu1 %v463_v54  ;;  %2302 = vmatmul.mubr.f32.gmra.mrb[92].mxu0 %v463_v54  ;;  %v548_v54 = vld [vmem:[%s10797_s15 + $0x9e8] sm:$0xff] }
 0x309   : > { %4631 = vmatprep.mubr.f32.mxu1 %v469_v55  ;;  %2307 = vmatprep.mubr.f32.mxu0 %v469_v55  ;;  %v554_v55 = vld [vmem:[%s10797_s15 + $0xa18] sm:$0xff] }
 0x30c   : > { %4632 = vmatmul.mubr.f32.gmra.mrb[94].mxu1 %v468_v56  ;;  %2308 = vmatmul.mubr.f32.gmra.mrb[94].mxu0 %v468_v56 }
 0x30d   : > { %4636 = vmatprep.mubr.f32.mxu1 %v474_v57  ;;  %2313 = vmatprep.mubr.f32.mxu0 %v474_v57 }
 0x310   : > { %4637 = vmatmul.mubr.f32.gmra.mrb[96].mxu1 %v473_v58  ;;  %2314 = vmatmul.mubr.f32.gmra.mrb[96].mxu0 %v473_v58  ;;  %v553_v58 = vld [vmem:[%s10797_s15 + $0xa10] sm:$0xff] }
 0x311   : > { %4641 = vmatprep.mubr.f32.mxu1 %v479_v59  ;;  %2319 = vmatprep.mubr.f32.mxu0 %v479_v59  ;;  %v559_v59 = vld [vmem:[%s10797_s15 + $0xa40] sm:$0xff] }
 0x314   : > { %4642 = vmatmul.mubr.f32.gmra.mrb[98].mxu1 %v478_v60  ;;  %2320 = vmatmul.mubr.f32.gmra.mrb[98].mxu0 %v478_v60 }
 0x315   : > { %4646 = vmatprep.mubr.f32.mxu1 %v484_v5  ;;  %2325 = vmatprep.mubr.f32.mxu0 %v484_v5  ;;  %v1099_v5 = vld [vmem:[%s15311_s1 + $0x720] sm:$0xff] }
 0x318   : > { %4647 = vmatmul.mubr.f32.gmra.mrb[100].mxu1 %v483_v47  ;;  %2326 = vmatmul.mubr.f32.gmra.mrb[100].mxu0 %v483_v47  ;;  %v9156_v47 = vpack.c.bf16 %v1103_v4, %v1100_v1  ;;  %v619_v1 = vld [vmem:[%s10797_s15 + $0xc20] sm:$0xff] }
 0x319   : > { %4651 = vmatprep.mubr.f32.mxu1 %v489_v8  ;;  %2331 = vmatprep.mubr.f32.mxu0 %v489_v8 }
 0x31a   : > { %9157 = vmatprep.subr.bf16.mxu0 %v9156_v47 }
 0x31c   : > { %4652 = vmatmul.mubr.f32.gmra.mrb[102].mxu1 %v488_v9  ;;  %2332 = vmatmul.mubr.f32.gmra.mrb[102].mxu0 %v488_v9  ;;  %v9158_v9 = vpack.c.bf16 %v1102_v6, %v1099_v5  ;;  %v618_v5 = vld [vmem:[%s10797_s15 + $0xc18] sm:$0xff]  ;;  %v624_v6 = vld [vmem:[%s10797_s15 + $0xc48] sm:$0xff] }
 0x31d   : > { %4656 = vmatprep.mubr.f32.mxu1 %v494_v10  ;;  %2337 = vmatprep.mubr.f32.mxu0 %v494_v10 }
 0x31e   : > { %9159 = vmatpush1.bf16.msra.mxu0 %v9158_v9  ;;  %v623_v9 = vld [vmem:[%s10797_s15 + $0xc40] sm:$0xff] }
 0x320   : > { %4657 = vmatmul.mubr.f32.gmra.mrb[104].mxu1 %v493_v11  ;;  %2338 = vmatmul.mubr.f32.gmra.mrb[104].mxu0 %v493_v11  ;;  %v563_v11 = vld [vmem:[%s10797_s15 + $0xa60] sm:$0xff] }
 0x321   : > { %4661 = vmatprep.mubr.f32.mxu1 %v499_v12  ;;  %2343 = vmatprep.mubr.f32.mxu0 %v499_v12  ;;  %v569_v12 = vld [vmem:[%s10797_s15 + $0xa90] sm:$0xff] }
 0x323   : > { %v11714_v15 = vpop.f32.mrb[0].mxu1 }
 0x324   : > { %v4400_v16 = vpop.f32.mrb[1].mxu1  ;;  %4662 = vmatmul.mubr.f32.gmra.mrb[106].mxu1 %v498_v13  ;;  %2344 = vmatmul.mubr.f32.gmra.mrb[106].mxu0 %v498_v13 }
 0x325   : > { %4666 = vmatprep.mubr.f32.mxu1 %v504_v14  ;;  %2349 = vmatprep.mubr.f32.mxu0 %v504_v14  ;;  %v568_v16 = vld [vmem:[%s10797_s15 + $0xa88] sm:$0xff] }
 0x327   : > { %v11718_v19 = vpop.f32.mrb[2].mxu1 }
 0x328   : > { %v4405_v20 = vpop.f32.mrb[3].mxu1  ;;  %4667 = vmatmul.mubr.f32.gmra.mrb[108].mxu1 %v503_v17  ;;  %2350 = vmatmul.mubr.f32.gmra.mrb[108].mxu0 %v503_v17  ;;  %v574_v17 = vld [vmem:[%s10797_s15 + $0xab8] sm:$0xff] }
 0x329   : > { %4671 = vmatprep.mubr.f32.mxu1 %v509_v18  ;;  %2355 = vmatprep.mubr.f32.mxu0 %v509_v18 }
 0x32b   : > { %v11722_v23 = vpop.f32.mrb[4].mxu1 }
 0x32c   : > { %v4410_v24 = vpop.f32.mrb[5].mxu1  ;;  %4672 = vmatmul.mubr.f32.gmra.mrb[110].mxu1 %v508_v21  ;;  %2356 = vmatmul.mubr.f32.gmra.mrb[110].mxu0 %v508_v21  ;;  %v573_v21 = vld [vmem:[%s10797_s15 + $0xab0] sm:$0xff] }
 0x32d   : > { %4676 = vmatprep.mubr.f32.mxu1 %v514_v22  ;;  %2361 = vmatprep.mubr.f32.mxu0 %v514_v22  ;;  %v579_v22 = vld [vmem:[%s10797_s15 + $0xae0] sm:$0xff] }
 0x32f   : > { %v11726_v27 = vpop.f32.mrb[6].mxu1 }
 0x330   : > { %v4415_v28 = vpop.f32.mrb[7].mxu1  ;;  %4677 = vmatmul.mubr.f32.gmra.mrb[112].mxu1 %v513_v25  ;;  %2362 = vmatmul.mubr.f32.gmra.mrb[112].mxu0 %v513_v25 }
 0x331   : > { %4681 = vmatprep.mubr.f32.mxu1 %v519_v26  ;;  %2367 = vmatprep.mubr.f32.mxu0 %v519_v26  ;;  %v578_v26 = vld [vmem:[%s10797_s15 + $0xad8] sm:$0xff]  ;;  %v584_v28 = vld [vmem:[%s10797_s15 + $0xb08] sm:$0xff] }
 0x333   : > { %v11730_v31 = vpop.f32.mrb[8].mxu1 }
 0x334   : > { %v4420_v32 = vpop.f32.mrb[9].mxu1  ;;  %4682 = vmatmul.mubr.f32.gmra.mrb[114].mxu1 %v518_v29  ;;  %2368 = vmatmul.mubr.f32.gmra.mrb[114].mxu0 %v518_v29 }
 0x335   : > { %4686 = vmatprep.mubr.f32.mxu1 %v524_v30  ;;  %2373 = vmatprep.mubr.f32.mxu0 %v524_v30  ;;  %v583_v32 = vld [vmem:[%s10797_s15 + $0xb00] sm:$0xff] }
 0x337   : > { %v11734_v35 = vpop.f32.mrb[10].mxu1 }
 0x338   : > { %v4425_v36 = vpop.f32.mrb[11].mxu1  ;;  %4687 = vmatmul.mubr.f32.gmra.mrb[116].mxu1 %v523_v33  ;;  %2374 = vmatmul.mubr.f32.gmra.mrb[116].mxu0 %v523_v33  ;;  %v589_v33 = vld [vmem:[%s10797_s15 + $0xb30] sm:$0xff] }
 0x339   : > { %4691 = vmatprep.mubr.f32.mxu1 %v529_v34  ;;  %2379 = vmatprep.mubr.f32.mxu0 %v529_v34 }
 0x33b   : > { %v11738_v39 = vpop.f32.mrb[12].mxu1 }
 0x33c   : > { %v4430_v40 = vpop.f32.mrb[13].mxu1  ;;  %4692 = vmatmul.mubr.f32.gmra.mrb[118].mxu1 %v528_v37  ;;  %2380 = vmatmul.mubr.f32.gmra.mrb[118].mxu0 %v528_v37  ;;  %v588_v37 = vld [vmem:[%s10797_s15 + $0xb28] sm:$0xff] }
 0x33d   : > { %4696 = vmatprep.mubr.f32.mxu1 %v534_v38  ;;  %2385 = vmatprep.mubr.f32.mxu0 %v534_v38  ;;  %v594_v38 = vld [vmem:[%s10797_s15 + $0xb58] sm:$0xff] }
 0x33f   : > { %v11742_v43 = vpop.f32.mrb[14].mxu1 }
 0x340   : > { %v4435_v44 = vpop.f32.mrb[15].mxu1  ;;  %4697 = vmatmul.mubr.f32.gmra.mrb[120].mxu1 %v533_v41  ;;  %2386 = vmatmul.mubr.f32.gmra.mrb[120].mxu0 %v533_v41 }
 0x341   : > { %4701 = vmatprep.mubr.f32.mxu1 %v539_v42  ;;  %2391 = vmatprep.mubr.f32.mxu0 %v539_v42  ;;  %v593_v42 = vld [vmem:[%s10797_s15 + $0xb50] sm:$0xff]  ;;  %v599_v44 = vld [vmem:[%s10797_s15 + $0xb80] sm:$0xff] }
 0x343   : > { %v11746_v48 = vpop.f32.mrb[16].mxu1 }
 0x344   : > { %v4440_v49 = vpop.f32.mrb[17].mxu1  ;;  %4702 = vmatmul.mubr.f32.gmra.mrb[122].mxu1 %v538_v45  ;;  %2392 = vmatmul.mubr.f32.gmra.mrb[122].mxu0 %v538_v45 }
 0x345   : > { %4706 = vmatprep.mubr.f32.mxu1 %v544_v46  ;;  %2397 = vmatprep.mubr.f32.mxu0 %v544_v46  ;;  %v598_v49 = vld [vmem:[%s10797_s15 + $0xb78] sm:$0xff] }
 0x347   : > { %v11750_v52 = vpop.f32.mrb[18].mxu1 }
 0x348   : > { %v4445_v53 = vpop.f32.mrb[19].mxu1  ;;  %4707 = vmatmul.mubr.f32.gmra.mrb[124].mxu1 %v543_v50  ;;  %2398 = vmatmul.mubr.f32.gmra.mrb[124].mxu0 %v543_v50  ;;  %v604_v50 = vld [vmem:[%s10797_s15 + $0xba8] sm:$0xff] }
 0x349   : > { %4711 = vmatprep.mubr.f32.mxu1 %v549_v51  ;;  %2403 = vmatprep.mubr.f32.mxu0 %v549_v51 }
 0x34b   : > { %v11754_v56 = vpop.f32.mrb[20].mxu1 }
 0x34c   : > { %v4450_v57 = vpop.f32.mrb[21].mxu1  ;;  %4712 = vmatmul.mubr.f32.gmra.mrb[126].mxu1 %v548_v54  ;;  %2404 = vmatmul.mubr.f32.gmra.mrb[126].mxu0 %v548_v54  ;;  %v603_v54 = vld [vmem:[%s10797_s15 + $0xba0] sm:$0xff] }
 0x34d   : > { %4716 = vmatprep.mubr.f32.mxu1 %v554_v55  ;;  %2409 = vmatprep.mubr.f32.mxu0 %v554_v55  ;;  %v609_v55 = vld [vmem:[%s10797_s15 + $0xbd0] sm:$0xff] }
 0x34f   : > { %v11758_v60 = vpop.f32.mrb[22].mxu1 }
 0x350   : > { %v4455_v62 = vpop.f32.mrb[23].mxu1  ;;  %4717 = vmatmul.mubr.f32.gmra.mrb[128].mxu1 %v553_v58  ;;  %2410 = vmatmul.mubr.f32.gmra.mrb[128].mxu0 %v553_v58 }
 0x351   : > { %4721 = vmatprep.mubr.f32.mxu1 %v559_v59  ;;  %2415 = vmatprep.mubr.f32.mxu0 %v559_v59  ;;  %v608_v59 = vld [vmem:[%s10797_s15 + $0xbc8] sm:$0xff] }
 0x353   : > { %v11780_v8 = vpop.f32.mrb[24].mxu1 }
 0x354   : > { %v4460_v10 = vpop.f32.mrb[25].mxu1  ;;  %4722 = vmatmul.mubr.f32.gmra.mrb[130].mxu1 %v558_v61  ;;  %2416 = vmatmul.mubr.f32.gmra.mrb[130].mxu0 %v558_v61  ;;  %v614_v61 = vld [vmem:[%s10797_s15 + $0xbf8] sm:$0xff] }
 0x355   : > { %4726 = vmatprep.mubr.f32.mxu1 %v564_v7  ;;  %2421 = vmatprep.mubr.f32.mxu0 %v564_v7  ;;  %v629_v10 = vld [vmem:[%s10797_s15 + $0xc70] sm:$0xff] }
 0x357   : > { %v11784_v13 = vpop.f32.mrb[26].mxu1 }
 0x358   : > { %v4465_v14 = vpop.f32.mrb[27].mxu1  ;;  %4727 = vmatmul.mubr.f32.gmra.mrb[132].mxu1 %v563_v11  ;;  %2422 = vmatmul.mubr.f32.gmra.mrb[132].mxu0 %v563_v11 }
 0x359   : > { %4731 = vmatprep.mubr.f32.mxu1 %v569_v12  ;;  %2427 = vmatprep.mubr.f32.mxu0 %v569_v12  ;;  %v628_v14 = vld [vmem:[%s10797_s15 + $0xc68] sm:$0xff] }
 0x35b   : > { %v11788_v18 = vpop.f32.mrb[28].mxu1 }
 0x35c   : > { %v4470_v20 = vpop.f32.mrb[29].mxu1  ;;  %4732 = vmatmul.mubr.f32.gmra.mrb[134].mxu1 %v568_v16  ;;  %2428 = vmatmul.mubr.f32.gmra.mrb[134].mxu0 %v568_v16  ;;  %v634_v16 = vld [vmem:[%s10797_s15 + $0xc98] sm:$0xff] }
 0x35d   : > { %4736 = vmatprep.mubr.f32.mxu1 %v574_v17  ;;  %2433 = vmatprep.mubr.f32.mxu0 %v574_v17 }
 0x35f   : > { %v11792_v24 = vpop.f32.mrb[30].mxu1 }
 0x360   : > { %v4475_v25 = vpop.f32.mrb[31].mxu1  ;;  %4737 = vmatmul.mubr.f32.gmra.mrb[136].mxu1 %v573_v21  ;;  %2434 = vmatmul.mubr.f32.gmra.mrb[136].mxu0 %v573_v21  ;;  %v633_v21 = vld [vmem:[%s10797_s15 + $0xc90] sm:$0xff] }
 0x361   : > { %4741 = vmatprep.mubr.f32.mxu1 %v579_v22  ;;  %2439 = vmatprep.mubr.f32.mxu0 %v579_v22  ;;  %v639_v22 = vld [vmem:[%s10797_s15 + $0xcc0] sm:$0xff] }
 0x363   : > { %v11796_v29 = vpop.f32.mrb[32].mxu1 }
 0x364   : > { %v4480_v30 = vpop.f32.mrb[33].mxu1  ;;  %4742 = vmatmul.mubr.f32.gmra.mrb[138].mxu1 %v578_v26  ;;  %2440 = vmatmul.mubr.f32.gmra.mrb[138].mxu0 %v578_v26  ;;  %v638_v26 = vld [vmem:[%s10797_s15 + $0xcb8] sm:$0xff] }
 0x365   : > { %4746 = vmatprep.mubr.f32.mxu1 %v584_v28  ;;  %2445 = vmatprep.mubr.f32.mxu0 %v584_v28  ;;  %v1107_v30 = vld [vmem:[%s15311_s1 + $0x760] sm:$0xff] }
 0x367   : > { %v11800_v34 = vpop.f32.mrb[34].mxu1 }
 0x368   : > { %v4485_v36 = vpop.f32.mrb[35].mxu1  ;;  %4747 = vmatmul.mubr.f32.gmra.mrb[140].mxu1 %v583_v32  ;;  %2446 = vmatmul.mubr.f32.gmra.mrb[140].mxu0 %v583_v32  ;;  %v1110_v32 = vld [vmem:[%s15311_s1 + $0x778] sm:$0xff] }
 0x369   : > { %4751 = vmatprep.mubr.f32.mxu1 %v589_v33  ;;  %2451 = vmatprep.mubr.f32.mxu0 %v589_v33  ;;  %v1106_v33 = vld [vmem:[%s15311_s1 + $0x758] sm:$0xff]  ;;  %v9288_v36 = vpack.c.bf16 %v1110_v32, %v1107_v30  ;;  %v673_v32 = vld [vmem:[%s10797_s15 + $0xdd0] sm:$0xff] }
 0x36b   : > { %v11804_v40 = vpop.f32.mrb[36].mxu1  ;;  %9289 = vmatprep.subr.bf16.mxu1 %v9288_v36 }
 0x36c   : > { %v4490_v41 = vpop.f32.mrb[37].mxu1  ;;  %4752 = vmatmul.mubr.f32.gmra.mrb[142].mxu1 %v588_v37  ;;  %2452 = vmatmul.mubr.f32.gmra.mrb[142].mxu0 %v588_v37  ;;  %v1109_v37 = vld [vmem:[%s15311_s1 + $0x770] sm:$0xff] }
 0x36d   : > { %4756 = vmatprep.mubr.f32.mxu1 %v594_v38  ;;  %2457 = vmatprep.mubr.f32.mxu0 %v594_v38  ;;  %v1105_v38 = vld [vmem:[%s15311_s1 + $0x750] sm:$0xff]  ;;  %v1108_v41 = vld [vmem:[%s15311_s1 + $0x768] sm:$0xff] }
 0x36e   : > { %9291 = vmatpush3.bf16.msra.mxu1 %v9288_v36 }
 0x36f   : > { %v11808_v45 = vpop.f32.mrb[38].mxu1  ;;  %9292 = vmatprep.subr.bf16.mxu1 %v15316_v3  ;;  %v779_v3 = vld [vmem:[%s10797_s15 + $0x1120] sm:$0xff] }
 0x370   : > { %v4495_v46 = vpop.f32.mrb[39].mxu1  ;;  %4757 = vmatmul.mubr.f32.gmra.mrb[144].mxu1 %v593_v42  ;;  %2458 = vmatmul.mubr.f32.gmra.mrb[144].mxu0 %v593_v42  ;;  %v644_v42 = vld [vmem:[%s10797_s15 + $0xce8] sm:$0xff] }
 0x371   : > { %4761 = vmatprep.mubr.f32.mxu1 %v599_v44  ;;  %2463 = vmatprep.mubr.f32.mxu0 %v599_v44  ;;  %v9160_v44 = vpack.c.bf16 %v1109_v37, %v1106_v33  ;;  %v679_v33 = vld [vmem:[%s10797_s15 + $0xe00] sm:$0xff] }
 0x373   : > { %v11812_v51 = vpop.f32.mrb[40].mxu1  ;;  %9161 = vmatprep.subr.bf16.mxu0 %v9160_v44 }
 0x374   : > { %v4500_v53 = vpop.f32.mrb[41].mxu1  ;;  %4762 = vmatmul.mubr.f32.gmra.mrb[146].mxu1 %v598_v49  ;;  %2464 = vmatmul.mubr.f32.gmra.mrb[146].mxu0 %v598_v49  ;;  %v9162_v49 = vpack.c.bf16 %v1108_v41, %v1105_v38  ;;  %v678_v38 = vld [vmem:[%s10797_s15 + $0xdf8] sm:$0xff]  ;;  %v684_v41 = vld [vmem:[%s10797_s15 + $0xe28] sm:$0xff] }
 0x375   : > { %4766 = vmatprep.mubr.f32.mxu1 %v604_v50  ;;  %2469 = vmatprep.mubr.f32.mxu0 %v604_v50  ;;  %v643_v53 = vld [vmem:[%s10797_s15 + $0xce0] sm:$0xff] }
 0x376   : > { %9163 = vmatpush1.bf16.msra.mxu0 %v9162_v49  ;;  %v683_v49 = vld [vmem:[%s10797_s15 + $0xe20] sm:$0xff] }
 0x377   : > { %v11816_v57 = vpop.f32.mrb[42].mxu1 }
 0x378   : > { %v4505_v58 = vpop.f32.mrb[43].mxu1  ;;  %4767 = vmatmul.mubr.f32.gmra.mrb[148].mxu1 %v603_v54  ;;  %2470 = vmatmul.mubr.f32.gmra.mrb[148].mxu0 %v603_v54  ;;  %v649_v54 = vld [vmem:[%s10797_s15 + $0xd10] sm:$0xff] }
 0x379   : > { %4771 = vmatprep.mubr.f32.mxu1 %v609_v55  ;;  %2475 = vmatprep.mubr.f32.mxu0 %v609_v55 }
 0x37b   : > { %v11820_v62 = vpop.f32.mrb[44].mxu1 }
 0x37c   : > { %15327 = vst [vmem:[#allocation2_spill] sm:$0xff] %v11820_v62  ;;  %v4510_v63 = vpop.f32.mrb[45].mxu1  ;;  %4772 = vmatmul.mubr.f32.gmra.mrb[150].mxu1 %v608_v59  ;;  %2476 = vmatmul.mubr.f32.gmra.mrb[150].mxu0 %v608_v59  ;;  %v648_v59 = vld [vmem:[%s10797_s15 + $0xd08] sm:$0xff] }
 0x37d   : > { %4776 = vmatprep.mubr.f32.mxu1 %v614_v61  ;;  %2481 = vmatprep.mubr.f32.mxu0 %v614_v61  ;;  %v654_v61 = vld [vmem:[%s10797_s15 + $0xd38] sm:$0xff] }
 0x37f   : > { %v11824_v2 = vpop.f32.mrb[46].mxu1 }
 0x380   : > { %v4515_v4 = vpop.f32.mrb[47].mxu1  ;;  %4777 = vmatmul.mubr.f32.gmra.mrb[152].mxu1 %v613_v0  ;;  %2482 = vmatmul.mubr.f32.gmra.mrb[152].mxu0 %v613_v0 }
 0x381   : > { %4781 = vmatprep.mubr.f32.mxu1 %v619_v1  ;;  %2487 = vmatprep.mubr.f32.mxu0 %v619_v1  ;;  %v653_v1 = vld [vmem:[%s10797_s15 + $0xd30] sm:$0xff]  ;;  %v659_v4 = vld [vmem:[%s10797_s15 + $0xd60] sm:$0xff] }
 0x383   : > { %v11828_v7 = vpop.f32.mrb[48].mxu1 }
 0x384   : > { %15328 = vst [vmem:[#allocation3_spill] sm:$0xff] %v11828_v7  ;;  %v4520_v47 = vpop.f32.mrb[49].mxu1  ;;  %4782 = vmatmul.mubr.f32.gmra.mrb[154].mxu1 %v618_v5  ;;  %2488 = vmatmul.mubr.f32.gmra.mrb[154].mxu0 %v618_v5  ;;  %v12512_v7 = vld [vmem:[%s10797_s15 + $0x9d0] sm:$0xff] }
 0x385   : > { %4786 = vmatprep.mubr.f32.mxu1 %v624_v6  ;;  %2493 = vmatprep.mubr.f32.mxu0 %v624_v6  ;;  %v658_v47 = vld [vmem:[%s10797_s15 + $0xd58] sm:$0xff] }
 0x387   : > { %v11832_v11 = vpop.f32.mrb[50].mxu1 }
 0x388   : > { %15329 = vst [vmem:[#allocation4_spill] sm:$0xff] %v11832_v11  ;;  %v4525_v12 = vpop.f32.mrb[51].mxu1  ;;  %4787 = vmatmul.mubr.f32.gmra.mrb[156].mxu1 %v623_v9  ;;  %2494 = vmatmul.mubr.f32.gmra.mrb[156].mxu0 %v623_v9  ;;  %v664_v9 = vld [vmem:[%s10797_s15 + $0xd88] sm:$0xff] }
 0x389   : > { %4791 = vmatprep.mubr.f32.mxu1 %v629_v10  ;;  %2499 = vmatprep.mubr.f32.mxu0 %v629_v10 }
 0x38b   : > { %v11836_v17 = vpop.f32.mrb[52].mxu1 }
 0x38c   : > { %15330 = vst [vmem:[#allocation5_spill] sm:$0xff] %v11836_v17  ;;  %v4530_v20 = vpop.f32.mrb[53].mxu1  ;;  %4792 = vmatmul.mubr.f32.gmra.mrb[158].mxu1 %v628_v14  ;;  %2500 = vmatmul.mubr.f32.gmra.mrb[158].mxu0 %v628_v14  ;;  %v663_v14 = vld [vmem:[%s10797_s15 + $0xd80] sm:$0xff] }
 0x38d   : > { %4796 = vmatprep.mubr.f32.mxu1 %v634_v16  ;;  %2505 = vmatprep.mubr.f32.mxu0 %v634_v16  ;;  %v669_v16 = vld [vmem:[%s10797_s15 + $0xdb0] sm:$0xff] }
 0x38f   : > { %v11840_v25 = vpop.f32.mrb[54].mxu1 }
 0x390   : > { %15331 = vst [vmem:[#allocation6_spill] sm:$0xff] %v11840_v25  ;;  %v4535_v28 = vpop.f32.mrb[55].mxu1  ;;  %4797 = vmatmul.mubr.f32.gmra.mrb[160].mxu1 %v633_v21  ;;  %2506 = vmatmul.mubr.f32.gmra.mrb[160].mxu0 %v633_v21 }
 0x391   : > { %4801 = vmatprep.mubr.f32.mxu1 %v639_v22  ;;  %2511 = vmatprep.mubr.f32.mxu0 %v639_v22  ;;  %v668_v22 = vld [vmem:[%s10797_s15 + $0xda8] sm:$0xff] }
 0x393   : > { %v11862_v46 = vpop.f32.mrb[56].mxu1 }
 0x394   : > { %15332 = vst [vmem:[#allocation7_spill] sm:$0xff] %v11862_v46  ;;  %v4540_v50 = vpop.f32.mrb[57].mxu1  ;;  %4802 = vmatmul.mubr.f32.gmra.mrb[162].mxu1 %v638_v26  ;;  %2512 = vmatmul.mubr.f32.gmra.mrb[162].mxu0 %v638_v26  ;;  %v674_v26 = vld [vmem:[%s10797_s15 + $0xdd8] sm:$0xff] }
 0x395   : > { %4806 = vmatprep.mubr.f32.mxu1 %v644_v42  ;;  %2517 = vmatprep.mubr.f32.mxu0 %v644_v42  ;;  %v689_v50 = vld [vmem:[%s10797_s15 + $0xe50] sm:$0xff] }
 0x397   : > { %v11866_v55 = vpop.f32.mrb[58].mxu1 }
 0x398   : > { %15333 = vst [vmem:[#allocation8_spill] sm:$0xff] %v11866_v55  ;;  %v4545_v58 = vpop.f32.mrb[59].mxu1  ;;  %4807 = vmatmul.mubr.f32.gmra.mrb[164].mxu1 %v643_v53  ;;  %2518 = vmatmul.mubr.f32.gmra.mrb[164].mxu0 %v643_v53  ;;  %v12457_v55 = vld [vmem:[%s10797_s15 + $0x890] sm:$0xff] }
 0x399   : > { %4811 = vmatprep.mubr.f32.mxu1 %v649_v54  ;;  %2523 = vmatprep.mubr.f32.mxu0 %v649_v54  ;;  %v688_v58 = vld [vmem:[%s10797_s15 + $0xe48] sm:$0xff] }
 0x39b   : > { %v11871_v63 = vpop.f32.mrb[60].mxu1 }
 0x39c   : > { %15334 = vst [vmem:[#allocation9_spill] sm:$0xff] %v11871_v63  ;;  %v4550_v0 = vpop.f32.mrb[61].mxu1  ;;  %4812 = vmatmul.mubr.f32.gmra.mrb[166].mxu1 %v648_v59  ;;  %2524 = vmatmul.mubr.f32.gmra.mrb[166].mxu0 %v648_v59  ;;  %v694_v59 = vld [vmem:[%s10797_s15 + $0xe78] sm:$0xff]  ;;  %v12402_v63 = vld [vmem:[%s10797_s15 + $0x750] sm:$0xff] }
 0x39d   : > { %4816 = vmatprep.mubr.f32.mxu1 %v654_v61  ;;  %2529 = vmatprep.mubr.f32.mxu0 %v654_v61 }
 0x39f   : > { %v11875_v5 = vpop.f32.mrb[62].mxu1 }
 0x3a0   : > { %15335 = vst [vmem:[#allocation10_spill] sm:$0xff] %v11875_v5  ;;  %v4555_v6 = vpop.f32.mrb[63].mxu1  ;;  %4817 = vmatmul.mubr.f32.gmra.mrb[168].mxu1 %v653_v1  ;;  %2530 = vmatmul.mubr.f32.gmra.mrb[168].mxu0 %v653_v1  ;;  %v693_v1 = vld [vmem:[%s10797_s15 + $0xe70] sm:$0xff] }
 0x3a1   : > { %4821 = vmatprep.mubr.f32.mxu1 %v659_v4  ;;  %2535 = vmatprep.mubr.f32.mxu0 %v659_v4  ;;  %v699_v4 = vld [vmem:[%s10797_s15 + $0xea0] sm:$0xff] }
 0x3a3   : > { %v11879_v10 = vpop.f32.mrb[64].mxu1 }
 0x3a4   : > { %15336 = vst [vmem:[#allocation11_spill] sm:$0xff] %v11879_v10  ;;  %v4560_v12 = vpop.f32.mrb[65].mxu1  ;;  %4822 = vmatmul.mubr.f32.gmra.mrb[170].mxu1 %v658_v47  ;;  %2536 = vmatmul.mubr.f32.gmra.mrb[170].mxu0 %v658_v47 }
 0x3a5   : > { %4826 = vmatprep.mubr.f32.mxu1 %v664_v9  ;;  %2541 = vmatprep.mubr.f32.mxu0 %v664_v9  ;;  %v698_v9 = vld [vmem:[%s10797_s15 + $0xe98] sm:$0xff]  ;;  %v704_v12 = vld [vmem:[%s10797_s15 + $0xec8] sm:$0xff] }
 0x3a7   : > { %v11883_v20 = vpop.f32.mrb[66].mxu1 }
 0x3a8   : > { %15337 = vst [vmem:[#allocation12_spill] sm:$0xff] %v11883_v20  ;;  %v4565_v21 = vpop.f32.mrb[67].mxu1  ;;  %4827 = vmatmul.mubr.f32.gmra.mrb[172].mxu1 %v663_v14  ;;  %2542 = vmatmul.mubr.f32.gmra.mrb[172].mxu0 %v663_v14  ;;  %v12399_v20 = vld [vmem:[%s10797_s15 + $0x728] sm:$0xff] }
 0x3a9   : > { %4831 = vmatprep.mubr.f32.mxu1 %v669_v16  ;;  %2547 = vmatprep.mubr.f32.mxu0 %v669_v16  ;;  %v703_v21 = vld [vmem:[%s10797_s15 + $0xec0] sm:$0xff] }
 0x3ab   : > { %v11887_v28 = vpop.f32.mrb[68].mxu1 }
 0x3ac   : > { %15338 = vst [vmem:[#allocation13_spill] sm:$0xff] %v11887_v28  ;;  %v4570_v30 = vpop.f32.mrb[69].mxu1  ;;  %4832 = vmatmul.mubr.f32.gmra.mrb[174].mxu1 %v668_v22  ;;  %2548 = vmatmul.mubr.f32.gmra.mrb[174].mxu0 %v668_v22  ;;  %v709_v22 = vld [vmem:[%s10797_s15 + $0xef0] sm:$0xff] }
 0x3ad   : > { %4836 = vmatprep.mubr.f32.mxu1 %v674_v26  ;;  %2553 = vmatprep.mubr.f32.mxu0 %v674_v26  ;;  %v12347_v28 = vld [vmem:[%s10797_s15 + $0x610] sm:$0xff] }
 0x3af   : > { %v11891_v36 = vpop.f32.mrb[70].mxu1 }
 0x3b0   : > { %15339 = vst [vmem:[#allocation14_spill] sm:$0xff] %v11891_v36  ;;  %v4575_v37 = vpop.f32.mrb[71].mxu1  ;;  %4837 = vmatmul.mubr.f32.gmra.mrb[176].mxu1 %v673_v32  ;;  %2554 = vmatmul.mubr.f32.gmra.mrb[176].mxu0 %v673_v32  ;;  %v708_v32 = vld [vmem:[%s10797_s15 + $0xee8] sm:$0xff] }
 0x3b1   : > { %4841 = vmatprep.mubr.f32.mxu1 %v679_v33  ;;  %2559 = vmatprep.mubr.f32.mxu0 %v679_v33  ;;  %v714_v33 = vld [vmem:[%s10797_s15 + $0xf18] sm:$0xff] }
 0x3b3   : > { %v11895_v42 = vpop.f32.mrb[72].mxu1 }
 0x3b4   : > { %15340 = vst [vmem:[#allocation15_spill] sm:$0xff] %v11895_v42  ;;  %v4580_v44 = vpop.f32.mrb[73].mxu1  ;;  %4842 = vmatmul.mubr.f32.gmra.mrb[178].mxu1 %v678_v38  ;;  %2560 = vmatmul.mubr.f32.gmra.mrb[178].mxu0 %v678_v38 }
 0x3b5   : > { %4846 = vmatprep.mubr.f32.mxu1 %v684_v41  ;;  %2565 = vmatprep.mubr.f32.mxu0 %v684_v41  ;;  %v713_v41 = vld [vmem:[%s10797_s15 + $0xf10] sm:$0xff]  ;;  %v719_v44 = vld [vmem:[%s10797_s15 + $0xf40] sm:$0xff] }
 0x3b7   : > { %v11899_v53 = vpop.f32.mrb[74].mxu1 }
 0x3b8   : > { %15341 = vst [vmem:[#allocation16_spill] sm:$0xff] %v11899_v53  ;;  %v4585_v54 = vpop.f32.mrb[75].mxu1  ;;  %4847 = vmatmul.mubr.f32.gmra.mrb[180].mxu1 %v683_v49  ;;  %2566 = vmatmul.mubr.f32.gmra.mrb[180].mxu0 %v683_v49  ;;  %v12344_v53 = vld [vmem:[%s10797_s15 + $0x5e8] sm:$0xff] }
 0x3b9   : > { %4851 = vmatprep.mubr.f32.mxu1 %v689_v50  ;;  %2571 = vmatprep.mubr.f32.mxu0 %v689_v50  ;;  %v718_v54 = vld [vmem:[%s10797_s15 + $0xf38] sm:$0xff] }
 0x3bb   : > { %v11903_v61 = vpop.f32.mrb[76].mxu1 }
 0x3bc   : > { %15342 = vst [vmem:[#allocation17_spill] sm:$0xff] %v11903_v61  ;;  %v4590_v0 = vpop.f32.mrb[77].mxu1  ;;  %4852 = vmatmul.mubr.f32.gmra.mrb[182].mxu1 %v688_v58  ;;  %2572 = vmatmul.mubr.f32.gmra.mrb[182].mxu0 %v688_v58  ;;  %v6158_v58 = vld [vmem:[%s15313_s3 + $0x100] sm:$0xff]  ;;  %v12292_v61 = vld [vmem:[%s10797_s15 + $0x4d0] sm:$0xff] }
 0x3bd   : > { %4856 = vmatprep.mubr.f32.mxu1 %v694_v59  ;;  %2577 = vmatprep.mubr.f32.mxu0 %v694_v59  ;;  %v6159_v59 = vld [vmem:[%s15313_s3 + $0x108] sm:$0xff] }
 0x3be   : > { %v724_v0 = vld [vmem:[%s10797_s15 + $0xf68] sm:$0xff] }
 0x3bf   : > { %v11907_v6 = vpop.f32.mrb[78].mxu1 }
 0x3c0   : > { %15343 = vst [vmem:[#allocation18_spill] sm:$0xff] %v11907_v6  ;;  %v4595_v47 = vpop.f32.mrb[79].mxu1  ;;  %4857 = vmatmul.mubr.f32.gmra.mrb[184].mxu1 %v693_v1  ;;  %2578 = vmatmul.mubr.f32.gmra.mrb[184].mxu0 %v693_v1  ;;  %v11933_v1 = vpack.c.bf16 %v6159_v59, %v6158_v58  ;;  %v744_v58 = vld [vmem:[%s10797_s15 + $0x1008] sm:$0xff] }
 0x3c1   : > { %4861 = vmatprep.mubr.f32.mxu1 %v699_v4  ;;  %2583 = vmatprep.mubr.f32.mxu0 %v699_v4 }
 0x3c2   : > { %9341 = vmatprep.subr.bf16.mxu0 %v11933_v1 }
 0x3c3   : > { %v11911_v14 = vpop.f32.mrb[80].mxu1 }
 0x3c4   : > { %15344 = vst [vmem:[#allocation19_spill] sm:$0xff] %v11911_v14  ;;  %v4600_v16 = vpop.f32.mrb[81].mxu1  ;;  %4862 = vmatmul.mubr.f32.gmra.mrb[186].mxu1 %v698_v9  ;;  %2584 = vmatmul.mubr.f32.gmra.mrb[186].mxu0 %v698_v9  ;;  %v723_v9 = vld [vmem:[%s10797_s15 + $0xf60] sm:$0xff] }
 0x3c5   : > { %4866 = vmatprep.mubr.f32.mxu1 %v704_v12  ;;  %2589 = vmatprep.mubr.f32.mxu0 %v704_v12  ;;  %v729_v12 = vld [vmem:[%s10797_s15 + $0xf90] sm:$0xff]  ;;  %v12249_v14 = vld [vmem:[%s10797_s15 + $0x3e0] sm:$0xff] }
 0x3c7   : > { %v11915_v26 = vpop.f32.mrb[82].mxu1 }
 0x3c8   : > { %15345 = vst [vmem:[#allocation20_spill] sm:$0xff] %v11915_v26  ;;  %v4605_v30 = vpop.f32.mrb[83].mxu1  ;;  %4867 = vmatmul.mubr.f32.gmra.mrb[188].mxu1 %v703_v21  ;;  %2590 = vmatmul.mubr.f32.gmra.mrb[188].mxu0 %v703_v21  ;;  %v12289_v26 = vld [vmem:[%s10797_s15 + $0x4a8] sm:$0xff] }
 0x3c9   : > { %4871 = vmatprep.mubr.f32.mxu1 %v709_v22  ;;  %2595 = vmatprep.mubr.f32.mxu0 %v709_v22  ;;  %v728_v22 = vld [vmem:[%s10797_s15 + $0xf88] sm:$0xff]  ;;  %v734_v30 = vld [vmem:[%s10797_s15 + $0xfb8] sm:$0xff] }
 0x3cb   : > { %v11919_v37 = vpop.f32.mrb[84].mxu1 }
 0x3cc   : > { %15346 = vst [vmem:[#allocation21_spill] sm:$0xff] %v11919_v37  ;;  %v4610_v38 = vpop.f32.mrb[85].mxu1  ;;  %4872 = vmatmul.mubr.f32.gmra.mrb[190].mxu1 %v708_v32  ;;  %2596 = vmatmul.mubr.f32.gmra.mrb[190].mxu0 %v708_v32 }
 0x3cd   : > { %4876 = vmatprep.mubr.f32.mxu1 %v714_v33  ;;  %2601 = vmatprep.mubr.f32.mxu0 %v714_v33  ;;  %v733_v38 = vld [vmem:[%s10797_s15 + $0xfb0] sm:$0xff] }
 0x3cf   : > { %v11923_v49 = vpop.f32.mrb[86].mxu1 }
 0x3d0   : > { %15347 = vst [vmem:[#allocation22_spill] sm:$0xff] %v11923_v49  ;;  %v4615_v50 = vpop.f32.mrb[87].mxu1  ;;  %4877 = vmatmul.mubr.f32.gmra.mrb[192].mxu1 %v713_v41  ;;  %2602 = vmatmul.mubr.f32.gmra.mrb[192].mxu0 %v713_v41  ;;  %v739_v41 = vld [vmem:[%s10797_s15 + $0xfe0] sm:$0xff] }
 0x3d1   : > { %4881 = vmatprep.mubr.f32.mxu1 %v719_v44  ;;  %2607 = vmatprep.mubr.f32.mxu0 %v719_v44 }
 0x3d3   : > { %v11935_v4 = vpop.f32.mrb[88].mxu1 }
 0x3d4   : > { %15348 = vst [vmem:[#allocation23_spill] sm:$0xff] %v11935_v4  ;;  %v4620_v47 = vpop.f32.mrb[89].mxu1  ;;  %4882 = vmatmul.mubr.f32.gmra.mrb[194].mxu1 %v718_v54  ;;  %2608 = vmatmul.mubr.f32.gmra.mrb[194].mxu0 %v718_v54  ;;  %v738_v54 = vld [vmem:[%s10797_s15 + $0xfd8] sm:$0xff] }
 0x3d5   : > { %4886 = vmatprep.mubr.f32.mxu1 %v724_v0  ;;  %2613 = vmatprep.mubr.f32.mxu0 %v724_v0  ;;  %v743_v47 = vld [vmem:[%s10797_s15 + $0x1000] sm:$0xff] }
 0x3d7   : > { %v11940_v16 = vpop.f32.mrb[90].mxu1 }
 0x3d8   : > { %15349 = vst [vmem:[#allocation24_spill] sm:$0xff] %v11940_v16  ;;  %v4625_v21 = vpop.f32.mrb[91].mxu1  ;;  %4887 = vmatmul.mubr.f32.gmra.mrb[196].mxu1 %v723_v9  ;;  %2614 = vmatmul.mubr.f32.gmra.mrb[196].mxu0 %v723_v9  ;;  %v749_v9 = vld [vmem:[%s10797_s15 + $0x1030] sm:$0xff] }
 0x3d9   : > { %4891 = vmatprep.mubr.f32.mxu1 %v729_v12  ;;  %2619 = vmatprep.mubr.f32.mxu0 %v729_v12 }
 0x3db   : > { %v11944_v32 = vpop.f32.mrb[92].mxu1 }
 0x3dc   : > { %15350 = vst [vmem:[#allocation25_spill] sm:$0xff] %v11944_v32  ;;  %v4630_v33 = vpop.f32.mrb[93].mxu1  ;;  %4892 = vmatmul.mubr.f32.gmra.mrb[198].mxu1 %v728_v22  ;;  %2620 = vmatmul.mubr.f32.gmra.mrb[198].mxu0 %v728_v22  ;;  %v748_v22 = vld [vmem:[%s10797_s15 + $0x1028] sm:$0xff] }
 0x3dd   : > { %4896 = vmatprep.mubr.f32.mxu1 %v734_v30  ;;  %2625 = vmatprep.mubr.f32.mxu0 %v734_v30  ;;  %v754_v30 = vld [vmem:[%s10797_s15 + $0x1058] sm:$0xff] }
 0x3df   : > { %v11948_v44 = vpop.f32.mrb[94].mxu1 }
 0x3e0   : > { %15351 = vst [vmem:[#allocation26_spill] sm:$0xff] %v11948_v44  ;;  %v4635_v50 = vpop.f32.mrb[95].mxu1  ;;  %4897 = vmatmul.mubr.f32.gmra.mrb[200].mxu1 %v733_v38  ;;  %2626 = vmatmul.mubr.f32.gmra.mrb[200].mxu0 %v733_v38 }
 0x3e1   : > { %4901 = vmatprep.mubr.f32.mxu1 %v739_v41  ;;  %2631 = vmatprep.mubr.f32.mxu0 %v739_v41  ;;  %v753_v41 = vld [vmem:[%s10797_s15 + $0x1050] sm:$0xff]  ;;  %v759_v50 = vld [vmem:[%s10797_s15 + $0x1080] sm:$0xff] }
 0x3e3   : > { %v11952_v59 = vpop.f32.mrb[96].mxu1 }
 0x3e4   : > { %15352 = vst [vmem:[#allocation27_spill] sm:$0xff] %v11952_v59  ;;  %v4640_v0 = vpop.f32.mrb[97].mxu1  ;;  %4902 = vmatmul.mubr.f32.gmra.mrb[202].mxu1 %v738_v54  ;;  %2632 = vmatmul.mubr.f32.gmra.mrb[202].mxu0 %v738_v54  ;;  %v15382_v59 = vmov 0.0|0.0  }
 0x3e5   : > { %4906 = vmatprep.mubr.f32.mxu1 %v744_v58  ;;  %2637 = vmatprep.mubr.f32.mxu0 %v744_v58  ;;  %v758_v0 = vld [vmem:[%s10797_s15 + $0x1078] sm:$0xff] }
 0x3e7   : > { %v11956_v12 = vpop.f32.mrb[98].mxu1 }
 0x3e8   : > { %15353 = vst [vmem:[#allocation28_spill] sm:$0xff] %v11956_v12  ;;  %v4645_v21 = vpop.f32.mrb[99].mxu1  ;;  %4907 = vmatmul.mubr.f32.gmra.mrb[204].mxu1 %v743_v47  ;;  %2638 = vmatmul.mubr.f32.gmra.mrb[204].mxu0 %v743_v47  ;;  %v764_v47 = vld [vmem:[%s10797_s15 + $0x10a8] sm:$0xff] }
 0x3e9   : > { %4911 = vmatprep.mubr.f32.mxu1 %v749_v9  ;;  %2643 = vmatprep.mubr.f32.mxu0 %v749_v9 }
 0x3eb   : > { %v11960_v33 = vpop.f32.mrb[100].mxu1 }
 0x3ec   : > { %15354 = vst [vmem:[#allocation29_spill] sm:$0xff] %v11960_v33  ;;  %v4650_v38 = vpop.f32.mrb[101].mxu1  ;;  %4912 = vmatmul.mubr.f32.gmra.mrb[206].mxu1 %v748_v22  ;;  %2644 = vmatmul.mubr.f32.gmra.mrb[206].mxu0 %v748_v22  ;;  %v763_v22 = vld [vmem:[%s10797_s15 + $0x10a0] sm:$0xff]  ;;  %v6128_v33 = vld [vmem:[%s15313_s3 + $0x10] sm:$0xff] }
 0x3ed   : > { %4916 = vmatprep.mubr.f32.mxu1 %v754_v30  ;;  %2649 = vmatprep.mubr.f32.mxu0 %v754_v30  ;;  %v769_v30 = vld [vmem:[%s10797_s15 + $0x10d0] sm:$0xff] }
 0x3ef   : > { %v11964_v54 = vpop.f32.mrb[102].mxu1 }
 0x3f0   : > { %15355 = vst [vmem:[#allocation30_spill] sm:$0xff] %v11964_v54  ;;  %v4655_v58 = vpop.f32.mrb[103].mxu1  ;;  %4917 = vmatmul.mubr.f32.gmra.mrb[208].mxu1 %v753_v41  ;;  %2650 = vmatmul.mubr.f32.gmra.mrb[208].mxu0 %v753_v41 }
 0x3f1   : > { %4921 = vmatprep.mubr.f32.mxu1 %v759_v50  ;;  %2655 = vmatprep.mubr.f32.mxu0 %v759_v50  ;;  %v768_v50 = vld [vmem:[%s10797_s15 + $0x10c8] sm:$0xff]  ;;  %v774_v58 = vld [vmem:[%s10797_s15 + $0x10f8] sm:$0xff] }
 0x3f3   : > { %v11968_v9 = vpop.f32.mrb[104].mxu1 }
 0x3f4   : > { %15356 = vst [vmem:[#allocation31_spill] sm:$0xff] %v11968_v9  ;;  %v4660_v21 = vpop.f32.mrb[105].mxu1  ;;  %4922 = vmatmul.mubr.f32.gmra.mrb[210].mxu1 %v758_v0  ;;  %2656 = vmatmul.mubr.f32.gmra.mrb[210].mxu0 %v758_v0  ;;  %v784_v9 = vld [vmem:[%s10797_s15 + $0x1148] sm:$0xff] }
 0x3f5   : > { %4926 = vmatprep.mubr.f32.mxu1 %v764_v47  ;;  %2661 = vmatprep.mubr.f32.mxu0 %v764_v47  ;;  %v773_v47 = vld [vmem:[%s10797_s15 + $0x10f0] sm:$0xff] }
 0x3f7   : > { %v11972_v38 = vpop.f32.mrb[106].mxu1 }
 0x3f8   : > { %15357 = vst [vmem:[#allocation32_spill] sm:$0xff] %v11972_v38  ;;  %v4665_v41 = vpop.f32.mrb[107].mxu1  ;;  %4927 = vmatmul.mubr.f32.gmra.mrb[212].mxu1 %v763_v22  ;;  %2662 = vmatmul.mubr.f32.gmra.mrb[212].mxu0 %v763_v22 }
 0x3f9   : > { %4931 = vmatprep.mubr.f32.mxu1 %v769_v30  ;;  %2667 = vmatprep.mubr.f32.mxu0 %v769_v30  ;;  %v778_v30 = vld [vmem:[%s10797_s15 + $0x1118] sm:$0xff] }
 0x3fb   : > { %v11976_v21 = vpop.f32.mrb[108].mxu1 }
 0x3fc   : > { %15358 = vst [vmem:[#allocation33_spill] sm:$0xff] %v11976_v21  ;;  %v4670_v0 = vpop.f32.mrb[109].mxu1  ;;  %4932 = vmatmul.mubr.f32.gmra.mrb[214].mxu1 %v768_v50  ;;  %2668 = vmatmul.mubr.f32.gmra.mrb[214].mxu0 %v768_v50  ;;  %v789_v21 = vld [vmem:[%s10797_s15 + $0x1170] sm:$0xff] }
 0x3fd   : > { %4936 = vmatprep.mubr.f32.mxu1 %v774_v58  ;;  %2673 = vmatprep.mubr.f32.mxu0 %v774_v58  ;;  %v783_v58 = vld [vmem:[%s10797_s15 + $0x1140] sm:$0xff] }
 0x3ff   : > { %v11980_v41 = vpop.f32.mrb[110].mxu1 }
 0x400   : > { %15359 = vst [vmem:[#allocation34_spill] sm:$0xff] %v11980_v41  ;;  %v4675_v22 = vpop.f32.mrb[111].mxu1  ;;  %4937 = vmatmul.mubr.f32.gmra.mrb[216].mxu1 %v773_v47  ;;  %2674 = vmatmul.mubr.f32.gmra.mrb[216].mxu0 %v773_v47  ;;  %v794_v41 = vld [vmem:[%s10797_s15 + $0x1198] sm:$0xff] }
 0x401   : > { %4941 = vmatprep.mubr.f32.mxu1 %v779_v3  ;;  %2679 = vmatprep.mubr.f32.mxu0 %v779_v3  ;;  %v788_v3 = vld [vmem:[%s10797_s15 + $0x1168] sm:$0xff] }
 0x403   : > { %v11984_v0 = vpop.f32.mrb[112].mxu1 }
 0x404   : > { %15360 = vst [vmem:[#allocation35_spill] sm:$0xff] %v11984_v0  ;;  %v4680_v50 = vpop.f32.mrb[113].mxu1  ;;  %4942 = vmatmul.mubr.f32.gmra.mrb[218].mxu1 %v778_v30  ;;  %2680 = vmatmul.mubr.f32.gmra.mrb[218].mxu0 %v778_v30  ;;  %v799_v0 = vld [vmem:[%s10797_s15 + $0x11c0] sm:$0xff] }
 0x405   : > { %4946 = vmatprep.mubr.f32.mxu1 %v784_v9  ;;  %2685 = vmatprep.mubr.f32.mxu0 %v784_v9  ;;  %v793_v9 = vld [vmem:[%s10797_s15 + $0x1190] sm:$0xff] }
 0x407   : > { %v11988_v22 = vpop.f32.mrb[114].mxu1 }
 0x408   : > { %15361 = vst [vmem:[#allocation36_spill] sm:$0xff] %v11988_v22  ;;  %v4685_v47 = vpop.f32.mrb[115].mxu1  ;;  %4947 = vmatmul.mubr.f32.gmra.mrb[220].mxu1 %v783_v58  ;;  %2686 = vmatmul.mubr.f32.gmra.mrb[220].mxu0 %v783_v58  ;;  %v804_v22 = vld [vmem:[%s10797_s15 + $0x11e8] sm:$0xff] }
 0x409   : > { %4951 = vmatprep.mubr.f32.mxu1 %v789_v21  ;;  %2691 = vmatprep.mubr.f32.mxu0 %v789_v21  ;;  %v798_v21 = vld [vmem:[%s10797_s15 + $0x11b8] sm:$0xff] }
 0x40b   : > { %v11992_v50 = vpop.f32.mrb[116].mxu1 }
 0x40c   : > { %15362 = vst [vmem:[#allocation37_spill] sm:$0xff] %v11992_v50  ;;  %v4690_v30 = vpop.f32.mrb[117].mxu1  ;;  %4952 = vmatmul.mubr.f32.gmra.mrb[222].mxu1 %v788_v3  ;;  %2692 = vmatmul.mubr.f32.gmra.mrb[222].mxu0 %v788_v3  ;;  %v809_v50 = vld [vmem:[%s10797_s15 + $0x1210] sm:$0xff] }
 0x40d   : > { %4956 = vmatprep.mubr.f32.mxu1 %v794_v41  ;;  %2697 = vmatprep.mubr.f32.mxu0 %v794_v41  ;;  %v803_v41 = vld [vmem:[%s10797_s15 + $0x11e0] sm:$0xff] }
 0x40f   : > { %v11996_v47 = vpop.f32.mrb[118].mxu1 }
 0x410   : > { %15363 = vst [vmem:[#allocation38_spill] sm:$0xff] %v11996_v47  ;;  %v4695_v58 = vpop.f32.mrb[119].mxu1  ;;  %4957 = vmatmul.mubr.f32.gmra.mrb[224].mxu1 %v793_v9  ;;  %2698 = vmatmul.mubr.f32.gmra.mrb[224].mxu0 %v793_v9  ;;  %v814_v47 = vld [vmem:[%s10797_s15 + $0x1238] sm:$0xff] }
 0x411   : > { %4961 = vmatprep.mubr.f32.mxu1 %v799_v0  ;;  %2703 = vmatprep.mubr.f32.mxu0 %v799_v0  ;;  %v808_v0 = vld [vmem:[%s10797_s15 + $0x1208] sm:$0xff] }
 0x413   : > { %v12000_v30 = vpop.f32.mrb[120].mxu1 }
 0x414   : > { %15364 = vst [vmem:[#allocation39_spill] sm:$0xff] %v12000_v30  ;;  %v4700_v3 = vpop.f32.mrb[121].mxu1  ;;  %4962 = vmatmul.mubr.f32.gmra.mrb[226].mxu1 %v798_v21  ;;  %2704 = vmatmul.mubr.f32.gmra.mrb[226].mxu0 %v798_v21  ;;  %v819_v30 = vld [vmem:[%s10797_s15 + $0x1260] sm:$0xff] }
 0x415   : > { %4966 = vmatprep.mubr.f32.mxu1 %v804_v22  ;;  %2709 = vmatprep.mubr.f32.mxu0 %v804_v22  ;;  %v813_v22 = vld [vmem:[%s10797_s15 + $0x1230] sm:$0xff] }
 0x417   : > { %v12004_v58 = vpop.f32.mrb[122].mxu1 }
 0x418   : > { %15365 = vst [vmem:[#allocation40_spill] sm:$0xff] %v12004_v58  ;;  %v4705_v9 = vpop.f32.mrb[123].mxu1  ;;  %4967 = vmatmul.mubr.f32.gmra.mrb[228].mxu1 %v803_v41  ;;  %2710 = vmatmul.mubr.f32.gmra.mrb[228].mxu0 %v803_v41  ;;  %v824_v58 = vld [vmem:[%s10797_s15 + $0x1288] sm:$0xff] }
 0x419   : > { %4971 = vmatprep.mubr.f32.mxu1 %v809_v50  ;;  %2715 = vmatprep.mubr.f32.mxu0 %v809_v50  ;;  %v818_v50 = vld [vmem:[%s10797_s15 + $0x1258] sm:$0xff] }
 0x41b   : > { %v12008_v3 = vpop.f32.mrb[124].mxu1 }
 0x41c   : > { %15366 = vst [vmem:[#allocation41_spill] sm:$0xff] %v12008_v3  ;;  %v4710_v21 = vpop.f32.mrb[125].mxu1  ;;  %4972 = vmatmul.mubr.f32.gmra.mrb[230].mxu1 %v808_v0  ;;  %2716 = vmatmul.mubr.f32.gmra.mrb[230].mxu0 %v808_v0  ;;  %v829_v3 = vld [vmem:[%s10797_s15 + $0x12b0] sm:$0xff] }
 0x41d   : > { %4976 = vmatprep.mubr.f32.mxu1 %v814_v47  ;;  %2721 = vmatprep.mubr.f32.mxu0 %v814_v47  ;;  %v823_v47 = vld [vmem:[%s10797_s15 + $0x1280] sm:$0xff] }
 0x41f   : > { %v12012_v9 = vpop.f32.mrb[126].mxu1 }
 0x420   : > { %15367 = vst [vmem:[#allocation42_spill] sm:$0xff] %v12012_v9  ;;  %v4715_v41 = vpop.f32.mrb[127].mxu1  ;;  %4977 = vmatmul.mubr.f32.gmra.mrb[232].mxu1 %v813_v22  ;;  %2722 = vmatmul.mubr.f32.gmra.mrb[232].mxu0 %v813_v22  ;;  %v834_v9 = vld [vmem:[%s10797_s15 + $0x12d8] sm:$0xff] }
 0x421   : > { %4981 = vmatprep.mubr.f32.mxu1 %v819_v30  ;;  %2727 = vmatprep.mubr.f32.mxu0 %v819_v30  ;;  %v828_v30 = vld [vmem:[%s10797_s15 + $0x12a8] sm:$0xff] }
 0x423   : > { %v12016_v21 = vpop.f32.mrb[128].mxu1 }
 0x424   : > { %15368 = vst [vmem:[#allocation43_spill] sm:$0xff] %v12016_v21  ;;  %v4720_v0 = vpop.f32.mrb[129].mxu1  ;;  %4982 = vmatmul.mubr.f32.gmra.mrb[234].mxu1 %v818_v50  ;;  %2728 = vmatmul.mubr.f32.gmra.mrb[234].mxu0 %v818_v50  ;;  %v839_v21 = vld [vmem:[%s10797_s15 + $0x1300] sm:$0xff] }
 0x425   : > { %4986 = vmatprep.mubr.f32.mxu1 %v824_v58  ;;  %2733 = vmatprep.mubr.f32.mxu0 %v824_v58  ;;  %v833_v58 = vld [vmem:[%s10797_s15 + $0x12d0] sm:$0xff] }
 0x427   : > { %v12020_v41 = vpop.f32.mrb[130].mxu1 }
 0x428   : > { %15369 = vst [vmem:[#allocation44_spill] sm:$0xff] %v12020_v41  ;;  %v4725_v22 = vpop.f32.mrb[131].mxu1  ;;  %4987 = vmatmul.mubr.f32.gmra.mrb[236].mxu1 %v823_v47  ;;  %2734 = vmatmul.mubr.f32.gmra.mrb[236].mxu0 %v823_v47  ;;  %v844_v41 = vld [vmem:[%s10797_s15 + $0x1328] sm:$0xff] }
 0x429   : > { %4991 = vmatprep.mubr.f32.mxu1 %v829_v3  ;;  %2739 = vmatprep.mubr.f32.mxu0 %v829_v3  ;;  %v838_v3 = vld [vmem:[%s10797_s15 + $0x12f8] sm:$0xff] }
 0x42b   : > { %v12024_v0 = vpop.f32.mrb[132].mxu1 }
 0x42c   : > { %15370 = vst [vmem:[#allocation45_spill] sm:$0xff] %v12024_v0  ;;  %v4730_v50 = vpop.f32.mrb[133].mxu1  ;;  %4992 = vmatmul.mubr.f32.gmra.mrb[238].mxu1 %v828_v30  ;;  %2740 = vmatmul.mubr.f32.gmra.mrb[238].mxu0 %v828_v30  ;;  %v849_v0 = vld [vmem:[%s10797_s15 + $0x1350] sm:$0xff] }
 0x42d   : > { %4996 = vmatprep.mubr.f32.mxu1 %v834_v9  ;;  %2745 = vmatprep.mubr.f32.mxu0 %v834_v9  ;;  %v843_v9 = vld [vmem:[%s10797_s15 + $0x1320] sm:$0xff] }
 0x42f   : > { %v12028_v22 = vpop.f32.mrb[134].mxu1 }
 0x430   : > { %15371 = vst [vmem:[#allocation46_spill] sm:$0xff] %v12028_v22  ;;  %v4735_v47 = vpop.f32.mrb[135].mxu1  ;;  %4997 = vmatmul.mubr.f32.gmra.mrb[240].mxu1 %v833_v58  ;;  %2746 = vmatmul.mubr.f32.gmra.mrb[240].mxu0 %v833_v58  ;;  %v854_v22 = vld [vmem:[%s10797_s15 + $0x1378] sm:$0xff] }
 0x431   : > { %5001 = vmatprep.mubr.f32.mxu1 %v839_v21  ;;  %2751 = vmatprep.mubr.f32.mxu0 %v839_v21  ;;  %v848_v21 = vld [vmem:[%s10797_s15 + $0x1348] sm:$0xff] }
 0x433   : > { %v12032_v50 = vpop.f32.mrb[136].mxu1 }
 0x434   : > { %15372 = vst [vmem:[#allocation47_spill] sm:$0xff] %v12032_v50  ;;  %v4740_v30 = vpop.f32.mrb[137].mxu1  ;;  %5002 = vmatmul.mubr.f32.gmra.mrb[242].mxu1 %v838_v3  ;;  %2752 = vmatmul.mubr.f32.gmra.mrb[242].mxu0 %v838_v3  ;;  %v859_v50 = vld [vmem:[%s10797_s15 + $0x13a0] sm:$0xff] }
 0x435   : > { %5006 = vmatprep.mubr.f32.mxu1 %v844_v41  ;;  %2757 = vmatprep.mubr.f32.mxu0 %v844_v41  ;;  %v853_v41 = vld [vmem:[%s10797_s15 + $0x1370] sm:$0xff] }
 0x437   : > { %v12036_v47 = vpop.f32.mrb[138].mxu1 }
 0x438   : > { %15373 = vst [vmem:[#allocation48_spill] sm:$0xff] %v12036_v47  ;;  %v4745_v58 = vpop.f32.mrb[139].mxu1  ;;  %5007 = vmatmul.mubr.f32.gmra.mrb[244].mxu1 %v843_v9  ;;  %2758 = vmatmul.mubr.f32.gmra.mrb[244].mxu0 %v843_v9  ;;  %v864_v47 = vld [vmem:[%s10797_s15 + $0x13c8] sm:$0xff] }
 0x439   : > { %5011 = vmatprep.mubr.f32.mxu1 %v849_v0  ;;  %2763 = vmatprep.mubr.f32.mxu0 %v849_v0  ;;  %v858_v0 = vld [vmem:[%s10797_s15 + $0x1398] sm:$0xff] }
 0x43b   : > { %v12040_v30 = vpop.f32.mrb[140].mxu1 }
 0x43c   : > { %15374 = vst [vmem:[#allocation49_spill] sm:$0xff] %v12040_v30  ;;  %v4750_v3 = vpop.f32.mrb[141].mxu1  ;;  %5012 = vmatmul.mubr.f32.gmra.mrb[246].mxu1 %v848_v21  ;;  %2764 = vmatmul.mubr.f32.gmra.mrb[246].mxu0 %v848_v21  ;;  %v869_v30 = vld [vmem:[%s10797_s15 + $0x13f0] sm:$0xff] }
 0x43d   : > { %5016 = vmatprep.mubr.f32.mxu1 %v854_v22  ;;  %2769 = vmatprep.mubr.f32.mxu0 %v854_v22  ;;  %v863_v22 = vld [vmem:[%s10797_s15 + $0x13c0] sm:$0xff] }
 0x43f   : > { %v12044_v58 = vpop.f32.mrb[142].mxu1 }
 0x440   : > { %15375 = vst [vmem:[#allocation50_spill] sm:$0xff] %v12044_v58  ;;  %v4755_v9 = vpop.f32.mrb[143].mxu1  ;;  %5017 = vmatmul.mubr.f32.gmra.mrb[248].mxu1 %v853_v41  ;;  %2770 = vmatmul.mubr.f32.gmra.mrb[248].mxu0 %v853_v41  ;;  %v235_v41 = vld [vmem:[%s10797_s15 + $0x20] sm:$0xff]  ;;  %v245_v58 = vld [vmem:[%s10797_s15 + $0x70] sm:$0xff] }
 0x441   : > { %5021 = vmatprep.mubr.f32.mxu1 %v859_v50  ;;  %2775 = vmatprep.mubr.f32.mxu0 %v859_v50  ;;  %v868_v50 = vld [vmem:[%s10797_s15 + $0x13e8] sm:$0xff] }
 0x443   : > { %v12048_v3 = vpop.f32.mrb[144].mxu1 }
 0x444   : > { %15376 = vst [vmem:[#allocation51_spill] sm:$0xff] %v12048_v3  ;;  %v4760_v21 = vpop.f32.mrb[145].mxu1  ;;  %5022 = vmatmul.mubr.f32.gmra.mrb[250].mxu1 %v858_v0  ;;  %2776 = vmatmul.mubr.f32.gmra.mrb[250].mxu0 %v858_v0 }
 0x445   : > { %5026 = vmatprep.mubr.f32.mxu1 %v864_v47  ;;  %2781 = vmatprep.mubr.f32.mxu0 %v864_v47  ;;  %v6126_v21 = vld [vmem:[%s15313_s3] sm:$0xff]  ;;  %v6127_v47 = vld [vmem:[%s15313_s3 + $0x8] sm:$0xff] }
 0x447   : > { %v12052_v38 = vpop.f32.mrb[146].mxu1 }
 0x448   : > { %15377 = vst [vmem:[#allocation52_spill] sm:$0xff] %v12052_v38  ;;  %v4765_v9 = vpop.f32.mrb[147].mxu1  ;;  %5027 = vmatmul.mubr.f32.gmra.mrb[252].mxu1 %v863_v22  ;;  %2782 = vmatmul.mubr.f32.gmra.mrb[252].mxu0 %v863_v22  ;;  %v15318_v22 = vmov 0.0  }
 0x449   : > { %5031 = vmatprep.mubr.f32.mxu1 %v869_v30  ;;  %2787 = vmatprep.mubr.f32.mxu0 %v869_v30  ;;  %v240_v30 = vld [vmem:[%s10797_s15 + $0x48] sm:$0xff]  ;;  %v9293_v9 = vpack.c.bf16 %v6127_v47, %v6126_v21  ;;  %v250_v21 = vld [vmem:[%s10797_s15 + $0x98] sm:$0xff] }
 0x44a   : > { %v6161_v47 = vld [vmem:[%s15313_s3 + $0x118] sm:$0xff] }
 0x44b   : > { %v12062_v0 = vpop.f32.mrb[148].mxu1 }
 0x44c   : > { %15378 = vst [vmem:[#allocation53_spill] sm:$0xff] %v12062_v0  ;;  %v4770_v3 = vpop.f32.mrb[149].mxu1  ;;  %5032 = vmatmul.mubr.f32.gmra.mrb[254].mxu1 %v868_v50  ;;  %2788 = vmatmul.mubr.f32.gmra.mrb[254].mxu0 %v868_v50  ;;  %v15380_v0 = vmov 0.0  }
 0x44d   : > { %8604 = vmatprep.mubr.f32.mxu1 %v235_v41  ;;  %2858 = vmatprep.mubr.f32.mxu0 %v15318_v22  ;;  %v6129_v3 = vld [vmem:[%s15313_s3 + $0x18] sm:$0xff]  ;;  %v6160_v22 = vld [vmem:[%s15313_s3 + $0x110] sm:$0xff] }
 0x44f   : > { %v12066_v38 = vpop.f32.mrb[150].mxu1 }
 0x450   : > { %15379 = vst [vmem:[#allocation54_spill] sm:$0xff] %v12066_v38  ;;  %v4775_v50 = vpop.f32.mrb[151].mxu1  ;;  %8605 = vmatmul.mubr.f32.vlgmr.msra.gmra.mrb[0].mxu1 %v240_v30  ;;  %2859 = vmatmul.mubr.f32.vlgmr.msra.gmra.mrb[0].mxu0 %v235_v41  ;;  %v9296_v38 = vpack.c.bf16 %v6129_v3, %v6128_v33  ;;  %v9344_v41 = vpack.c.bf16 %v6161_v47, %v6160_v22  ;;  %v260_v33 = vld [vmem:[%s10797_s15 + $0xe8] sm:$0xff]  ;;  %v265_v22 = vld [vmem:[%s10797_s15 + $0x110] sm:$0xff] }
 0x451   : > { %9294 = vmatpush1.bf16.msra.mxu1 %v9293_v9  ;;  %9343 = vmatpush3.bf16.msra.mxu0 %v11933_v1  ;;  %v255_v50 = vld [vmem:[%s10797_s15 + $0xc0] sm:$0xff]  ;;  %v6131_v9 = vld [vmem:[%s15313_s3 + $0x28] sm:$0xff] }
 0x452   : > { %8607 = vmatprep.mubr.f32.mxu1 %v245_v58  ;;  %2864 = vmatprep.mubr.f32.mxu0 %v15380_v0  ;;  %v6130_v1 = vld [vmem:[%s15313_s3 + $0x20] sm:$0xff] }
 0x453   : > { %v12085_v54 = vpop.f32.mrb[152].mxu1  ;;  %9295 = vmatprep.subr.bf16.mxu1 %v15382_v59  ;;  %v9299_v3 = vpack.c.bf16 %v6131_v9, %v6130_v1  ;;  %9345 = vmatprep.subr.bf16.mxu0 %v9344_v41  ;;  %v12109_v1 = vld [vmem:[%s10797_s15 + $0x160] sm:$0xff] }
 0x454   : > { %15381 = vst [vmem:[#allocation55_spill] sm:$0xff] %v12085_v54  ;;  %v4780_v12 = vpop.f32.mrb[153].mxu1  ;;  %8608 = vmatmul.mubr.f32.gmra.mrb[2].mxu1 %v250_v21  ;;  %2865 = vmatmul.mubr.f32.gmra.mrb[2].mxu0 %v240_v30  ;;  %v6133_v30 = vld [vmem:[%s15313_s3 + $0x38] sm:$0xff] }
 0x455   : > { %8610 = vmatprep.mubr.f32.mxu1 %v255_v50  ;;  %2870 = vmatprep.mubr.f32.mxu0 %v15380_v0  ;;  %v6132_v12 = vld [vmem:[%s15313_s3 + $0x30] sm:$0xff] }
 0x456   : > { %9297 = vmatpush1.bf16.msra.mxu1 %v9296_v38  ;;  %9347 = vmatpush3.bf16.msra.mxu0 %v9344_v41  ;;  %v270_v38 = vld [vmem:[%s10797_s15 + $0x138] sm:$0xff]  ;;  %v9302_v9 = vpack.c.bf16 %v6133_v30, %v6132_v12  ;;  %v12126_v12 = vld [vmem:[%s10797_s15 + $0x1b0] sm:$0xff] }
 0x457   : > { %v12097_v47 = vpop.f32.mrb[154].mxu1  ;;  %9298 = vmatprep.subr.bf16.mxu1 %v15382_v59 }
 0x458   : > { %15383 = vst [vmem:[#allocation56_spill] sm:$0xff] %v12097_v47  ;;  %v4785_v54 = vpop.f32.mrb[155].mxu1  ;;  %8611 = vmatmul.mubr.f32.gmra.mrb[4].mxu1 %v260_v33  ;;  %2871 = vmatmul.mubr.f32.gmra.mrb[4].mxu0 %v245_v58  ;;  %v6135_v58 = vld [vmem:[%s15313_s3 + $0x48] sm:$0xff] }
 0x459   : > { %8613 = vmatprep.mubr.f32.mxu1 %v265_v22  ;;  %2876 = vmatprep.mubr.f32.mxu0 %v15380_v0  ;;  %v6134_v54 = vld [vmem:[%s15313_s3 + $0x40] sm:$0xff] }
 0x45a   : > { %9300 = vmatpush1.bf16.msra.mxu1 %v9299_v3  ;;  %v12123_v3 = vld [vmem:[%s10797_s15 + $0x188] sm:$0xff]  ;;  %v9305_v30 = vpack.c.bf16 %v6135_v58, %v6134_v54  ;;  %v12144_v54 = vld [vmem:[%s10797_s15 + $0x200] sm:$0xff] }
 0x45b   : > { %v12111_v47 = vpop.f32.mrb[156].mxu1  ;;  %9301 = vmatprep.subr.bf16.mxu1 %v15382_v59 }
 0x45c   : > { %15384 = vst [vmem:[#allocation57_spill] sm:$0xff] %v12111_v47  ;;  %v4790_v41 = vpop.f32.mrb[157].mxu1  ;;  %8614 = vmatmul.mubr.f32.gmra.mrb[6].mxu1 %v270_v38  ;;  %2877 = vmatmul.mubr.f32.gmra.mrb[6].mxu0 %v250_v21  ;;  %v6136_v21 = vld [vmem:[%s15313_s3 + $0x50] sm:$0xff] }
 0x45d   : > { %8616 = vmatprep.mubr.f32.mxu1 %v12109_v1  ;;  %2882 = vmatprep.mubr.f32.mxu0 %v15380_v0  ;;  %v6137_v41 = vld [vmem:[%s15313_s3 + $0x58] sm:$0xff] }
 0x45e   : > { %9303 = vmatpush1.bf16.msra.mxu1 %v9302_v9  ;;  %v12141_v9 = vld [vmem:[%s10797_s15 + $0x1d8] sm:$0xff]  ;;  %v9308_v58 = vpack.c.bf16 %v6137_v41, %v6136_v21  ;;  %v12162_v21 = vld [vmem:[%s10797_s15 + $0x250] sm:$0xff] }
 0x45f   : > { %v12128_v47 = vpop.f32.mrb[158].mxu1  ;;  %9304 = vmatprep.subr.bf16.mxu1 %v15382_v59 }
 0x460   : > { %15385 = vst [vmem:[#allocation58_spill] sm:$0xff] %v12128_v47  ;;  %v4795_v32 = vpop.f32.mrb[159].mxu1  ;;  %8617 = vmatmul.mubr.f32.gmra.mrb[8].mxu1 %v12123_v3  ;;  %2883 = vmatmul.mubr.f32.gmra.mrb[8].mxu0 %v255_v50  ;;  %v6139_v50 = vld [vmem:[%s15313_s3 + $0x68] sm:$0xff] }
 0x461   : > { %8619 = vmatprep.mubr.f32.mxu1 %v12126_v12  ;;  %2888 = vmatprep.mubr.f32.mxu0 %v15380_v0  ;;  %v6138_v32 = vld [vmem:[%s15313_s3 + $0x60] sm:$0xff] }
 0x462   : > { %9306 = vmatpush1.bf16.msra.mxu1 %v9305_v30  ;;  %v12159_v30 = vld [vmem:[%s10797_s15 + $0x228] sm:$0xff]  ;;  %v9311_v41 = vpack.c.bf16 %v6139_v50, %v6138_v32  ;;  %v12180_v32 = vld [vmem:[%s10797_s15 + $0x2a0] sm:$0xff] }
 0x463   : > { %v12146_v47 = vpop.f32.mrb[160].mxu1  ;;  %9307 = vmatprep.subr.bf16.mxu1 %v15382_v59 }
 0x464   : > { %15386 = vst [vmem:[#allocation59_spill] sm:$0xff] %v12146_v47  ;;  %v4800_v44 = vpop.f32.mrb[161].mxu1  ;;  %8620 = vmatmul.mubr.f32.gmra.mrb[10].mxu1 %v12141_v9  ;;  %2889 = vmatmul.mubr.f32.gmra.mrb[10].mxu0 %v260_v33  ;;  %v6141_v33 = vld [vmem:[%s15313_s3 + $0x78] sm:$0xff] }
 0x465   : > { %8622 = vmatprep.mubr.f32.mxu1 %v12144_v54  ;;  %2894 = vmatprep.mubr.f32.mxu0 %v15380_v0  ;;  %v6140_v44 = vld [vmem:[%s15313_s3 + $0x70] sm:$0xff] }
 0x466   : > { %9309 = vmatpush1.bf16.msra.mxu1 %v9308_v58  ;;  %v12177_v58 = vld [vmem:[%s10797_s15 + $0x278] sm:$0xff]  ;;  %v9314_v50 = vpack.c.bf16 %v6141_v33, %v6140_v44  ;;  %v12198_v44 = vld [vmem:[%s10797_s15 + $0x2f0] sm:$0xff] }
 0x467   : > { %v12164_v47 = vpop.f32.mrb[162].mxu1  ;;  %9310 = vmatprep.subr.bf16.mxu1 %v15382_v59 }
 0x468   : > { %15387 = vst [vmem:[#allocation60_spill] sm:$0xff] %v12164_v47  ;;  %v4805_v4 = vpop.f32.mrb[163].mxu1  ;;  %8623 = vmatmul.mubr.f32.gmra.mrb[12].mxu1 %v12159_v30  ;;  %2895 = vmatmul.mubr.f32.gmra.mrb[12].mxu0 %v265_v22  ;;  %v6143_v22 = vld [vmem:[%s15313_s3 + $0x88] sm:$0xff] }
 0x469   : > { %8625 = vmatprep.mubr.f32.mxu1 %v12162_v21  ;;  %2900 = vmatprep.mubr.f32.mxu0 %v15380_v0  ;;  %v6142_v4 = vld [vmem:[%s15313_s3 + $0x80] sm:$0xff] }
 0x46a   : > { %9312 = vmatpush1.bf16.msra.mxu1 %v9311_v41  ;;  %v12195_v41 = vld [vmem:[%s10797_s15 + $0x2c8] sm:$0xff]  ;;  %v9317_v33 = vpack.c.bf16 %v6143_v22, %v6142_v4  ;;  %v12217_v4 = vld [vmem:[%s10797_s15 + $0x340] sm:$0xff] }
 0x46b   : > { %v12182_v47 = vpop.f32.mrb[164].mxu1  ;;  %9313 = vmatprep.subr.bf16.mxu1 %v15382_v59 }
 0x46c   : > { %15388 = vst [vmem:[#allocation61_spill] sm:$0xff] %v12182_v47  ;;  %v4810_v16 = vpop.f32.mrb[165].mxu1  ;;  %8626 = vmatmul.mubr.f32.gmra.mrb[14].mxu1 %v12177_v58  ;;  %2901 = vmatmul.mubr.f32.gmra.mrb[14].mxu0 %v270_v38  ;;  %v6145_v38 = vld [vmem:[%s15313_s3 + $0x98] sm:$0xff] }
 0x46d   : > { %8628 = vmatprep.mubr.f32.mxu1 %v12180_v32  ;;  %2906 = vmatprep.mubr.f32.mxu0 %v15380_v0  ;;  %v6144_v16 = vld [vmem:[%s15313_s3 + $0x90] sm:$0xff] }
 0x46e   : > { %9315 = vmatpush1.bf16.msra.mxu1 %v9314_v50  ;;  %v12214_v50 = vld [vmem:[%s10797_s15 + $0x318] sm:$0xff]  ;;  %v9320_v22 = vpack.c.bf16 %v6145_v38, %v6144_v16  ;;  %v12236_v16 = vld [vmem:[%s10797_s15 + $0x390] sm:$0xff] }
 0x46f   : > { %v12200_v47 = vpop.f32.mrb[166].mxu1  ;;  %9316 = vmatprep.subr.bf16.mxu1 %v15382_v59 }
 0x470   : > { %15389 = vst [vmem:[#allocation62_spill] sm:$0xff] %v12200_v47  ;;  %v4815_v37 = vpop.f32.mrb[167].mxu1  ;;  %8629 = vmatmul.mubr.f32.gmra.mrb[16].mxu1 %v12195_v41  ;;  %2907 = vmatmul.mubr.f32.gmra.mrb[16].mxu0 %v12109_v1  ;;  %v6147_v1 = vld [vmem:[%s15313_s3 + $0xa8] sm:$0xff] }
 0x471   : > { %8631 = vmatprep.mubr.f32.mxu1 %v12198_v44  ;;  %2912 = vmatprep.mubr.f32.mxu0 %v15380_v0  ;;  %v6146_v37 = vld [vmem:[%s15313_s3 + $0xa0] sm:$0xff] }
 0x472   : > { %9318 = vmatpush1.bf16.msra.mxu1 %v9317_v33  ;;  %v12233_v33 = vld [vmem:[%s10797_s15 + $0x368] sm:$0xff]  ;;  %v9323_v38 = vpack.c.bf16 %v6147_v1, %v6146_v37  ;;  %v12262_v1 = vld [vmem:[%s10797_s15 + $0x430] sm:$0xff] }
 0x473   : > { %v12219_v47 = vpop.f32.mrb[168].mxu1  ;;  %9319 = vmatprep.subr.bf16.mxu1 %v15382_v59 }
 0x474   : > { %15390 = vst [vmem:[#allocation63_spill] sm:$0xff] %v12219_v47  ;;  %v4820_v49 = vpop.f32.mrb[169].mxu1  ;;  %8632 = vmatmul.mubr.f32.gmra.mrb[18].mxu1 %v12214_v50  ;;  %2913 = vmatmul.mubr.f32.gmra.mrb[18].mxu0 %v12123_v3  ;;  %v12246_v3 = vld [vmem:[%s10797_s15 + $0x3b8] sm:$0xff] }
 0x475   : > { %8634 = vmatprep.mubr.f32.mxu1 %v12217_v4  ;;  %2918 = vmatprep.mubr.f32.mxu0 %v15380_v0 }
 0x476   : > { %9321 = vmatpush1.bf16.msra.mxu1 %v9320_v22 }
 0x477   : > { %v12238_v47 = vpop.f32.mrb[170].mxu1  ;;  %9322 = vmatprep.subr.bf16.mxu1 %v15382_v59 }
 0x478   : > { %15391 = vst [vmem:[#allocation64_spill] sm:$0xff] %v12238_v47  ;;  %v4825_v49 = vpop.f32.mrb[171].mxu1  ;;  %8635 = vmatmul.mubr.f32.gmra.mrb[20].mxu1 %v12233_v33  ;;  %2919 = vmatmul.mubr.f32.gmra.mrb[20].mxu0 %v12126_v12  ;;  %v12259_v12 = vld [vmem:[%s10797_s15 + $0x408] sm:$0xff] }
 0x479   : > { %8637 = vmatprep.mubr.f32.mxu1 %v12236_v16  ;;  %2924 = vmatprep.mubr.f32.mxu0 %v15380_v0 }
 0x47a   : > { %9324 = vmatpush1.bf16.msra.mxu1 %v9323_v38 }
 0x47b   : > { %v12251_v22 = vpop.f32.mrb[172].mxu1  ;;  %9325 = vmatprep.subr.bf16.mxu1 %v15382_v59 }
 0x47c   : > { %15392 = vst [vmem:[#allocation65_spill] sm:$0xff] %v12251_v22  ;;  %v4830_v37 = vpop.f32.mrb[173].mxu1  ;;  %8638 = vmatmul.mubr.f32.gmra.mrb[22].mxu1 %v12246_v3  ;;  %2925 = vmatmul.mubr.f32.gmra.mrb[22].mxu0 %v12141_v9  ;;  %v6148_v9 = vld [vmem:[%s15313_s3 + $0xb0] sm:$0xff]  ;;  %v12277_v22 = vld [vmem:[%s10797_s15 + $0x458] sm:$0xff] }
 0x47d   : > { %8640 = vmatprep.mubr.f32.mxu1 %v12249_v14  ;;  %2930 = vmatprep.mubr.f32.mxu0 %v15380_v0  ;;  %v6149_v37 = vld [vmem:[%s15313_s3 + $0xb8] sm:$0xff] }
 0x47f   : > { %v12264_v38 = vpop.f32.mrb[174].mxu1 }
 0x480   : > { %15393 = vst [vmem:[#allocation66_spill] sm:$0xff] %v12264_v38  ;;  %v4835_v49 = vpop.f32.mrb[175].mxu1  ;;  %8641 = vmatmul.mubr.f32.gmra.mrb[24].mxu1 %v12259_v12  ;;  %2931 = vmatmul.mubr.f32.gmra.mrb[24].mxu0 %v12144_v54  ;;  %v12280_v38 = vld [vmem:[%s10797_s15 + $0x480] sm:$0xff] }
 0x481   : > { %8643 = vmatprep.mubr.f32.mxu1 %v12262_v1  ;;  %2936 = vmatprep.mubr.f32.mxu0 %v15380_v0  ;;  %v9326_v49 = vpack.c.bf16 %v6149_v37, %v6148_v9 }
 0x483   : > { %v12282_v47 = vpop.f32.mrb[176].mxu1  ;;  %9327 = vmatpush1.bf16.msra.mxu1 %v9326_v49  ;;  %v12305_v49 = vld [vmem:[%s10797_s15 + $0x520] sm:$0xff] }
 0x484   : > { %15394 = vst [vmem:[#allocation67_spill] sm:$0xff] %v12282_v47  ;;  %v4840_v54 = vpop.f32.mrb[177].mxu1  ;;  %8644 = vmatmul.mubr.f32.gmra.mrb[26].mxu1 %v12277_v22  ;;  %2937 = vmatmul.mubr.f32.gmra.mrb[26].mxu0 %v12159_v30  ;;  %v12302_v30 = vld [vmem:[%s10797_s15 + $0x4f8] sm:$0xff] }
 0x485   : > { %8646 = vmatprep.mubr.f32.mxu1 %v12280_v38  ;;  %2942 = vmatprep.mubr.f32.mxu0 %v15380_v0 }
 0x486   : > { %9328 = vmatprep.subr.bf16.mxu1 %v15382_v59 }
 0x487   : > { %v12295_v9 = vpop.f32.mrb[178].mxu1 }
 0x488   : > { %15395 = vst [vmem:[#allocation68_spill] sm:$0xff] %v12295_v9  ;;  %v4845_v37 = vpop.f32.mrb[179].mxu1  ;;  %8647 = vmatmul.mubr.f32.gmra.mrb[28].mxu1 %v12289_v26  ;;  %2943 = vmatmul.mubr.f32.gmra.mrb[28].mxu0 %v12162_v21  ;;  %v12314_v21 = vld [vmem:[%s10797_s15 + $0x548] sm:$0xff] }
 0x489   : > { %8649 = vmatprep.mubr.f32.mxu1 %v12292_v61  ;;  %2948 = vmatprep.mubr.f32.mxu0 %v15380_v0  ;;  %v12317_v37 = vld [vmem:[%s10797_s15 + $0x570] sm:$0xff] }
 0x48b   : > { %v12307_v54 = vpop.f32.mrb[180].mxu1 }
 0x48c   : > { %15396 = vst [vmem:[#allocation69_spill] sm:$0xff] %v12307_v54  ;;  %v4850_v47 = vpop.f32.mrb[181].mxu1  ;;  %8650 = vmatmul.mubr.f32.gmra.mrb[30].mxu1 %v12302_v30  ;;  %2949 = vmatmul.mubr.f32.gmra.mrb[30].mxu0 %v12177_v58  ;;  %v6151_v58 = vld [vmem:[%s15313_s3 + $0xc8] sm:$0xff]  ;;  %v12332_v54 = vld [vmem:[%s10797_s15 + $0x598] sm:$0xff] }
 0x48d   : > { %8652 = vmatprep.mubr.f32.mxu1 %v12305_v49  ;;  %2954 = vmatprep.mubr.f32.mxu0 %v15380_v0  ;;  %v6150_v47 = vld [vmem:[%s15313_s3 + $0xc0] sm:$0xff] }
 0x48f   : > { %v12319_v9 = vpop.f32.mrb[182].mxu1 }
 0x490   : > { %15397 = vst [vmem:[#allocation70_spill] sm:$0xff] %v12319_v9  ;;  %v4855_v6 = vpop.f32.mrb[183].mxu1  ;;  %8653 = vmatmul.mubr.f32.gmra.mrb[32].mxu1 %v12314_v21  ;;  %2955 = vmatmul.mubr.f32.gmra.mrb[32].mxu0 %v12180_v32  ;;  %v12335_v9 = vld [vmem:[%s10797_s15 + $0x5c0] sm:$0xff] }
 0x491   : > { %8655 = vmatprep.mubr.f32.mxu1 %v12317_v37  ;;  %2960 = vmatprep.mubr.f32.mxu0 %v15380_v0  ;;  %v9329_v6 = vpack.c.bf16 %v6151_v58, %v6150_v47 }
 0x493   : > { %v12337_v42 = vpop.f32.mrb[184].mxu1  ;;  %9330 = vmatpush1.bf16.msra.mxu1 %v9329_v6  ;;  %v12360_v6 = vld [vmem:[%s10797_s15 + $0x660] sm:$0xff] }
 0x494   : > { %15398 = vst [vmem:[#allocation71_spill] sm:$0xff] %v12337_v42  ;;  %v4860_v32 = vpop.f32.mrb[185].mxu1  ;;  %8656 = vmatmul.mubr.f32.gmra.mrb[34].mxu1 %v12332_v54  ;;  %2961 = vmatmul.mubr.f32.gmra.mrb[34].mxu0 %v12195_v41  ;;  %v12357_v41 = vld [vmem:[%s10797_s15 + $0x638] sm:$0xff] }
 0x495   : > { %8658 = vmatprep.mubr.f32.mxu1 %v12335_v9  ;;  %2966 = vmatprep.mubr.f32.mxu0 %v15380_v0 }
 0x496   : > { %9331 = vmatprep.subr.bf16.mxu1 %v15382_v59 }
 0x497   : > { %v12350_v47 = vpop.f32.mrb[186].mxu1 }
 0x498   : > { %15399 = vst [vmem:[#allocation72_spill] sm:$0xff] %v12350_v47  ;;  %v4865_v58 = vpop.f32.mrb[187].mxu1  ;;  %8659 = vmatmul.mubr.f32.gmra.mrb[36].mxu1 %v12344_v53  ;;  %2967 = vmatmul.mubr.f32.gmra.mrb[36].mxu0 %v12198_v44  ;;  %v12369_v44 = vld [vmem:[%s10797_s15 + $0x688] sm:$0xff] }
 0x499   : > { %8661 = vmatprep.mubr.f32.mxu1 %v12347_v28  ;;  %2972 = vmatprep.mubr.f32.mxu0 %v15380_v0  ;;  %v12372_v58 = vld [vmem:[%s10797_s15 + $0x6b0] sm:$0xff] }
 0x49b   : > { %v12362_v32 = vpop.f32.mrb[188].mxu1 }
 0x49c   : > { %15400 = vst [vmem:[#allocation73_spill] sm:$0xff] %v12362_v32  ;;  %v4870_v42 = vpop.f32.mrb[189].mxu1  ;;  %8662 = vmatmul.mubr.f32.gmra.mrb[38].mxu1 %v12357_v41  ;;  %2973 = vmatmul.mubr.f32.gmra.mrb[38].mxu0 %v12214_v50  ;;  %v6153_v50 = vld [vmem:[%s15313_s3 + $0xd8] sm:$0xff] }
 0x49d   : > { %8664 = vmatprep.mubr.f32.mxu1 %v12360_v6  ;;  %2978 = vmatprep.mubr.f32.mxu0 %v15380_v0  ;;  %v6152_v42 = vld [vmem:[%s15313_s3 + $0xd0] sm:$0xff]  ;;  %v12387_v32 = vld [vmem:[%s10797_s15 + $0x6d8] sm:$0xff] }
 0x49f   : > { %v12374_v47 = vpop.f32.mrb[190].mxu1 }
 0x4a0   : > { %15401 = vst [vmem:[#allocation74_spill] sm:$0xff] %v12374_v47  ;;  %v4875_v36 = vpop.f32.mrb[191].mxu1  ;;  %8665 = vmatmul.mubr.f32.gmra.mrb[40].mxu1 %v12369_v44  ;;  %2979 = vmatmul.mubr.f32.gmra.mrb[40].mxu0 %v12217_v4  ;;  %v12390_v47 = vld [vmem:[%s10797_s15 + $0x700] sm:$0xff] }
 0x4a1   : > { %8667 = vmatprep.mubr.f32.mxu1 %v12372_v58  ;;  %2984 = vmatprep.mubr.f32.mxu0 %v15380_v0  ;;  %v9332_v36 = vpack.c.bf16 %v6153_v50, %v6152_v42 }
 0x4a3   : > { %v12392_v10 = vpop.f32.mrb[192].mxu1  ;;  %9333 = vmatpush1.bf16.msra.mxu1 %v9332_v36  ;;  %v12415_v36 = vld [vmem:[%s10797_s15 + $0x7a0] sm:$0xff] }
 0x4a4   : > { %15402 = vst [vmem:[#allocation75_spill] sm:$0xff] %v12392_v10  ;;  %v4880_v4 = vpop.f32.mrb[193].mxu1  ;;  %8668 = vmatmul.mubr.f32.gmra.mrb[42].mxu1 %v12387_v32  ;;  %2985 = vmatmul.mubr.f32.gmra.mrb[42].mxu0 %v12233_v33  ;;  %v12412_v33 = vld [vmem:[%s10797_s15 + $0x778] sm:$0xff] }
 0x4a5   : > { %8670 = vmatprep.mubr.f32.mxu1 %v12390_v47  ;;  %2990 = vmatprep.mubr.f32.mxu0 %v15380_v0 }
 0x4a6   : > { %9334 = vmatprep.subr.bf16.mxu1 %v15382_v59 }
 0x4a7   : > { %v12405_v42 = vpop.f32.mrb[194].mxu1 }
 0x4a8   : > { %15403 = vst [vmem:[#allocation76_spill] sm:$0xff] %v12405_v42  ;;  %v4885_v50 = vpop.f32.mrb[195].mxu1  ;;  %8671 = vmatmul.mubr.f32.gmra.mrb[44].mxu1 %v12399_v20  ;;  %2991 = vmatmul.mubr.f32.gmra.mrb[44].mxu0 %v12236_v16  ;;  %v12424_v16 = vld [vmem:[%s10797_s15 + $0x7c8] sm:$0xff] }
 0x4a9   : > { %8673 = vmatprep.mubr.f32.mxu1 %v12402_v63  ;;  %2996 = vmatprep.mubr.f32.mxu0 %v15380_v0  ;;  %v12427_v50 = vld [vmem:[%s10797_s15 + $0x7f0] sm:$0xff] }
 0x4ab   : > { %v12417_v4 = vpop.f32.mrb[196].mxu1 }
 0x4ac   : > { %15404 = vst [vmem:[#allocation77_spill] sm:$0xff] %v12417_v4  ;;  %v4890_v10 = vpop.f32.mrb[197].mxu1  ;;  %8674 = vmatmul.mubr.f32.gmra.mrb[46].mxu1 %v12412_v33  ;;  %2997 = vmatmul.mubr.f32.gmra.mrb[46].mxu0 %v12246_v3  ;;  %v12439_v3 = vld [vmem:[%s10797_s15 + $0x840] sm:$0xff] }
 0x4ad   : > { %8676 = vmatprep.mubr.f32.mxu1 %v12415_v36  ;;  %3002 = vmatprep.mubr.f32.mxu0 %v15380_v0  ;;  %v12436_v10 = vld [vmem:[%s10797_s15 + $0x818] sm:$0xff] }
 0x4af   : > { %v12429_v42 = vpop.f32.mrb[198].mxu1 }
 0x4b0   : > { %15405 = vst [vmem:[#allocation78_spill] sm:$0xff] %v12429_v42  ;;  %v4895_v5 = vpop.f32.mrb[199].mxu1  ;;  %8677 = vmatmul.mubr.f32.gmra.mrb[48].mxu1 %v12424_v16  ;;  %3003 = vmatmul.mubr.f32.gmra.mrb[48].mxu0 %v12249_v14  ;;  %v6155_v42 = vld [vmem:[%s15313_s3 + $0xe8] sm:$0xff] }
 0x4b1   : > { %8679 = vmatprep.mubr.f32.mxu1 %v12427_v50  ;;  %3008 = vmatprep.mubr.f32.mxu0 %v15380_v0  ;;  %v6154_v5 = vld [vmem:[%s15313_s3 + $0xe0] sm:$0xff] }
 0x4b2   : > { %v9335_v14 = vpack.c.bf16 %v6155_v42, %v6154_v5  ;;  %v12470_v42 = vld [vmem:[%s10797_s15 + $0x8e0] sm:$0xff] }
 0x4b3   : > { %v12441_v4 = vpop.f32.mrb[200].mxu1 }
 0x4b4   : > { %15406 = vst [vmem:[#allocation79_spill] sm:$0xff] %v12441_v4  ;;  %v4900_v46 = vpop.f32.mrb[201].mxu1  ;;  %8680 = vmatmul.mubr.f32.gmra.mrb[50].mxu1 %v12436_v10  ;;  %3009 = vmatmul.mubr.f32.gmra.mrb[50].mxu0 %v12259_v12  ;;  %v12454_v4 = vld [vmem:[%s10797_s15 + $0x868] sm:$0xff]  ;;  %v12467_v12 = vld [vmem:[%s10797_s15 + $0x8b8] sm:$0xff] }
 0x4b5   : > { %8682 = vmatprep.mubr.f32.mxu1 %v12439_v3  ;;  %3014 = vmatprep.mubr.f32.mxu0 %v15380_v0 }
 0x4b6   : > { %9336 = vmatpush1.bf16.msra.mxu1 %v9335_v14 }
 0x4b7   : > { %v12459_v17 = vpop.f32.mrb[202].mxu1  ;;  %9337 = vmatprep.subr.bf16.mxu1 %v15382_v59  ;;  %v12479_v59 = vld [vmem:[%s10797_s15 + $0x908] sm:$0xff] }
 0x4b8   : > { %15407 = vst [vmem:[#allocation80_spill] sm:$0xff] %v12459_v17  ;;  %v4905_v46 = vpop.f32.mrb[203].mxu1  ;;  %8683 = vmatmul.mubr.f32.gmra.mrb[52].mxu1 %v12454_v4  ;;  %3015 = vmatmul.mubr.f32.gmra.mrb[52].mxu0 %v12262_v1  ;;  %v12482_v1 = vld [vmem:[%s10797_s15 + $0x930] sm:$0xff] }
 0x4b9   : > { %8685 = vmatprep.mubr.f32.mxu1 %v12457_v55  ;;  %3020 = vmatprep.mubr.f32.mxu0 %v15380_v0 }
 0x4bb   : > { %v12472_v5 = vpop.f32.mrb[204].mxu1 }
 0x4bc   : > { %15408 = vst [vmem:[#allocation81_spill] sm:$0xff] %v12472_v5  ;;  %v4910_v14 = vpop.f32.mrb[205].mxu1  ;;  %8686 = vmatmul.mubr.f32.gmra.mrb[54].mxu1 %v12467_v12  ;;  %3021 = vmatmul.mubr.f32.gmra.mrb[54].mxu0 %v12277_v22  ;;  %v12491_v22 = vld [vmem:[%s10797_s15 + $0x958] sm:$0xff] }
 0x4bd   : > { %8688 = vmatprep.mubr.f32.mxu1 %v12470_v42  ;;  %3026 = vmatprep.mubr.f32.mxu0 %v15380_v0  ;;  %v12494_v14 = vld [vmem:[%s10797_s15 + $0x980] sm:$0xff] }
 0x4bf   : > { %v12484_v46 = vpop.f32.mrb[206].mxu1 }
 0x4c0   : > { %15409 = vst [vmem:[#allocation82_spill] sm:$0xff] %v12484_v46  ;;  %v4915_v17 = vpop.f32.mrb[207].mxu1  ;;  %8689 = vmatmul.mubr.f32.gmra.mrb[56].mxu1 %v12479_v59  ;;  %3027 = vmatmul.mubr.f32.gmra.mrb[56].mxu0 %v12280_v38  ;;  %v6157_v46 = vld [vmem:[%s15313_s3 + $0xf8] sm:$0xff] }
 0x4c1   : > { %8691 = vmatprep.mubr.f32.mxu1 %v12482_v1  ;;  %3032 = vmatprep.mubr.f32.mxu0 %v15380_v0  ;;  %v6156_v17 = vld [vmem:[%s15313_s3 + $0xf0] sm:$0xff] }
 0x4c2   : > { %v9338_v25 = vpack.c.bf16 %v6157_v46, %v6156_v17  ;;  %v12524_v46 = vld [vmem:[%s10797_s15 + $0xa20] sm:$0xff] }
 0x4c3   : > { %v12496_v5 = vpop.f32.mrb[208].mxu1  ;;  %15412 = vst [vmem:[#allocation85_spill] sm:$0xff] %v12524_v46 }
 0x4c4   : > { %15410 = vst [vmem:[#allocation83_spill] sm:$0xff] %v12496_v5  ;;  %v4920_v38 = vpop.f32.mrb[209].mxu1  ;;  %8692 = vmatmul.mubr.f32.gmra.mrb[58].mxu1 %v12491_v22  ;;  %3033 = vmatmul.mubr.f32.gmra.mrb[58].mxu0 %v12289_v26  ;;  %v12509_v5 = vld [vmem:[%s10797_s15 + $0x9a8] sm:$0xff]  ;;  %v12521_v26 = vld [vmem:[%s10797_s15 + $0x9f8] sm:$0xff] }
 0x4c5   : > { %8694 = vmatprep.mubr.f32.mxu1 %v12494_v14  ;;  %3038 = vmatprep.mubr.f32.mxu0 %v15380_v0 }
 0x4c6   : > { %9339 = vmatpush1.bf16.msra.mxu1 %v9338_v25 }
 0x4c7   : > { %v12514_v11 = vpop.f32.mrb[210].mxu1 }
 0x4c8   : > { %15411 = vst [vmem:[#allocation84_spill] sm:$0xff] %v12514_v11  ;;  %v4925_v38 = vpop.f32.mrb[211].mxu1  ;;  %8695 = vmatmul.mubr.f32.gmra.mrb[60].mxu1 %v12509_v5  ;;  %3039 = vmatmul.mubr.f32.gmra.mrb[60].mxu0 %v12292_v61  ;;  %v12533_v61 = vld [vmem:[%s10797_s15 + $0xa48] sm:$0xff] }
 0x4c9   : > { %8697 = vmatprep.mubr.f32.mxu1 %v12512_v7  ;;  %3044 = vmatprep.mubr.f32.mxu0 %v15380_v0  ;;  %15414 = vst [vmem:[#allocation87_spill] sm:$0xff] %v12533_v61  ;;  %v12536_v38 = vld [vmem:[%s10797_s15 + $0xa70] sm:$0xff] }
 0x4ca   : > { %15415 = vst [vmem:[#allocation88_spill] sm:$0xff] %v12536_v38 }
 0x4cb   : > { %v12526_v17 = vpop.f32.mrb[212].mxu1 }
 0x4cc   : > { %15413 = vst [vmem:[#allocation86_spill] sm:$0xff] %v12526_v17  ;;  %v4930_v25 = vpop.f32.mrb[213].mxu1  ;;  %8698 = vmatmul.mubr.f32.gmra.mrb[62].mxu1 %v12521_v26  ;;  %3045 = vmatmul.mubr.f32.gmra.mrb[62].mxu0 %v12302_v30  ;;  %v12545_v30 = vld [vmem:[%s10797_s15 + $0xa98] sm:$0xff] }
 0x4cd   : > { %8700 = vmatprep.mubr.f32.mxu1 %v12524_v46  ;;  %3050 = vmatprep.mubr.f32.mxu0 %v15380_v0  ;;  %v12548_v25 = vld [vmem:[%s10797_s15 + $0xac0] sm:$0xff] }
 0x4cf   : > { %v12538_v11 = vpop.f32.mrb[214].mxu1 }
 0x4d0   : > { %15416 = vst [vmem:[#allocation89_spill] sm:$0xff] %v12538_v11  ;;  %v4935_v62 = vpop.f32.mrb[215].mxu1  ;;  %8701 = vmatmul.mubr.f32.gmra.mrb[64].mxu1 %v12533_v61  ;;  %3051 = vmatmul.mubr.f32.gmra.mrb[64].mxu0 %v12305_v49  ;;  %v6163_v11 = vld [vmem:[%s15313_s3 + $0x128] sm:$0xff] }
 0x4d1   : > { %8703 = vmatprep.mubr.f32.mxu1 %v12536_v38  ;;  %3056 = vmatprep.mubr.f32.mxu0 %v15380_v0  ;;  %v6162_v62 = vld [vmem:[%s15313_s3 + $0x120] sm:$0xff]  ;;  %v12566_v38 = vld [vmem:[%s10797_s15 + $0xb10] sm:$0xff] }
 0x4d2   : > { %v9348_v49 = vpack.c.bf16 %v6163_v11, %v6162_v62  ;;  %15418 = vst [vmem:[#allocation91_spill] sm:$0xff] %v12566_v38  ;;  %v12575_v11 = vld [vmem:[%s10797_s15 + $0xb38] sm:$0xff] }
 0x4d3   : > { %v12550_v17 = vpop.f32.mrb[216].mxu1 }
 0x4d4   : > { %15417 = vst [vmem:[#allocation90_spill] sm:$0xff] %v12550_v17  ;;  %v4940_v61 = vpop.f32.mrb[217].mxu1  ;;  %8704 = vmatmul.mubr.f32.gmra.mrb[66].mxu1 %v12545_v30  ;;  %3057 = vmatmul.mubr.f32.gmra.mrb[66].mxu0 %v12314_v21  ;;  %v12563_v17 = vld [vmem:[%s10797_s15 + $0xae8] sm:$0xff]  ;;  %v12578_v21 = vld [vmem:[%s10797_s15 + $0xb60] sm:$0xff] }
 0x4d5   : > { %8706 = vmatprep.mubr.f32.mxu1 %v12548_v25  ;;  %3062 = vmatprep.mubr.f32.mxu0 %v15380_v0  ;;  %15420 = vst [vmem:[#allocation93_spill] sm:$0xff] %v12578_v21 }
 0x4d6   : > { %9349 = vmatprep.subr.bf16.mxu0 %v9348_v49 }
 0x4d7   : > { %v12568_v46 = vpop.f32.mrb[218].mxu1  ;;  %9351 = vmatpush3.bf16.msra.mxu0 %v9348_v49  ;;  %v12590_v49 = vld [vmem:[%s10797_s15 + $0xbb0] sm:$0xff] }
 0x4d8   : > { %15419 = vst [vmem:[#allocation92_spill] sm:$0xff] %v12568_v46  ;;  %v4945_v61 = vpop.f32.mrb[219].mxu1  ;;  %8707 = vmatmul.mubr.f32.gmra.mrb[68].mxu1 %v12563_v17  ;;  %3063 = vmatmul.mubr.f32.gmra.mrb[68].mxu0 %v12317_v37  ;;  %v12587_v37 = vld [vmem:[%s10797_s15 + $0xb88] sm:$0xff]  ;;  %15422 = vst [vmem:[#allocation95_spill] sm:$0xff] %v12590_v49 }
 0x4d9   : > { %8709 = vmatprep.mubr.f32.mxu1 %v12566_v38  ;;  %3068 = vmatprep.mubr.f32.mxu0 %v15380_v0 }
 0x4db   : > { %v12580_v62 = vpop.f32.mrb[220].mxu1 }
 0x4dc   : > { %15421 = vst [vmem:[#allocation94_spill] sm:$0xff] %v12580_v62  ;;  %v4950_v46 = vpop.f32.mrb[221].mxu1  ;;  %8710 = vmatmul.mubr.f32.gmra.mrb[70].mxu1 %v12575_v11  ;;  %3069 = vmatmul.mubr.f32.gmra.mrb[70].mxu0 %v12332_v54  ;;  %v12599_v54 = vld [vmem:[%s10797_s15 + $0xbd8] sm:$0xff] }
 0x4dd   : > { %8712 = vmatprep.mubr.f32.mxu1 %v12578_v21  ;;  %3074 = vmatprep.mubr.f32.mxu0 %v15380_v0  ;;  %v12602_v46 = vld [vmem:[%s10797_s15 + $0xc00] sm:$0xff] }
 0x4de   : > { %15424 = vst [vmem:[#allocation97_spill] sm:$0xff] %v12602_v46 }
 0x4df   : > { %v12592_v61 = vpop.f32.mrb[222].mxu1 }
 0x4e0   : > { %15423 = vst [vmem:[#allocation96_spill] sm:$0xff] %v12592_v61  ;;  %v4955_v38 = vpop.f32.mrb[223].mxu1  ;;  %8713 = vmatmul.mubr.f32.gmra.mrb[72].mxu1 %v12587_v37  ;;  %3075 = vmatmul.mubr.f32.gmra.mrb[72].mxu0 %v12335_v9  ;;  %v12611_v9 = vld [vmem:[%s10797_s15 + $0xc28] sm:$0xff] }
 0x4e1   : > { %8715 = vmatprep.mubr.f32.mxu1 %v12590_v49  ;;  %3080 = vmatprep.mubr.f32.mxu0 %v15380_v0  ;;  %v625_v38 = vld [vmem:[%s10797_s15 + $0xc50] sm:$0xff] }
 0x4e3   : > { %v12604_v62 = vpop.f32.mrb[224].mxu1 }
 0x4e4   : > { %15425 = vst [vmem:[#allocation98_spill] sm:$0xff] %v12604_v62  ;;  %v4960_v21 = vpop.f32.mrb[225].mxu1  ;;  %8716 = vmatmul.mubr.f32.gmra.mrb[74].mxu1 %v12599_v54  ;;  %3081 = vmatmul.mubr.f32.gmra.mrb[74].mxu0 %v12344_v53  ;;  %v630_v53 = vld [vmem:[%s10797_s15 + $0xc78] sm:$0xff] }
 0x4e5   : > { %8718 = vmatprep.mubr.f32.mxu1 %v12602_v46  ;;  %3086 = vmatprep.mubr.f32.mxu0 %v15380_v0  ;;  %v635_v21 = vld [vmem:[%s10797_s15 + $0xca0] sm:$0xff] }
 0x4e7   : > { %v12614_v61 = vpop.f32.mrb[226].mxu1 }
 0x4e8   : > { %15426 = vst [vmem:[#allocation99_spill] sm:$0xff] %v12614_v61  ;;  %v4965_v49 = vpop.f32.mrb[227].mxu1  ;;  %8719 = vmatmul.mubr.f32.gmra.mrb[76].mxu1 %v12611_v9  ;;  %3087 = vmatmul.mubr.f32.gmra.mrb[76].mxu0 %v12347_v28  ;;  %v645_v61 = vld [vmem:[%s10797_s15 + $0xcf0] sm:$0xff] }
 0x4e9   : > { %8721 = vmatprep.mubr.f32.mxu1 %v625_v38  ;;  %3092 = vmatprep.mubr.f32.mxu0 %v15380_v0  ;;  %v640_v49 = vld [vmem:[%s10797_s15 + $0xcc8] sm:$0xff] }
 0x4eb   : > { %v12621_v62 = vpop.f32.mrb[228].mxu1 }
 0x4ec   : > { %v4970_v46 = vpop.f32.mrb[229].mxu1  ;;  %8722 = vmatmul.mubr.f32.gmra.mrb[78].mxu1 %v630_v53  ;;  %3093 = vmatmul.mubr.f32.gmra.mrb[78].mxu0 %v12357_v41  ;;  %v655_v53 = vld [vmem:[%s10797_s15 + $0xd40] sm:$0xff] }
 0x4ed   : > { %8724 = vmatprep.mubr.f32.mxu1 %v635_v21  ;;  %3098 = vmatprep.mubr.f32.mxu0 %v15380_v0  ;;  %v650_v46 = vld [vmem:[%s10797_s15 + $0xd18] sm:$0xff] }
 0x4ef   : > { %v12627_v28 = vpop.f32.mrb[230].mxu1 }
 0x4f0   : > { %v4975_v38 = vpop.f32.mrb[231].mxu1  ;;  %8725 = vmatmul.mubr.f32.gmra.mrb[80].mxu1 %v640_v49  ;;  %3099 = vmatmul.mubr.f32.gmra.mrb[80].mxu0 %v12360_v6  ;;  %v665_v49 = vld [vmem:[%s10797_s15 + $0xd90] sm:$0xff] }
 0x4f1   : > { %8727 = vmatprep.mubr.f32.mxu1 %v645_v61  ;;  %3104 = vmatprep.mubr.f32.mxu0 %v15380_v0  ;;  %v660_v38 = vld [vmem:[%s10797_s15 + $0xd68] sm:$0xff] }
 0x4f3   : > { %v12633_v41 = vpop.f32.mrb[232].mxu1 }
 0x4f4   : > { %v4980_v21 = vpop.f32.mrb[233].mxu1  ;;  %8728 = vmatmul.mubr.f32.gmra.mrb[82].mxu1 %v650_v46  ;;  %3105 = vmatmul.mubr.f32.gmra.mrb[82].mxu0 %v12369_v44  ;;  %v675_v46 = vld [vmem:[%s10797_s15 + $0xde0] sm:$0xff] }
 0x4f5   : > { %8730 = vmatprep.mubr.f32.mxu1 %v655_v53  ;;  %3110 = vmatprep.mubr.f32.mxu0 %v15380_v0  ;;  %v670_v21 = vld [vmem:[%s10797_s15 + $0xdb8] sm:$0xff] }
 0x4f7   : > { %v12639_v6 = vpop.f32.mrb[234].mxu1 }
 0x4f8   : > { %v4985_v61 = vpop.f32.mrb[235].mxu1  ;;  %8731 = vmatmul.mubr.f32.gmra.mrb[84].mxu1 %v660_v38  ;;  %3111 = vmatmul.mubr.f32.gmra.mrb[84].mxu0 %v12372_v58  ;;  %v685_v38 = vld [vmem:[%s10797_s15 + $0xe30] sm:$0xff] }
 0x4f9   : > { %8733 = vmatprep.mubr.f32.mxu1 %v665_v49  ;;  %3116 = vmatprep.mubr.f32.mxu0 %v15380_v0  ;;  %v680_v61 = vld [vmem:[%s10797_s15 + $0xe08] sm:$0xff] }
 0x4fb   : > { %v12645_v44 = vpop.f32.mrb[236].mxu1 }
 0x4fc   : > { %v4990_v53 = vpop.f32.mrb[237].mxu1  ;;  %8734 = vmatmul.mubr.f32.gmra.mrb[86].mxu1 %v670_v21  ;;  %3117 = vmatmul.mubr.f32.gmra.mrb[86].mxu0 %v12387_v32  ;;  %v695_v21 = vld [vmem:[%s10797_s15 + $0xe80] sm:$0xff] }
 0x4fd   : > { %8736 = vmatprep.mubr.f32.mxu1 %v675_v46  ;;  %3122 = vmatprep.mubr.f32.mxu0 %v15380_v0  ;;  %v690_v53 = vld [vmem:[%s10797_s15 + $0xe58] sm:$0xff] }
 0x4ff   : > { %v12651_v58 = vpop.f32.mrb[238].mxu1 }
 0x500   : > { %v4995_v49 = vpop.f32.mrb[239].mxu1  ;;  %8737 = vmatmul.mubr.f32.gmra.mrb[88].mxu1 %v680_v61  ;;  %3123 = vmatmul.mubr.f32.gmra.mrb[88].mxu0 %v12390_v47  ;;  %v705_v61 = vld [vmem:[%s10797_s15 + $0xed0] sm:$0xff] }
 0x501   : > { %8739 = vmatprep.mubr.f32.mxu1 %v685_v38  ;;  %3128 = vmatprep.mubr.f32.mxu0 %v15380_v0  ;;  %v700_v49 = vld [vmem:[%s10797_s15 + $0xea8] sm:$0xff] }
 0x503   : > { %v12657_v32 = vpop.f32.mrb[240].mxu1 }
 0x504   : > { %v5000_v46 = vpop.f32.mrb[241].mxu1  ;;  %8740 = vmatmul.mubr.f32.gmra.mrb[90].mxu1 %v690_v53  ;;  %3129 = vmatmul.mubr.f32.gmra.mrb[90].mxu0 %v12399_v20  ;;  %v715_v53 = vld [vmem:[%s10797_s15 + $0xf20] sm:$0xff] }
 0x505   : > { %8742 = vmatprep.mubr.f32.mxu1 %v695_v21  ;;  %3134 = vmatprep.mubr.f32.mxu0 %v15380_v0  ;;  %v710_v46 = vld [vmem:[%s10797_s15 + $0xef8] sm:$0xff] }
 0x507   : > { %v12663_v47 = vpop.f32.mrb[242].mxu1 }
 0x508   : > { %v5005_v38 = vpop.f32.mrb[243].mxu1  ;;  %8743 = vmatmul.mubr.f32.gmra.mrb[92].mxu1 %v700_v49  ;;  %3135 = vmatmul.mubr.f32.gmra.mrb[92].mxu0 %v12402_v63  ;;  %v725_v49 = vld [vmem:[%s10797_s15 + $0xf70] sm:$0xff] }
 0x509   : > { %8745 = vmatprep.mubr.f32.mxu1 %v705_v61  ;;  %3140 = vmatprep.mubr.f32.mxu0 %v15380_v0  ;;  %v720_v38 = vld [vmem:[%s10797_s15 + $0xf48] sm:$0xff] }
 0x50b   : > { %v12669_v20 = vpop.f32.mrb[244].mxu1 }
 0x50c   : > { %15427 = vst [vmem:[#allocation100_spill] sm:$0xff] %v12669_v20  ;;  %v5010_v21 = vpop.f32.mrb[245].mxu1  ;;  %8746 = vmatmul.mubr.f32.gmra.mrb[94].mxu1 %v710_v46  ;;  %3141 = vmatmul.mubr.f32.gmra.mrb[94].mxu0 %v12412_v33  ;;  %v735_v46 = vld [vmem:[%s10797_s15 + $0xfc0] sm:$0xff]  ;;  %v1113_v20 = vlaneseq }
 0x50d   : > { %8748 = vmatprep.mubr.f32.mxu1 %v715_v53  ;;  %3146 = vmatprep.mubr.f32.mxu0 %v15380_v0  ;;  %v730_v21 = vld [vmem:[%s10797_s15 + $0xf98] sm:$0xff] }
 0x50f   : > { %v12675_v63 = vpop.f32.mrb[246].mxu1 }
 0x510   : > { %15428 = vst [vmem:[#allocation101_spill] sm:$0xff] %v12675_v63  ;;  %v5015_v61 = vpop.f32.mrb[247].mxu1  ;;  %8749 = vmatmul.mubr.f32.gmra.mrb[96].mxu1 %v720_v38  ;;  %3147 = vmatmul.mubr.f32.gmra.mrb[96].mxu0 %v12415_v36  ;;  %v740_v38 = vld [vmem:[%s10797_s15 + $0xfe8] sm:$0xff]  ;;  %v12687_v36 = vshrl.u32 %v1113_v20, 7  ;;  %v12701_v20 = vld [vmem:[%s15312_s2] sm:$0x7] }
 0x511   : > { %8751 = vmatprep.mubr.f32.mxu1 %v725_v49  ;;  %3152 = vmatprep.mubr.f32.mxu0 %v15380_v0  ;;  %v745_v61 = vld [vmem:[%s10797_s15 + $0x1010] sm:$0xff] }
 0x513   : > { %v12681_v33 = vpop.f32.mrb[248].mxu1 }
 0x514   : > { %15429 = vst [vmem:[#allocation102_spill] sm:$0xff] %v12681_v33  ;;  %v5020_v53 = vpop.f32.mrb[249].mxu1  ;;  %8752 = vmatmul.mubr.f32.gmra.mrb[98].mxu1 %v730_v21  ;;  %3153 = vmatmul.mubr.f32.gmra.mrb[98].mxu0 %v12424_v16  ;;  %v750_v21 = vld [vmem:[%s10797_s15 + $0x1038] sm:$0xff]  ;;  %v755_v16 = vld [vmem:[%s10797_s15 + $0x1060] sm:$0xff] }
 0x515   : > { %8754 = vmatprep.mubr.f32.mxu1 %v735_v46  ;;  %3158 = vmatprep.mubr.f32.mxu0 %v15380_v0  ;;  %v1123_v46 = vsub.s32 2, %v12687_v36 }
 0x517   : > { %v12689_v49 = vpop.f32.mrb[250].mxu1 }
 0x518   : > { %15430 = vst [vmem:[#allocation103_spill] sm:$0xff] %v12689_v49  ;;  %v5025_v63 = vpop.f32.mrb[251].mxu1  ;;  %8755 = vmatmul.mubr.f32.gmra.mrb[100].mxu1 %v740_v38  ;;  %3159 = vmatmul.mubr.f32.gmra.mrb[100].mxu0 %v12427_v50  ;;  %v760_v50 = vld [vmem:[%s10797_s15 + $0x1088] sm:$0xff]  ;;  %v765_v38 = vld [vmem:[%s10797_s15 + $0x10b0] sm:$0xff] }
 0x519   : > { %8757 = vmatprep.mubr.f32.mxu1 %v745_v61  ;;  %3164 = vmatprep.mubr.f32.mxu0 %v15380_v0  ;;  %v12708_v61 = vrot.slane %v12701_v20, %v1123_v46 }
 0x51b   : > { %v12696_v53 = vpop.f32.mrb[252].mxu1  ;;  %v9612_v46 = vadd.f32 %v11714_v15, %v12708_v61  ;;  %v9615_v15 = vadd.f32 %v11726_v27, %v12708_v61  ;;  %v790_v27 = vld [vmem:[%s10797_s15 + $0x1178] sm:$0xff] }
 0x51c   : > { %15431 = vst [vmem:[#allocation104_spill] sm:$0xff] %v12696_v53  ;;  %v5030_v63 = vpop.f32.mrb[253].mxu1  ;;  %8758 = vmatmul.mubr.f32.gmra.mrb[102].mxu1 %v750_v21  ;;  %3165 = vmatmul.mubr.f32.gmra.mrb[102].mxu0 %v12436_v10  ;;  %v770_v21 = vld [vmem:[%s10797_s15 + $0x10d8] sm:$0xff]  ;;  %v9613_v10 = vadd.f32 %v11718_v19, %v12708_v61  ;;  %v780_v19 = vld [vmem:[%s10797_s15 + $0x1128] sm:$0xff] }
 0x51d   : > { %8760 = vmatprep.mubr.f32.mxu1 %v755_v16  ;;  %3170 = vmatprep.mubr.f32.mxu0 %v15380_v0  ;;  %v775_v16 = vld [vmem:[%s10797_s15 + $0x1100] sm:$0xff] }
 0x51f   : > { %v12710_v53 = vpop.f32.mrb[254].mxu1 }
 0x520   : > { %15432 = vst [vmem:[#allocation105_spill] sm:$0xff] %v12710_v53  ;;  %v5035_v33 = vpop.f32.mrb[255].mxu1  ;;  %8761 = vmatmul.mubr.f32.gmra.mrb[104].mxu1 %v760_v50  ;;  %3171 = vmatmul.mubr.f32.gmra.mrb[104].mxu0 %v12439_v3  ;;  %v785_v53 = vld [vmem:[%s10797_s15 + $0x1150] sm:$0xff] }
 0x521   : > { %8763 = vmatprep.mubr.f32.mxu1 %v765_v38  ;;  %3176 = vmatprep.mubr.f32.mxu0 %v15380_v0 }
 0x523   : > { %v8606_v63 = vpop.f32.mrb[0].mxu1  ;;  %v12720_v49 = vpop.f32.mrb[0].mxu0 }
 0x524   : > { %v12722_v33 = vadd.f32 %v9613_v10, %v8606_v63  ;;  %v5103_v50 = vpop.f32.mrb[1].mxu1  ;;  %8764 = vmatmul.mubr.f32.gmra.mrb[106].mxu1 %v770_v21  ;;  %v12724_v3 = vpop.f32.mrb[1].mxu0  ;;  %3177 = vmatmul.mubr.f32.gmra.mrb[106].mxu0 %v12454_v4  ;;  %v9614_v10 = vadd.f32 %v11722_v23, %v12708_v61  ;;  %v9617_v23 = vadd.f32 %v11734_v35, %v12708_v61  ;;  %v800_v35 = vld [vmem:[%s10797_s15 + $0x11c8] sm:$0xff] }
 0x525   : > { %v12727_v38 = vadd.f32 %v9612_v46, %v5103_v50  ;;  %8766 = vmatprep.mubr.f32.mxu1 %v775_v16  ;;  %3182 = vmatprep.mubr.f32.mxu0 %v15380_v0  ;;  %v795_v50 = vld [vmem:[%s10797_s15 + $0x11a0] sm:$0xff] }
 0x526   : > { %15433 = vst [vmem:[#allocation106_spill] sm:$0xff] %v12722_v33 }
 0x527   : > { %v8609_v21 = vpop.f32.mrb[2].mxu1  ;;  %v12736_v63 = vpop.f32.mrb[2].mxu0 }
 0x528   : > { %v12738_v33 = vadd.f32 %v9615_v15, %v8609_v21  ;;  %v5113_v4 = vpop.f32.mrb[3].mxu1  ;;  %8767 = vmatmul.mubr.f32.gmra.mrb[108].mxu1 %v780_v19  ;;  %v12740_v16 = vpop.f32.mrb[3].mxu0  ;;  %3183 = vmatmul.mubr.f32.gmra.mrb[108].mxu0 %v12457_v55  ;;  %v9616_v15 = vadd.f32 %v11730_v31, %v12708_v61  ;;  %v9619_v31 = vadd.f32 %v11742_v43, %v12708_v61  ;;  %v810_v43 = vld [vmem:[%s10797_s15 + $0x1218] sm:$0xff] }
 0x529   : > { %v12743_v46 = vadd.f32 %v9614_v10, %v5113_v4  ;;  %8769 = vmatprep.mubr.f32.mxu1 %v785_v53  ;;  %3188 = vmatprep.mubr.f32.mxu0 %v15380_v0  ;;  %v805_v4 = vld [vmem:[%s10797_s15 + $0x11f0] sm:$0xff] }
 0x52a   : > { %15434 = vst [vmem:[#allocation107_spill] sm:$0xff] %v12738_v33 }
 0x52b   : > { %v8612_v19 = vpop.f32.mrb[4].mxu1  ;;  %v12752_v21 = vpop.f32.mrb[4].mxu0 }
 0x52c   : > { %v12754_v33 = vadd.f32 %v9617_v23, %v8612_v19  ;;  %v5123_v55 = vpop.f32.mrb[5].mxu1  ;;  %8770 = vmatmul.mubr.f32.gmra.mrb[110].mxu1 %v790_v27  ;;  %v12756_v53 = vpop.f32.mrb[5].mxu0  ;;  %3189 = vmatmul.mubr.f32.gmra.mrb[110].mxu0 %v12467_v12  ;;  %v9618_v23 = vadd.f32 %v11738_v39, %v12708_v61  ;;  %v9621_v39 = vadd.f32 %v11750_v52, %v12708_v61  ;;  %v820_v52 = vld [vmem:[%s10797_s15 + $0x1268] sm:$0xff] }
 0x52d   : > { %v12759_v10 = vadd.f32 %v9616_v15, %v5123_v55  ;;  %8772 = vmatprep.mubr.f32.mxu1 %v795_v50  ;;  %3194 = vmatprep.mubr.f32.mxu0 %v15380_v0  ;;  %v815_v55 = vld [vmem:[%s10797_s15 + $0x1240] sm:$0xff] }
 0x52e   : > { %15435 = vst [vmem:[#allocation108_spill] sm:$0xff] %v12754_v33 }
 0x52f   : > { %v8615_v27 = vpop.f32.mrb[6].mxu1  ;;  %v12768_v19 = vpop.f32.mrb[6].mxu0 }
 0x530   : > { %v12770_v33 = vadd.f32 %v9619_v31, %v8615_v27  ;;  %v5133_v12 = vpop.f32.mrb[7].mxu1  ;;  %8773 = vmatmul.mubr.f32.gmra.mrb[112].mxu1 %v800_v35  ;;  %v12772_v50 = vpop.f32.mrb[7].mxu0  ;;  %3195 = vmatmul.mubr.f32.gmra.mrb[112].mxu0 %v12470_v42  ;;  %v9620_v31 = vadd.f32 %v11746_v48, %v12708_v61  ;;  %v9623_v48 = vadd.f32 %v11758_v60, %v12708_v61  ;;  %v830_v60 = vld [vmem:[%s10797_s15 + $0x12b8] sm:$0xff] }
 0x531   : > { %v12775_v15 = vadd.f32 %v9618_v23, %v5133_v12  ;;  %8775 = vmatprep.mubr.f32.mxu1 %v805_v4  ;;  %3200 = vmatprep.mubr.f32.mxu0 %v15380_v0  ;;  %v825_v12 = vld [vmem:[%s10797_s15 + $0x1290] sm:$0xff] }
 0x532   : > { %15436 = vst [vmem:[#allocation109_spill] sm:$0xff] %v12770_v33 }
 0x533   : > { %v8618_v35 = vpop.f32.mrb[8].mxu1  ;;  %v12784_v27 = vpop.f32.mrb[8].mxu0 }
 0x534   : > { %v12786_v33 = vadd.f32 %v9621_v39, %v8618_v35  ;;  %v5143_v42 = vpop.f32.mrb[9].mxu1  ;;  %8776 = vmatmul.mubr.f32.gmra.mrb[114].mxu1 %v810_v43  ;;  %v12788_v4 = vpop.f32.mrb[9].mxu0  ;;  %3201 = vmatmul.mubr.f32.gmra.mrb[114].mxu0 %v12479_v59  ;;  %v9622_v39 = vadd.f32 %v11754_v56, %v12708_v61  ;;  %v9625_v56 = vadd.f32 %v11784_v13, %v12708_v61  ;;  %v840_v13 = vld [vmem:[%s10797_s15 + $0x1308] sm:$0xff] }
 0x535   : > { %v12791_v23 = vadd.f32 %v9620_v31, %v5143_v42  ;;  %8778 = vmatprep.mubr.f32.mxu1 %v815_v55  ;;  %3206 = vmatprep.mubr.f32.mxu0 %v15380_v0  ;;  %v835_v42 = vld [vmem:[%s10797_s15 + $0x12e0] sm:$0xff] }
 0x536   : > { %15437 = vst [vmem:[#allocation110_spill] sm:$0xff] %v12786_v33 }
 0x537   : > { %v8621_v43 = vpop.f32.mrb[10].mxu1  ;;  %v12800_v35 = vpop.f32.mrb[10].mxu0 }
 0x538   : > { %v12802_v33 = vadd.f32 %v9623_v48, %v8621_v43  ;;  %v5153_v59 = vpop.f32.mrb[11].mxu1  ;;  %8779 = vmatmul.mubr.f32.gmra.mrb[116].mxu1 %v820_v52  ;;  %v12804_v55 = vpop.f32.mrb[11].mxu0  ;;  %3207 = vmatmul.mubr.f32.gmra.mrb[116].mxu0 %v12482_v1  ;;  %v9624_v48 = vadd.f32 %v11780_v8, %v12708_v61  ;;  %v9627_v8 = vadd.f32 %v11792_v24, %v12708_v61  ;;  %v850_v24 = vld [vmem:[%s10797_s15 + $0x1358] sm:$0xff] }
 0x539   : > { %v12807_v31 = vadd.f32 %v9622_v39, %v5153_v59  ;;  %8781 = vmatprep.mubr.f32.mxu1 %v825_v12  ;;  %3212 = vmatprep.mubr.f32.mxu0 %v15380_v0  ;;  %v845_v59 = vld [vmem:[%s10797_s15 + $0x1330] sm:$0xff] }
 0x53a   : > { %15438 = vst [vmem:[#allocation111_spill] sm:$0xff] %v12802_v33 }
 0x53b   : > { %v8624_v52 = vpop.f32.mrb[12].mxu1  ;;  %v12816_v43 = vpop.f32.mrb[12].mxu0 }
 0x53c   : > { %v12818_v33 = vadd.f32 %v9625_v56, %v8624_v52  ;;  %v5163_v1 = vpop.f32.mrb[13].mxu1  ;;  %8782 = vmatmul.mubr.f32.gmra.mrb[118].mxu1 %v830_v60  ;;  %v12820_v12 = vpop.f32.mrb[13].mxu0  ;;  %3213 = vmatmul.mubr.f32.gmra.mrb[118].mxu0 %v12491_v22  ;;  %v9626_v56 = vadd.f32 %v11788_v18, %v12708_v61  ;;  %v1119_v60 = vsub.s32 1, %v12687_v36  ;;  %v9629_v18 = vadd.f32 %v11800_v34, %v12708_v61 }
 0x53d   : > { %v12823_v39 = vadd.f32 %v9624_v48, %v5163_v1  ;;  %8784 = vmatprep.mubr.f32.mxu1 %v835_v42  ;;  %3218 = vmatprep.mubr.f32.mxu0 %v15380_v0 }
 0x53e   : > { %15439 = vst [vmem:[#allocation112_spill] sm:$0xff] %v12818_v33 }
 0x53f   : > { %15440 = vst [vmem:[#allocation113_spill] sm:$0xff] %v12823_v39  ;;  %v8627_v52 = vpop.f32.mrb[14].mxu1  ;;  %v12833_v33 = vpop.f32.mrb[14].mxu0  ;;  %v1115_v39 = vsub.s32 0, %v12687_v36  ;;  %v9631_v36 = vadd.f32 %v11808_v45, %v12708_v61 }
 0x540   : > { %v12835_v22 = vadd.f32 %v9627_v8, %v8627_v52  ;;  %v5173_v42 = vpop.f32.mrb[15].mxu1  ;;  %8785 = vmatmul.mubr.f32.gmra.mrb[120].mxu1 %v840_v13  ;;  %v12837_v48 = vpop.f32.mrb[15].mxu0  ;;  %3219 = vmatmul.mubr.f32.gmra.mrb[120].mxu0 %v12494_v14  ;;  %v855_v8 = vld [vmem:[%s10797_s15 + $0x1380] sm:$0xff]  ;;  %v9628_v13 = vadd.f32 %v11796_v29, %v12708_v61  ;;  %v12851_v52 = vrot.slane %v12701_v20, %v1119_v60  ;;  %v860_v29 = vld [vmem:[%s10797_s15 + $0x13a8] sm:$0xff] }
 0x541   : > { %v12840_v1 = vadd.f32 %v9626_v56, %v5173_v42  ;;  %8787 = vmatprep.mubr.f32.mxu1 %v845_v59  ;;  %3224 = vmatprep.mubr.f32.mxu0 %v15380_v0  ;;  %v12867_v60 = vrot.slane %v12701_v20, %v1115_v39  ;;  %v9633_v20 = vadd.f32 %v11816_v57, %v12708_v61 }
 0x542   : > { %15441 = vst [vmem:[#allocation114_spill] sm:$0xff] %v12835_v22  ;;  %v9632_v39 = vadd.f32 %v11812_v51, %v12708_v61  ;;  %v9635_v51 = vadd.f32 %v11824_v2, %v12708_v61  ;;  %v15448_v2 = vld [vmem:[#allocation85_spill] sm:$0xff] }
 0x543   : > { %v8630_v14 = vpop.f32.mrb[16].mxu1  ;;  %v12853_v56 = vpop.f32.mrb[16].mxu0 }
 0x544   : > { %v12855_v59 = vadd.f32 %v9629_v18, %v8630_v14  ;;  %v5183_v42 = vpop.f32.mrb[17].mxu1  ;;  %8788 = vmatmul.mubr.f32.gmra.mrb[122].mxu1 %v850_v24  ;;  %v12857_v22 = vpop.f32.mrb[17].mxu0  ;;  %3225 = vmatmul.mubr.f32.gmra.mrb[122].mxu0 %v12509_v5  ;;  %v865_v18 = vld [vmem:[%s10797_s15 + $0x13d0] sm:$0xff]  ;;  %v9630_v24 = vadd.f32 %v11804_v40, %v12708_v61  ;;  %v9357_v5 = vadd.f32 %v12724_v3, %v12851_v52  ;;  %v870_v40 = vld [vmem:[%s10797_s15 + $0x13f8] sm:$0xff] }
 0x545   : > { %v12860_v34 = vadd.f32 %v9628_v13, %v5183_v42  ;;  %8790 = vmatprep.mubr.f32.mxu1 %v855_v8  ;;  %3230 = vmatprep.mubr.f32.mxu0 %v15380_v0  ;;  %v9356_v3 = vadd.f32 %v12720_v49, %v12867_v60 }
 0x546   : > { %15442 = vst [vmem:[#allocation115_spill] sm:$0xff] %v12855_v59 }
 0x547   : > { %v8633_v13 = vpop.f32.mrb[18].mxu1  ;;  %v12874_v14 = vpop.f32.mrb[18].mxu0  ;;  %v5742_v49 = vmax.f32 %v9356_v3, 0.0 }
 0x548   : > { %v12876_v8 = vadd.f32 %v9631_v36, %v8633_v13  ;;  %v5193_v42 = vpop.f32.mrb[19].mxu1  ;;  %8791 = vmatmul.mubr.f32.gmra.mrb[124].mxu1 %v860_v29  ;;  %v12878_v59 = vpop.f32.mrb[19].mxu0  ;;  %3231 = vmatmul.mubr.f32.gmra.mrb[124].mxu0 %v12512_v7  ;;  %v9359_v29 = vadd.f32 %v12740_v16, %v12851_v52  ;;  %v9358_v16 = vadd.f32 %v12736_v63, %v12867_v60  ;;  %v15450_v63 = vld [vmem:[#allocation4_spill] sm:$0xff] }
 0x549   : > { %v12881_v45 = vadd.f32 %v9630_v24, %v5193_v42  ;;  %8793 = vmatprep.mubr.f32.mxu1 %v865_v18  ;;  %3236 = vmatprep.mubr.f32.mxu0 %v15380_v0  ;;  %v5743_v24 = vmax.f32 %v9357_v5, 0.0  ;;  %v15446_v5 = vld [vmem:[#allocation2_spill] sm:$0xff] }
 0x54a   : > { %15443 = vst [vmem:[#allocation116_spill] sm:$0xff] %v12876_v8 }
 0x54b   : > { %v8636_v36 = vpop.f32.mrb[20].mxu1  ;;  %v12893_v7 = vpop.f32.mrb[20].mxu0 }
 0x54c   : > { %v12895_v18 = vadd.f32 %v9633_v20, %v8636_v36  ;;  %v5203_v13 = vpop.f32.mrb[21].mxu1  ;;  %8794 = vmatmul.mubr.f32.gmra.mrb[126].mxu1 %v870_v40  ;;  %v12897_v42 = vpop.f32.mrb[21].mxu0  ;;  %3237 = vmatmul.mubr.f32.gmra.mrb[126].mxu0 %v12521_v26  ;;  %v9634_v20 = vadd.f32 %v15446_v5, %v12708_v61  ;;  %v9361_v40 = vadd.f32 %v12756_v53, %v12851_v52  ;;  %v5745_v5 = vmax.f32 %v9358_v16, 0.0  ;;  %v6165_v16 = vld [vmem:[%s15313_s3 + $0x138] sm:$0xff] }
 0x54d   : > { %v12900_v57 = vadd.f32 %v9632_v39, %v5203_v13  ;;  %6622 = vmatprep.mubr.f32.mxu1 %v5743_v24  ;;  %3242 = vmatprep.mubr.f32.mxu0 %v15380_v0  ;;  %v5746_v39 = vmax.f32 %v9359_v29, 0.0  ;;  %v9637_v53 = vadd.f32 %v15450_v63, %v12708_v61  ;;  %v9360_v29 = vadd.f32 %v12752_v21, %v12867_v60 }
 0x54e   : > { %15444 = vst [vmem:[#allocation117_spill] sm:$0xff] %v12895_v18 }
 0x54f   : > { %15445 = vst [vmem:[#allocation118_spill] sm:$0xff] %v12900_v57  ;;  %v8639_v36 = vpop.f32.mrb[22].mxu1  ;;  %v12911_v26 = vpop.f32.mrb[22].mxu0  ;;  %v5748_v8 = vmax.f32 %v9360_v29, 0.0 }
 0x550   : > { %v12913_v24 = vadd.f32 %v9635_v51, %v8639_v36  ;;  %v5213_v13 = vpop.f32.mrb[23].mxu1  ;;  %6623 = vmatmul.mubr.f32.vlgmr.msra.gmra.mrb[128].mxu1 %v5742_v49  ;;  %v12915_v18 = vpop.f32.mrb[23].mxu0  ;;  %3243 = vmatmul.mubr.f32.gmra.mrb[128].mxu0 %v15448_v2  ;;  %v15451_v51 = vld [vmem:[#allocation3_spill] sm:$0xff]  ;;  %v9363_v49 = vadd.f32 %v12772_v50, %v12851_v52 }
 0x551   : > { %v12918_v3 = vadd.f32 %v9634_v20, %v5213_v13  ;;  %6627 = vmatprep.mubr.f32.mxu1 %v5746_v39  ;;  %3248 = vmatprep.mubr.f32.mxu0 %v15380_v0  ;;  %v9636_v36 = vadd.f32 %v15451_v51, %v12708_v61  ;;  %v5749_v20 = vmax.f32 %v9361_v40, 0.0  ;;  %v6164_v39 = vld [vmem:[%s15313_s3 + $0x130] sm:$0xff]  ;;  %v15453_v51 = vld [vmem:[#allocation87_spill] sm:$0xff]  ;;  %v15454_v40 = vld [vmem:[#allocation6_spill] sm:$0xff] }
 0x552   : > { %15447 = vst [vmem:[#allocation2_spill] sm:$0xff] %v12913_v24  ;;  %v9352_v50 = vpack.c.bf16 %v6165_v16, %v6164_v39  ;;  %v9639_v57 = vadd.f32 %v15454_v40, %v12708_v61  ;;  %v15457_v40 = vld [vmem:[#allocation88_spill] sm:$0xff] }
 0x553   : > { %15449 = vst [vmem:[#allocation85_spill] sm:$0xff] %v12918_v3  ;;  %v8642_v24 = vpop.f32.mrb[24].mxu1  ;;  %v12929_v2 = vpop.f32.mrb[24].mxu0 }
 0x554   : > { %v12937_v13 = vadd.f32 %v9637_v53, %v8642_v24  ;;  %v5223_v21 = vpop.f32.mrb[25].mxu1  ;;  %6628 = vmatmul.mubr.f32.gmra.mrb[130].mxu1 %v5745_v5  ;;  %v12939_v63 = vpop.f32.mrb[25].mxu0  ;;  %3249 = vmatmul.mubr.f32.gmra.mrb[130].mxu0 %v15453_v51  ;;  %v9362_v24 = vadd.f32 %v12768_v19, %v12867_v60  ;;  %v15455_v53 = vld [vmem:[#allocation5_spill] sm:$0xff]  ;;  %v9365_v51 = vadd.f32 %v12788_v4, %v12851_v52  ;;  %v15458_v4 = vld [vmem:[#allocation8_spill] sm:$0xff] }
 0x555   : > { %v12942_v3 = vadd.f32 %v9636_v36, %v5223_v21  ;;  %6632 = vmatprep.mubr.f32.mxu1 %v5749_v20  ;;  %3254 = vmatprep.mubr.f32.mxu0 %v15380_v0  ;;  %v9638_v5 = vadd.f32 %v15455_v53, %v12708_v61  ;;  %v5752_v20 = vmax.f32 %v9363_v49, 0.0  ;;  %v9641_v53 = vadd.f32 %v15458_v4, %v12708_v61 }
 0x556   : > { %15452 = vst [vmem:[#allocation4_spill] sm:$0xff] %v12937_v13  ;;  %9353 = vmatprep.subr.bf16.mxu0 %v9352_v50  ;;  %v5751_v13 = vmax.f32 %v9362_v24, 0.0  ;;  %v9364_v49 = vadd.f32 %v12784_v27, %v12867_v60  ;;  %v15461_v27 = vld [vmem:[#allocation10_spill] sm:$0xff] }
 0x557   : > { %v8645_v39 = vpop.f32.mrb[26].mxu1  ;;  %v12953_v36 = vpop.f32.mrb[26].mxu0  ;;  %9355 = vmatpush3.bf16.msra.mxu0 %v9352_v50 }
 0x558   : > { %v12955_v16 = vadd.f32 %v9639_v57, %v8645_v39  ;;  %v5233_v21 = vpop.f32.mrb[27].mxu1  ;;  %6633 = vmatmul.mubr.f32.gmra.mrb[132].mxu1 %v5748_v8  ;;  %v12957_v29 = vpop.f32.mrb[27].mxu0  ;;  %3255 = vmatmul.mubr.f32.gmra.mrb[132].mxu0 %v15457_v40  ;;  %v15459_v57 = vld [vmem:[#allocation7_spill] sm:$0xff]  ;;  %v9367_v8 = vadd.f32 %v12804_v55, %v12851_v52  ;;  %v9643_v55 = vadd.f32 %v15461_v27, %v12708_v61  ;;  %v5754_v4 = vmax.f32 %v9364_v49, 0.0 }
 0x559   : > { %v12960_v19 = vadd.f32 %v9638_v5, %v5233_v21  ;;  %6637 = vmatprep.mubr.f32.mxu1 %v5752_v20  ;;  %3260 = vmatprep.mubr.f32.mxu0 %v15380_v0  ;;  %v9640_v50 = vadd.f32 %v15459_v57, %v12708_v61  ;;  %v5755_v5 = vmax.f32 %v9365_v51, 0.0  ;;  %v9366_v51 = vadd.f32 %v12800_v35, %v12867_v60  ;;  %v15464_v35 = vld [vmem:[#allocation12_spill] sm:$0xff] }
 0x55a   : > { %15456 = vst [vmem:[#allocation3_spill] sm:$0xff] %v12955_v16 }
 0x55b   : > { %v8648_v39 = vpop.f32.mrb[28].mxu1  ;;  %v12971_v40 = vpop.f32.mrb[28].mxu0  ;;  %v5757_v27 = vmax.f32 %v9366_v51, 0.0 }
 0x55c   : > { %v12973_v20 = vadd.f32 %v9641_v53, %v8648_v39  ;;  %v5243_v21 = vpop.f32.mrb[29].mxu1  ;;  %6638 = vmatmul.mubr.f32.gmra.mrb[134].mxu1 %v5751_v13  ;;  %v12975_v16 = vpop.f32.mrb[29].mxu0  ;;  %3261 = vmatmul.mubr.f32.gmra.mrb[134].mxu0 %v12545_v30  ;;  %v15462_v53 = vld [vmem:[#allocation9_spill] sm:$0xff]  ;;  %v9369_v13 = vadd.f32 %v12820_v12, %v12851_v52  ;;  %v9645_v12 = vadd.f32 %v15464_v35, %v12708_v61 }
 0x55d   : > { %v12978_v24 = vadd.f32 %v9640_v50, %v5243_v21  ;;  %6642 = vmatprep.mubr.f32.mxu1 %v5755_v5  ;;  %3266 = vmatprep.mubr.f32.mxu0 %v15380_v0  ;;  %v9642_v57 = vadd.f32 %v15462_v53, %v12708_v61  ;;  %v5758_v50 = vmax.f32 %v9367_v8, 0.0  ;;  %v9368_v8 = vadd.f32 %v12816_v43, %v12867_v60  ;;  %v15467_v43 = vld [vmem:[#allocation14_spill] sm:$0xff] }
 0x55e   : > { %15460 = vst [vmem:[#allocation87_spill] sm:$0xff] %v12973_v20 }
 0x55f   : > { %v8651_v39 = vpop.f32.mrb[30].mxu1  ;;  %v12989_v30 = vpop.f32.mrb[30].mxu0  ;;  %v5760_v35 = vmax.f32 %v9368_v8, 0.0  ;;  %v15470_v8 = vld [vmem:[#allocation91_spill] sm:$0xff] }
 0x560   : > { %v12991_v5 = vadd.f32 %v9643_v55, %v8651_v39  ;;  %v5253_v21 = vpop.f32.mrb[31].mxu1  ;;  %6643 = vmatmul.mubr.f32.gmra.mrb[136].mxu1 %v5754_v4  ;;  %v12993_v20 = vpop.f32.mrb[31].mxu0  ;;  %3267 = vmatmul.mubr.f32.gmra.mrb[136].mxu0 %v12548_v25  ;;  %v15465_v55 = vld [vmem:[#allocation11_spill] sm:$0xff]  ;;  %v9371_v4 = vadd.f32 %v12837_v48, %v12851_v52  ;;  %v9647_v48 = vadd.f32 %v15467_v43, %v12708_v61 }
 0x561   : > { %v12996_v49 = vadd.f32 %v9642_v57, %v5253_v21  ;;  %6647 = vmatprep.mubr.f32.mxu1 %v5758_v50  ;;  %3272 = vmatprep.mubr.f32.mxu0 %v15380_v0  ;;  %v9644_v53 = vadd.f32 %v15465_v55, %v12708_v61  ;;  %v5761_v57 = vmax.f32 %v9369_v13, 0.0  ;;  %v9370_v13 = vadd.f32 %v12833_v33, %v12867_v60  ;;  %v15472_v33 = vld [vmem:[#allocation16_spill] sm:$0xff] }
 0x562   : > { %15463 = vst [vmem:[#allocation6_spill] sm:$0xff] %v12991_v5 }
 0x563   : > { %v8654_v39 = vpop.f32.mrb[32].mxu1  ;;  %v13007_v25 = vpop.f32.mrb[32].mxu0 }
 0x564   : > { %v13009_v50 = vadd.f32 %v9645_v12, %v8654_v39  ;;  %v5263_v21 = vpop.f32.mrb[33].mxu1  ;;  %6648 = vmatmul.mubr.f32.gmra.mrb[138].mxu1 %v5757_v27  ;;  %v13011_v5 = vpop.f32.mrb[33].mxu0  ;;  %3273 = vmatmul.mubr.f32.gmra.mrb[138].mxu0 %v12563_v17  ;;  %v15468_v12 = vld [vmem:[#allocation13_spill] sm:$0xff]  ;;  %v9373_v27 = vadd.f32 %v12857_v22, %v12851_v52  ;;  %v9649_v22 = vadd.f32 %v15472_v33, %v12708_v61 }
 0x565   : > { %v13014_v51 = vadd.f32 %v9644_v53, %v5263_v21  ;;  %6652 = vmatprep.mubr.f32.mxu1 %v5761_v57  ;;  %3278 = vmatprep.mubr.f32.mxu0 %v15380_v0  ;;  %v9646_v55 = vadd.f32 %v15468_v12, %v12708_v61  ;;  %v5764_v53 = vmax.f32 %v9371_v4, 0.0  ;;  %v5763_v12 = vmax.f32 %v9370_v13, 0.0 }
 0x566   : > { %15466 = vst [vmem:[#allocation5_spill] sm:$0xff] %v13009_v50  ;;  %v9372_v4 = vadd.f32 %v12853_v56, %v12867_v60  ;;  %v15475_v56 = vld [vmem:[#allocation18_spill] sm:$0xff] }
 0x567   : > { %v8657_v39 = vpop.f32.mrb[34].mxu1  ;;  %v13025_v17 = vpop.f32.mrb[34].mxu0 }
 0x568   : > { %v13027_v57 = vadd.f32 %v9647_v48, %v8657_v39  ;;  %v5273_v21 = vpop.f32.mrb[35].mxu1  ;;  %6653 = vmatmul.mubr.f32.gmra.mrb[140].mxu1 %v5760_v35  ;;  %v13029_v50 = vpop.f32.mrb[35].mxu0  ;;  %3279 = vmatmul.mubr.f32.gmra.mrb[140].mxu0 %v15470_v8  ;;  %v15473_v48 = vld [vmem:[#allocation15_spill] sm:$0xff]  ;;  %v9375_v35 = vadd.f32 %v12878_v59, %v12851_v52  ;;  %v9651_v59 = vadd.f32 %v15475_v56, %v12708_v61  ;;  %v5766_v33 = vmax.f32 %v9372_v4, 0.0  ;;  %v15478_v4 = vld [vmem:[#allocation93_spill] sm:$0xff] }
 0x569   : > { %v13032_v43 = vadd.f32 %v9646_v55, %v5273_v21  ;;  %6657 = vmatprep.mubr.f32.mxu1 %v5764_v53  ;;  %3284 = vmatprep.mubr.f32.mxu0 %v15380_v0  ;;  %v9648_v39 = vadd.f32 %v15473_v48, %v12708_v61  ;;  %v5767_v55 = vmax.f32 %v9373_v27, 0.0  ;;  %v9374_v27 = vadd.f32 %v12874_v14, %v12867_v60  ;;  %v15480_v14 = vld [vmem:[#allocation20_spill] sm:$0xff] }
 0x56a   : > { %15469 = vst [vmem:[#allocation88_spill] sm:$0xff] %v13027_v57 }
 0x56b   : > { %15471 = vst [vmem:[#allocation8_spill] sm:$0xff] %v13032_v43  ;;  %v8660_v57 = vpop.f32.mrb[36].mxu1  ;;  %v13043_v8 = vpop.f32.mrb[36].mxu0 }
 0x56c   : > { %v13045_v53 = vadd.f32 %v9649_v22, %v8660_v57  ;;  %v5283_v21 = vpop.f32.mrb[37].mxu1  ;;  %6658 = vmatmul.mubr.f32.gmra.mrb[142].mxu1 %v5763_v12  ;;  %v13047_v43 = vpop.f32.mrb[37].mxu0  ;;  %3285 = vmatmul.mubr.f32.gmra.mrb[142].mxu0 %v12575_v11  ;;  %v15476_v57 = vld [vmem:[#allocation17_spill] sm:$0xff]  ;;  %v9377_v12 = vadd.f32 %v12897_v42, %v12851_v52  ;;  %v9653_v42 = vadd.f32 %v15480_v14, %v12708_v61 }
 0x56d   : > { %v13050_v13 = vadd.f32 %v9648_v39, %v5283_v21  ;;  %6662 = vmatprep.mubr.f32.mxu1 %v5767_v55  ;;  %3290 = vmatprep.mubr.f32.mxu0 %v15380_v0  ;;  %v9650_v22 = vadd.f32 %v15476_v57, %v12708_v61  ;;  %v5770_v39 = vmax.f32 %v9375_v35, 0.0  ;;  %v5769_v57 = vmax.f32 %v9374_v27, 0.0 }
 0x56e   : > { %15474 = vst [vmem:[#allocation7_spill] sm:$0xff] %v13045_v53  ;;  %v9376_v35 = vadd.f32 %v12893_v7, %v12867_v60  ;;  %v15483_v7 = vld [vmem:[#allocation22_spill] sm:$0xff] }
 0x56f   : > { %v8663_v48 = vpop.f32.mrb[38].mxu1  ;;  %v13061_v11 = vpop.f32.mrb[38].mxu0 }
 0x570   : > { %v13063_v55 = vadd.f32 %v9651_v59, %v8663_v48  ;;  %v5293_v21 = vpop.f32.mrb[39].mxu1  ;;  %6663 = vmatmul.mubr.f32.gmra.mrb[144].mxu1 %v5766_v33  ;;  %v13065_v53 = vpop.f32.mrb[39].mxu0  ;;  %3291 = vmatmul.mubr.f32.gmra.mrb[144].mxu0 %v15478_v4  ;;  %v15481_v59 = vld [vmem:[#allocation19_spill] sm:$0xff]  ;;  %v9379_v33 = vadd.f32 %v12915_v18, %v12851_v52  ;;  %v9655_v18 = vadd.f32 %v15483_v7, %v12708_v61  ;;  %v5772_v14 = vmax.f32 %v9376_v35, 0.0 }
 0x571   : > { %v13068_v56 = vadd.f32 %v9650_v22, %v5293_v21  ;;  %6667 = vmatprep.mubr.f32.mxu1 %v5770_v39  ;;  %3296 = vmatprep.mubr.f32.mxu0 %v15380_v0  ;;  %v9652_v48 = vadd.f32 %v15481_v59, %v12708_v61  ;;  %v5773_v22 = vmax.f32 %v9377_v12, 0.0  ;;  %v9378_v12 = vadd.f32 %v12911_v26, %v12867_v60  ;;  %v15486_v35 = vld [vmem:[#allocation95_spill] sm:$0xff]  ;;  %v15488_v26 = vld [vmem:[#allocation24_spill] sm:$0xff] }
 0x572   : > { %15477 = vst [vmem:[#allocation10_spill] sm:$0xff] %v13063_v55 }
 0x573   : > { %15479 = vst [vmem:[#allocation9_spill] sm:$0xff] %v13068_v56  ;;  %v8666_v55 = vpop.f32.mrb[40].mxu1  ;;  %v13079_v4 = vpop.f32.mrb[40].mxu0 }
 0x574   : > { %v13081_v39 = vadd.f32 %v9653_v42, %v8666_v55  ;;  %v5303_v21 = vpop.f32.mrb[41].mxu1  ;;  %6668 = vmatmul.mubr.f32.gmra.mrb[146].mxu1 %v5769_v57  ;;  %v13083_v56 = vpop.f32.mrb[41].mxu0  ;;  %3297 = vmatmul.mubr.f32.gmra.mrb[146].mxu0 %v12587_v37  ;;  %v15484_v55 = vld [vmem:[#allocation21_spill] sm:$0xff]  ;;  %v9381_v57 = vadd.f32 %v12939_v63, %v12851_v52  ;;  %v9657_v63 = vadd.f32 %v15488_v26, %v12708_v61 }
 0x575   : > { %v13086_v27 = vadd.f32 %v9652_v48, %v5303_v21  ;;  %6672 = vmatprep.mubr.f32.mxu1 %v5773_v22  ;;  %3302 = vmatprep.mubr.f32.mxu0 %v15380_v0  ;;  %v9654_v42 = vadd.f32 %v15484_v55, %v12708_v61  ;;  %v5776_v48 = vmax.f32 %v9379_v33, 0.0  ;;  %v5775_v55 = vmax.f32 %v9378_v12, 0.0 }
 0x576   : > { %15482 = vst [vmem:[#allocation12_spill] sm:$0xff] %v13081_v39  ;;  %v9380_v33 = vadd.f32 %v12929_v2, %v12867_v60  ;;  %v15491_v2 = vld [vmem:[#allocation26_spill] sm:$0xff] }
 0x577   : > { %v8669_v59 = vpop.f32.mrb[42].mxu1  ;;  %v13097_v37 = vpop.f32.mrb[42].mxu0 }
 0x578   : > { %v13099_v22 = vadd.f32 %v9655_v18, %v8669_v59  ;;  %v5313_v21 = vpop.f32.mrb[43].mxu1  ;;  %6673 = vmatmul.mubr.f32.gmra.mrb[148].mxu1 %v5772_v14  ;;  %v13101_v39 = vpop.f32.mrb[43].mxu0  ;;  %3303 = vmatmul.mubr.f32.gmra.mrb[148].mxu0 %v15486_v35  ;;  %v15489_v18 = vld [vmem:[#allocation23_spill] sm:$0xff]  ;;  %v9383_v14 = vadd.f32 %v12957_v29, %v12851_v52  ;;  %v9659_v29 = vadd.f32 %v15491_v2, %v12708_v61  ;;  %v5778_v26 = vmax.f32 %v9380_v33, 0.0  ;;  %v15494_v33 = vld [vmem:[#allocation97_spill] sm:$0xff] }
 0x579   : > { %v13104_v7 = vadd.f32 %v9654_v42, %v5313_v21  ;;  %6677 = vmatprep.mubr.f32.mxu1 %v5776_v48  ;;  %3308 = vmatprep.mubr.f32.mxu0 %v15380_v0  ;;  %v9656_v59 = vadd.f32 %v15489_v18, %v12708_v61  ;;  %v5779_v42 = vmax.f32 %v9381_v57, 0.0  ;;  %v9382_v57 = vadd.f32 %v12953_v36, %v12867_v60  ;;  %v15496_v36 = vld [vmem:[#allocation28_spill] sm:$0xff] }
 0x57a   : > { %15485 = vst [vmem:[#allocation11_spill] sm:$0xff] %v13099_v22 }
 0x57b   : > { %15487 = vst [vmem:[#allocation14_spill] sm:$0xff] %v13104_v7  ;;  %v8672_v22 = vpop.f32.mrb[44].mxu1  ;;  %v13115_v35 = vpop.f32.mrb[44].mxu0 }
 0x57c   : > { %v13117_v48 = vadd.f32 %v9657_v63, %v8672_v22  ;;  %v5323_v21 = vpop.f32.mrb[45].mxu1  ;;  %6678 = vmatmul.mubr.f32.gmra.mrb[150].mxu1 %v5775_v55  ;;  %v13119_v7 = vpop.f32.mrb[45].mxu0  ;;  %3309 = vmatmul.mubr.f32.gmra.mrb[150].mxu0 %v12599_v54  ;;  %v15492_v22 = vld [vmem:[#allocation25_spill] sm:$0xff]  ;;  %v9385_v55 = vadd.f32 %v12975_v16, %v12851_v52  ;;  %v9661_v16 = vadd.f32 %v15496_v36, %v12708_v61 }
 0x57d   : > { %v13122_v12 = vadd.f32 %v9656_v59, %v5323_v21  ;;  %6682 = vmatprep.mubr.f32.mxu1 %v5779_v42  ;;  %3314 = vmatprep.mubr.f32.mxu0 %v15380_v0  ;;  %v9658_v63 = vadd.f32 %v15492_v22, %v12708_v61  ;;  %v5782_v59 = vmax.f32 %v9383_v14, 0.0  ;;  %v5781_v22 = vmax.f32 %v9382_v57, 0.0 }
 0x57e   : > { %15490 = vst [vmem:[#allocation13_spill] sm:$0xff] %v13117_v48  ;;  %v9384_v14 = vadd.f32 %v12971_v40, %v12867_v60 }
 0x57f   : > { %v8675_v18 = vpop.f32.mrb[46].mxu1  ;;  %v13133_v54 = vpop.f32.mrb[46].mxu0 }
 0x580   : > { %v13135_v42 = vadd.f32 %v9659_v29, %v8675_v18  ;;  %v5333_v21 = vpop.f32.mrb[47].mxu1  ;;  %6683 = vmatmul.mubr.f32.gmra.mrb[152].mxu1 %v5778_v26  ;;  %v13137_v48 = vpop.f32.mrb[47].mxu0  ;;  %3315 = vmatmul.mubr.f32.gmra.mrb[152].mxu0 %v15494_v33  ;;  %v15497_v29 = vld [vmem:[#allocation27_spill] sm:$0xff]  ;;  %v9387_v26 = vadd.f32 %v12993_v20, %v12851_v52  ;;  %v15499_v20 = vld [vmem:[#allocation30_spill] sm:$0xff]  ;;  %v5784_v36 = vmax.f32 %v9384_v14, 0.0  ;;  %v10519_v14 = vld [vmem:[%s10797_s15 + $0xc50] sm:$0xff] }
 0x581   : > { %v13140_v2 = vadd.f32 %v9658_v63, %v5333_v21  ;;  %6687 = vmatprep.mubr.f32.mxu1 %v5782_v59  ;;  %3320 = vmatprep.mubr.f32.mxu0 %v15380_v0  ;;  %v9660_v18 = vadd.f32 %v15497_v29, %v12708_v61  ;;  %v5785_v63 = vmax.f32 %v9385_v55, 0.0  ;;  %v9663_v57 = vadd.f32 %v15499_v20, %v12708_v61 }
 0x582   : > { %15493 = vst [vmem:[#allocation91_spill] sm:$0xff] %v13135_v42  ;;  %v9386_v55 = vadd.f32 %v12989_v30, %v12867_v60 }
 0x583   : > { %15495 = vst [vmem:[#allocation16_spill] sm:$0xff] %v13140_v2  ;;  %v8678_v42 = vpop.f32.mrb[48].mxu1  ;;  %v13151_v33 = vpop.f32.mrb[48].mxu0 }
 0x584   : > { %v13153_v59 = vadd.f32 %v9661_v16, %v8678_v42  ;;  %v5343_v21 = vpop.f32.mrb[49].mxu1  ;;  %6688 = vmatmul.mubr.f32.gmra.mrb[154].mxu1 %v5781_v22  ;;  %v13155_v2 = vpop.f32.mrb[49].mxu0  ;;  %3321 = vmatmul.mubr.f32.gmra.mrb[154].mxu0 %v12611_v9  ;;  %v15500_v42 = vld [vmem:[#allocation29_spill] sm:$0xff]  ;;  %v9389_v22 = vadd.f32 %v13011_v5, %v12851_v52  ;;  %v15503_v5 = vld [vmem:[#allocation32_spill] sm:$0xff] }
 0x585   : > { %v13158_v40 = vadd.f32 %v9660_v18, %v5343_v21  ;;  %6692 = vmatprep.mubr.f32.mxu1 %v5785_v63  ;;  %3326 = vmatprep.mubr.f32.mxu0 %v15380_v0  ;;  %v9662_v16 = vadd.f32 %v15500_v42, %v12708_v61  ;;  %v5788_v18 = vmax.f32 %v9387_v26, 0.0  ;;  %v9665_v20 = vadd.f32 %v15503_v5, %v12708_v61 }
 0x586   : > { %15498 = vst [vmem:[#allocation15_spill] sm:$0xff] %v13153_v59  ;;  %v5787_v42 = vmax.f32 %v9386_v55, 0.0  ;;  %v9388_v26 = vadd.f32 %v13007_v25, %v12867_v60  ;;  %v10520_v55 = vld [vmem:[%s10797_s15 + $0xc78] sm:$0xff] }
 0x587   : > { %v8681_v9 = vpop.f32.mrb[50].mxu1  ;;  %v13169_v29 = vpop.f32.mrb[50].mxu0 }
 0x588   : > { %v13171_v63 = vadd.f32 %v9663_v57, %v8681_v9  ;;  %v5353_v21 = vpop.f32.mrb[51].mxu1  ;;  %6693 = vmatmul.mubr.f32.gmra.mrb[156].mxu1 %v5784_v36  ;;  %v13173_v59 = vpop.f32.mrb[51].mxu0  ;;  %3327 = vmatmul.mubr.f32.gmra.mrb[156].mxu0 %v10519_v14  ;;  %v15504_v57 = vld [vmem:[#allocation31_spill] sm:$0xff]  ;;  %v9391_v9 = vadd.f32 %v13029_v50, %v12851_v52  ;;  %v15507_v50 = vld [vmem:[#allocation34_spill] sm:$0xff] }
 0x589   : > { %v13176_v30 = vadd.f32 %v9662_v16, %v5353_v21  ;;  %6697 = vmatprep.mubr.f32.mxu1 %v5788_v18  ;;  %3332 = vmatprep.mubr.f32.mxu0 %v15380_v0  ;;  %v9664_v36 = vadd.f32 %v15504_v57, %v12708_v61  ;;  %v5791_v16 = vmax.f32 %v9389_v22, 0.0  ;;  %v9667_v5 = vadd.f32 %v15507_v50, %v12708_v61 }
 0x58a   : > { %15501 = vst [vmem:[#allocation18_spill] sm:$0xff] %v13171_v63  ;;  %v5790_v57 = vmax.f32 %v9388_v26, 0.0  ;;  %v9390_v22 = vadd.f32 %v13025_v17, %v12867_v60  ;;  %v10521_v26 = vld [vmem:[%s10797_s15 + $0xca0] sm:$0xff] }
 0x58b   : > { %15502 = vst [vmem:[#allocation17_spill] sm:$0xff] %v13176_v30  ;;  %v8684_v14 = vpop.f32.mrb[52].mxu1  ;;  %v13187_v63 = vpop.f32.mrb[52].mxu0 }
 0x58c   : > { %v13189_v18 = vadd.f32 %v9665_v20, %v8684_v14  ;;  %v5363_v21 = vpop.f32.mrb[53].mxu1  ;;  %6698 = vmatmul.mubr.f32.gmra.mrb[158].mxu1 %v5787_v42  ;;  %v13191_v30 = vpop.f32.mrb[53].mxu0  ;;  %3333 = vmatmul.mubr.f32.gmra.mrb[158].mxu0 %v10520_v55  ;;  %v15508_v20 = vld [vmem:[#allocation33_spill] sm:$0xff]  ;;  %v9393_v14 = vadd.f32 %v13047_v43, %v12851_v52  ;;  %v15511_v43 = vld [vmem:[#allocation36_spill] sm:$0xff] }
 0x58d   : > { %v13194_v25 = vadd.f32 %v9664_v36, %v5363_v21  ;;  %6702 = vmatprep.mubr.f32.mxu1 %v5791_v16  ;;  %3338 = vmatprep.mubr.f32.mxu0 %v15380_v0  ;;  %v9666_v42 = vadd.f32 %v15508_v20, %v12708_v61  ;;  %v5794_v36 = vmax.f32 %v9391_v9, 0.0  ;;  %v9669_v50 = vadd.f32 %v15511_v43, %v12708_v61 }
 0x58e   : > { %15505 = vst [vmem:[#allocation93_spill] sm:$0xff] %v13189_v18  ;;  %v5793_v20 = vmax.f32 %v9390_v22, 0.0  ;;  %v9392_v9 = vadd.f32 %v13043_v8, %v12867_v60  ;;  %v10522_v22 = vld [vmem:[%s10797_s15 + $0xcc8] sm:$0xff] }
 0x58f   : > { %15506 = vst [vmem:[#allocation20_spill] sm:$0xff] %v13194_v25  ;;  %v8687_v55 = vpop.f32.mrb[54].mxu1  ;;  %v13205_v18 = vpop.f32.mrb[54].mxu0 }
 0x590   : > { %v13207_v16 = vadd.f32 %v9667_v5, %v8687_v55  ;;  %v5373_v21 = vpop.f32.mrb[55].mxu1  ;;  %6703 = vmatmul.mubr.f32.gmra.mrb[160].mxu1 %v5790_v57  ;;  %v13209_v25 = vpop.f32.mrb[55].mxu0  ;;  %3339 = vmatmul.mubr.f32.gmra.mrb[160].mxu0 %v10521_v26  ;;  %v15512_v5 = vld [vmem:[#allocation35_spill] sm:$0xff]  ;;  %v9395_v55 = vadd.f32 %v13065_v53, %v12851_v52  ;;  %v15515_v53 = vld [vmem:[#allocation38_spill] sm:$0xff] }
 0x591   : > { %v13212_v17 = vadd.f32 %v9666_v42, %v5373_v21  ;;  %6707 = vmatprep.mubr.f32.mxu1 %v5794_v36  ;;  %3344 = vmatprep.mubr.f32.mxu0 %v15380_v0  ;;  %v9668_v57 = vadd.f32 %v15512_v5, %v12708_v61  ;;  %v5797_v42 = vmax.f32 %v9393_v14, 0.0  ;;  %v9671_v43 = vadd.f32 %v15515_v53, %v12708_v61 }
 0x592   : > { %15509 = vst [vmem:[#allocation19_spill] sm:$0xff] %v13207_v16  ;;  %v5796_v5 = vmax.f32 %v9392_v9, 0.0  ;;  %v9394_v14 = vadd.f32 %v13061_v11, %v12867_v60  ;;  %v10523_v9 = vld [vmem:[%s10797_s15 + $0xcf0] sm:$0xff] }
 0x593   : > { %15510 = vst [vmem:[#allocation22_spill] sm:$0xff] %v13212_v17  ;;  %v8690_v26 = vpop.f32.mrb[56].mxu1  ;;  %v13223_v16 = vpop.f32.mrb[56].mxu0 }
 0x594   : > { %v13225_v36 = vadd.f32 %v9669_v50, %v8690_v26  ;;  %v5383_v21 = vpop.f32.mrb[57].mxu1  ;;  %6708 = vmatmul.mubr.f32.gmra.mrb[162].mxu1 %v5793_v20  ;;  %v13227_v17 = vpop.f32.mrb[57].mxu0  ;;  %3345 = vmatmul.mubr.f32.gmra.mrb[162].mxu0 %v10522_v22  ;;  %v15516_v50 = vld [vmem:[#allocation37_spill] sm:$0xff]  ;;  %v9397_v26 = vadd.f32 %v13083_v56, %v12851_v52  ;;  %v15519_v56 = vld [vmem:[#allocation40_spill] sm:$0xff] }
 0x595   : > { %v13230_v8 = vadd.f32 %v9668_v57, %v5383_v21  ;;  %6712 = vmatprep.mubr.f32.mxu1 %v5797_v42  ;;  %3350 = vmatprep.mubr.f32.mxu0 %v15380_v0  ;;  %v9670_v20 = vadd.f32 %v15516_v50, %v12708_v61  ;;  %v5800_v57 = vmax.f32 %v9395_v55, 0.0  ;;  %v9673_v53 = vadd.f32 %v15519_v56, %v12708_v61 }
 0x596   : > { %15513 = vst [vmem:[#allocation21_spill] sm:$0xff] %v13225_v36  ;;  %v5799_v50 = vmax.f32 %v9394_v14, 0.0  ;;  %v9396_v55 = vadd.f32 %v13079_v4, %v12867_v60  ;;  %v10524_v14 = vld [vmem:[%s10797_s15 + $0xd18] sm:$0xff] }
 0x597   : > { %15514 = vst [vmem:[#allocation95_spill] sm:$0xff] %v13230_v8  ;;  %v8693_v22 = vpop.f32.mrb[58].mxu1  ;;  %v13241_v36 = vpop.f32.mrb[58].mxu0 }
 0x598   : > { %v13243_v42 = vadd.f32 %v9671_v43, %v8693_v22  ;;  %v5393_v21 = vpop.f32.mrb[59].mxu1  ;;  %6713 = vmatmul.mubr.f32.gmra.mrb[164].mxu1 %v5796_v5  ;;  %v13245_v8 = vpop.f32.mrb[59].mxu0  ;;  %3351 = vmatmul.mubr.f32.gmra.mrb[164].mxu0 %v10523_v9  ;;  %v15520_v43 = vld [vmem:[#allocation39_spill] sm:$0xff]  ;;  %v9399_v22 = vadd.f32 %v13101_v39, %v12851_v52  ;;  %v15523_v39 = vld [vmem:[#allocation42_spill] sm:$0xff] }
 0x599   : > { %v13248_v11 = vadd.f32 %v9670_v20, %v5393_v21  ;;  %6717 = vmatprep.mubr.f32.mxu1 %v5800_v57  ;;  %3356 = vmatprep.mubr.f32.mxu0 %v15380_v0  ;;  %v9672_v5 = vadd.f32 %v15520_v43, %v12708_v61  ;;  %v5803_v20 = vmax.f32 %v9397_v26, 0.0  ;;  %v9675_v56 = vadd.f32 %v15523_v39, %v12708_v61 }
 0x59a   : > { %15517 = vst [vmem:[#allocation24_spill] sm:$0xff] %v13243_v42  ;;  %v5802_v43 = vmax.f32 %v9396_v55, 0.0  ;;  %v9398_v26 = vadd.f32 %v13097_v37, %v12867_v60  ;;  %v10525_v55 = vld [vmem:[%s10797_s15 + $0xd40] sm:$0xff] }
 0x59b   : > { %15518 = vst [vmem:[#allocation23_spill] sm:$0xff] %v13248_v11  ;;  %v8696_v9 = vpop.f32.mrb[60].mxu1  ;;  %v13259_v42 = vpop.f32.mrb[60].mxu0 }
 0x59c   : > { %v13261_v57 = vadd.f32 %v9673_v53, %v8696_v9  ;;  %v5403_v21 = vpop.f32.mrb[61].mxu1  ;;  %6718 = vmatmul.mubr.f32.gmra.mrb[166].mxu1 %v5799_v50  ;;  %v13263_v11 = vpop.f32.mrb[61].mxu0  ;;  %3357 = vmatmul.mubr.f32.gmra.mrb[166].mxu0 %v10524_v14  ;;  %v15524_v53 = vld [vmem:[#allocation41_spill] sm:$0xff]  ;;  %v9401_v9 = vadd.f32 %v13119_v7, %v12851_v52  ;;  %v15527_v7 = vld [vmem:[#allocation44_spill] sm:$0xff] }
 0x59d   : > { %v13266_v4 = vadd.f32 %v9672_v5, %v5403_v21  ;;  %6722 = vmatprep.mubr.f32.mxu1 %v5803_v20  ;;  %3362 = vmatprep.mubr.f32.mxu0 %v15380_v0  ;;  %v9674_v50 = vadd.f32 %v15524_v53, %v12708_v61  ;;  %v5806_v5 = vmax.f32 %v9399_v22, 0.0  ;;  %v9677_v39 = vadd.f32 %v15527_v7, %v12708_v61 }
 0x59e   : > { %15521 = vst [vmem:[#allocation26_spill] sm:$0xff] %v13261_v57  ;;  %v5805_v53 = vmax.f32 %v9398_v26, 0.0  ;;  %v9400_v22 = vadd.f32 %v13115_v35, %v12867_v60  ;;  %v10526_v26 = vld [vmem:[%s10797_s15 + $0xd68] sm:$0xff] }
 0x59f   : > { %15522 = vst [vmem:[#allocation25_spill] sm:$0xff] %v13266_v4  ;;  %v8699_v14 = vpop.f32.mrb[62].mxu1  ;;  %v13277_v57 = vpop.f32.mrb[62].mxu0 }
 0x5a0   : > { %v13279_v20 = vadd.f32 %v9675_v56, %v8699_v14  ;;  %v5413_v21 = vpop.f32.mrb[63].mxu1  ;;  %6723 = vmatmul.mubr.f32.gmra.mrb[168].mxu1 %v5802_v43  ;;  %v13281_v4 = vpop.f32.mrb[63].mxu0  ;;  %3363 = vmatmul.mubr.f32.gmra.mrb[168].mxu0 %v10525_v55  ;;  %v15528_v56 = vld [vmem:[#allocation43_spill] sm:$0xff]  ;;  %v9403_v14 = vadd.f32 %v13137_v48, %v12851_v52  ;;  %v15531_v48 = vld [vmem:[#allocation46_spill] sm:$0xff] }
 0x5a1   : > { %v13284_v37 = vadd.f32 %v9674_v50, %v5413_v21  ;;  %6727 = vmatprep.mubr.f32.mxu1 %v5806_v5  ;;  %3368 = vmatprep.mubr.f32.mxu0 %v15380_v0  ;;  %v9676_v43 = vadd.f32 %v15528_v56, %v12708_v61  ;;  %v5809_v50 = vmax.f32 %v9401_v9, 0.0  ;;  %v9679_v7 = vadd.f32 %v15531_v48, %v12708_v61 }
 0x5a2   : > { %15525 = vst [vmem:[#allocation97_spill] sm:$0xff] %v13279_v20  ;;  %v5808_v56 = vmax.f32 %v9400_v22, 0.0  ;;  %v9402_v9 = vadd.f32 %v13133_v54, %v12867_v60  ;;  %v10527_v22 = vld [vmem:[%s10797_s15 + $0xd90] sm:$0xff] }
 0x5a3   : > { %15526 = vst [vmem:[#allocation28_spill] sm:$0xff] %v13284_v37  ;;  %v8702_v55 = vpop.f32.mrb[64].mxu1  ;;  %v13295_v20 = vpop.f32.mrb[64].mxu0 }
 0x5a4   : > { %v13297_v5 = vadd.f32 %v9677_v39, %v8702_v55  ;;  %v5423_v21 = vpop.f32.mrb[65].mxu1  ;;  %6728 = vmatmul.mubr.f32.gmra.mrb[170].mxu1 %v5805_v53  ;;  %v13299_v37 = vpop.f32.mrb[65].mxu0  ;;  %3369 = vmatmul.mubr.f32.gmra.mrb[170].mxu0 %v10526_v26  ;;  %v15532_v39 = vld [vmem:[#allocation45_spill] sm:$0xff]  ;;  %v9405_v55 = vadd.f32 %v13155_v2, %v12851_v52  ;;  %v15535_v2 = vld [vmem:[#allocation48_spill] sm:$0xff] }
 0x5a5   : > { %v13302_v35 = vadd.f32 %v9676_v43, %v5423_v21  ;;  %6732 = vmatprep.mubr.f32.mxu1 %v5809_v50  ;;  %3374 = vmatprep.mubr.f32.mxu0 %v15380_v0  ;;  %v9678_v53 = vadd.f32 %v15532_v39, %v12708_v61  ;;  %v5812_v43 = vmax.f32 %v9403_v14, 0.0  ;;  %v9681_v48 = vadd.f32 %v15535_v2, %v12708_v61 }
 0x5a6   : > { %15529 = vst [vmem:[#allocation27_spill] sm:$0xff] %v13297_v5  ;;  %v5811_v39 = vmax.f32 %v9402_v9, 0.0  ;;  %v9404_v14 = vadd.f32 %v13151_v33, %v12867_v60  ;;  %v10528_v9 = vld [vmem:[%s10797_s15 + $0xdb8] sm:$0xff] }
 0x5a7   : > { %15530 = vst [vmem:[#allocation30_spill] sm:$0xff] %v13302_v35  ;;  %v8705_v26 = vpop.f32.mrb[66].mxu1  ;;  %v13313_v5 = vpop.f32.mrb[66].mxu0 }
 0x5a8   : > { %v13315_v50 = vadd.f32 %v9679_v7, %v8705_v26  ;;  %v5433_v21 = vpop.f32.mrb[67].mxu1  ;;  %6733 = vmatmul.mubr.f32.gmra.mrb[172].mxu1 %v5808_v56  ;;  %v13317_v35 = vpop.f32.mrb[67].mxu0  ;;  %3375 = vmatmul.mubr.f32.gmra.mrb[172].mxu0 %v10527_v22  ;;  %v15536_v7 = vld [vmem:[#allocation47_spill] sm:$0xff]  ;;  %v9407_v26 = vadd.f32 %v13173_v59, %v12851_v52  ;;  %v15539_v59 = vld [vmem:[#allocation50_spill] sm:$0xff] }
 0x5a9   : > { %v13320_v54 = vadd.f32 %v9678_v53, %v5433_v21  ;;  %6737 = vmatprep.mubr.f32.mxu1 %v5812_v43  ;;  %3380 = vmatprep.mubr.f32.mxu0 %v15380_v0  ;;  %v9680_v56 = vadd.f32 %v15536_v7, %v12708_v61  ;;  %v5815_v53 = vmax.f32 %v9405_v55, 0.0  ;;  %v9683_v2 = vadd.f32 %v15539_v59, %v12708_v61 }
 0x5aa   : > { %15533 = vst [vmem:[#allocation29_spill] sm:$0xff] %v13315_v50  ;;  %v5814_v7 = vmax.f32 %v9404_v14, 0.0  ;;  %v9406_v55 = vadd.f32 %v13169_v29, %v12867_v60  ;;  %v10529_v14 = vld [vmem:[%s10797_s15 + $0xde0] sm:$0xff] }
 0x5ab   : > { %15534 = vst [vmem:[#allocation32_spill] sm:$0xff] %v13320_v54  ;;  %v8708_v22 = vpop.f32.mrb[68].mxu1  ;;  %v13331_v50 = vpop.f32.mrb[68].mxu0 }
 0x5ac   : > { %v13333_v43 = vadd.f32 %v9681_v48, %v8708_v22  ;;  %v5443_v21 = vpop.f32.mrb[69].mxu1  ;;  %6738 = vmatmul.mubr.f32.gmra.mrb[174].mxu1 %v5811_v39  ;;  %v13335_v54 = vpop.f32.mrb[69].mxu0  ;;  %3381 = vmatmul.mubr.f32.gmra.mrb[174].mxu0 %v10528_v9  ;;  %v15540_v48 = vld [vmem:[#allocation49_spill] sm:$0xff]  ;;  %v9409_v22 = vadd.f32 %v13191_v30, %v12851_v52  ;;  %v15543_v30 = vld [vmem:[#allocation52_spill] sm:$0xff] }
 0x5ad   : > { %v13338_v33 = vadd.f32 %v9680_v56, %v5443_v21  ;;  %6742 = vmatprep.mubr.f32.mxu1 %v5815_v53  ;;  %3386 = vmatprep.mubr.f32.mxu0 %v15380_v0  ;;  %v9682_v39 = vadd.f32 %v15540_v48, %v12708_v61  ;;  %v5818_v56 = vmax.f32 %v9407_v26, 0.0  ;;  %v9685_v59 = vadd.f32 %v15543_v30, %v12708_v61 }
 0x5ae   : > { %15537 = vst [vmem:[#allocation31_spill] sm:$0xff] %v13333_v43  ;;  %v5817_v48 = vmax.f32 %v9406_v55, 0.0  ;;  %v9408_v26 = vadd.f32 %v13187_v63, %v12867_v60  ;;  %v10530_v55 = vld [vmem:[%s10797_s15 + $0xe08] sm:$0xff] }
 0x5af   : > { %15538 = vst [vmem:[#allocation34_spill] sm:$0xff] %v13338_v33  ;;  %v8711_v9 = vpop.f32.mrb[70].mxu1  ;;  %v13349_v43 = vpop.f32.mrb[70].mxu0 }
 0x5b0   : > { %v13351_v53 = vadd.f32 %v9683_v2, %v8711_v9  ;;  %v5453_v21 = vpop.f32.mrb[71].mxu1  ;;  %6743 = vmatmul.mubr.f32.gmra.mrb[176].mxu1 %v5814_v7  ;;  %v13353_v33 = vpop.f32.mrb[71].mxu0  ;;  %3387 = vmatmul.mubr.f32.gmra.mrb[176].mxu0 %v10529_v14  ;;  %v15544_v2 = vld [vmem:[#allocation51_spill] sm:$0xff]  ;;  %v9411_v9 = vadd.f32 %v13209_v25, %v12851_v52  ;;  %v15547_v25 = vld [vmem:[#allocation54_spill] sm:$0xff] }
 0x5b1   : > { %v13356_v29 = vadd.f32 %v9682_v39, %v5453_v21  ;;  %6747 = vmatprep.mubr.f32.mxu1 %v5818_v56  ;;  %3392 = vmatprep.mubr.f32.mxu0 %v15380_v0  ;;  %v9684_v7 = vadd.f32 %v15544_v2, %v12708_v61  ;;  %v5821_v39 = vmax.f32 %v9409_v22, 0.0  ;;  %v9687_v30 = vadd.f32 %v15547_v25, %v12708_v61 }
 0x5b2   : > { %15541 = vst [vmem:[#allocation33_spill] sm:$0xff] %v13351_v53  ;;  %v5820_v2 = vmax.f32 %v9408_v26, 0.0  ;;  %v9410_v22 = vadd.f32 %v13205_v18, %v12867_v60  ;;  %v10531_v26 = vld [vmem:[%s10797_s15 + $0xe30] sm:$0xff] }
 0x5b3   : > { %15542 = vst [vmem:[#allocation36_spill] sm:$0xff] %v13356_v29  ;;  %v8714_v14 = vpop.f32.mrb[72].mxu1  ;;  %v13367_v53 = vpop.f32.mrb[72].mxu0 }
 0x5b4   : > { %v13369_v56 = vadd.f32 %v9685_v59, %v8714_v14  ;;  %v5463_v21 = vpop.f32.mrb[73].mxu1  ;;  %6748 = vmatmul.mubr.f32.gmra.mrb[178].mxu1 %v5817_v48  ;;  %v13371_v29 = vpop.f32.mrb[73].mxu0  ;;  %3393 = vmatmul.mubr.f32.gmra.mrb[178].mxu0 %v10530_v55  ;;  %v15548_v59 = vld [vmem:[#allocation53_spill] sm:$0xff]  ;;  %v9413_v14 = vadd.f32 %v13227_v17, %v12851_v52  ;;  %v15551_v17 = vld [vmem:[#allocation56_spill] sm:$0xff] }
 0x5b5   : > { %v13374_v63 = vadd.f32 %v9684_v7, %v5463_v21  ;;  %6752 = vmatprep.mubr.f32.mxu1 %v5821_v39  ;;  %3398 = vmatprep.mubr.f32.mxu0 %v15380_v0  ;;  %v9686_v48 = vadd.f32 %v15548_v59, %v12708_v61  ;;  %v5824_v7 = vmax.f32 %v9411_v9, 0.0  ;;  %v9689_v25 = vadd.f32 %v15551_v17, %v12708_v61 }
 0x5b6   : > { %15545 = vst [vmem:[#allocation35_spill] sm:$0xff] %v13369_v56  ;;  %v5823_v59 = vmax.f32 %v9410_v22, 0.0  ;;  %v9412_v9 = vadd.f32 %v13223_v16, %v12867_v60  ;;  %v10532_v22 = vld [vmem:[%s10797_s15 + $0xe58] sm:$0xff] }
 0x5b7   : > { %15546 = vst [vmem:[#allocation38_spill] sm:$0xff] %v13374_v63  ;;  %v8717_v55 = vpop.f32.mrb[74].mxu1  ;;  %v13385_v56 = vpop.f32.mrb[74].mxu0 }
 0x5b8   : > { %v13387_v39 = vadd.f32 %v9687_v30, %v8717_v55  ;;  %v5473_v21 = vpop.f32.mrb[75].mxu1  ;;  %6753 = vmatmul.mubr.f32.gmra.mrb[180].mxu1 %v5820_v2  ;;  %v13389_v63 = vpop.f32.mrb[75].mxu0  ;;  %3399 = vmatmul.mubr.f32.gmra.mrb[180].mxu0 %v10531_v26  ;;  %v15552_v30 = vld [vmem:[#allocation55_spill] sm:$0xff]  ;;  %v9415_v55 = vadd.f32 %v13245_v8, %v12851_v52  ;;  %v15555_v8 = vld [vmem:[#allocation58_spill] sm:$0xff] }
 0x5b9   : > { %v13392_v18 = vadd.f32 %v9686_v48, %v5473_v21  ;;  %6757 = vmatprep.mubr.f32.mxu1 %v5824_v7  ;;  %3404 = vmatprep.mubr.f32.mxu0 %v15380_v0  ;;  %v9688_v2 = vadd.f32 %v15552_v30, %v12708_v61  ;;  %v5827_v48 = vmax.f32 %v9413_v14, 0.0  ;;  %v9691_v17 = vadd.f32 %v15555_v8, %v12708_v61 }
 0x5ba   : > { %15549 = vst [vmem:[#allocation37_spill] sm:$0xff] %v13387_v39  ;;  %v5826_v30 = vmax.f32 %v9412_v9, 0.0  ;;  %v9414_v14 = vadd.f32 %v13241_v36, %v12867_v60  ;;  %v10533_v9 = vld [vmem:[%s10797_s15 + $0xe80] sm:$0xff] }
 0x5bb   : > { %15550 = vst [vmem:[#allocation40_spill] sm:$0xff] %v13392_v18  ;;  %v8720_v26 = vpop.f32.mrb[76].mxu1  ;;  %v13403_v39 = vpop.f32.mrb[76].mxu0 }
 0x5bc   : > { %v13405_v7 = vadd.f32 %v9689_v25, %v8720_v26  ;;  %v5483_v21 = vpop.f32.mrb[77].mxu1  ;;  %6758 = vmatmul.mubr.f32.gmra.mrb[182].mxu1 %v5823_v59  ;;  %v13407_v18 = vpop.f32.mrb[77].mxu0  ;;  %3405 = vmatmul.mubr.f32.gmra.mrb[182].mxu0 %v10532_v22  ;;  %v15556_v25 = vld [vmem:[#allocation57_spill] sm:$0xff]  ;;  %v9417_v26 = vadd.f32 %v13263_v11, %v12851_v52  ;;  %v15559_v11 = vld [vmem:[#allocation60_spill] sm:$0xff] }
 0x5bd   : > { %v13410_v16 = vadd.f32 %v9688_v2, %v5483_v21  ;;  %6762 = vmatprep.mubr.f32.mxu1 %v5827_v48  ;;  %3410 = vmatprep.mubr.f32.mxu0 %v15380_v0  ;;  %v9690_v59 = vadd.f32 %v15556_v25, %v12708_v61  ;;  %v5830_v2 = vmax.f32 %v9415_v55, 0.0  ;;  %v9693_v8 = vadd.f32 %v15559_v11, %v12708_v61 }
 0x5be   : > { %15553 = vst [vmem:[#allocation39_spill] sm:$0xff] %v13405_v7  ;;  %v5829_v25 = vmax.f32 %v9414_v14, 0.0  ;;  %v9416_v55 = vadd.f32 %v13259_v42, %v12867_v60  ;;  %v10534_v14 = vld [vmem:[%s10797_s15 + $0xea8] sm:$0xff] }
 0x5bf   : > { %15554 = vst [vmem:[#allocation42_spill] sm:$0xff] %v13410_v16  ;;  %v8723_v22 = vpop.f32.mrb[78].mxu1  ;;  %v13421_v7 = vpop.f32.mrb[78].mxu0 }
 0x5c0   : > { %v13423_v48 = vadd.f32 %v9691_v17, %v8723_v22  ;;  %v5493_v21 = vpop.f32.mrb[79].mxu1  ;;  %6763 = vmatmul.mubr.f32.gmra.mrb[184].mxu1 %v5826_v30  ;;  %v13425_v16 = vpop.f32.mrb[79].mxu0  ;;  %3411 = vmatmul.mubr.f32.gmra.mrb[184].mxu0 %v10533_v9  ;;  %v15560_v17 = vld [vmem:[#allocation59_spill] sm:$0xff]  ;;  %v9419_v22 = vadd.f32 %v13281_v4, %v12851_v52  ;;  %v15563_v4 = vld [vmem:[#allocation62_spill] sm:$0xff] }
 0x5c1   : > { %v13428_v36 = vadd.f32 %v9690_v59, %v5493_v21  ;;  %6767 = vmatprep.mubr.f32.mxu1 %v5830_v2  ;;  %3416 = vmatprep.mubr.f32.mxu0 %v15380_v0  ;;  %v9692_v30 = vadd.f32 %v15560_v17, %v12708_v61  ;;  %v5833_v59 = vmax.f32 %v9417_v26, 0.0  ;;  %v9695_v11 = vadd.f32 %v15563_v4, %v12708_v61 }
 0x5c2   : > { %15557 = vst [vmem:[#allocation41_spill] sm:$0xff] %v13423_v48  ;;  %v5832_v17 = vmax.f32 %v9416_v55, 0.0  ;;  %v9418_v26 = vadd.f32 %v13277_v57, %v12867_v60  ;;  %v10535_v55 = vld [vmem:[%s10797_s15 + $0xed0] sm:$0xff] }
 0x5c3   : > { %15558 = vst [vmem:[#allocation44_spill] sm:$0xff] %v13428_v36  ;;  %v8726_v9 = vpop.f32.mrb[80].mxu1  ;;  %v13439_v48 = vpop.f32.mrb[80].mxu0 }
 0x5c4   : > { %v13441_v2 = vadd.f32 %v9693_v8, %v8726_v9  ;;  %v5503_v21 = vpop.f32.mrb[81].mxu1  ;;  %6768 = vmatmul.mubr.f32.gmra.mrb[186].mxu1 %v5829_v25  ;;  %v13443_v36 = vpop.f32.mrb[81].mxu0  ;;  %3417 = vmatmul.mubr.f32.gmra.mrb[186].mxu0 %v10534_v14  ;;  %v15564_v8 = vld [vmem:[#allocation61_spill] sm:$0xff]  ;;  %v9421_v9 = vadd.f32 %v13299_v37, %v12851_v52  ;;  %v15567_v37 = vld [vmem:[#allocation64_spill] sm:$0xff] }
 0x5c5   : > { %v13446_v42 = vadd.f32 %v9692_v30, %v5503_v21  ;;  %6772 = vmatprep.mubr.f32.mxu1 %v5833_v59  ;;  %3422 = vmatprep.mubr.f32.mxu0 %v15380_v0  ;;  %v9694_v25 = vadd.f32 %v15564_v8, %v12708_v61  ;;  %v5836_v30 = vmax.f32 %v9419_v22, 0.0  ;;  %v9697_v4 = vadd.f32 %v15567_v37, %v12708_v61 }
 0x5c6   : > { %15561 = vst [vmem:[#allocation43_spill] sm:$0xff] %v13441_v2  ;;  %v5835_v8 = vmax.f32 %v9418_v26, 0.0  ;;  %v9420_v22 = vadd.f32 %v13295_v20, %v12867_v60  ;;  %v10536_v26 = vld [vmem:[%s10797_s15 + $0xef8] sm:$0xff] }
 0x5c7   : > { %15562 = vst [vmem:[#allocation46_spill] sm:$0xff] %v13446_v42  ;;  %v8729_v14 = vpop.f32.mrb[82].mxu1  ;;  %v13457_v2 = vpop.f32.mrb[82].mxu0 }
 0x5c8   : > { %v13459_v59 = vadd.f32 %v9695_v11, %v8729_v14  ;;  %v5513_v21 = vpop.f32.mrb[83].mxu1  ;;  %6773 = vmatmul.mubr.f32.gmra.mrb[188].mxu1 %v5832_v17  ;;  %v13461_v42 = vpop.f32.mrb[83].mxu0  ;;  %3423 = vmatmul.mubr.f32.gmra.mrb[188].mxu0 %v10535_v55  ;;  %v15568_v11 = vld [vmem:[#allocation63_spill] sm:$0xff]  ;;  %v9423_v14 = vadd.f32 %v13317_v35, %v12851_v52  ;;  %v15571_v35 = vld [vmem:[#allocation66_spill] sm:$0xff] }
 0x5c9   : > { %v13464_v57 = vadd.f32 %v9694_v25, %v5513_v21  ;;  %6777 = vmatprep.mubr.f32.mxu1 %v5836_v30  ;;  %3428 = vmatprep.mubr.f32.mxu0 %v15380_v0  ;;  %v9696_v17 = vadd.f32 %v15568_v11, %v12708_v61  ;;  %v5839_v25 = vmax.f32 %v9421_v9, 0.0  ;;  %v9699_v37 = vadd.f32 %v15571_v35, %v12708_v61 }
 0x5ca   : > { %15565 = vst [vmem:[#allocation45_spill] sm:$0xff] %v13459_v59  ;;  %v5838_v11 = vmax.f32 %v9420_v22, 0.0  ;;  %v9422_v9 = vadd.f32 %v13313_v5, %v12867_v60  ;;  %v10537_v22 = vld [vmem:[%s10797_s15 + $0xf20] sm:$0xff] }
 0x5cb   : > { %15566 = vst [vmem:[#allocation48_spill] sm:$0xff] %v13464_v57  ;;  %v8732_v55 = vpop.f32.mrb[84].mxu1  ;;  %v13475_v59 = vpop.f32.mrb[84].mxu0 }
 0x5cc   : > { %v13477_v30 = vadd.f32 %v9697_v4, %v8732_v55  ;;  %v5523_v21 = vpop.f32.mrb[85].mxu1  ;;  %6778 = vmatmul.mubr.f32.gmra.mrb[190].mxu1 %v5835_v8  ;;  %v13479_v57 = vpop.f32.mrb[85].mxu0  ;;  %3429 = vmatmul.mubr.f32.gmra.mrb[190].mxu0 %v10536_v26  ;;  %v15572_v4 = vld [vmem:[#allocation65_spill] sm:$0xff]  ;;  %v9425_v55 = vadd.f32 %v13335_v54, %v12851_v52  ;;  %v15575_v54 = vld [vmem:[#allocation68_spill] sm:$0xff] }
 0x5cd   : > { %v13482_v20 = vadd.f32 %v9696_v17, %v5523_v21  ;;  %6782 = vmatprep.mubr.f32.mxu1 %v5839_v25  ;;  %3434 = vmatprep.mubr.f32.mxu0 %v15380_v0  ;;  %v9698_v8 = vadd.f32 %v15572_v4, %v12708_v61  ;;  %v5842_v17 = vmax.f32 %v9423_v14, 0.0  ;;  %v9701_v35 = vadd.f32 %v15575_v54, %v12708_v61 }
 0x5ce   : > { %15569 = vst [vmem:[#allocation47_spill] sm:$0xff] %v13477_v30  ;;  %v5841_v4 = vmax.f32 %v9422_v9, 0.0  ;;  %v9424_v14 = vadd.f32 %v13331_v50, %v12867_v60  ;;  %v10538_v9 = vld [vmem:[%s10797_s15 + $0xf48] sm:$0xff] }
 0x5cf   : > { %15570 = vst [vmem:[#allocation50_spill] sm:$0xff] %v13482_v20  ;;  %v8735_v26 = vpop.f32.mrb[86].mxu1  ;;  %v13493_v30 = vpop.f32.mrb[86].mxu0 }
 0x5d0   : > { %v13495_v25 = vadd.f32 %v9699_v37, %v8735_v26  ;;  %v5533_v21 = vpop.f32.mrb[87].mxu1  ;;  %6783 = vmatmul.mubr.f32.gmra.mrb[192].mxu1 %v5838_v11  ;;  %v13497_v20 = vpop.f32.mrb[87].mxu0  ;;  %3435 = vmatmul.mubr.f32.gmra.mrb[192].mxu0 %v10537_v22  ;;  %v15576_v37 = vld [vmem:[#allocation67_spill] sm:$0xff]  ;;  %v9427_v26 = vadd.f32 %v13353_v33, %v12851_v52  ;;  %v15579_v33 = vld [vmem:[#allocation70_spill] sm:$0xff] }
 0x5d1   : > { %v13500_v5 = vadd.f32 %v9698_v8, %v5533_v21  ;;  %6787 = vmatprep.mubr.f32.mxu1 %v5842_v17  ;;  %3440 = vmatprep.mubr.f32.mxu0 %v15380_v0  ;;  %v9700_v11 = vadd.f32 %v15576_v37, %v12708_v61  ;;  %v5845_v8 = vmax.f32 %v9425_v55, 0.0  ;;  %v9703_v54 = vadd.f32 %v15579_v33, %v12708_v61 }
 0x5d2   : > { %15573 = vst [vmem:[#allocation49_spill] sm:$0xff] %v13495_v25  ;;  %v5844_v37 = vmax.f32 %v9424_v14, 0.0  ;;  %v9426_v55 = vadd.f32 %v13349_v43, %v12867_v60  ;;  %v10539_v14 = vld [vmem:[%s10797_s15 + $0xf70] sm:$0xff] }
 0x5d3   : > { %15574 = vst [vmem:[#allocation52_spill] sm:$0xff] %v13500_v5  ;;  %v8738_v22 = vpop.f32.mrb[88].mxu1  ;;  %v13511_v25 = vpop.f32.mrb[88].mxu0 }
 0x5d4   : > { %v13513_v17 = vadd.f32 %v9701_v35, %v8738_v22  ;;  %v5543_v21 = vpop.f32.mrb[89].mxu1  ;;  %6788 = vmatmul.mubr.f32.gmra.mrb[194].mxu1 %v5841_v4  ;;  %v13515_v5 = vpop.f32.mrb[89].mxu0  ;;  %3441 = vmatmul.mubr.f32.gmra.mrb[194].mxu0 %v10538_v9  ;;  %v15580_v35 = vld [vmem:[#allocation69_spill] sm:$0xff]  ;;  %v9429_v22 = vadd.f32 %v13371_v29, %v12851_v52  ;;  %v15583_v29 = vld [vmem:[#allocation72_spill] sm:$0xff] }
 0x5d5   : > { %v13518_v50 = vadd.f32 %v9700_v11, %v5543_v21  ;;  %6792 = vmatprep.mubr.f32.mxu1 %v5845_v8  ;;  %3446 = vmatprep.mubr.f32.mxu0 %v15380_v0  ;;  %v9702_v4 = vadd.f32 %v15580_v35, %v12708_v61  ;;  %v5848_v11 = vmax.f32 %v9427_v26, 0.0  ;;  %v9705_v33 = vadd.f32 %v15583_v29, %v12708_v61 }
 0x5d6   : > { %15577 = vst [vmem:[#allocation51_spill] sm:$0xff] %v13513_v17  ;;  %v5847_v35 = vmax.f32 %v9426_v55, 0.0  ;;  %v9428_v26 = vadd.f32 %v13367_v53, %v12867_v60  ;;  %v10540_v55 = vld [vmem:[%s10797_s15 + $0xf98] sm:$0xff] }
 0x5d7   : > { %15578 = vst [vmem:[#allocation54_spill] sm:$0xff] %v13518_v50  ;;  %v8741_v9 = vpop.f32.mrb[90].mxu1  ;;  %v13529_v17 = vpop.f32.mrb[90].mxu0 }
 0x5d8   : > { %v13531_v8 = vadd.f32 %v9703_v54, %v8741_v9  ;;  %v5553_v21 = vpop.f32.mrb[91].mxu1  ;;  %6793 = vmatmul.mubr.f32.gmra.mrb[196].mxu1 %v5844_v37  ;;  %v13533_v50 = vpop.f32.mrb[91].mxu0  ;;  %3447 = vmatmul.mubr.f32.gmra.mrb[196].mxu0 %v10539_v14  ;;  %v15584_v54 = vld [vmem:[#allocation71_spill] sm:$0xff]  ;;  %v9431_v9 = vadd.f32 %v13389_v63, %v12851_v52  ;;  %v15587_v63 = vld [vmem:[#allocation74_spill] sm:$0xff] }
 0x5d9   : > { %v13536_v43 = vadd.f32 %v9702_v4, %v5553_v21  ;;  %6797 = vmatprep.mubr.f32.mxu1 %v5848_v11  ;;  %3452 = vmatprep.mubr.f32.mxu0 %v15380_v0  ;;  %v9704_v37 = vadd.f32 %v15584_v54, %v12708_v61  ;;  %v5851_v4 = vmax.f32 %v9429_v22, 0.0  ;;  %v9707_v29 = vadd.f32 %v15587_v63, %v12708_v61 }
 0x5da   : > { %15581 = vst [vmem:[#allocation53_spill] sm:$0xff] %v13531_v8  ;;  %v5850_v54 = vmax.f32 %v9428_v26, 0.0  ;;  %v9430_v22 = vadd.f32 %v13385_v56, %v12867_v60  ;;  %v10541_v26 = vld [vmem:[%s10797_s15 + $0xfc0] sm:$0xff] }
 0x5db   : > { %15582 = vst [vmem:[#allocation56_spill] sm:$0xff] %v13536_v43  ;;  %v8744_v14 = vpop.f32.mrb[92].mxu1  ;;  %v13547_v8 = vpop.f32.mrb[92].mxu0 }
 0x5dc   : > { %v13549_v11 = vadd.f32 %v9705_v33, %v8744_v14  ;;  %v5563_v21 = vpop.f32.mrb[93].mxu1  ;;  %6798 = vmatmul.mubr.f32.gmra.mrb[198].mxu1 %v5847_v35  ;;  %v13551_v43 = vpop.f32.mrb[93].mxu0  ;;  %3453 = vmatmul.mubr.f32.gmra.mrb[198].mxu0 %v10540_v55  ;;  %v15588_v33 = vld [vmem:[#allocation73_spill] sm:$0xff]  ;;  %v9433_v14 = vadd.f32 %v13407_v18, %v12851_v52  ;;  %v15591_v18 = vld [vmem:[#allocation76_spill] sm:$0xff] }
 0x5dd   : > { %v13554_v53 = vadd.f32 %v9704_v37, %v5563_v21  ;;  %6802 = vmatprep.mubr.f32.mxu1 %v5851_v4  ;;  %3458 = vmatprep.mubr.f32.mxu0 %v15380_v0  ;;  %v9706_v35 = vadd.f32 %v15588_v33, %v12708_v61  ;;  %v5854_v37 = vmax.f32 %v9431_v9, 0.0  ;;  %v9709_v63 = vadd.f32 %v15591_v18, %v12708_v61 }
 0x5de   : > { %15585 = vst [vmem:[#allocation55_spill] sm:$0xff] %v13549_v11  ;;  %v5853_v33 = vmax.f32 %v9430_v22, 0.0  ;;  %v9432_v9 = vadd.f32 %v13403_v39, %v12867_v60  ;;  %v10542_v22 = vld [vmem:[%s10797_s15 + $0xfe8] sm:$0xff] }
 0x5df   : > { %15586 = vst [vmem:[#allocation58_spill] sm:$0xff] %v13554_v53  ;;  %v8747_v55 = vpop.f32.mrb[94].mxu1  ;;  %v13565_v11 = vpop.f32.mrb[94].mxu0 }
 0x5e0   : > { %v13567_v4 = vadd.f32 %v9707_v29, %v8747_v55  ;;  %v5573_v21 = vpop.f32.mrb[95].mxu1  ;;  %6803 = vmatmul.mubr.f32.gmra.mrb[200].mxu1 %v5850_v54  ;;  %v13569_v53 = vpop.f32.mrb[95].mxu0  ;;  %3459 = vmatmul.mubr.f32.gmra.mrb[200].mxu0 %v10541_v26  ;;  %v15592_v29 = vld [vmem:[#allocation75_spill] sm:$0xff]  ;;  %v9435_v55 = vadd.f32 %v13425_v16, %v12851_v52  ;;  %v15595_v16 = vld [vmem:[#allocation78_spill] sm:$0xff] }
 0x5e1   : > { %v13572_v56 = vadd.f32 %v9706_v35, %v5573_v21  ;;  %6807 = vmatprep.mubr.f32.mxu1 %v5854_v37  ;;  %3464 = vmatprep.mubr.f32.mxu0 %v15380_v0  ;;  %v9708_v54 = vadd.f32 %v15592_v29, %v12708_v61  ;;  %v5857_v35 = vmax.f32 %v9433_v14, 0.0  ;;  %v9711_v18 = vadd.f32 %v15595_v16, %v12708_v61 }
 0x5e2   : > { %15589 = vst [vmem:[#allocation57_spill] sm:$0xff] %v13567_v4  ;;  %v5856_v29 = vmax.f32 %v9432_v9, 0.0  ;;  %v9434_v14 = vadd.f32 %v13421_v7, %v12867_v60  ;;  %v10543_v9 = vld [vmem:[%s10797_s15 + $0x1010] sm:$0xff] }
 0x5e3   : > { %15590 = vst [vmem:[#allocation60_spill] sm:$0xff] %v13572_v56  ;;  %v8750_v26 = vpop.f32.mrb[96].mxu1  ;;  %v13583_v4 = vpop.f32.mrb[96].mxu0 }
 0x5e4   : > { %v13585_v37 = vadd.f32 %v9709_v63, %v8750_v26  ;;  %v5583_v21 = vpop.f32.mrb[97].mxu1  ;;  %6808 = vmatmul.mubr.f32.gmra.mrb[202].mxu1 %v5853_v33  ;;  %v13587_v56 = vpop.f32.mrb[97].mxu0  ;;  %3465 = vmatmul.mubr.f32.gmra.mrb[202].mxu0 %v10542_v22  ;;  %v15596_v63 = vld [vmem:[#allocation77_spill] sm:$0xff]  ;;  %v9437_v26 = vadd.f32 %v13443_v36, %v12851_v52  ;;  %v15599_v36 = vld [vmem:[#allocation80_spill] sm:$0xff] }
 0x5e5   : > { %v13590_v39 = vadd.f32 %v9708_v54, %v5583_v21  ;;  %6812 = vmatprep.mubr.f32.mxu1 %v5857_v35  ;;  %3470 = vmatprep.mubr.f32.mxu0 %v15380_v0  ;;  %v9710_v33 = vadd.f32 %v15596_v63, %v12708_v61  ;;  %v5860_v54 = vmax.f32 %v9435_v55, 0.0  ;;  %v9713_v16 = vadd.f32 %v15599_v36, %v12708_v61 }
 0x5e6   : > { %15593 = vst [vmem:[#allocation59_spill] sm:$0xff] %v13585_v37  ;;  %v5859_v63 = vmax.f32 %v9434_v14, 0.0  ;;  %v9436_v55 = vadd.f32 %v13439_v48, %v12867_v60  ;;  %v10544_v14 = vld [vmem:[%s10797_s15 + $0x1038] sm:$0xff] }
 0x5e7   : > { %15594 = vst [vmem:[#allocation62_spill] sm:$0xff] %v13590_v39  ;;  %v8753_v22 = vpop.f32.mrb[98].mxu1  ;;  %v13601_v37 = vpop.f32.mrb[98].mxu0 }
 0x5e8   : > { %v13603_v35 = vadd.f32 %v9711_v18, %v8753_v22  ;;  %v5593_v21 = vpop.f32.mrb[99].mxu1  ;;  %6813 = vmatmul.mubr.f32.gmra.mrb[204].mxu1 %v5856_v29  ;;  %v13605_v39 = vpop.f32.mrb[99].mxu0  ;;  %3471 = vmatmul.mubr.f32.gmra.mrb[204].mxu0 %v10543_v9  ;;  %v15600_v18 = vld [vmem:[#allocation79_spill] sm:$0xff]  ;;  %v9439_v22 = vadd.f32 %v13461_v42, %v12851_v52  ;;  %v15603_v42 = vld [vmem:[#allocation82_spill] sm:$0xff] }
 0x5e9   : > { %v13608_v7 = vadd.f32 %v9710_v33, %v5593_v21  ;;  %6817 = vmatprep.mubr.f32.mxu1 %v5860_v54  ;;  %3476 = vmatprep.mubr.f32.mxu0 %v15380_v0  ;;  %v9712_v29 = vadd.f32 %v15600_v18, %v12708_v61  ;;  %v5863_v33 = vmax.f32 %v9437_v26, 0.0  ;;  %v9715_v36 = vadd.f32 %v15603_v42, %v12708_v61 }
 0x5ea   : > { %15597 = vst [vmem:[#allocation61_spill] sm:$0xff] %v13603_v35  ;;  %v5862_v18 = vmax.f32 %v9436_v55, 0.0  ;;  %v9438_v26 = vadd.f32 %v13457_v2, %v12867_v60  ;;  %v10545_v55 = vld [vmem:[%s10797_s15 + $0x1060] sm:$0xff] }
 0x5eb   : > { %15598 = vst [vmem:[#allocation64_spill] sm:$0xff] %v13608_v7  ;;  %v8756_v9 = vpop.f32.mrb[100].mxu1  ;;  %v13619_v35 = vpop.f32.mrb[100].mxu0 }
 0x5ec   : > { %v13621_v54 = vadd.f32 %v9713_v16, %v8756_v9  ;;  %v5603_v21 = vpop.f32.mrb[101].mxu1  ;;  %6818 = vmatmul.mubr.f32.gmra.mrb[206].mxu1 %v5859_v63  ;;  %v13623_v7 = vpop.f32.mrb[101].mxu0  ;;  %3477 = vmatmul.mubr.f32.gmra.mrb[206].mxu0 %v10544_v14  ;;  %v15604_v16 = vld [vmem:[#allocation81_spill] sm:$0xff]  ;;  %v9441_v9 = vadd.f32 %v13479_v57, %v12851_v52  ;;  %v15607_v57 = vld [vmem:[#allocation84_spill] sm:$0xff] }
 0x5ed   : > { %v13626_v48 = vadd.f32 %v9712_v29, %v5603_v21  ;;  %6822 = vmatprep.mubr.f32.mxu1 %v5863_v33  ;;  %3482 = vmatprep.mubr.f32.mxu0 %v15380_v0  ;;  %v9714_v63 = vadd.f32 %v15604_v16, %v12708_v61  ;;  %v5866_v29 = vmax.f32 %v9439_v22, 0.0  ;;  %v9717_v42 = vadd.f32 %v15607_v57, %v12708_v61 }
 0x5ee   : > { %15601 = vst [vmem:[#allocation63_spill] sm:$0xff] %v13621_v54  ;;  %v5865_v16 = vmax.f32 %v9438_v26, 0.0  ;;  %v9440_v22 = vadd.f32 %v13475_v59, %v12867_v60  ;;  %v10546_v26 = vld [vmem:[%s10797_s15 + $0x1088] sm:$0xff] }
 0x5ef   : > { %15602 = vst [vmem:[#allocation66_spill] sm:$0xff] %v13626_v48  ;;  %v8759_v14 = vpop.f32.mrb[102].mxu1  ;;  %v13637_v54 = vpop.f32.mrb[102].mxu0 }
 0x5f0   : > { %v13639_v33 = vadd.f32 %v9715_v36, %v8759_v14  ;;  %v5613_v21 = vpop.f32.mrb[103].mxu1  ;;  %6823 = vmatmul.mubr.f32.gmra.mrb[208].mxu1 %v5862_v18  ;;  %v13641_v48 = vpop.f32.mrb[103].mxu0  ;;  %3483 = vmatmul.mubr.f32.gmra.mrb[208].mxu0 %v10545_v55  ;;  %v15608_v36 = vld [vmem:[#allocation83_spill] sm:$0xff]  ;;  %v9443_v14 = vadd.f32 %v13497_v20, %v12851_v52  ;;  %v15611_v20 = vld [vmem:[#allocation89_spill] sm:$0xff] }
 0x5f1   : > { %v13644_v2 = vadd.f32 %v9714_v63, %v5613_v21  ;;  %6827 = vmatprep.mubr.f32.mxu1 %v5866_v29  ;;  %3488 = vmatprep.mubr.f32.mxu0 %v15380_v0  ;;  %v9716_v18 = vadd.f32 %v15608_v36, %v12708_v61  ;;  %v5869_v63 = vmax.f32 %v9441_v9, 0.0  ;;  %v9719_v57 = vadd.f32 %v15611_v20, %v12708_v61 }
 0x5f2   : > { %15605 = vst [vmem:[#allocation65_spill] sm:$0xff] %v13639_v33  ;;  %v5868_v36 = vmax.f32 %v9440_v22, 0.0  ;;  %v9442_v9 = vadd.f32 %v13493_v30, %v12867_v60  ;;  %v10547_v22 = vld [vmem:[%s10797_s15 + $0x10b0] sm:$0xff] }
 0x5f3   : > { %15606 = vst [vmem:[#allocation68_spill] sm:$0xff] %v13644_v2  ;;  %v8762_v55 = vpop.f32.mrb[104].mxu1  ;;  %v13655_v33 = vpop.f32.mrb[104].mxu0 }
 0x5f4   : > { %v13657_v29 = vadd.f32 %v9717_v42, %v8762_v55  ;;  %v5623_v21 = vpop.f32.mrb[105].mxu1  ;;  %6828 = vmatmul.mubr.f32.gmra.mrb[210].mxu1 %v5865_v16  ;;  %v13659_v2 = vpop.f32.mrb[105].mxu0  ;;  %3489 = vmatmul.mubr.f32.gmra.mrb[210].mxu0 %v10546_v26  ;;  %v15612_v42 = vld [vmem:[#allocation86_spill] sm:$0xff]  ;;  %v9445_v55 = vadd.f32 %v13515_v5, %v12851_v52  ;;  %v15615_v5 = vld [vmem:[#allocation92_spill] sm:$0xff] }
 0x5f5   : > { %v13662_v59 = vadd.f32 %v9716_v18, %v5623_v21  ;;  %6832 = vmatprep.mubr.f32.mxu1 %v5869_v63  ;;  %3494 = vmatprep.mubr.f32.mxu0 %v15380_v0  ;;  %v9718_v16 = vadd.f32 %v15612_v42, %v12708_v61  ;;  %v5872_v18 = vmax.f32 %v9443_v14, 0.0  ;;  %v9721_v20 = vadd.f32 %v15615_v5, %v12708_v61 }
 0x5f6   : > { %15609 = vst [vmem:[#allocation67_spill] sm:$0xff] %v13657_v29  ;;  %v5871_v42 = vmax.f32 %v9442_v9, 0.0  ;;  %v9444_v14 = vadd.f32 %v13511_v25, %v12867_v60  ;;  %v10548_v9 = vld [vmem:[%s10797_s15 + $0x10d8] sm:$0xff] }
 0x5f7   : > { %15610 = vst [vmem:[#allocation70_spill] sm:$0xff] %v13662_v59  ;;  %v8765_v26 = vpop.f32.mrb[106].mxu1  ;;  %v13673_v29 = vpop.f32.mrb[106].mxu0 }
 0x5f8   : > { %v13675_v63 = vadd.f32 %v9719_v57, %v8765_v26  ;;  %v5633_v21 = vpop.f32.mrb[107].mxu1  ;;  %6833 = vmatmul.mubr.f32.gmra.mrb[212].mxu1 %v5868_v36  ;;  %v13677_v59 = vpop.f32.mrb[107].mxu0  ;;  %3495 = vmatmul.mubr.f32.gmra.mrb[212].mxu0 %v10547_v22  ;;  %v15616_v57 = vld [vmem:[#allocation90_spill] sm:$0xff]  ;;  %v9447_v26 = vadd.f32 %v13533_v50, %v12851_v52  ;;  %v15619_v50 = vld [vmem:[#allocation96_spill] sm:$0xff] }
 0x5f9   : > { %v13680_v30 = vadd.f32 %v9718_v16, %v5633_v21  ;;  %6837 = vmatprep.mubr.f32.mxu1 %v5872_v18  ;;  %3500 = vmatprep.mubr.f32.mxu0 %v15380_v0  ;;  %v9720_v36 = vadd.f32 %v15616_v57, %v12708_v61  ;;  %v5875_v16 = vmax.f32 %v9445_v55, 0.0  ;;  %v9723_v5 = vadd.f32 %v15619_v50, %v12708_v61 }
 0x5fa   : > { %15613 = vst [vmem:[#allocation69_spill] sm:$0xff] %v13675_v63  ;;  %v5874_v57 = vmax.f32 %v9444_v14, 0.0  ;;  %v9446_v55 = vadd.f32 %v13529_v17, %v12867_v60  ;;  %v10549_v14 = vld [vmem:[%s10797_s15 + $0x1100] sm:$0xff] }
 0x5fb   : > { %15614 = vst [vmem:[#allocation72_spill] sm:$0xff] %v13680_v30  ;;  %v8768_v22 = vpop.f32.mrb[108].mxu1  ;;  %v13691_v63 = vpop.f32.mrb[108].mxu0 }
 0x5fc   : > { %v13693_v18 = vadd.f32 %v9721_v20, %v8768_v22  ;;  %v5643_v21 = vpop.f32.mrb[109].mxu1  ;;  %6838 = vmatmul.mubr.f32.gmra.mrb[214].mxu1 %v5871_v42  ;;  %v13695_v30 = vpop.f32.mrb[109].mxu0  ;;  %3501 = vmatmul.mubr.f32.gmra.mrb[214].mxu0 %v10548_v9  ;;  %v15620_v20 = vld [vmem:[#allocation94_spill] sm:$0xff]  ;;  %v9449_v22 = vadd.f32 %v13551_v43, %v12851_v52  ;;  %v15623_v43 = vld [vmem:[#allocation99_spill] sm:$0xff] }
 0x5fd   : > { %v13698_v25 = vadd.f32 %v9720_v36, %v5643_v21  ;;  %6842 = vmatprep.mubr.f32.mxu1 %v5875_v16  ;;  %3506 = vmatprep.mubr.f32.mxu0 %v15380_v0  ;;  %v9722_v42 = vadd.f32 %v15620_v20, %v12708_v61  ;;  %v5878_v36 = vmax.f32 %v9447_v26, 0.0  ;;  %v9725_v50 = vadd.f32 %v15623_v43, %v12708_v61 }
 0x5fe   : > { %15617 = vst [vmem:[#allocation71_spill] sm:$0xff] %v13693_v18  ;;  %v5877_v20 = vmax.f32 %v9446_v55, 0.0  ;;  %v9448_v26 = vadd.f32 %v13547_v8, %v12867_v60  ;;  %v10550_v55 = vld [vmem:[%s10797_s15 + $0x1128] sm:$0xff] }
 0x5ff   : > { %15618 = vst [vmem:[#allocation74_spill] sm:$0xff] %v13698_v25  ;;  %v8771_v9 = vpop.f32.mrb[110].mxu1  ;;  %v13709_v18 = vpop.f32.mrb[110].mxu0 }
 0x600   : > { %v13711_v16 = vadd.f32 %v9723_v5, %v8771_v9  ;;  %v5653_v21 = vpop.f32.mrb[111].mxu1  ;;  %6843 = vmatmul.mubr.f32.gmra.mrb[216].mxu1 %v5874_v57  ;;  %v13713_v25 = vpop.f32.mrb[111].mxu0  ;;  %3507 = vmatmul.mubr.f32.gmra.mrb[216].mxu0 %v10549_v14  ;;  %v15624_v5 = vld [vmem:[#allocation98_spill] sm:$0xff]  ;;  %v9451_v9 = vadd.f32 %v13569_v53, %v12851_v52  ;;  %v9727_v53 = vadd.f32 %v12627_v28, %v12708_v61  ;;  %v5880_v43 = vmax.f32 %v9448_v26, 0.0  ;;  %v10551_v28 = vld [vmem:[%s10797_s15 + $0x1150] sm:$0xff] }
 0x601   : > { %v13716_v17 = vadd.f32 %v9722_v42, %v5653_v21  ;;  %6847 = vmatprep.mubr.f32.mxu1 %v5878_v36  ;;  %3512 = vmatprep.mubr.f32.mxu0 %v15380_v0  ;;  %v9724_v57 = vadd.f32 %v15624_v5, %v12708_v61  ;;  %v5881_v42 = vmax.f32 %v9449_v22, 0.0  ;;  %v9450_v22 = vadd.f32 %v13565_v11, %v12867_v60 }
 0x602   : > { %15621 = vst [vmem:[#allocation73_spill] sm:$0xff] %v13711_v16  ;;  %v9452_v26 = vadd.f32 %v13583_v4, %v12867_v60 }
 0x603   : > { %15622 = vst [vmem:[#allocation76_spill] sm:$0xff] %v13716_v17  ;;  %v8774_v14 = vpop.f32.mrb[112].mxu1  ;;  %v13727_v16 = vpop.f32.mrb[112].mxu0 }
 0x604   : > { %v13729_v36 = vadd.f32 %v9725_v50, %v8774_v14  ;;  %v5663_v21 = vpop.f32.mrb[113].mxu1  ;;  %6848 = vmatmul.mubr.f32.gmra.mrb[218].mxu1 %v5877_v20  ;;  %v13731_v17 = vpop.f32.mrb[113].mxu0  ;;  %3513 = vmatmul.mubr.f32.gmra.mrb[218].mxu0 %v10550_v55  ;;  %v9726_v50 = vadd.f32 %v12621_v62, %v12708_v61  ;;  %v9453_v20 = vadd.f32 %v13587_v56, %v12851_v52  ;;  %v5883_v56 = vmax.f32 %v9450_v22, 0.0 }
 0x605   : > { %v13734_v8 = vadd.f32 %v9724_v57, %v5663_v21  ;;  %6852 = vmatprep.mubr.f32.mxu1 %v5881_v42  ;;  %3518 = vmatprep.mubr.f32.mxu0 %v15380_v0  ;;  %v5884_v57 = vmax.f32 %v9451_v9, 0.0  ;;  %v9729_v62 = vadd.f32 %v12639_v6, %v12708_v61  ;;  %v9728_v9 = vadd.f32 %v12633_v41, %v12708_v61  ;;  %v10552_v6 = vld [vmem:[%s10797_s15 + $0x1178] sm:$0xff] }
 0x606   : > { %v9731_v41 = vadd.f32 %v12651_v58, %v12708_v61  ;;  %v9454_v22 = vadd.f32 %v13601_v37, %v12867_v60  ;;  %v10553_v58 = vld [vmem:[%s10797_s15 + $0x11a0] sm:$0xff] }
 0x607   : > { %v8777_v5 = vpop.f32.mrb[114].mxu1  ;;  %v13745_v14 = vpop.f32.mrb[114].mxu0 }
 0x608   : > { %v13747_v42 = vadd.f32 %v9727_v53, %v8777_v5  ;;  %v5673_v21 = vpop.f32.mrb[115].mxu1  ;;  %6853 = vmatmul.mubr.f32.gmra.mrb[220].mxu1 %v5880_v43  ;;  %v13749_v55 = vpop.f32.mrb[115].mxu0  ;;  %3519 = vmatmul.mubr.f32.gmra.mrb[220].mxu0 %v10551_v28  ;;  %v9455_v53 = vadd.f32 %v13605_v39, %v12851_v52  ;;  %v5886_v39 = vmax.f32 %v9452_v26, 0.0  ;;  %v9456_v26 = vadd.f32 %v13619_v35, %v12867_v60 }
 0x609   : > { %v13752_v11 = vadd.f32 %v9726_v50, %v5673_v21  ;;  %6857 = vmatprep.mubr.f32.mxu1 %v5884_v57  ;;  %3524 = vmatprep.mubr.f32.mxu0 %v15380_v0  ;;  %v5887_v50 = vmax.f32 %v9453_v20, 0.0  ;;  %v9730_v20 = vadd.f32 %v12645_v44, %v12708_v61  ;;  %v9733_v44 = vadd.f32 %v12663_v47, %v12708_v61  ;;  %v10554_v47 = vld [vmem:[%s10797_s15 + $0x11c8] sm:$0xff] }
 0x60b   : > { %v8780_v43 = vpop.f32.mrb[116].mxu1  ;;  %v13763_v5 = vpop.f32.mrb[116].mxu0 }
 0x60c   : > { %v13765_v57 = vadd.f32 %v9729_v62, %v8780_v43  ;;  %v5683_v21 = vpop.f32.mrb[117].mxu1  ;;  %6858 = vmatmul.mubr.f32.gmra.mrb[222].mxu1 %v5883_v56  ;;  %v13767_v28 = vpop.f32.mrb[117].mxu0  ;;  %3525 = vmatmul.mubr.f32.gmra.mrb[222].mxu0 %v10552_v6  ;;  %v9457_v62 = vadd.f32 %v13623_v7, %v12851_v52  ;;  %v5889_v7 = vmax.f32 %v9454_v22, 0.0  ;;  %v5892_v22 = vmax.f32 %v9456_v26, 0.0  ;;  %v10555_v26 = vld [vmem:[%s10797_s15 + $0x11f0] sm:$0xff] }
 0x60d   : > { %v13770_v4 = vadd.f32 %v9728_v9, %v5683_v21  ;;  %6862 = vmatprep.mubr.f32.mxu1 %v5887_v50  ;;  %3530 = vmatprep.mubr.f32.mxu0 %v15380_v0  ;;  %v5890_v9 = vmax.f32 %v9455_v53, 0.0  ;;  %v9732_v53 = vadd.f32 %v12657_v32, %v12708_v61  ;;  %v15631_v32 = vld [vmem:[#allocation101_spill] sm:$0xff] }
 0x60e   : > { %15625 = vst [vmem:[#allocation75_spill] sm:$0xff] %v13765_v57 }
 0x60f   : > { %15626 = vst [vmem:[#allocation78_spill] sm:$0xff] %v13770_v4  ;;  %v8783_v56 = vpop.f32.mrb[118].mxu1  ;;  %v13781_v43 = vpop.f32.mrb[118].mxu0 }
 0x610   : > { %v13783_v50 = vadd.f32 %v9731_v41, %v8783_v56  ;;  %v5693_v21 = vpop.f32.mrb[119].mxu1  ;;  %6863 = vmatmul.mubr.f32.gmra.mrb[224].mxu1 %v5886_v39  ;;  %v13785_v6 = vpop.f32.mrb[119].mxu0  ;;  %3531 = vmatmul.mubr.f32.gmra.mrb[224].mxu0 %v10553_v58  ;;  %v9459_v41 = vadd.f32 %v13641_v48, %v12851_v52  ;;  %v9735_v48 = vadd.f32 %v15631_v32, %v12708_v61 }
 0x611   : > { %v13788_v37 = vadd.f32 %v9730_v20, %v5693_v21  ;;  %6867 = vmatprep.mubr.f32.mxu1 %v5890_v9  ;;  %3536 = vmatprep.mubr.f32.mxu0 %v15380_v0  ;;  %v5893_v20 = vmax.f32 %v9457_v62, 0.0  ;;  %v9458_v62 = vadd.f32 %v13637_v54, %v12867_v60 }
 0x612   : > { %15627 = vst [vmem:[#allocation77_spill] sm:$0xff] %v13783_v50 }
 0x613   : > { %15628 = vst [vmem:[#allocation80_spill] sm:$0xff] %v13788_v37  ;;  %v8786_v39 = vpop.f32.mrb[120].mxu1  ;;  %v13799_v56 = vpop.f32.mrb[120].mxu0 }
 0x614   : > { %v13801_v9 = vadd.f32 %v9733_v44, %v8786_v39  ;;  %v5703_v21 = vpop.f32.mrb[121].mxu1  ;;  %6868 = vmatmul.mubr.f32.gmra.mrb[226].mxu1 %v5889_v7  ;;  %v13803_v58 = vpop.f32.mrb[121].mxu0  ;;  %3537 = vmatmul.mubr.f32.gmra.mrb[226].mxu0 %v10554_v47  ;;  %v15632_v44 = vld [vmem:[#allocation100_spill] sm:$0xff]  ;;  %v9461_v39 = vadd.f32 %v13659_v2, %v12851_v52  ;;  %v15635_v2 = vld [vmem:[#allocation103_spill] sm:$0xff] }
 0x615   : > { %v13806_v35 = vadd.f32 %v9732_v53, %v5703_v21  ;;  %6872 = vmatprep.mubr.f32.mxu1 %v5893_v20  ;;  %3542 = vmatprep.mubr.f32.mxu0 %v15380_v0  ;;  %v9734_v7 = vadd.f32 %v15632_v44, %v12708_v61  ;;  %v5896_v53 = vmax.f32 %v9459_v41, 0.0  ;;  %v9737_v32 = vadd.f32 %v15635_v2, %v12708_v61 }
 0x616   : > { %15629 = vst [vmem:[#allocation79_spill] sm:$0xff] %v13801_v9  ;;  %v5895_v44 = vmax.f32 %v9458_v62, 0.0  ;;  %v9460_v41 = vadd.f32 %v13655_v33, %v12867_v60  ;;  %v10556_v62 = vld [vmem:[%s10797_s15 + $0x1218] sm:$0xff] }
 0x617   : > { %15630 = vst [vmem:[#allocation82_spill] sm:$0xff] %v13806_v35  ;;  %v8789_v47 = vpop.f32.mrb[122].mxu1  ;;  %v13817_v9 = vpop.f32.mrb[122].mxu0 }
 0x618   : > { %v13819_v20 = vadd.f32 %v9735_v48, %v8789_v47  ;;  %v5713_v21 = vpop.f32.mrb[123].mxu1  ;;  %6873 = vmatmul.mubr.f32.gmra.mrb[228].mxu1 %v5892_v22  ;;  %v13821_v35 = vpop.f32.mrb[123].mxu0  ;;  %3543 = vmatmul.mubr.f32.gmra.mrb[228].mxu0 %v10555_v26  ;;  %v15636_v48 = vld [vmem:[#allocation102_spill] sm:$0xff]  ;;  %v9463_v47 = vadd.f32 %v13677_v59, %v12851_v52  ;;  %v15639_v59 = vld [vmem:[#allocation105_spill] sm:$0xff] }
 0x619   : > { %v13824_v54 = vadd.f32 %v9734_v7, %v5713_v21  ;;  %6877 = vmatprep.mubr.f32.mxu1 %v5896_v53  ;;  %3548 = vmatprep.mubr.f32.mxu0 %v15380_v0  ;;  %v9736_v22 = vadd.f32 %v15636_v48, %v12708_v61  ;;  %v5899_v7 = vmax.f32 %v9461_v39, 0.0  ;;  %v9739_v2 = vadd.f32 %v15639_v59, %v12708_v61 }
 0x61a   : > { %15633 = vst [vmem:[#allocation81_spill] sm:$0xff] %v13819_v20  ;;  %v5898_v48 = vmax.f32 %v9460_v41, 0.0  ;;  %v9462_v39 = vadd.f32 %v13673_v29, %v12867_v60  ;;  %v10557_v41 = vld [vmem:[%s10797_s15 + $0x1240] sm:$0xff] }
 0x61b   : > { %15634 = vst [vmem:[#allocation84_spill] sm:$0xff] %v13824_v54  ;;  %v8792_v26 = vpop.f32.mrb[124].mxu1  ;;  %v13835_v20 = vpop.f32.mrb[124].mxu0 }
 0x61c   : > { %v13837_v53 = vadd.f32 %v9737_v32, %v8792_v26  ;;  %v5723_v21 = vpop.f32.mrb[125].mxu1  ;;  %6878 = vmatmul.mubr.f32.gmra.mrb[230].mxu1 %v5895_v44  ;;  %v13839_v54 = vpop.f32.mrb[125].mxu0  ;;  %3549 = vmatmul.mubr.f32.gmra.mrb[230].mxu0 %v10556_v62  ;;  %v15640_v32 = vld [vmem:[#allocation104_spill] sm:$0xff]  ;;  %v9465_v26 = vadd.f32 %v13695_v30, %v12851_v52  ;;  %v9464_v30 = vadd.f32 %v13691_v63, %v12867_v60 }
 0x61d   : > { %v13842_v33 = vadd.f32 %v9736_v22, %v5723_v21  ;;  %6882 = vmatprep.mubr.f32.mxu1 %v5899_v7  ;;  %3554 = vmatprep.mubr.f32.mxu0 %v15380_v0  ;;  %v9738_v44 = vadd.f32 %v15640_v32, %v12708_v61  ;;  %v5902_v22 = vmax.f32 %v9463_v47, 0.0  ;;  %v5901_v61 = vmax.f32 %v9462_v39, 0.0 }
 0x61e   : > { %15637 = vst [vmem:[#allocation83_spill] sm:$0xff] %v13837_v53  ;;  %v9467_v47 = vadd.f32 %v13713_v25, %v12851_v52  ;;  %v5905_v32 = vmax.f32 %v9465_v26, 0.0  ;;  %v5904_v39 = vmax.f32 %v9464_v30, 0.0  ;;  %v9466_v63 = vadd.f32 %v13709_v18, %v12867_v60 }
 0x61f   : > { %15638 = vst [vmem:[#allocation89_spill] sm:$0xff] %v13842_v33  ;;  %v8795_v62 = vpop.f32.mrb[126].mxu1  ;;  %v13853_v53 = vpop.f32.mrb[126].mxu0  ;;  %v9469_v25 = vadd.f32 %v13731_v17, %v12851_v52  ;;  %v9468_v18 = vadd.f32 %v13727_v16, %v12867_v60  ;;  %v9471_v17 = vadd.f32 %v13749_v55, %v12851_v52  ;;  %v9470_v16 = vadd.f32 %v13745_v14, %v12867_v60 }
 0x620   : > { %v13855_v7 = vadd.f32 %v9739_v2, %v8795_v62  ;;  %v5733_v21 = vpop.f32.mrb[127].mxu1  ;;  %6883 = vmatmul.mubr.f32.gmra.mrb[232].mxu1 %v5898_v48  ;;  %v13857_v59 = vpop.f32.mrb[127].mxu0  ;;  %3555 = vmatmul.mubr.f32.gmra.mrb[232].mxu0 %v10557_v41  ;;  %v5908_v41 = vmax.f32 %v9467_v47, 0.0  ;;  %v5907_v30 = vmax.f32 %v9466_v63, 0.0  ;;  %v9473_v55 = vadd.f32 %v13767_v28, %v12851_v52 }
 0x621   : > { %v13860_v29 = vadd.f32 %v9738_v44, %v5733_v21  ;;  %6887 = vmatprep.mubr.f32.mxu1 %v5902_v22  ;;  %3560 = vmatprep.mubr.f32.mxu0 %v15380_v0  ;;  %v10558_v22 = vld [vmem:[%s10797_s15 + $0x1268] sm:$0xff]  ;;  %v5910_v63 = vmax.f32 %v9468_v18, 0.0  ;;  %v5913_v18 = vmax.f32 %v9470_v16, 0.0  ;;  %v9472_v14 = vadd.f32 %v13763_v5, %v12867_v60 }
 0x622   : > { %15641 = vst [vmem:[#allocation86_spill] sm:$0xff] %v13855_v7  ;;  %v9475_v28 = vadd.f32 %v13785_v6, %v12851_v52  ;;  %v9474_v5 = vadd.f32 %v13781_v43, %v12867_v60  ;;  %v9477_v6 = vadd.f32 %v13803_v58, %v12851_v52  ;;  %v9476_v43 = vadd.f32 %v13799_v56, %v12867_v60 }
 0x623   : > { %15642 = vst [vmem:[#allocation92_spill] sm:$0xff] %v13860_v29  ;;  %v13867_v2 = vpop.f32.mrb[128].mxu1  ;;  %v13869_v48 = vpop.f32.mrb[128].mxu0  ;;  %v5916_v16 = vmax.f32 %v9472_v14, 0.0  ;;  %v9479_v58 = vadd.f32 %v13821_v35, %v12851_v52  ;;  %v9478_v56 = vadd.f32 %v13817_v9, %v12867_v60  ;;  %v9481_v35 = vadd.f32 %v13839_v54, %v12851_v52 }
 0x624   : > { %v6626_v62 = vpop.f32.mrb[129].mxu1  ;;  %6888 = vmatmul.mubr.f32.gmra.mrb[234].mxu1 %v5901_v61  ;;  %v13871_v44 = vpop.f32.mrb[129].mxu0  ;;  %3561 = vmatmul.mubr.f32.gmra.mrb[234].mxu0 %v10558_v22  ;;  %v5919_v14 = vmax.f32 %v9474_v5, 0.0  ;;  %v5922_v5 = vmax.f32 %v9476_v43, 0.0  ;;  %v9480_v9 = vadd.f32 %v13835_v20, %v12867_v60  ;;  %v9483_v54 = vadd.f32 %v13857_v59, %v12851_v52 }
 0x625   : > { %6892 = vmatprep.mubr.f32.mxu1 %v5905_v32  ;;  %3566 = vmatprep.mubr.f32.mxu0 %v15380_v0  ;;  %v10559_v32 = vld [vmem:[%s10797_s15 + $0x1290] sm:$0xff]  ;;  %v5925_v43 = vmax.f32 %v9478_v56, 0.0  ;;  %v9482_v20 = vadd.f32 %v13853_v53, %v12867_v60  ;;  %v9485_v59 = vadd.f32 %v13871_v44, %v12851_v52  ;;  %v9484_v53 = vadd.f32 %v13869_v48, %v12867_v60  ;;  %v15646_v48 = vld [vmem:[#allocation106_spill] sm:$0xff] }
 0x626   : > { %v5928_v56 = vmax.f32 %v9480_v9, 0.0  ;;  %v5744_v44 = vmax.f32 %v12727_v38, 0.0 }
 0x627   : > { %v13879_v21 = vpop.f32.mrb[130].mxu1  ;;  %v13881_v26 = vpop.f32.mrb[130].mxu0  ;;  %v5931_v9 = vmax.f32 %v9482_v20, 0.0  ;;  %v5747_v20 = vmax.f32 %v15646_v48, 0.0  ;;  %v5934_v38 = vmax.f32 %v9484_v53, 0.0 }
 0x628   : > { %v6631_v61 = vpop.f32.mrb[131].mxu1  ;;  %6893 = vmatmul.mubr.f32.gmra.mrb[236].mxu1 %v5904_v39  ;;  %v13883_v62 = vpop.f32.mrb[131].mxu0  ;;  %3567 = vmatmul.mubr.f32.gmra.mrb[236].mxu0 %v10559_v32 }
 0x629   : > { %6897 = vmatprep.mubr.f32.mxu1 %v5908_v41  ;;  %3572 = vmatprep.mubr.f32.mxu0 %v15380_v0  ;;  %v5911_v61 = vmax.f32 %v9469_v25, 0.0  ;;  %v10560_v41 = vld [vmem:[%s10797_s15 + $0x12b8] sm:$0xff] }
 0x62b   : > { %v13891_v22 = vpop.f32.mrb[132].mxu1  ;;  %v13893_v47 = vpop.f32.mrb[132].mxu0 }
 0x62c   : > { %v6636_v39 = vpop.f32.mrb[133].mxu1  ;;  %6898 = vmatmul.mubr.f32.gmra.mrb[238].mxu1 %v5907_v30  ;;  %v13895_v7 = vpop.f32.mrb[133].mxu0  ;;  %3573 = vmatmul.mubr.f32.gmra.mrb[238].mxu0 %v10560_v41 }
 0x62d   : > { %6902 = vmatprep.mubr.f32.mxu1 %v5911_v61  ;;  %3578 = vmatprep.mubr.f32.mxu0 %v15380_v0  ;;  %v5914_v39 = vmax.f32 %v9471_v17, 0.0  ;;  %v10561_v61 = vld [vmem:[%s10797_s15 + $0x12e0] sm:$0xff] }
 0x62f   : > { %v13903_v32 = vpop.f32.mrb[134].mxu1  ;;  %v13905_v25 = vpop.f32.mrb[134].mxu0 }
 0x630   : > { %v6641_v30 = vpop.f32.mrb[135].mxu1  ;;  %6903 = vmatmul.mubr.f32.gmra.mrb[240].mxu1 %v5910_v63  ;;  %v13907_v29 = vpop.f32.mrb[135].mxu0  ;;  %3579 = vmatmul.mubr.f32.gmra.mrb[240].mxu0 %v10561_v61 }
 0x631   : > { %6907 = vmatprep.mubr.f32.mxu1 %v5914_v39  ;;  %3584 = vmatprep.mubr.f32.mxu0 %v15380_v0  ;;  %v5917_v30 = vmax.f32 %v9473_v55, 0.0  ;;  %v10562_v39 = vld [vmem:[%s10797_s15 + $0x1308] sm:$0xff]  ;;  %v9491_v48 = vadd.f32 %v13907_v29, %v12851_v52  ;;  %v5762_v29 = vmax.f32 %v12775_v15, 0.0 }
 0x633   : > { %v13915_v41 = vpop.f32.mrb[136].mxu1  ;;  %v13917_v17 = vpop.f32.mrb[136].mxu0 }
 0x634   : > { %v6646_v63 = vpop.f32.mrb[137].mxu1  ;;  %6908 = vmatmul.mubr.f32.gmra.mrb[242].mxu1 %v5913_v18  ;;  %v13919_v33 = vpop.f32.mrb[137].mxu0  ;;  %3585 = vmatmul.mubr.f32.gmra.mrb[242].mxu0 %v10562_v39 }
 0x635   : > { %6912 = vmatprep.mubr.f32.mxu1 %v5917_v30  ;;  %3590 = vmatprep.mubr.f32.mxu0 %v15380_v0  ;;  %v5920_v63 = vmax.f32 %v9475_v28, 0.0  ;;  %v10563_v30 = vld [vmem:[%s10797_s15 + $0x1330] sm:$0xff] }
 0x637   : > { %v13927_v61 = vpop.f32.mrb[138].mxu1  ;;  %v13929_v55 = vpop.f32.mrb[138].mxu0 }
 0x638   : > { %v6651_v18 = vpop.f32.mrb[139].mxu1  ;;  %6913 = vmatmul.mubr.f32.gmra.mrb[244].mxu1 %v5916_v16  ;;  %v13931_v50 = vpop.f32.mrb[139].mxu0  ;;  %3591 = vmatmul.mubr.f32.gmra.mrb[244].mxu0 %v10563_v30 }
 0x639   : > { %6917 = vmatprep.mubr.f32.mxu1 %v5920_v63  ;;  %3596 = vmatprep.mubr.f32.mxu0 %v15380_v0  ;;  %v5923_v18 = vmax.f32 %v9477_v6, 0.0  ;;  %v10564_v63 = vld [vmem:[%s10797_s15 + $0x1358] sm:$0xff] }
 0x63b   : > { %v13939_v39 = vpop.f32.mrb[140].mxu1  ;;  %v13941_v28 = vpop.f32.mrb[140].mxu0 }
 0x63c   : > { %v6656_v16 = vpop.f32.mrb[141].mxu1  ;;  %6918 = vmatmul.mubr.f32.gmra.mrb[246].mxu1 %v5919_v14  ;;  %v13943_v37 = vpop.f32.mrb[141].mxu0  ;;  %3597 = vmatmul.mubr.f32.gmra.mrb[246].mxu0 %v10564_v63 }
 0x63d   : > { %6922 = vmatprep.mubr.f32.mxu1 %v5923_v18  ;;  %3602 = vmatprep.mubr.f32.mxu0 %v15380_v0  ;;  %v5926_v16 = vmax.f32 %v9479_v58, 0.0  ;;  %v10565_v18 = vld [vmem:[%s10797_s15 + $0x1380] sm:$0xff] }
 0x63f   : > { %v13951_v30 = vpop.f32.mrb[142].mxu1  ;;  %v13953_v6 = vpop.f32.mrb[142].mxu0 }
 0x640   : > { %v6661_v14 = vpop.f32.mrb[143].mxu1  ;;  %6923 = vmatmul.mubr.f32.gmra.mrb[248].mxu1 %v5922_v5  ;;  %v13955_v57 = vpop.f32.mrb[143].mxu0  ;;  %3603 = vmatmul.mubr.f32.gmra.mrb[248].mxu0 %v10565_v18 }
 0x641   : > { %6927 = vmatprep.mubr.f32.mxu1 %v5926_v16  ;;  %3608 = vmatprep.mubr.f32.mxu0 %v15380_v0  ;;  %v5929_v14 = vmax.f32 %v9481_v35, 0.0  ;;  %v10566_v16 = vld [vmem:[%s10797_s15 + $0x13a8] sm:$0xff] }
 0x643   : > { %v13963_v63 = vpop.f32.mrb[144].mxu1  ;;  %v13965_v58 = vpop.f32.mrb[144].mxu0 }
 0x644   : > { %15643 = vst [vmem:[#allocation90_spill] sm:$0xff] %v13963_v63  ;;  %v6666_v5 = vpop.f32.mrb[145].mxu1  ;;  %6928 = vmatmul.mubr.f32.gmra.mrb[250].mxu1 %v5925_v43  ;;  %v13967_v4 = vpop.f32.mrb[145].mxu0  ;;  %3609 = vmatmul.mubr.f32.gmra.mrb[250].mxu0 %v10566_v16  ;;  %v5935_v16 = vmax.f32 %v9485_v59, 0.0  ;;  %v9486_v59 = vadd.f32 %v13881_v26, %v12867_v60  ;;  %v15647_v26 = vld [vmem:[#allocation107_spill] sm:$0xff] }
 0x645   : > { %6932 = vmatprep.mubr.f32.mxu1 %v5929_v14  ;;  %3614 = vmatprep.mubr.f32.mxu0 %v15380_v0  ;;  %v5932_v5 = vmax.f32 %v9483_v54, 0.0  ;;  %v10567_v14 = vld [vmem:[%s10797_s15 + $0x13d0] sm:$0xff]  ;;  %v9487_v54 = vadd.f32 %v13883_v62, %v12851_v52  ;;  %v5750_v62 = vmax.f32 %v12743_v46, 0.0  ;;  %v5753_v53 = vmax.f32 %v15647_v26, 0.0 }
 0x646   : > { %v5937_v46 = vmax.f32 %v9486_v59, 0.0  ;;  %v9493_v26 = vadd.f32 %v13919_v33, %v12851_v52  ;;  %v5768_v33 = vmax.f32 %v12791_v23, 0.0 }
 0x647   : > { %v13975_v18 = vpop.f32.mrb[146].mxu1  ;;  %v13977_v35 = vpop.f32.mrb[146].mxu0 }
 0x648   : > { %15644 = vst [vmem:[#allocation96_spill] sm:$0xff] %v13975_v18  ;;  %v6671_v43 = vpop.f32.mrb[147].mxu1  ;;  %6933 = vmatmul.mubr.f32.gmra.mrb[252].mxu1 %v5928_v56  ;;  %v13979_v63 = vpop.f32.mrb[147].mxu0  ;;  %3615 = vmatmul.mubr.f32.gmra.mrb[252].mxu0 %v10567_v14  ;;  %v5938_v14 = vmax.f32 %v9487_v54, 0.0 }
 0x649   : > { %6937 = vmatprep.mubr.f32.mxu1 %v5932_v5  ;;  %3620 = vmatprep.mubr.f32.mxu0 %v15380_v0  ;;  %v10568_v0 = vld [vmem:[%s10797_s15 + $0x13f8] sm:$0xff] }
 0x64b   : > { %v13988_v56 = vpop.f32.mrb[148].mxu1  ;;  %v13990_v43 = vpop.f32.mrb[148].mxu0 }
 0x64c   : > { %15645 = vst [vmem:[#allocation94_spill] sm:$0xff] %v13988_v56  ;;  %v6676_v18 = vpop.f32.mrb[149].mxu1  ;;  %6938 = vmatmul.mubr.f32.gmra.mrb[254].mxu1 %v5931_v9  ;;  %v13992_v5 = vpop.f32.mrb[149].mxu0  ;;  %3621 = vmatmul.mubr.f32.gmra.mrb[254].mxu0 %v10568_v0 }
 0x64d   : > { %6942 = vmatprep.mubr.f32.mxu1 %v5935_v16  ;;  %8812 = vmatprep.mubr.msk.f32.mxu0 %vm6173_vm0, %v5744_v44  ;;  %v9489_v18 = vadd.f32 %v13895_v7, %v12851_v52  ;;  %v9488_v44 = vadd.f32 %v13893_v47, %v12867_v60  ;;  %v5756_v7 = vmax.f32 %v12759_v10, 0.0  ;;  %v15648_v47 = vld [vmem:[#allocation108_spill] sm:$0xff] }
 0x64e   : > { %v5759_v59 = vmax.f32 %v15648_v47, 0.0  ;;  %v9495_v47 = vadd.f32 %v13931_v50, %v12851_v52  ;;  %v5774_v50 = vmax.f32 %v12807_v31, 0.0 }
 0x64f   : > { %v14002_v9 = vpop.f32.mrb[150].mxu1  ;;  %v14004_v56 = vpop.f32.mrb[150].mxu0  ;;  %v5941_v54 = vmax.f32 %v9489_v18, 0.0  ;;  %v5940_v10 = vmax.f32 %v9488_v44, 0.0  ;;  %v5944_v18 = vmax.f32 %v9491_v48, 0.0  ;;  %v5947_v48 = vmax.f32 %v9493_v26, 0.0 }
 0x650   : > { %v6681_v0 = vpop.f32.mrb[151].mxu1  ;;  %6943 = vmatmul.mubr.f32.gmra.mrb[0].mxu1 %v5934_v38  ;;  %v14006_v16 = vpop.f32.mrb[151].mxu0  ;;  %8813 = vmatmul.mubr.msk.f32.vlgmr.msra.gmra.mrb[0].mxu0 %vm6173_vm0, %v5747_v20  ;;  %v5950_v26 = vmax.f32 %v9495_v47, 0.0 }
 0x651   : > { %6947 = vmatprep.mubr.f32.mxu1 %v5938_v14  ;;  %8815 = vmatprep.mubr.msk.f32.mxu0 %vm6173_vm0, %v5750_v62  ;;  %v9490_v62 = vadd.f32 %v13905_v25, %v12867_v60  ;;  %v15649_v25 = vld [vmem:[#allocation109_spill] sm:$0xff] }
 0x652   : > { %v5765_v44 = vmax.f32 %v15649_v25, 0.0  ;;  %v9497_v25 = vadd.f32 %v13943_v37, %v12851_v52  ;;  %v15653_v37 = vld [vmem:[#allocation113_spill] sm:$0xff] }
 0x653   : > { %v14016_v38 = vpop.f32.mrb[152].mxu1  ;;  %v14018_v0 = vpop.f32.mrb[152].mxu0  ;;  %v5943_v15 = vmax.f32 %v9490_v62, 0.0  ;;  %v5780_v47 = vmax.f32 %v15653_v37, 0.0  ;;  %v9501_v37 = vadd.f32 %v13967_v4, %v12851_v52  ;;  %v5792_v4 = vmax.f32 %v12860_v34, 0.0 }
 0x654   : > { %v6686_v20 = vpop.f32.mrb[153].mxu1  ;;  %6948 = vmatmul.mubr.f32.gmra.mrb[2].mxu1 %v5937_v46  ;;  %v14020_v14 = vpop.f32.mrb[153].mxu0  ;;  %8816 = vmatmul.mubr.msk.f32.gmra.mrb[2].mxu0 %vm6173_vm0, %v5753_v53 }
 0x655   : > { %6952 = vmatprep.mubr.f32.mxu1 %v5941_v54  ;;  %8818 = vmatprep.mubr.msk.f32.mxu0 %vm6173_vm0, %v5756_v7  ;;  %v9492_v7 = vadd.f32 %v13917_v17, %v12867_v60  ;;  %v15651_v17 = vld [vmem:[#allocation110_spill] sm:$0xff] }
 0x656   : > { %v5771_v62 = vmax.f32 %v15651_v17, 0.0  ;;  %v5953_v17 = vmax.f32 %v9497_v25, 0.0  ;;  %v9498_v25 = vadd.f32 %v13953_v6, %v12867_v60  ;;  %v15655_v6 = vld [vmem:[#allocation114_spill] sm:$0xff] }
 0x657   : > { %v14030_v46 = vpop.f32.mrb[154].mxu1  ;;  %v14032_v20 = vpop.f32.mrb[154].mxu0  ;;  %v5946_v23 = vmax.f32 %v9492_v7, 0.0 }
 0x658   : > { %v6691_v53 = vpop.f32.mrb[155].mxu1  ;;  %6953 = vmatmul.mubr.f32.gmra.mrb[4].mxu1 %v5940_v10  ;;  %v14034_v54 = vpop.f32.mrb[155].mxu0  ;;  %8819 = vmatmul.mubr.msk.f32.gmra.mrb[4].mxu0 %vm6173_vm0, %v5759_v59 }
 0x659   : > { %6957 = vmatprep.mubr.f32.mxu1 %v5944_v18  ;;  %8821 = vmatprep.mubr.msk.f32.mxu0 %vm6173_vm0, %v5762_v29  ;;  %v9494_v29 = vadd.f32 %v13929_v55, %v12867_v60  ;;  %v15652_v55 = vld [vmem:[#allocation111_spill] sm:$0xff] }
 0x65a   : > { %v5777_v7 = vmax.f32 %v15652_v55, 0.0 }
 0x65b   : > { %v14044_v10 = vpop.f32.mrb[156].mxu1  ;;  %v14046_v53 = vpop.f32.mrb[156].mxu0  ;;  %v5949_v31 = vmax.f32 %v9494_v29, 0.0 }
 0x65c   : > { %15650 = vst [vmem:[#allocation99_spill] sm:$0xff] %v14044_v10  ;;  %v6696_v59 = vpop.f32.mrb[157].mxu1  ;;  %6958 = vmatmul.mubr.f32.gmra.mrb[6].mxu1 %v5943_v15  ;;  %v14048_v18 = vpop.f32.mrb[157].mxu0  ;;  %8822 = vmatmul.mubr.msk.f32.gmra.mrb[6].mxu0 %vm6173_vm0, %v5765_v44 }
 0x65d   : > { %6962 = vmatprep.mubr.f32.mxu1 %v5947_v48  ;;  %8824 = vmatprep.mubr.msk.f32.mxu0 %vm6173_vm0, %v5768_v33  ;;  %v9496_v33 = vadd.f32 %v13941_v28, %v12867_v60  ;;  %v15654_v28 = vld [vmem:[#allocation112_spill] sm:$0xff] }
 0x65e   : > { %v5783_v29 = vmax.f32 %v15654_v28, 0.0  ;;  %v9503_v28 = vadd.f32 %v13979_v63, %v12851_v52  ;;  %v5798_v63 = vmax.f32 %v12881_v45, 0.0 }
 0x65f   : > { %v14058_v15 = vpop.f32.mrb[158].mxu1  ;;  %v14060_v59 = vpop.f32.mrb[158].mxu0 }
 0x660   : > { %v6701_v44 = vpop.f32.mrb[159].mxu1  ;;  %6963 = vmatmul.mubr.f32.gmra.mrb[8].mxu1 %v5946_v23  ;;  %v14062_v48 = vpop.f32.mrb[159].mxu0  ;;  %8825 = vmatmul.mubr.msk.f32.gmra.mrb[8].mxu0 %vm6173_vm0, %v5771_v62 }
 0x661   : > { %6967 = vmatprep.mubr.f32.mxu1 %v5950_v26  ;;  %8827 = vmatprep.mubr.msk.f32.mxu0 %vm6173_vm0, %v5774_v50  ;;  %v9499_v44 = vadd.f32 %v13955_v57, %v12851_v52  ;;  %v5952_v50 = vmax.f32 %v9496_v33, 0.0  ;;  %v5786_v57 = vmax.f32 %v12840_v1, 0.0  ;;  %v5789_v33 = vmax.f32 %v15655_v6, 0.0 }
 0x662   : > { %v5955_v1 = vmax.f32 %v9498_v25, 0.0  ;;  %v9505_v6 = vadd.f32 %v13992_v5, %v12851_v52  ;;  %v15659_v5 = vld [vmem:[#allocation118_spill] sm:$0xff] }
 0x663   : > { %v14072_v23 = vpop.f32.mrb[160].mxu1  ;;  %v14074_v10 = vpop.f32.mrb[160].mxu0  ;;  %v5956_v55 = vmax.f32 %v9499_v44, 0.0  ;;  %v5959_v44 = vmax.f32 %v9501_v37, 0.0  ;;  %v5962_v37 = vmax.f32 %v9503_v28, 0.0  ;;  %v5804_v28 = vmax.f32 %v15659_v5, 0.0 }
 0x664   : > { %v6706_v62 = vpop.f32.mrb[161].mxu1  ;;  %6968 = vmatmul.mubr.f32.gmra.mrb[10].mxu1 %v5949_v31  ;;  %v14076_v26 = vpop.f32.mrb[161].mxu0  ;;  %8828 = vmatmul.mubr.msk.f32.gmra.mrb[10].mxu0 %vm6173_vm0, %v5777_v7 }
 0x665   : > { %6972 = vmatprep.mubr.f32.mxu1 %v5953_v17  ;;  %8830 = vmatprep.mubr.msk.f32.mxu0 %vm6173_vm0, %v5780_v47  ;;  %v9500_v47 = vadd.f32 %v13965_v58, %v12867_v60  ;;  %v15657_v58 = vld [vmem:[#allocation115_spill] sm:$0xff] }
 0x666   : > { %v5795_v25 = vmax.f32 %v15657_v58, 0.0  ;;  %v5965_v58 = vmax.f32 %v9505_v6, 0.0  ;;  %v9506_v6 = vadd.f32 %v14004_v56, %v12867_v60  ;;  %v15663_v56 = vld [vmem:[#allocation2_spill] sm:$0xff] }
 0x667   : > { %v14086_v31 = vpop.f32.mrb[162].mxu1  ;;  %v14088_v62 = vpop.f32.mrb[162].mxu0  ;;  %v5958_v34 = vmax.f32 %v9500_v47, 0.0 }
 0x668   : > { %v6711_v7 = vpop.f32.mrb[163].mxu1  ;;  %6973 = vmatmul.mubr.f32.gmra.mrb[12].mxu1 %v5952_v50  ;;  %v14090_v17 = vpop.f32.mrb[163].mxu0  ;;  %8831 = vmatmul.mubr.msk.f32.gmra.mrb[12].mxu0 %vm6173_vm0, %v5783_v29 }
 0x669   : > { %6977 = vmatprep.mubr.f32.mxu1 %v5956_v55  ;;  %8833 = vmatprep.mubr.msk.f32.mxu0 %vm6173_vm0, %v5786_v57  ;;  %v9502_v57 = vadd.f32 %v13977_v35, %v12867_v60  ;;  %v15658_v35 = vld [vmem:[#allocation116_spill] sm:$0xff] }
 0x66a   : > { %v5801_v47 = vmax.f32 %v15658_v35, 0.0 }
 0x66b   : > { %v14100_v50 = vpop.f32.mrb[164].mxu1  ;;  %v14102_v7 = vpop.f32.mrb[164].mxu0  ;;  %v5961_v45 = vmax.f32 %v9502_v57, 0.0 }
 0x66c   : > { %15656 = vst [vmem:[#allocation98_spill] sm:$0xff] %v14100_v50  ;;  %v6716_v29 = vpop.f32.mrb[165].mxu1  ;;  %6978 = vmatmul.mubr.f32.gmra.mrb[14].mxu1 %v5955_v1  ;;  %v14104_v55 = vpop.f32.mrb[165].mxu0  ;;  %8834 = vmatmul.mubr.msk.f32.gmra.mrb[14].mxu0 %vm6173_vm0, %v5789_v33 }
 0x66d   : > { %6982 = vmatprep.mubr.f32.mxu1 %v5959_v44  ;;  %8836 = vmatprep.mubr.msk.f32.mxu0 %vm6173_vm0, %v5792_v4  ;;  %v9504_v4 = vadd.f32 %v13990_v43, %v12867_v60  ;;  %v15661_v43 = vld [vmem:[#allocation117_spill] sm:$0xff] }
 0x66e   : > { %v5807_v57 = vmax.f32 %v15661_v43, 0.0 }
 0x66f   : > { %v14114_v1 = vpop.f32.mrb[166].mxu1  ;;  %v14116_v29 = vpop.f32.mrb[166].mxu0 }
 0x670   : > { %v6721_v33 = vpop.f32.mrb[167].mxu1  ;;  %6983 = vmatmul.mubr.f32.gmra.mrb[16].mxu1 %v5958_v34  ;;  %v14118_v44 = vpop.f32.mrb[167].mxu0  ;;  %8837 = vmatmul.mubr.msk.f32.gmra.mrb[16].mxu0 %vm6173_vm0, %v5795_v25 }
 0x671   : > { %6987 = vmatprep.mubr.f32.mxu1 %v5962_v37  ;;  %8839 = vmatprep.mubr.msk.f32.mxu0 %vm6173_vm0, %v5798_v63  ;;  %v9507_v33 = vadd.f32 %v14006_v16, %v12851_v52  ;;  %v5964_v63 = vmax.f32 %v9504_v4, 0.0  ;;  %v15662_v16 = vld [vmem:[#allocation85_spill] sm:$0xff]  ;;  %v5813_v4 = vmax.f32 %v15663_v56, 0.0  ;;  %v9513_v56 = vadd.f32 %v14048_v18, %v12851_v52 }
 0x672   : > { %v5810_v35 = vmax.f32 %v15662_v16, 0.0  ;;  %v9511_v16 = vadd.f32 %v14034_v54, %v12851_v52  ;;  %v5822_v54 = vmax.f32 %v12960_v19, 0.0  ;;  %v5828_v18 = vmax.f32 %v12978_v24, 0.0 }
 0x673   : > { %v14128_v34 = vpop.f32.mrb[168].mxu1  ;;  %v14130_v50 = vpop.f32.mrb[168].mxu0  ;;  %v5968_v5 = vmax.f32 %v9507_v33, 0.0  ;;  %v9508_v33 = vadd.f32 %v14018_v0, %v12867_v60  ;;  %v15664_v0 = vld [vmem:[#allocation4_spill] sm:$0xff] }
 0x674   : > { %15660 = vst [vmem:[#allocation101_spill] sm:$0xff] %v14128_v34  ;;  %v6726_v25 = vpop.f32.mrb[169].mxu1  ;;  %6988 = vmatmul.mubr.f32.gmra.mrb[18].mxu1 %v5961_v45  ;;  %v14132_v37 = vpop.f32.mrb[169].mxu0  ;;  %8840 = vmatmul.mubr.msk.f32.gmra.mrb[18].mxu0 %vm6173_vm0, %v5801_v47 }
 0x675   : > { %6992 = vmatprep.mubr.f32.mxu1 %v5965_v58  ;;  %8842 = vmatprep.mubr.msk.f32.mxu0 %vm6173_vm0, %v5804_v28  ;;  %v9509_v25 = vadd.f32 %v14020_v14, %v12851_v52  ;;  %v5967_v28 = vmax.f32 %v9506_v6, 0.0  ;;  %v5816_v14 = vmax.f32 %v12942_v3, 0.0  ;;  %v5819_v6 = vmax.f32 %v15664_v0, 0.0 }
 0x676   : > { %v5970_v3 = vmax.f32 %v9508_v33, 0.0  ;;  %v9515_v0 = vadd.f32 %v14062_v48, %v12851_v52  ;;  %v5834_v48 = vmax.f32 %v12996_v49, 0.0 }
 0x677   : > { %v14142_v45 = vpop.f32.mrb[170].mxu1  ;;  %v14144_v34 = vpop.f32.mrb[170].mxu0  ;;  %v5971_v43 = vmax.f32 %v9509_v25, 0.0  ;;  %v5974_v25 = vmax.f32 %v9511_v16, 0.0  ;;  %v5977_v16 = vmax.f32 %v9513_v56, 0.0 }
 0x678   : > { %v6731_v47 = vpop.f32.mrb[171].mxu1  ;;  %6993 = vmatmul.mubr.f32.gmra.mrb[20].mxu1 %v5964_v63  ;;  %v14146_v58 = vpop.f32.mrb[171].mxu0  ;;  %8843 = vmatmul.mubr.msk.f32.gmra.mrb[20].mxu0 %vm6173_vm0, %v5807_v57  ;;  %v5980_v56 = vmax.f32 %v9515_v0, 0.0 }
 0x679   : > { %6997 = vmatprep.mubr.f32.mxu1 %v5968_v5  ;;  %8845 = vmatprep.mubr.msk.f32.mxu0 %vm6173_vm0, %v5810_v35  ;;  %v9510_v35 = vadd.f32 %v14032_v20, %v12867_v60  ;;  %v15665_v20 = vld [vmem:[#allocation3_spill] sm:$0xff] }
 0x67a   : > { %v5825_v33 = vmax.f32 %v15665_v20, 0.0  ;;  %v9517_v20 = vadd.f32 %v14076_v26, %v12851_v52  ;;  %v5840_v26 = vmax.f32 %v13014_v51, 0.0 }
 0x67b   : > { %v14156_v63 = vpop.f32.mrb[172].mxu1  ;;  %v14158_v47 = vpop.f32.mrb[172].mxu0  ;;  %v5973_v19 = vmax.f32 %v9510_v35, 0.0 }
 0x67c   : > { %v6736_v57 = vpop.f32.mrb[173].mxu1  ;;  %6998 = vmatmul.mubr.f32.gmra.mrb[22].mxu1 %v5967_v28  ;;  %v14160_v5 = vpop.f32.mrb[173].mxu0  ;;  %8846 = vmatmul.mubr.msk.f32.gmra.mrb[22].mxu0 %vm6173_vm0, %v5813_v4  ;;  %v5983_v0 = vmax.f32 %v9517_v20, 0.0 }
 0x67d   : > { %7002 = vmatprep.mubr.f32.mxu1 %v5971_v43  ;;  %8848 = vmatprep.mubr.msk.f32.mxu0 %vm6173_vm0, %v5816_v14  ;;  %v9512_v14 = vadd.f32 %v14046_v53, %v12867_v60  ;;  %v15666_v53 = vld [vmem:[#allocation87_spill] sm:$0xff] }
 0x67e   : > { %v5831_v35 = vmax.f32 %v15666_v53, 0.0  ;;  %v9519_v53 = vadd.f32 %v14090_v17, %v12851_v52  ;;  %v15670_v17 = vld [vmem:[#allocation8_spill] sm:$0xff] }
 0x67f   : > { %v14170_v28 = vpop.f32.mrb[174].mxu1  ;;  %v14172_v57 = vpop.f32.mrb[174].mxu0  ;;  %v5976_v24 = vmax.f32 %v9512_v14, 0.0  ;;  %v5846_v20 = vmax.f32 %v15670_v17, 0.0  ;;  %v9523_v17 = vadd.f32 %v14118_v44, %v12851_v52  ;;  %v15674_v44 = vld [vmem:[#allocation9_spill] sm:$0xff] }
 0x680   : > { %v6741_v4 = vpop.f32.mrb[175].mxu1  ;;  %7003 = vmatmul.mubr.f32.gmra.mrb[24].mxu1 %v5970_v3  ;;  %v14174_v43 = vpop.f32.mrb[175].mxu0  ;;  %8849 = vmatmul.mubr.msk.f32.gmra.mrb[24].mxu0 %vm6173_vm0, %v5819_v6 }
 0x681   : > { %7007 = vmatprep.mubr.f32.mxu1 %v5974_v25  ;;  %8851 = vmatprep.mubr.msk.f32.mxu0 %vm6173_vm0, %v5822_v54  ;;  %v9514_v54 = vadd.f32 %v14060_v59, %v12867_v60  ;;  %v15667_v59 = vld [vmem:[#allocation6_spill] sm:$0xff] }
 0x682   : > { %v5837_v14 = vmax.f32 %v15667_v59, 0.0  ;;  %v5986_v59 = vmax.f32 %v9519_v53, 0.0  ;;  %v9520_v53 = vadd.f32 %v14102_v7, %v12867_v60  ;;  %v15673_v7 = vld [vmem:[#allocation7_spill] sm:$0xff] }
 0x683   : > { %v14184_v3 = vpop.f32.mrb[176].mxu1  ;;  %v14186_v4 = vpop.f32.mrb[176].mxu0  ;;  %v5979_v49 = vmax.f32 %v9514_v54, 0.0 }
 0x684   : > { %v6746_v6 = vpop.f32.mrb[177].mxu1  ;;  %7008 = vmatmul.mubr.f32.gmra.mrb[26].mxu1 %v5973_v19  ;;  %v14188_v25 = vpop.f32.mrb[177].mxu0  ;;  %8852 = vmatmul.mubr.msk.f32.gmra.mrb[26].mxu0 %vm6173_vm0, %v5825_v33 }
 0x685   : > { %7012 = vmatprep.mubr.f32.mxu1 %v5977_v16  ;;  %8854 = vmatprep.mubr.msk.f32.mxu0 %vm6173_vm0, %v5828_v18  ;;  %v9516_v18 = vadd.f32 %v14074_v10, %v12867_v60  ;;  %v15669_v10 = vld [vmem:[#allocation5_spill] sm:$0xff] }
 0x686   : > { %v5843_v54 = vmax.f32 %v15669_v10, 0.0 }
 0x687   : > { %v14198_v19 = vpop.f32.mrb[178].mxu1  ;;  %v14200_v6 = vpop.f32.mrb[178].mxu0  ;;  %v5982_v51 = vmax.f32 %v9516_v18, 0.0 }
 0x688   : > { %v6751_v33 = vpop.f32.mrb[179].mxu1  ;;  %7013 = vmatmul.mubr.f32.gmra.mrb[28].mxu1 %v5976_v24  ;;  %v14202_v16 = vpop.f32.mrb[179].mxu0  ;;  %8855 = vmatmul.mubr.msk.f32.gmra.mrb[28].mxu0 %vm6173_vm0, %v5831_v35 }
 0x689   : > { %7017 = vmatprep.mubr.f32.mxu1 %v5980_v56  ;;  %8857 = vmatprep.mubr.msk.f32.mxu0 %vm6173_vm0, %v5834_v48  ;;  %v9518_v48 = vadd.f32 %v14088_v62, %v12867_v60  ;;  %v15671_v62 = vld [vmem:[#allocation88_spill] sm:$0xff] }
 0x68a   : > { %v5849_v18 = vmax.f32 %v15671_v62, 0.0  ;;  %v5992_v62 = vmax.f32 %v9523_v17, 0.0  ;;  %v9524_v17 = vadd.f32 %v14130_v50, %v12867_v60  ;;  %v15677_v50 = vld [vmem:[#allocation12_spill] sm:$0xff] }
 0x68b   : > { %v14212_v24 = vpop.f32.mrb[180].mxu1  ;;  %v14214_v33 = vpop.f32.mrb[180].mxu0 }
 0x68c   : > { %15668 = vst [vmem:[#allocation100_spill] sm:$0xff] %v14212_v24  ;;  %v6756_v35 = vpop.f32.mrb[181].mxu1  ;;  %7018 = vmatmul.mubr.f32.gmra.mrb[30].mxu1 %v5979_v49  ;;  %v14216_v56 = vpop.f32.mrb[181].mxu0  ;;  %8858 = vmatmul.mubr.msk.f32.gmra.mrb[30].mxu0 %vm6173_vm0, %v5837_v14 }
 0x68d   : > { %7022 = vmatprep.mubr.f32.mxu1 %v5983_v0  ;;  %8860 = vmatprep.mubr.msk.f32.mxu0 %vm6173_vm0, %v5840_v26  ;;  %v9521_v35 = vadd.f32 %v14104_v55, %v12851_v52  ;;  %v5985_v26 = vmax.f32 %v9518_v48, 0.0  ;;  %v5852_v55 = vmax.f32 %v13050_v13, 0.0  ;;  %v5855_v48 = vmax.f32 %v15673_v7, 0.0 }
 0x68e   : > { %v5988_v13 = vmax.f32 %v9520_v53, 0.0 }
 0x68f   : > { %v14226_v49 = vpop.f32.mrb[182].mxu1  ;;  %v14228_v24 = vpop.f32.mrb[182].mxu0  ;;  %v5989_v10 = vmax.f32 %v9521_v35, 0.0  ;;  %v5858_v35 = vmax.f32 %v15674_v44, 0.0  ;;  %v9527_v44 = vadd.f32 %v14146_v58, %v12851_v52  ;;  %v15678_v58 = vld [vmem:[#allocation14_spill] sm:$0xff] }
 0x690   : > { %v6761_v14 = vpop.f32.mrb[183].mxu1  ;;  %7023 = vmatmul.mubr.f32.gmra.mrb[32].mxu1 %v5982_v51  ;;  %v14230_v0 = vpop.f32.mrb[183].mxu0  ;;  %8861 = vmatmul.mubr.msk.f32.gmra.mrb[32].mxu0 %vm6173_vm0, %v5843_v54 }
 0x691   : > { %7027 = vmatprep.mubr.f32.mxu1 %v5986_v59  ;;  %8863 = vmatprep.mubr.msk.f32.mxu0 %vm6173_vm0, %v5846_v20  ;;  %v9522_v20 = vadd.f32 %v14116_v29, %v12867_v60  ;;  %v15675_v29 = vld [vmem:[#allocation10_spill] sm:$0xff] }
 0x692   : > { %v5861_v53 = vmax.f32 %v15675_v29, 0.0  ;;  %v5998_v29 = vmax.f32 %v9527_v44, 0.0  ;;  %v9528_v44 = vadd.f32 %v14158_v47, %v12867_v60  ;;  %v15681_v47 = vld [vmem:[#allocation13_spill] sm:$0xff] }
 0x693   : > { %v14240_v51 = vpop.f32.mrb[184].mxu1  ;;  %v14242_v14 = vpop.f32.mrb[184].mxu0 }
 0x694   : > { %15672 = vst [vmem:[#allocation103_spill] sm:$0xff] %v14240_v51  ;;  %v6766_v54 = vpop.f32.mrb[185].mxu1  ;;  %7028 = vmatmul.mubr.f32.gmra.mrb[34].mxu1 %v5985_v26  ;;  %v14244_v59 = vpop.f32.mrb[185].mxu0  ;;  %8864 = vmatmul.mubr.msk.f32.gmra.mrb[34].mxu0 %vm6173_vm0, %v5849_v18 }
 0x695   : > { %7032 = vmatprep.mubr.f32.mxu1 %v5989_v10  ;;  %8866 = vmatprep.mubr.msk.f32.mxu0 %vm6173_vm0, %v5852_v55  ;;  %v9525_v54 = vadd.f32 %v14132_v37, %v12851_v52  ;;  %v5991_v55 = vmax.f32 %v9522_v20, 0.0  ;;  %v5864_v37 = vmax.f32 %v13086_v27, 0.0  ;;  %v5867_v20 = vmax.f32 %v15677_v50, 0.0 }
 0x696   : > { %v5994_v27 = vmax.f32 %v9524_v17, 0.0 }
 0x697   : > { %v14254_v26 = vpop.f32.mrb[186].mxu1  ;;  %v14256_v51 = vpop.f32.mrb[186].mxu0  ;;  %v5995_v7 = vmax.f32 %v9525_v54, 0.0  ;;  %v5870_v54 = vmax.f32 %v15678_v58, 0.0  ;;  %v9531_v58 = vadd.f32 %v14174_v43, %v12851_v52  ;;  %v15682_v43 = vld [vmem:[#allocation16_spill] sm:$0xff] }
 0x698   : > { %v6771_v18 = vpop.f32.mrb[187].mxu1  ;;  %7033 = vmatmul.mubr.f32.gmra.mrb[36].mxu1 %v5988_v13  ;;  %v14258_v10 = vpop.f32.mrb[187].mxu0  ;;  %8867 = vmatmul.mubr.msk.f32.gmra.mrb[36].mxu0 %vm6173_vm0, %v5855_v48 }
 0x699   : > { %7037 = vmatprep.mubr.f32.mxu1 %v5992_v62  ;;  %8869 = vmatprep.mubr.msk.f32.mxu0 %vm6173_vm0, %v5858_v35  ;;  %v9526_v35 = vadd.f32 %v14144_v34, %v12867_v60  ;;  %v15679_v34 = vld [vmem:[#allocation11_spill] sm:$0xff] }
 0x69a   : > { %v5873_v17 = vmax.f32 %v15679_v34, 0.0  ;;  %v6004_v34 = vmax.f32 %v9531_v58, 0.0  ;;  %v9532_v58 = vadd.f32 %v14186_v4, %v12867_v60  ;;  %v15685_v4 = vld [vmem:[#allocation15_spill] sm:$0xff] }
 0x69b   : > { %v14268_v13 = vpop.f32.mrb[188].mxu1  ;;  %v14270_v18 = vpop.f32.mrb[188].mxu0 }
 0x69c   : > { %15676 = vst [vmem:[#allocation102_spill] sm:$0xff] %v14268_v13  ;;  %v6776_v48 = vpop.f32.mrb[189].mxu1  ;;  %7038 = vmatmul.mubr.f32.gmra.mrb[38].mxu1 %v5991_v55  ;;  %v14272_v62 = vpop.f32.mrb[189].mxu0  ;;  %8870 = vmatmul.mubr.msk.f32.gmra.mrb[38].mxu0 %vm6173_vm0, %v5861_v53 }
 0x69d   : > { %7042 = vmatprep.mubr.f32.mxu1 %v5995_v7  ;;  %8872 = vmatprep.mubr.msk.f32.mxu0 %vm6173_vm0, %v5864_v37  ;;  %v9529_v48 = vadd.f32 %v14160_v5, %v12851_v52  ;;  %v5997_v37 = vmax.f32 %v9526_v35, 0.0  ;;  %v5876_v5 = vmax.f32 %v13122_v12, 0.0  ;;  %v5879_v35 = vmax.f32 %v15681_v47, 0.0 }
 0x69e   : > { %v6000_v12 = vmax.f32 %v9528_v44, 0.0 }
 0x69f   : > { %v14282_v55 = vpop.f32.mrb[190].mxu1  ;;  %v14284_v13 = vpop.f32.mrb[190].mxu0  ;;  %v6001_v50 = vmax.f32 %v9529_v48, 0.0  ;;  %v5882_v48 = vmax.f32 %v15682_v43, 0.0  ;;  %v9535_v43 = vadd.f32 %v14202_v16, %v12851_v52  ;;  %v15686_v16 = vld [vmem:[#allocation17_spill] sm:$0xff] }
 0x6a0   : > { %v6781_v53 = vpop.f32.mrb[191].mxu1  ;;  %7043 = vmatmul.mubr.f32.gmra.mrb[40].mxu1 %v5994_v27  ;;  %v14286_v7 = vpop.f32.mrb[191].mxu0  ;;  %8873 = vmatmul.mubr.msk.f32.gmra.mrb[40].mxu0 %vm6173_vm0, %v5867_v20 }
 0x6a1   : > { %7047 = vmatprep.mubr.f32.mxu1 %v5998_v29  ;;  %8875 = vmatprep.mubr.msk.f32.mxu0 %vm6173_vm0, %v5870_v54  ;;  %v9530_v54 = vadd.f32 %v14172_v57, %v12867_v60  ;;  %v15683_v57 = vld [vmem:[#allocation91_spill] sm:$0xff] }
 0x6a2   : > { %v5885_v44 = vmax.f32 %v15683_v57, 0.0  ;;  %v6010_v57 = vmax.f32 %v9535_v43, 0.0  ;;  %v9536_v43 = vadd.f32 %v14214_v33, %v12867_v60  ;;  %v15691_v33 = vld [vmem:[#allocation93_spill] sm:$0xff] }
 0x6a3   : > { %v14296_v27 = vpop.f32.mrb[192].mxu1  ;;  %v14298_v53 = vpop.f32.mrb[192].mxu0 }
 0x6a4   : > { %15680 = vst [vmem:[#allocation105_spill] sm:$0xff] %v14296_v27  ;;  %v6786_v20 = vpop.f32.mrb[193].mxu1  ;;  %7048 = vmatmul.mubr.f32.gmra.mrb[42].mxu1 %v5997_v37  ;;  %v14300_v29 = vpop.f32.mrb[193].mxu0  ;;  %8876 = vmatmul.mubr.msk.f32.gmra.mrb[42].mxu0 %vm6173_vm0, %v5873_v17 }
 0x6a5   : > { %7052 = vmatprep.mubr.f32.mxu1 %v6001_v50  ;;  %8878 = vmatprep.mubr.msk.f32.mxu0 %vm6173_vm0, %v5876_v5  ;;  %v9533_v20 = vadd.f32 %v14188_v25, %v12851_v52  ;;  %v6003_v5 = vmax.f32 %v9530_v54, 0.0  ;;  %v5888_v25 = vmax.f32 %v13158_v40, 0.0  ;;  %v5891_v54 = vmax.f32 %v15685_v4, 0.0 }
 0x6a6   : > { %v6006_v40 = vmax.f32 %v9532_v58, 0.0 }
 0x6a7   : > { %v14310_v37 = vpop.f32.mrb[194].mxu1  ;;  %v14312_v27 = vpop.f32.mrb[194].mxu0  ;;  %v6007_v47 = vmax.f32 %v9533_v20, 0.0  ;;  %v5894_v20 = vmax.f32 %v15686_v16, 0.0 }
 0x6a8   : > { %v6791_v17 = vpop.f32.mrb[195].mxu1  ;;  %7053 = vmatmul.mubr.f32.gmra.mrb[44].mxu1 %v6000_v12  ;;  %v14314_v50 = vpop.f32.mrb[195].mxu0  ;;  %8879 = vmatmul.mubr.msk.f32.gmra.mrb[44].mxu0 %vm6173_vm0, %v5879_v35 }
 0x6a9   : > { %7057 = vmatprep.mubr.f32.mxu1 %v6004_v34  ;;  %8881 = vmatprep.mubr.msk.f32.mxu0 %vm6173_vm0, %v5882_v48  ;;  %v9534_v48 = vadd.f32 %v14200_v6, %v12867_v60  ;;  %v15688_v6 = vld [vmem:[#allocation18_spill] sm:$0xff] }
 0x6aa   : > { %v5897_v58 = vmax.f32 %v15688_v6, 0.0 }
 0x6ab   : > { %v14324_v12 = vpop.f32.mrb[196].mxu1  ;;  %v14326_v17 = vpop.f32.mrb[196].mxu0 }
 0x6ac   : > { %15684 = vst [vmem:[#allocation104_spill] sm:$0xff] %v14324_v12  ;;  %v6796_v35 = vpop.f32.mrb[197].mxu1  ;;  %7058 = vmatmul.mubr.f32.gmra.mrb[46].mxu1 %v6003_v5  ;;  %v14328_v34 = vpop.f32.mrb[197].mxu0  ;;  %8882 = vmatmul.mubr.msk.f32.gmra.mrb[46].mxu0 %vm6173_vm0, %v5885_v44 }
 0x6ad   : > { %7062 = vmatprep.mubr.f32.mxu1 %v6007_v47  ;;  %8884 = vmatprep.mubr.msk.f32.mxu0 %vm6173_vm0, %v5888_v25  ;;  %v9537_v35 = vadd.f32 %v14216_v56, %v12851_v52  ;;  %v6009_v25 = vmax.f32 %v9534_v48, 0.0  ;;  %v15689_v56 = vld [vmem:[#allocation20_spill] sm:$0xff]  ;;  %v5903_v48 = vmax.f32 %v15691_v33, 0.0 }
 0x6ae   : > { %v5900_v4 = vmax.f32 %v15689_v56, 0.0 }
 0x6af   : > { %v14338_v5 = vpop.f32.mrb[198].mxu1  ;;  %v14340_v12 = vpop.f32.mrb[198].mxu0  ;;  %v6013_v16 = vmax.f32 %v9537_v35, 0.0  ;;  %v9538_v35 = vadd.f32 %v14228_v24, %v12867_v60  ;;  %v15694_v24 = vld [vmem:[#allocation19_spill] sm:$0xff] }
 0x6b0   : > { %15687 = vst [vmem:[#allocation106_spill] sm:$0xff] %v14338_v5  ;;  %v6801_v44 = vpop.f32.mrb[199].mxu1  ;;  %7063 = vmatmul.mubr.f32.gmra.mrb[48].mxu1 %v6006_v40  ;;  %v14342_v47 = vpop.f32.mrb[199].mxu0  ;;  %8885 = vmatmul.mubr.msk.f32.gmra.mrb[48].mxu0 %vm6173_vm0, %v5891_v54 }
 0x6b1   : > { %7067 = vmatprep.mubr.f32.mxu1 %v6010_v57  ;;  %8887 = vmatprep.mubr.msk.f32.mxu0 %vm6173_vm0, %v5894_v20  ;;  %v9539_v44 = vadd.f32 %v14230_v0, %v12851_v52  ;;  %v6012_v20 = vmax.f32 %v9536_v43, 0.0  ;;  %v15692_v0 = vld [vmem:[#allocation22_spill] sm:$0xff]  ;;  %v5909_v43 = vmax.f32 %v15694_v24, 0.0 }
 0x6b2   : > { %v5906_v6 = vmax.f32 %v15692_v0, 0.0 }
 0x6b3   : > { %v14352_v40 = vpop.f32.mrb[200].mxu1  ;;  %v14354_v5 = vpop.f32.mrb[200].mxu0  ;;  %v6016_v56 = vmax.f32 %v9539_v44, 0.0  ;;  %v9540_v44 = vadd.f32 %v14242_v14, %v12867_v60  ;;  %v15697_v14 = vld [vmem:[#allocation21_spill] sm:$0xff] }
 0x6b4   : > { %15690 = vst [vmem:[#allocation107_spill] sm:$0xff] %v14352_v40  ;;  %v6806_v54 = vpop.f32.mrb[201].mxu1  ;;  %7068 = vmatmul.mubr.f32.gmra.mrb[50].mxu1 %v6009_v25  ;;  %v14356_v57 = vpop.f32.mrb[201].mxu0  ;;  %8888 = vmatmul.mubr.msk.f32.gmra.mrb[50].mxu0 %vm6173_vm0, %v5897_v58 }
 0x6b5   : > { %7072 = vmatprep.mubr.f32.mxu1 %v6013_v16  ;;  %8890 = vmatprep.mubr.msk.f32.mxu0 %vm6173_vm0, %v5900_v4  ;;  %v9541_v54 = vadd.f32 %v14244_v59, %v12851_v52  ;;  %v6015_v4 = vmax.f32 %v9538_v35, 0.0  ;;  %v15695_v59 = vld [vmem:[#allocation95_spill] sm:$0xff]  ;;  %v5915_v35 = vmax.f32 %v15697_v14, 0.0 }
 0x6b6   : > { %v5912_v33 = vmax.f32 %v15695_v59, 0.0 }
 0x6b7   : > { %v14366_v25 = vpop.f32.mrb[202].mxu1  ;;  %v14368_v40 = vpop.f32.mrb[202].mxu0  ;;  %v6019_v0 = vmax.f32 %v9541_v54, 0.0  ;;  %v9542_v54 = vadd.f32 %v14256_v51, %v12867_v60  ;;  %v15700_v51 = vld [vmem:[#allocation24_spill] sm:$0xff] }
 0x6b8   : > { %15693 = vst [vmem:[#allocation108_spill] sm:$0xff] %v14366_v25  ;;  %v6811_v58 = vpop.f32.mrb[203].mxu1  ;;  %7073 = vmatmul.mubr.f32.gmra.mrb[52].mxu1 %v6012_v20  ;;  %v14370_v16 = vpop.f32.mrb[203].mxu0  ;;  %8891 = vmatmul.mubr.msk.f32.gmra.mrb[52].mxu0 %vm6173_vm0, %v5903_v48 }
 0x6b9   : > { %7077 = vmatprep.mubr.f32.mxu1 %v6016_v56  ;;  %8893 = vmatprep.mubr.msk.f32.mxu0 %vm6173_vm0, %v5906_v6  ;;  %v9543_v58 = vadd.f32 %v14258_v10, %v12851_v52  ;;  %v6018_v6 = vmax.f32 %v9540_v44, 0.0  ;;  %v15698_v10 = vld [vmem:[#allocation23_spill] sm:$0xff]  ;;  %v5921_v44 = vmax.f32 %v15700_v51, 0.0 }
 0x6ba   : > { %v5918_v24 = vmax.f32 %v15698_v10, 0.0 }
 0x6bb   : > { %v14380_v20 = vpop.f32.mrb[204].mxu1  ;;  %v14382_v25 = vpop.f32.mrb[204].mxu0  ;;  %v6022_v59 = vmax.f32 %v9543_v58, 0.0  ;;  %v9544_v58 = vadd.f32 %v14270_v18, %v12867_v60  ;;  %v15703_v18 = vld [vmem:[#allocation26_spill] sm:$0xff] }
 0x6bc   : > { %15696 = vst [vmem:[#allocation109_spill] sm:$0xff] %v14380_v20  ;;  %v6816_v48 = vpop.f32.mrb[205].mxu1  ;;  %7078 = vmatmul.mubr.f32.gmra.mrb[54].mxu1 %v6015_v4  ;;  %v14384_v56 = vpop.f32.mrb[205].mxu0  ;;  %8894 = vmatmul.mubr.msk.f32.gmra.mrb[54].mxu0 %vm6173_vm0, %v5909_v43 }
 0x6bd   : > { %7082 = vmatprep.mubr.f32.mxu1 %v6019_v0  ;;  %8896 = vmatprep.mubr.msk.f32.mxu0 %vm6173_vm0, %v5912_v33  ;;  %v9545_v48 = vadd.f32 %v14272_v62, %v12851_v52  ;;  %v6021_v33 = vmax.f32 %v9542_v54, 0.0  ;;  %v15701_v62 = vld [vmem:[#allocation25_spill] sm:$0xff]  ;;  %v5927_v54 = vmax.f32 %v15703_v18, 0.0 }
 0x6be   : > { %v5924_v14 = vmax.f32 %v15701_v62, 0.0 }
 0x6bf   : > { %v14394_v4 = vpop.f32.mrb[206].mxu1  ;;  %v14396_v20 = vpop.f32.mrb[206].mxu0  ;;  %v6025_v10 = vmax.f32 %v9545_v48, 0.0  ;;  %v9546_v48 = vadd.f32 %v14284_v13, %v12867_v60  ;;  %v15706_v13 = vld [vmem:[#allocation97_spill] sm:$0xff] }
 0x6c0   : > { %15699 = vst [vmem:[#allocation110_spill] sm:$0xff] %v14394_v4  ;;  %v6821_v43 = vpop.f32.mrb[207].mxu1  ;;  %7083 = vmatmul.mubr.f32.gmra.mrb[56].mxu1 %v6018_v6  ;;  %v14398_v0 = vpop.f32.mrb[207].mxu0  ;;  %8897 = vmatmul.mubr.msk.f32.gmra.mrb[56].mxu0 %vm6173_vm0, %v5915_v35 }
 0x6c1   : > { %7087 = vmatprep.mubr.f32.mxu1 %v6022_v59  ;;  %8899 = vmatprep.mubr.msk.f32.mxu0 %vm6173_vm0, %v5918_v24  ;;  %v9547_v43 = vadd.f32 %v14286_v7, %v12851_v52  ;;  %v6024_v24 = vmax.f32 %v9544_v58, 0.0  ;;  %v15704_v7 = vld [vmem:[#allocation28_spill] sm:$0xff]  ;;  %v5933_v58 = vmax.f32 %v15706_v13, 0.0 }
 0x6c2   : > { %v5930_v51 = vmax.f32 %v15704_v7, 0.0 }
 0x6c3   : > { %v14408_v6 = vpop.f32.mrb[208].mxu1  ;;  %v14410_v4 = vpop.f32.mrb[208].mxu0  ;;  %v6028_v62 = vmax.f32 %v9547_v43, 0.0  ;;  %v9548_v43 = vadd.f32 %v14298_v53, %v12867_v60  ;;  %v15709_v53 = vld [vmem:[#allocation27_spill] sm:$0xff] }
 0x6c4   : > { %15702 = vst [vmem:[#allocation111_spill] sm:$0xff] %v14408_v6  ;;  %v6826_v35 = vpop.f32.mrb[209].mxu1  ;;  %7088 = vmatmul.mubr.f32.gmra.mrb[58].mxu1 %v6021_v33  ;;  %v14412_v59 = vpop.f32.mrb[209].mxu0  ;;  %8900 = vmatmul.mubr.msk.f32.gmra.mrb[58].mxu0 %vm6173_vm0, %v5921_v44 }
 0x6c5   : > { %7092 = vmatprep.mubr.f32.mxu1 %v6025_v10  ;;  %8902 = vmatprep.mubr.msk.f32.mxu0 %vm6173_vm0, %v5924_v14  ;;  %v9549_v35 = vadd.f32 %v14300_v29, %v12851_v52  ;;  %v6027_v14 = vmax.f32 %v9546_v48, 0.0  ;;  %v15707_v29 = vld [vmem:[#allocation30_spill] sm:$0xff]  ;;  %v5939_v48 = vmax.f32 %v15709_v53, 0.0 }
 0x6c6   : > { %v5936_v18 = vmax.f32 %v15707_v29, 0.0 }
 0x6c7   : > { %v14422_v33 = vpop.f32.mrb[210].mxu1  ;;  %v14424_v6 = vpop.f32.mrb[210].mxu0  ;;  %v6031_v7 = vmax.f32 %v9549_v35, 0.0  ;;  %v9550_v35 = vadd.f32 %v14312_v27, %v12867_v60  ;;  %v15712_v27 = vld [vmem:[#allocation29_spill] sm:$0xff] }
 0x6c8   : > { %15705 = vst [vmem:[#allocation113_spill] sm:$0xff] %v14422_v33  ;;  %v6831_v44 = vpop.f32.mrb[211].mxu1  ;;  %7093 = vmatmul.mubr.f32.gmra.mrb[60].mxu1 %v6024_v24  ;;  %v14426_v10 = vpop.f32.mrb[211].mxu0  ;;  %8903 = vmatmul.mubr.msk.f32.gmra.mrb[60].mxu0 %vm6173_vm0, %v5927_v54 }
 0x6c9   : > { %7097 = vmatprep.mubr.f32.mxu1 %v6028_v62  ;;  %8905 = vmatprep.mubr.msk.f32.mxu0 %vm6173_vm0, %v5930_v51  ;;  %v9551_v44 = vadd.f32 %v14314_v50, %v12851_v52  ;;  %v6030_v51 = vmax.f32 %v9548_v43, 0.0  ;;  %v15710_v50 = vld [vmem:[#allocation32_spill] sm:$0xff]  ;;  %v5945_v43 = vmax.f32 %v15712_v27, 0.0 }
 0x6ca   : > { %v5942_v13 = vmax.f32 %v15710_v50, 0.0 }
 0x6cb   : > { %v14436_v24 = vpop.f32.mrb[212].mxu1  ;;  %v14438_v33 = vpop.f32.mrb[212].mxu0  ;;  %v6034_v29 = vmax.f32 %v9551_v44, 0.0  ;;  %v9552_v44 = vadd.f32 %v14326_v17, %v12867_v60  ;;  %v15715_v17 = vld [vmem:[#allocation31_spill] sm:$0xff] }
 0x6cc   : > { %15708 = vst [vmem:[#allocation112_spill] sm:$0xff] %v14436_v24  ;;  %v6836_v54 = vpop.f32.mrb[213].mxu1  ;;  %7098 = vmatmul.mubr.f32.gmra.mrb[62].mxu1 %v6027_v14  ;;  %v14440_v62 = vpop.f32.mrb[213].mxu0  ;;  %8906 = vmatmul.mubr.msk.f32.gmra.mrb[62].mxu0 %vm6173_vm0, %v5933_v58 }
 0x6cd   : > { %7102 = vmatprep.mubr.f32.mxu1 %v6031_v7  ;;  %8908 = vmatprep.mubr.msk.f32.mxu0 %vm6173_vm0, %v5936_v18  ;;  %v9553_v54 = vadd.f32 %v14328_v34, %v12851_v52  ;;  %v6033_v18 = vmax.f32 %v9550_v35, 0.0  ;;  %v15713_v34 = vld [vmem:[#allocation34_spill] sm:$0xff]  ;;  %v5951_v35 = vmax.f32 %v15715_v17, 0.0 }
 0x6ce   : > { %v5948_v53 = vmax.f32 %v15713_v34, 0.0 }
 0x6cf   : > { %v14450_v14 = vpop.f32.mrb[214].mxu1  ;;  %v14452_v24 = vpop.f32.mrb[214].mxu0  ;;  %v6037_v50 = vmax.f32 %v9553_v54, 0.0  ;;  %v9554_v54 = vadd.f32 %v14340_v12, %v12867_v60  ;;  %v15718_v12 = vld [vmem:[#allocation33_spill] sm:$0xff] }
 0x6d0   : > { %15711 = vst [vmem:[#allocation114_spill] sm:$0xff] %v14450_v14  ;;  %v6841_v58 = vpop.f32.mrb[215].mxu1  ;;  %7103 = vmatmul.mubr.f32.gmra.mrb[64].mxu1 %v6030_v51  ;;  %v14454_v7 = vpop.f32.mrb[215].mxu0  ;;  %8909 = vmatmul.mubr.msk.f32.gmra.mrb[64].mxu0 %vm6173_vm0, %v5939_v48 }
 0x6d1   : > { %7107 = vmatprep.mubr.f32.mxu1 %v6034_v29  ;;  %8911 = vmatprep.mubr.msk.f32.mxu0 %vm6173_vm0, %v5942_v13  ;;  %v9555_v58 = vadd.f32 %v14342_v47, %v12851_v52  ;;  %v6036_v13 = vmax.f32 %v9552_v44, 0.0  ;;  %v15716_v47 = vld [vmem:[#allocation36_spill] sm:$0xff]  ;;  %v5957_v44 = vmax.f32 %v15718_v12, 0.0 }
 0x6d2   : > { %v5954_v27 = vmax.f32 %v15716_v47, 0.0 }
 0x6d3   : > { %v14464_v51 = vpop.f32.mrb[216].mxu1  ;;  %v14466_v14 = vpop.f32.mrb[216].mxu0  ;;  %v6040_v34 = vmax.f32 %v9555_v58, 0.0  ;;  %v9556_v58 = vadd.f32 %v14354_v5, %v12867_v60  ;;  %v15721_v5 = vld [vmem:[#allocation35_spill] sm:$0xff] }
 0x6d4   : > { %15714 = vst [vmem:[#allocation115_spill] sm:$0xff] %v14464_v51  ;;  %v6846_v48 = vpop.f32.mrb[217].mxu1  ;;  %7108 = vmatmul.mubr.f32.gmra.mrb[66].mxu1 %v6033_v18  ;;  %v14468_v29 = vpop.f32.mrb[217].mxu0  ;;  %8912 = vmatmul.mubr.msk.f32.gmra.mrb[66].mxu0 %vm6173_vm0, %v5945_v43 }
 0x6d5   : > { %7112 = vmatprep.mubr.f32.mxu1 %v6037_v50  ;;  %8914 = vmatprep.mubr.msk.f32.mxu0 %vm6173_vm0, %v5948_v53  ;;  %v9557_v48 = vadd.f32 %v14356_v57, %v12851_v52  ;;  %v6039_v53 = vmax.f32 %v9554_v54, 0.0  ;;  %v15719_v57 = vld [vmem:[#allocation38_spill] sm:$0xff]  ;;  %v5963_v54 = vmax.f32 %v15721_v5, 0.0 }
 0x6d6   : > { %v5960_v17 = vmax.f32 %v15719_v57, 0.0 }
 0x6d7   : > { %v14478_v18 = vpop.f32.mrb[218].mxu1  ;;  %v14480_v51 = vpop.f32.mrb[218].mxu0  ;;  %v6043_v47 = vmax.f32 %v9557_v48, 0.0  ;;  %v9558_v48 = vadd.f32 %v14368_v40, %v12867_v60  ;;  %v15724_v40 = vld [vmem:[#allocation37_spill] sm:$0xff] }
 0x6d8   : > { %15717 = vst [vmem:[#allocation116_spill] sm:$0xff] %v14478_v18  ;;  %v6851_v43 = vpop.f32.mrb[219].mxu1  ;;  %7113 = vmatmul.mubr.f32.gmra.mrb[68].mxu1 %v6036_v13  ;;  %v14482_v50 = vpop.f32.mrb[219].mxu0  ;;  %8915 = vmatmul.mubr.msk.f32.gmra.mrb[68].mxu0 %vm6173_vm0, %v5951_v35 }
 0x6d9   : > { %7117 = vmatprep.mubr.f32.mxu1 %v6040_v34  ;;  %8917 = vmatprep.mubr.msk.f32.mxu0 %vm6173_vm0, %v5954_v27  ;;  %v9559_v43 = vadd.f32 %v14370_v16, %v12851_v52  ;;  %v6042_v27 = vmax.f32 %v9556_v58, 0.0  ;;  %v15722_v16 = vld [vmem:[#allocation40_spill] sm:$0xff]  ;;  %v5969_v58 = vmax.f32 %v15724_v40, 0.0 }
 0x6da   : > { %v5966_v12 = vmax.f32 %v15722_v16, 0.0 }
 0x6db   : > { %v14492_v13 = vpop.f32.mrb[220].mxu1  ;;  %v14494_v18 = vpop.f32.mrb[220].mxu0  ;;  %v6046_v57 = vmax.f32 %v9559_v43, 0.0  ;;  %v9560_v43 = vadd.f32 %v14382_v25, %v12867_v60  ;;  %v15727_v25 = vld [vmem:[#allocation39_spill] sm:$0xff] }
 0x6dc   : > { %15720 = vst [vmem:[#allocation118_spill] sm:$0xff] %v14492_v13  ;;  %v6856_v35 = vpop.f32.mrb[221].mxu1  ;;  %7118 = vmatmul.mubr.f32.gmra.mrb[70].mxu1 %v6039_v53  ;;  %v14496_v34 = vpop.f32.mrb[221].mxu0  ;;  %8918 = vmatmul.mubr.msk.f32.gmra.mrb[70].mxu0 %vm6173_vm0, %v5957_v44 }
 0x6dd   : > { %7122 = vmatprep.mubr.f32.mxu1 %v6043_v47  ;;  %8920 = vmatprep.mubr.msk.f32.mxu0 %vm6173_vm0, %v5960_v17  ;;  %v9561_v35 = vadd.f32 %v14384_v56, %v12851_v52  ;;  %v6045_v17 = vmax.f32 %v9558_v48, 0.0  ;;  %v15725_v56 = vld [vmem:[#allocation42_spill] sm:$0xff]  ;;  %v5975_v48 = vmax.f32 %v15727_v25, 0.0 }
 0x6de   : > { %v5972_v5 = vmax.f32 %v15725_v56, 0.0 }
 0x6df   : > { %v14506_v53 = vpop.f32.mrb[222].mxu1  ;;  %v14508_v13 = vpop.f32.mrb[222].mxu0  ;;  %v6049_v16 = vmax.f32 %v9561_v35, 0.0  ;;  %v9562_v35 = vadd.f32 %v14396_v20, %v12867_v60  ;;  %v15730_v20 = vld [vmem:[#allocation41_spill] sm:$0xff] }
 0x6e0   : > { %15723 = vst [vmem:[#allocation117_spill] sm:$0xff] %v14506_v53  ;;  %v6861_v44 = vpop.f32.mrb[223].mxu1  ;;  %7123 = vmatmul.mubr.f32.gmra.mrb[72].mxu1 %v6042_v27  ;;  %v14510_v47 = vpop.f32.mrb[223].mxu0  ;;  %8921 = vmatmul.mubr.msk.f32.gmra.mrb[72].mxu0 %vm6173_vm0, %v5963_v54 }
 0x6e1   : > { %7127 = vmatprep.mubr.f32.mxu1 %v6046_v57  ;;  %8923 = vmatprep.mubr.msk.f32.mxu0 %vm6173_vm0, %v5966_v12  ;;  %v9563_v44 = vadd.f32 %v14398_v0, %v12851_v52  ;;  %v6048_v12 = vmax.f32 %v9560_v43, 0.0  ;;  %v15728_v0 = vld [vmem:[#allocation44_spill] sm:$0xff]  ;;  %v5981_v43 = vmax.f32 %v15730_v20, 0.0 }
 0x6e2   : > { %v5978_v40 = vmax.f32 %v15728_v0, 0.0 }
 0x6e3   : > { %v14520_v27 = vpop.f32.mrb[224].mxu1  ;;  %v14522_v53 = vpop.f32.mrb[224].mxu0  ;;  %v6052_v56 = vmax.f32 %v9563_v44, 0.0  ;;  %v9564_v44 = vadd.f32 %v14410_v4, %v12867_v60  ;;  %v15733_v4 = vld [vmem:[#allocation43_spill] sm:$0xff] }
 0x6e4   : > { %15726 = vst [vmem:[#allocation85_spill] sm:$0xff] %v14520_v27  ;;  %v6866_v54 = vpop.f32.mrb[225].mxu1  ;;  %7128 = vmatmul.mubr.f32.gmra.mrb[74].mxu1 %v6045_v17  ;;  %v14524_v57 = vpop.f32.mrb[225].mxu0  ;;  %8924 = vmatmul.mubr.msk.f32.gmra.mrb[74].mxu0 %vm6173_vm0, %v5969_v58 }
 0x6e5   : > { %7132 = vmatprep.mubr.f32.mxu1 %v6049_v16  ;;  %8926 = vmatprep.mubr.msk.f32.mxu0 %vm6173_vm0, %v5972_v5  ;;  %v9565_v54 = vadd.f32 %v14412_v59, %v12851_v52  ;;  %v6051_v5 = vmax.f32 %v9562_v35, 0.0  ;;  %v15731_v59 = vld [vmem:[#allocation46_spill] sm:$0xff]  ;;  %v5987_v35 = vmax.f32 %v15733_v4, 0.0 }
 0x6e6   : > { %v5984_v25 = vmax.f32 %v15731_v59, 0.0 }
 0x6e7   : > { %v14534_v17 = vpop.f32.mrb[226].mxu1  ;;  %v14536_v27 = vpop.f32.mrb[226].mxu0  ;;  %v6055_v0 = vmax.f32 %v9565_v54, 0.0  ;;  %v9566_v54 = vadd.f32 %v14424_v6, %v12867_v60  ;;  %v15736_v6 = vld [vmem:[#allocation45_spill] sm:$0xff] }
 0x6e8   : > { %15729 = vst [vmem:[#allocation2_spill] sm:$0xff] %v14534_v17  ;;  %v6871_v58 = vpop.f32.mrb[227].mxu1  ;;  %7133 = vmatmul.mubr.f32.gmra.mrb[76].mxu1 %v6048_v12  ;;  %v14538_v16 = vpop.f32.mrb[227].mxu0  ;;  %8927 = vmatmul.mubr.msk.f32.gmra.mrb[76].mxu0 %vm6173_vm0, %v5975_v48 }
 0x6e9   : > { %7137 = vmatprep.mubr.f32.mxu1 %v6052_v56  ;;  %8929 = vmatprep.mubr.msk.f32.mxu0 %vm6173_vm0, %v5978_v40  ;;  %v9567_v58 = vadd.f32 %v14426_v10, %v12851_v52  ;;  %v6054_v40 = vmax.f32 %v9564_v44, 0.0  ;;  %v15734_v10 = vld [vmem:[#allocation48_spill] sm:$0xff]  ;;  %v5993_v44 = vmax.f32 %v15736_v6, 0.0 }
 0x6ea   : > { %v5990_v20 = vmax.f32 %v15734_v10, 0.0 }
 0x6eb   : > { %v14548_v12 = vpop.f32.mrb[228].mxu1  ;;  %v14550_v17 = vpop.f32.mrb[228].mxu0  ;;  %v6058_v59 = vmax.f32 %v9567_v58, 0.0  ;;  %v9568_v58 = vadd.f32 %v14438_v33, %v12867_v60  ;;  %v15739_v33 = vld [vmem:[#allocation47_spill] sm:$0xff] }
 0x6ec   : > { %15732 = vst [vmem:[#allocation4_spill] sm:$0xff] %v14548_v12  ;;  %v6876_v48 = vpop.f32.mrb[229].mxu1  ;;  %7138 = vmatmul.mubr.f32.gmra.mrb[78].mxu1 %v6051_v5  ;;  %v14552_v56 = vpop.f32.mrb[229].mxu0  ;;  %8930 = vmatmul.mubr.msk.f32.gmra.mrb[78].mxu0 %vm6173_vm0, %v5981_v43 }
 0x6ed   : > { %7142 = vmatprep.mubr.f32.mxu1 %v6055_v0  ;;  %8932 = vmatprep.mubr.msk.f32.mxu0 %vm6173_vm0, %v5984_v25  ;;  %v9569_v48 = vadd.f32 %v14440_v62, %v12851_v52  ;;  %v6057_v25 = vmax.f32 %v9566_v54, 0.0  ;;  %v15737_v62 = vld [vmem:[#allocation50_spill] sm:$0xff]  ;;  %v5999_v54 = vmax.f32 %v15739_v33, 0.0 }
 0x6ee   : > { %v5996_v4 = vmax.f32 %v15737_v62, 0.0 }
 0x6ef   : > { %v14562_v5 = vpop.f32.mrb[230].mxu1  ;;  %v14564_v12 = vpop.f32.mrb[230].mxu0  ;;  %v6061_v10 = vmax.f32 %v9569_v48, 0.0  ;;  %v9570_v48 = vadd.f32 %v14452_v24, %v12867_v60  ;;  %v15742_v24 = vld [vmem:[#allocation49_spill] sm:$0xff] }
 0x6f0   : > { %15735 = vst [vmem:[#allocation3_spill] sm:$0xff] %v14562_v5  ;;  %v6881_v43 = vpop.f32.mrb[231].mxu1  ;;  %7143 = vmatmul.mubr.f32.gmra.mrb[80].mxu1 %v6054_v40  ;;  %v14566_v0 = vpop.f32.mrb[231].mxu0  ;;  %8933 = vmatmul.mubr.msk.f32.gmra.mrb[80].mxu0 %vm6173_vm0, %v5987_v35 }
 0x6f1   : > { %7147 = vmatprep.mubr.f32.mxu1 %v6058_v59  ;;  %8935 = vmatprep.mubr.msk.f32.mxu0 %vm6173_vm0, %v5990_v20  ;;  %v9571_v43 = vadd.f32 %v14454_v7, %v12851_v52  ;;  %v6060_v20 = vmax.f32 %v9568_v58, 0.0  ;;  %v15740_v7 = vld [vmem:[#allocation52_spill] sm:$0xff]  ;;  %v6005_v58 = vmax.f32 %v15742_v24, 0.0 }
 0x6f2   : > { %v6002_v6 = vmax.f32 %v15740_v7, 0.0 }
 0x6f3   : > { %v14576_v40 = vpop.f32.mrb[232].mxu1  ;;  %v14578_v5 = vpop.f32.mrb[232].mxu0  ;;  %v6064_v62 = vmax.f32 %v9571_v43, 0.0  ;;  %v9572_v43 = vadd.f32 %v14466_v14, %v12867_v60  ;;  %v15745_v14 = vld [vmem:[#allocation51_spill] sm:$0xff] }
 0x6f4   : > { %15738 = vst [vmem:[#allocation87_spill] sm:$0xff] %v14576_v40  ;;  %v6886_v35 = vpop.f32.mrb[233].mxu1  ;;  %7148 = vmatmul.mubr.f32.gmra.mrb[82].mxu1 %v6057_v25  ;;  %v14580_v59 = vpop.f32.mrb[233].mxu0  ;;  %8936 = vmatmul.mubr.msk.f32.gmra.mrb[82].mxu0 %vm6173_vm0, %v5993_v44 }
 0x6f5   : > { %7152 = vmatprep.mubr.f32.mxu1 %v6061_v10  ;;  %8938 = vmatprep.mubr.msk.f32.mxu0 %vm6173_vm0, %v5996_v4  ;;  %v9573_v35 = vadd.f32 %v14468_v29, %v12851_v52  ;;  %v6063_v4 = vmax.f32 %v9570_v48, 0.0  ;;  %v15743_v29 = vld [vmem:[#allocation54_spill] sm:$0xff]  ;;  %v6011_v48 = vmax.f32 %v15745_v14, 0.0 }
 0x6f6   : > { %v6008_v33 = vmax.f32 %v15743_v29, 0.0 }
 0x6f7   : > { %v14590_v25 = vpop.f32.mrb[234].mxu1  ;;  %v14592_v40 = vpop.f32.mrb[234].mxu0  ;;  %v6067_v7 = vmax.f32 %v9573_v35, 0.0  ;;  %v9574_v35 = vadd.f32 %v14480_v51, %v12867_v60  ;;  %v15748_v51 = vld [vmem:[#allocation53_spill] sm:$0xff] }
 0x6f8   : > { %15741 = vst [vmem:[#allocation6_spill] sm:$0xff] %v14590_v25  ;;  %v6891_v44 = vpop.f32.mrb[235].mxu1  ;;  %7153 = vmatmul.mubr.f32.gmra.mrb[84].mxu1 %v6060_v20  ;;  %v14594_v10 = vpop.f32.mrb[235].mxu0  ;;  %8939 = vmatmul.mubr.msk.f32.gmra.mrb[84].mxu0 %vm6173_vm0, %v5999_v54 }
 0x6f9   : > { %7157 = vmatprep.mubr.f32.mxu1 %v6064_v62  ;;  %8941 = vmatprep.mubr.msk.f32.mxu0 %vm6173_vm0, %v6002_v6  ;;  %v9575_v44 = vadd.f32 %v14482_v50, %v12851_v52  ;;  %v6066_v6 = vmax.f32 %v9572_v43, 0.0  ;;  %v15746_v50 = vld [vmem:[#allocation56_spill] sm:$0xff]  ;;  %v6017_v43 = vmax.f32 %v15748_v51, 0.0 }
 0x6fa   : > { %v6014_v24 = vmax.f32 %v15746_v50, 0.0 }
 0x6fb   : > { %v14604_v20 = vpop.f32.mrb[236].mxu1  ;;  %v14606_v25 = vpop.f32.mrb[236].mxu0  ;;  %v6070_v29 = vmax.f32 %v9575_v44, 0.0  ;;  %v9576_v44 = vadd.f32 %v14494_v18, %v12867_v60  ;;  %v15751_v18 = vld [vmem:[#allocation55_spill] sm:$0xff] }
 0x6fc   : > { %15744 = vst [vmem:[#allocation5_spill] sm:$0xff] %v14604_v20  ;;  %v6896_v54 = vpop.f32.mrb[237].mxu1  ;;  %7158 = vmatmul.mubr.f32.gmra.mrb[86].mxu1 %v6063_v4  ;;  %v14608_v62 = vpop.f32.mrb[237].mxu0  ;;  %8942 = vmatmul.mubr.msk.f32.gmra.mrb[86].mxu0 %vm6173_vm0, %v6005_v58 }
 0x6fd   : > { %7162 = vmatprep.mubr.f32.mxu1 %v6067_v7  ;;  %8944 = vmatprep.mubr.msk.f32.mxu0 %vm6173_vm0, %v6008_v33  ;;  %v9577_v54 = vadd.f32 %v14496_v34, %v12851_v52  ;;  %v6069_v33 = vmax.f32 %v9574_v35, 0.0  ;;  %v15749_v34 = vld [vmem:[#allocation58_spill] sm:$0xff]  ;;  %v6023_v35 = vmax.f32 %v15751_v18, 0.0 }
 0x6fe   : > { %v6020_v14 = vmax.f32 %v15749_v34, 0.0 }
 0x6ff   : > { %v14618_v4 = vpop.f32.mrb[238].mxu1  ;;  %v14620_v20 = vpop.f32.mrb[238].mxu0  ;;  %v6073_v50 = vmax.f32 %v9577_v54, 0.0  ;;  %v9578_v54 = vadd.f32 %v14508_v13, %v12867_v60  ;;  %v15754_v13 = vld [vmem:[#allocation57_spill] sm:$0xff] }
 0x700   : > { %15747 = vst [vmem:[#allocation8_spill] sm:$0xff] %v14618_v4  ;;  %v6901_v58 = vpop.f32.mrb[239].mxu1  ;;  %7163 = vmatmul.mubr.f32.gmra.mrb[88].mxu1 %v6066_v6  ;;  %v14622_v7 = vpop.f32.mrb[239].mxu0  ;;  %8945 = vmatmul.mubr.msk.f32.gmra.mrb[88].mxu0 %vm6173_vm0, %v6011_v48 }
 0x701   : > { %7167 = vmatprep.mubr.f32.mxu1 %v6070_v29  ;;  %8947 = vmatprep.mubr.msk.f32.mxu0 %vm6173_vm0, %v6014_v24  ;;  %v9579_v58 = vadd.f32 %v14510_v47, %v12851_v52  ;;  %v6072_v24 = vmax.f32 %v9576_v44, 0.0  ;;  %v15752_v47 = vld [vmem:[#allocation60_spill] sm:$0xff]  ;;  %v6029_v44 = vmax.f32 %v15754_v13, 0.0 }
 0x702   : > { %v6026_v51 = vmax.f32 %v15752_v47, 0.0 }
 0x703   : > { %v14632_v6 = vpop.f32.mrb[240].mxu1  ;;  %v14634_v4 = vpop.f32.mrb[240].mxu0  ;;  %v6076_v34 = vmax.f32 %v9579_v58, 0.0  ;;  %v9580_v58 = vadd.f32 %v14522_v53, %v12867_v60  ;;  %v15757_v53 = vld [vmem:[#allocation59_spill] sm:$0xff] }
 0x704   : > { %15750 = vst [vmem:[#allocation88_spill] sm:$0xff] %v14632_v6  ;;  %v6906_v48 = vpop.f32.mrb[241].mxu1  ;;  %7168 = vmatmul.mubr.f32.gmra.mrb[90].mxu1 %v6069_v33  ;;  %v14636_v29 = vpop.f32.mrb[241].mxu0  ;;  %8948 = vmatmul.mubr.msk.f32.gmra.mrb[90].mxu0 %vm6173_vm0, %v6017_v43 }
 0x705   : > { %7172 = vmatprep.mubr.f32.mxu1 %v6073_v50  ;;  %8950 = vmatprep.mubr.msk.f32.mxu0 %vm6173_vm0, %v6020_v14  ;;  %v9581_v48 = vadd.f32 %v14524_v57, %v12851_v52  ;;  %v6075_v14 = vmax.f32 %v9578_v54, 0.0  ;;  %v15755_v57 = vld [vmem:[#allocation62_spill] sm:$0xff]  ;;  %v6035_v54 = vmax.f32 %v15757_v53, 0.0 }
 0x706   : > { %v6032_v18 = vmax.f32 %v15755_v57, 0.0 }
 0x707   : > { %v14646_v33 = vpop.f32.mrb[242].mxu1  ;;  %v14648_v6 = vpop.f32.mrb[242].mxu0  ;;  %v6079_v47 = vmax.f32 %v9581_v48, 0.0  ;;  %v9582_v48 = vadd.f32 %v14536_v27, %v12867_v60  ;;  %v15760_v27 = vld [vmem:[#allocation61_spill] sm:$0xff] }
 0x708   : > { %15753 = vst [vmem:[#allocation7_spill] sm:$0xff] %v14646_v33  ;;  %v6911_v43 = vpop.f32.mrb[243].mxu1  ;;  %7173 = vmatmul.mubr.f32.gmra.mrb[92].mxu1 %v6072_v24  ;;  %v14650_v50 = vpop.f32.mrb[243].mxu0  ;;  %8951 = vmatmul.mubr.msk.f32.gmra.mrb[92].mxu0 %vm6173_vm0, %v6023_v35 }
 0x709   : > { %7177 = vmatprep.mubr.f32.mxu1 %v6076_v34  ;;  %8953 = vmatprep.mubr.msk.f32.mxu0 %vm6173_vm0, %v6026_v51  ;;  %v9583_v43 = vadd.f32 %v14538_v16, %v12851_v52  ;;  %v6078_v51 = vmax.f32 %v9580_v58, 0.0  ;;  %v15758_v16 = vld [vmem:[#allocation64_spill] sm:$0xff]  ;;  %v6041_v58 = vmax.f32 %v15760_v27, 0.0 }
 0x70a   : > { %v6038_v13 = vmax.f32 %v15758_v16, 0.0 }
 0x70b   : > { %v14660_v24 = vpop.f32.mrb[244].mxu1  ;;  %v14662_v33 = vpop.f32.mrb[244].mxu0  ;;  %v6082_v57 = vmax.f32 %v9583_v43, 0.0  ;;  %v9584_v43 = vadd.f32 %v14550_v17, %v12867_v60  ;;  %v15763_v17 = vld [vmem:[#allocation63_spill] sm:$0xff] }
 0x70c   : > { %15756 = vst [vmem:[#allocation9_spill] sm:$0xff] %v14660_v24  ;;  %v6916_v35 = vpop.f32.mrb[245].mxu1  ;;  %7178 = vmatmul.mubr.f32.gmra.mrb[94].mxu1 %v6075_v14  ;;  %v14664_v34 = vpop.f32.mrb[245].mxu0  ;;  %8954 = vmatmul.mubr.msk.f32.gmra.mrb[94].mxu0 %vm6173_vm0, %v6029_v44 }
 0x70d   : > { %7182 = vmatprep.mubr.f32.mxu1 %v6079_v47  ;;  %8956 = vmatprep.mubr.msk.f32.mxu0 %vm6173_vm0, %v6032_v18  ;;  %v9585_v35 = vadd.f32 %v14552_v56, %v12851_v52  ;;  %v6081_v18 = vmax.f32 %v9582_v48, 0.0  ;;  %v15761_v56 = vld [vmem:[#allocation66_spill] sm:$0xff]  ;;  %v6047_v48 = vmax.f32 %v15763_v17, 0.0 }
 0x70e   : > { %v6044_v53 = vmax.f32 %v15761_v56, 0.0 }
 0x70f   : > { %v14674_v14 = vpop.f32.mrb[246].mxu1  ;;  %v14676_v24 = vpop.f32.mrb[246].mxu0  ;;  %v6085_v16 = vmax.f32 %v9585_v35, 0.0  ;;  %v9586_v35 = vadd.f32 %v14564_v12, %v12867_v60  ;;  %v15766_v12 = vld [vmem:[#allocation65_spill] sm:$0xff] }
 0x710   : > { %15759 = vst [vmem:[#allocation10_spill] sm:$0xff] %v14674_v14  ;;  %v6921_v44 = vpop.f32.mrb[247].mxu1  ;;  %7183 = vmatmul.mubr.f32.gmra.mrb[96].mxu1 %v6078_v51  ;;  %v14678_v47 = vpop.f32.mrb[247].mxu0  ;;  %8957 = vmatmul.mubr.msk.f32.gmra.mrb[96].mxu0 %vm6173_vm0, %v6035_v54 }
 0x711   : > { %7187 = vmatprep.mubr.f32.mxu1 %v6082_v57  ;;  %8959 = vmatprep.mubr.msk.f32.mxu0 %vm6173_vm0, %v6038_v13  ;;  %v9587_v44 = vadd.f32 %v14566_v0, %v12851_v52  ;;  %v6084_v13 = vmax.f32 %v9584_v43, 0.0  ;;  %v15764_v0 = vld [vmem:[#allocation68_spill] sm:$0xff]  ;;  %v6053_v43 = vmax.f32 %v15766_v12, 0.0 }
 0x712   : > { %v6050_v27 = vmax.f32 %v15764_v0, 0.0 }
 0x713   : > { %v14688_v51 = vpop.f32.mrb[248].mxu1  ;;  %v14690_v14 = vpop.f32.mrb[248].mxu0  ;;  %v6088_v56 = vmax.f32 %v9587_v44, 0.0  ;;  %v9588_v44 = vadd.f32 %v14578_v5, %v12867_v60  ;;  %v15769_v5 = vld [vmem:[#allocation67_spill] sm:$0xff] }
 0x714   : > { %15762 = vst [vmem:[#allocation12_spill] sm:$0xff] %v14688_v51  ;;  %v6926_v54 = vpop.f32.mrb[249].mxu1  ;;  %7188 = vmatmul.mubr.f32.gmra.mrb[98].mxu1 %v6081_v18  ;;  %v14692_v57 = vpop.f32.mrb[249].mxu0  ;;  %8960 = vmatmul.mubr.msk.f32.gmra.mrb[98].mxu0 %vm6173_vm0, %v6041_v58 }
 0x715   : > { %7192 = vmatprep.mubr.f32.mxu1 %v6085_v16  ;;  %8962 = vmatprep.mubr.msk.f32.mxu0 %vm6173_vm0, %v6044_v53  ;;  %v9589_v54 = vadd.f32 %v14580_v59, %v12851_v52  ;;  %v6087_v53 = vmax.f32 %v9586_v35, 0.0  ;;  %v15767_v59 = vld [vmem:[#allocation70_spill] sm:$0xff]  ;;  %v6059_v35 = vmax.f32 %v15769_v5, 0.0  ;;  %v9592_v5 = vadd.f32 %v14606_v25, %v12867_v60 }
 0x716   : > { %v6056_v17 = vmax.f32 %v15767_v59, 0.0 }
 0x717   : > { %v14702_v18 = vpop.f32.mrb[250].mxu1  ;;  %v14704_v51 = vpop.f32.mrb[250].mxu0  ;;  %v6091_v0 = vmax.f32 %v9589_v54, 0.0  ;;  %v15770_v54 = vld [vmem:[#allocation72_spill] sm:$0xff] }
 0x718   : > { %15765 = vst [vmem:[#allocation14_spill] sm:$0xff] %v14702_v18  ;;  %v6931_v58 = vpop.f32.mrb[251].mxu1  ;;  %7193 = vmatmul.mubr.f32.gmra.mrb[100].mxu1 %v6084_v13  ;;  %v14706_v16 = vpop.f32.mrb[251].mxu0  ;;  %8963 = vmatmul.mubr.msk.f32.gmra.mrb[100].mxu0 %vm6173_vm0, %v6047_v48  ;;  %v6062_v12 = vmax.f32 %v15770_v54, 0.0  ;;  %v15773_v54 = vld [vmem:[#allocation74_spill] sm:$0xff] }
 0x719   : > { %7197 = vmatprep.mubr.f32.mxu1 %v6088_v56  ;;  %8965 = vmatprep.mubr.msk.f32.mxu0 %vm6173_vm0, %v6050_v27  ;;  %v9591_v58 = vadd.f32 %v14594_v10, %v12851_v52  ;;  %v6090_v27 = vmax.f32 %v9588_v44, 0.0  ;;  %v9590_v10 = vadd.f32 %v14592_v40, %v12867_v60  ;;  %v15772_v40 = vld [vmem:[#allocation69_spill] sm:$0xff] }
 0x71b   : > { %v14716_v13 = vpop.f32.mrb[252].mxu1  ;;  %v14718_v18 = vpop.f32.mrb[252].mxu0  ;;  %v6094_v59 = vmax.f32 %v9591_v58, 0.0  ;;  %v6093_v58 = vmax.f32 %v9590_v10, 0.0 }
 0x71c   : > { %15768 = vst [vmem:[#allocation11_spill] sm:$0xff] %v14716_v13  ;;  %v6936_v48 = vpop.f32.mrb[253].mxu1  ;;  %7198 = vmatmul.mubr.f32.gmra.mrb[102].mxu1 %v6087_v53  ;;  %v14720_v56 = vpop.f32.mrb[253].mxu0  ;;  %8966 = vmatmul.mubr.msk.f32.gmra.mrb[102].mxu0 %vm6173_vm0, %v6053_v43  ;;  %v9593_v53 = vadd.f32 %v14608_v62, %v12851_v52  ;;  %v14737_v43 = vld [vmem:[%s15314_s4] ss:$0 sm:$0xff]  ;;  %v6065_v62 = vmax.f32 %v15772_v40, 0.0 }
 0x71d   : > { %7202 = vmatprep.mubr.f32.mxu1 %v6091_v0  ;;  %8968 = vmatprep.mubr.msk.f32.mxu0 %vm6173_vm0, %v6056_v17  ;;  %v6630_v0 = vadd.f32 %v14737_v43, %v13879_v21  ;;  %v6640_v40 = vadd.f32 %v14737_v43, %v13903_v32 }
 0x71f   : > { %v14730_v48 = vpop.f32.mrb[254].mxu1  ;;  %v14732_v13 = vpop.f32.mrb[254].mxu0 }
 0x720   : > { %15771 = vst [vmem:[#allocation13_spill] sm:$0xff] %v14730_v48  ;;  %v6941_v17 = vpop.f32.mrb[255].mxu1  ;;  %7203 = vmatmul.mubr.f32.gmra.mrb[104].mxu1 %v6090_v27  ;;  %v14739_v44 = vpop.f32.mrb[255].mxu0  ;;  %8969 = vmatmul.mubr.msk.f32.gmra.mrb[104].mxu0 %vm6173_vm0, %v6059_v35  ;;  %v6625_v27 = vadd.f32 %v14737_v43, %v13867_v2  ;;  %v6097_v48 = vmax.f32 %v9593_v53, 0.0  ;;  %v9595_v35 = vadd.f32 %v14622_v7, %v12851_v52  ;;  %v15775_v7 = vld [vmem:[#allocation71_spill] sm:$0xff] }
 0x721   : > { %7207 = vmatprep.mubr.f32.mxu1 %v6094_v59  ;;  %8971 = vmatprep.mubr.msk.f32.mxu0 %vm6173_vm0, %v6062_v12  ;;  %v6068_v17 = vmax.f32 %v15773_v54, 0.0  ;;  %v6071_v53 = vmax.f32 %v15775_v7, 0.0  ;;  %v6096_v54 = vmax.f32 %v9592_v5, 0.0  ;;  %v6645_v7 = vadd.f32 %v14737_v43, %v13915_v41 }
 0x722   : > { %v6083_v41 = vmax.f32 %v13729_v36, 0.0 }
 0x723   : > { %v14754_v59 = vpop.f32.mrb[0].mxu1  ;;  %v8814_v21 = vpop.f32.mrb[0].mxu0 }
 0x724   : > { %15774 = vst [vmem:[#allocation16_spill] sm:$0xff] %v14754_v59  ;;  %v6946_v10 = vpop.f32.mrb[1].mxu1  ;;  %7208 = vmatmul.mubr.f32.gmra.mrb[106].mxu1 %v6093_v58  ;;  %v7335_v25 = vadd.f32 %v8814_v21, %v6630_v0  ;;  %v7329_v12 = vpop.f32.mrb[1].mxu0  ;;  %8972 = vmatmul.mubr.msk.f32.gmra.mrb[106].mxu0 %vm6173_vm0, %v6065_v62  ;;  %v9594_v59 = vadd.f32 %v14620_v20, %v12867_v60  ;;  %v15776_v58 = vld [vmem:[#allocation76_spill] sm:$0xff]  ;;  %v6100_v62 = vmax.f32 %v9595_v35, 0.0 }
 0x725   : > { %7212 = vmatprep.mubr.f32.mxu1 %v6097_v48  ;;  %v7330_v2 = vadd.f32 %v7329_v12, %v6625_v27  ;;  %8974 = vmatprep.mubr.msk.f32.mxu0 %vm6173_vm0, %v6068_v17  ;;  %v6074_v10 = vmax.f32 %v15776_v58, 0.0  ;;  %v6635_v0 = vadd.f32 %v14737_v43, %v13891_v22  ;;  %v9597_v48 = vadd.f32 %v14636_v29, %v12851_v52  ;;  %v15777_v22 = vld [vmem:[#allocation73_spill] sm:$0xff] }
 0x726   : > { %7969 = vst [vmem:[%s14759_s9 + $0x8] sm:$0xff] %v7335_v25  ;;  %v6077_v35 = vmax.f32 %v15777_v22, 0.0  ;;  %v6650_v29 = vadd.f32 %v14737_v43, %v13927_v61  ;;  %v6099_v25 = vmax.f32 %v9594_v59, 0.0  ;;  %v9596_v12 = vadd.f32 %v14634_v4, %v12867_v60 }
 0x727   : > { %7968 = vst [vmem:[%s14759_s9] sm:$0xff] %v7330_v2  ;;  %v14775_v17 = vpop.f32.mrb[2].mxu1  ;;  %v8817_v27 = vpop.f32.mrb[2].mxu0  ;;  %v6080_v2 = vmax.f32 %v13734_v8, 0.0 }
 0x728   : > { %v6951_v32 = vpop.f32.mrb[3].mxu1  ;;  %7213 = vmatmul.mubr.f32.gmra.mrb[108].mxu1 %v6096_v54  ;;  %v7345_v5 = vadd.f32 %v8817_v27, %v6640_v40  ;;  %v7339_v20 = vpop.f32.mrb[3].mxu0  ;;  %8975 = vmatmul.mubr.msk.f32.gmra.mrb[108].mxu0 %vm6173_vm0, %v6071_v53  ;;  %v6103_v53 = vmax.f32 %v9597_v48, 0.0  ;;  %v9599_v40 = vadd.f32 %v14650_v50, %v12851_v52  ;;  %v6660_v50 = vadd.f32 %v14737_v43, %v13951_v30 }
 0x729   : > { %7217 = vmatprep.mubr.f32.mxu1 %v6100_v62  ;;  %v7340_v21 = vadd.f32 %v7339_v20, %v6635_v0  ;;  %8977 = vmatprep.mubr.msk.f32.mxu0 %vm6173_vm0, %v6074_v10  ;;  %v6102_v10 = vmax.f32 %v9596_v12, 0.0  ;;  %v9598_v0 = vadd.f32 %v14648_v6, %v12867_v60  ;;  %v6086_v62 = vmax.f32 %v13752_v11, 0.0  ;;  %v15780_v12 = vld [vmem:[#allocation90_spill] sm:$0xff] }
 0x72a   : > { %7971 = vst [vmem:[%s14759_s9 + $0x18] sm:$0xff] %v7345_v5  ;;  %v6655_v48 = vadd.f32 %v14737_v43, %v13939_v39  ;;  %v6106_v27 = vmax.f32 %v9599_v40, 0.0  ;;  %v9601_v32 = vadd.f32 %v14664_v34, %v12851_v52  ;;  %v6089_v39 = vmax.f32 %v13747_v42, 0.0 }
 0x72b   : > { %7970 = vst [vmem:[%s14759_s9 + $0x10] sm:$0xff] %v7340_v21  ;;  %v14791_v54 = vpop.f32.mrb[4].mxu1  ;;  %v8820_v58 = vpop.f32.mrb[4].mxu0  ;;  %v15778_v21 = vld [vmem:[#allocation96_spill] sm:$0xff]  ;;  %v6105_v22 = vmax.f32 %v9598_v0, 0.0 }
 0x72c   : > { %v6956_v61 = vpop.f32.mrb[5].mxu1  ;;  %7218 = vmatmul.mubr.f32.gmra.mrb[110].mxu1 %v6099_v25  ;;  %v7355_v59 = vadd.f32 %v8820_v58, %v6650_v29  ;;  %v7349_v4 = vpop.f32.mrb[5].mxu0  ;;  %8978 = vmatmul.mubr.msk.f32.gmra.mrb[110].mxu0 %vm6173_vm0, %v6077_v35  ;;  %v6670_v34 = vadd.f32 %v14737_v43, %v15778_v21  ;;  %v9600_v35 = vadd.f32 %v14662_v33, %v12867_v60  ;;  %v15779_v29 = vld [vmem:[#allocation78_spill] sm:$0xff] }
 0x72d   : > { %7222 = vmatprep.mubr.f32.mxu1 %v6103_v53  ;;  %v7350_v8 = vadd.f32 %v7349_v4, %v6645_v7  ;;  %8980 = vmatprep.mubr.msk.f32.mxu0 %vm6173_vm0, %v6080_v2  ;;  %v6092_v25 = vmax.f32 %v15779_v29, 0.0  ;;  %v6665_v2 = vadd.f32 %v14737_v43, %v15780_v12  ;;  %v6109_v7 = vmax.f32 %v9601_v32, 0.0  ;;  %v15781_v4 = vld [vmem:[#allocation75_spill] sm:$0xff] }
 0x72e   : > { %7973 = vst [vmem:[%s14759_s9 + $0x28] sm:$0xff] %v7355_v59  ;;  %v9603_v53 = vadd.f32 %v14678_v47, %v12851_v52  ;;  %v6680_v47 = vadd.f32 %v14737_v43, %v14002_v9  ;;  %v9605_v32 = vadd.f32 %v14692_v57, %v12851_v52  ;;  %v6690_v57 = vadd.f32 %v14737_v43, %v14030_v46 }
 0x72f   : > { %7972 = vst [vmem:[%s14759_s9 + $0x20] sm:$0xff] %v7350_v8  ;;  %v14807_v36 = vpop.f32.mrb[6].mxu1  ;;  %v8823_v5 = vpop.f32.mrb[6].mxu0  ;;  %v6095_v8 = vmax.f32 %v15781_v4, 0.0  ;;  %v6685_v29 = vadd.f32 %v14737_v43, %v14016_v38  ;;  %v9607_v12 = vadd.f32 %v14706_v16, %v12851_v52  ;;  %v15786_v38 = vld [vmem:[#allocation79_spill] sm:$0xff]  ;;  %v6700_v16 = vadd.f32 %v14737_v43, %v14058_v15 }
 0x730   : > { %v6961_v30 = vpop.f32.mrb[7].mxu1  ;;  %7223 = vmatmul.mubr.f32.gmra.mrb[112].mxu1 %v6102_v10  ;;  %v7365_v20 = vadd.f32 %v8823_v5, %v6660_v50  ;;  %v7359_v6 = vpop.f32.mrb[7].mxu0  ;;  %8981 = vmatmul.mubr.msk.f32.gmra.mrb[112].mxu0 %vm6173_vm0, %v6083_v41  ;;  %v6108_v41 = vmax.f32 %v9600_v35, 0.0  ;;  %v9602_v50 = vadd.f32 %v14676_v24, %v12867_v60  ;;  %v15782_v10 = vld [vmem:[#allocation80_spill] sm:$0xff] }
 0x731   : > { %7227 = vmatprep.mubr.f32.mxu1 %v6106_v27  ;;  %v7360_v11 = vadd.f32 %v7359_v6, %v6655_v48  ;;  %8983 = vmatprep.mubr.msk.f32.mxu0 %vm6173_vm0, %v6086_v62  ;;  %v6098_v0 = vmax.f32 %v15782_v10, 0.0  ;;  %v15783_v62 = vld [vmem:[#allocation94_spill] sm:$0xff]  ;;  %v6112_v27 = vmax.f32 %v9603_v53, 0.0 }
 0x732   : > { %7975 = vst [vmem:[%s14759_s9 + $0x38] sm:$0xff] %v7365_v20  ;;  %v6675_v48 = vadd.f32 %v14737_v43, %v15783_v62  ;;  %v6111_v21 = vmax.f32 %v9602_v50, 0.0  ;;  %v9609_v50 = vadd.f32 %v14720_v56, %v12851_v52  ;;  %v6710_v56 = vadd.f32 %v14737_v43, %v14086_v31 }
 0x733   : > { %7974 = vst [vmem:[%s14759_s9 + $0x30] sm:$0xff] %v7360_v11  ;;  %v14823_v42 = vpop.f32.mrb[8].mxu1  ;;  %v8826_v40 = vpop.f32.mrb[8].mxu0  ;;  %v15784_v11 = vld [vmem:[#allocation77_spill] sm:$0xff] }
 0x734   : > { %v6966_v58 = vpop.f32.mrb[9].mxu1  ;;  %7228 = vmatmul.mubr.f32.gmra.mrb[114].mxu1 %v6105_v22  ;;  %v7375_v61 = vadd.f32 %v8826_v40, %v6670_v34  ;;  %v7369_v33 = vpop.f32.mrb[9].mxu0  ;;  %8984 = vmatmul.mubr.msk.f32.gmra.mrb[114].mxu0 %vm6173_vm0, %v6089_v39  ;;  %v6101_v39 = vmax.f32 %v15784_v11, 0.0  ;;  %v9604_v34 = vadd.f32 %v14690_v14, %v12867_v60  ;;  %v15785_v22 = vld [vmem:[#allocation82_spill] sm:$0xff]  ;;  %v6121_v11 = vmax.f32 %v9609_v50, 0.0 }
 0x735   : > { %7232 = vmatprep.mubr.f32.mxu1 %v6109_v7  ;;  %v7370_v59 = vadd.f32 %v7369_v33, %v6665_v2  ;;  %8986 = vmatprep.mubr.msk.f32.mxu0 %vm6173_vm0, %v6092_v25  ;;  %v6104_v35 = vmax.f32 %v15785_v22, 0.0  ;;  %v6115_v25 = vmax.f32 %v9605_v32, 0.0  ;;  %v6107_v58 = vmax.f32 %v15786_v38, 0.0 }
 0x736   : > { %7977 = vst [vmem:[%s14759_s9 + $0x48] sm:$0xff] %v7375_v61  ;;  %v6114_v61 = vmax.f32 %v9604_v34, 0.0  ;;  %v9606_v33 = vadd.f32 %v14704_v51, %v12867_v60 }
 0x737   : > { %7976 = vst [vmem:[%s14759_s9 + $0x40] sm:$0xff] %v7370_v59  ;;  %v14839_v5 = vpop.f32.mrb[10].mxu1  ;;  %v8829_v30 = vpop.f32.mrb[10].mxu0  ;;  %v15787_v59 = vld [vmem:[#allocation84_spill] sm:$0xff] }
 0x738   : > { %v6971_v9 = vpop.f32.mrb[11].mxu1  ;;  %7233 = vmatmul.mubr.f32.gmra.mrb[116].mxu1 %v6108_v41  ;;  %v7385_v20 = vadd.f32 %v8829_v30, %v6680_v47  ;;  %v7379_v24 = vpop.f32.mrb[11].mxu0  ;;  %8987 = vmatmul.mubr.msk.f32.gmra.mrb[116].mxu0 %vm6173_vm0, %v6095_v8  ;;  %v6110_v4 = vmax.f32 %v15787_v59, 0.0  ;;  %v15788_v8 = vld [vmem:[#allocation99_spill] sm:$0xff]  ;;  %v6118_v41 = vmax.f32 %v9607_v12, 0.0  ;;  %v6117_v30 = vmax.f32 %v9606_v33, 0.0 }
 0x739   : > { %7237 = vmatprep.mubr.f32.mxu1 %v6112_v27  ;;  %v7380_v6 = vadd.f32 %v7379_v24, %v6675_v48  ;;  %8989 = vmatprep.mubr.msk.f32.mxu0 %vm6173_vm0, %v6098_v0  ;;  %v6695_v47 = vadd.f32 %v14737_v43, %v15788_v8  ;;  %v15789_v27 = vld [vmem:[#allocation81_spill] sm:$0xff]  ;;  %v9608_v9 = vadd.f32 %v14718_v18, %v12867_v60 }
 0x73a   : > { %7979 = vst [vmem:[%s14759_s9 + $0x58] sm:$0xff] %v7385_v20  ;;  %v6113_v32 = vmax.f32 %v15789_v27, 0.0  ;;  %v15790_v20 = vld [vmem:[#allocation89_spill] sm:$0xff] }
 0x73b   : > { %7978 = vst [vmem:[%s14759_s9 + $0x50] sm:$0xff] %v7380_v6  ;;  %v14855_v2 = vpop.f32.mrb[12].mxu1  ;;  %v8832_v7 = vpop.f32.mrb[12].mxu0  ;;  %v6116_v24 = vmax.f32 %v15790_v20, 0.0  ;;  %v6705_v6 = vadd.f32 %v14737_v43, %v14072_v23  ;;  %v15791_v23 = vld [vmem:[#allocation83_spill] sm:$0xff]  ;;  %v15795_v59 = vld [vmem:[#allocation101_spill] sm:$0xff] }
 0x73c   : > { %v6976_v46 = vpop.f32.mrb[13].mxu1  ;;  %7238 = vmatmul.mubr.f32.gmra.mrb[118].mxu1 %v6111_v21  ;;  %v7395_v53 = vadd.f32 %v8832_v7, %v6690_v57  ;;  %v7389_v14 = vpop.f32.mrb[13].mxu0  ;;  %8990 = vmatmul.mubr.msk.f32.gmra.mrb[118].mxu0 %vm6173_vm0, %v6101_v39  ;;  %v9611_v39 = vadd.f32 %v14739_v44, %v12851_v52  ;;  %v6720_v52 = vadd.f32 %v14737_v43, %v14114_v1  ;;  %v6120_v44 = vmax.f32 %v9608_v9, 0.0  ;;  %v15793_v7 = vld [vmem:[#allocation98_spill] sm:$0xff] }
 0x73d   : > { %7242 = vmatprep.mubr.f32.mxu1 %v6115_v25  ;;  %v7390_v40 = vadd.f32 %v7389_v14, %v6685_v29  ;;  %8992 = vmatprep.mubr.msk.f32.mxu0 %vm6173_vm0, %v6104_v35  ;;  %v6119_v35 = vmax.f32 %v15791_v23, 0.0  ;;  %v9610_v29 = vadd.f32 %v14732_v13, %v12867_v60  ;;  %v15792_v25 = vld [vmem:[#allocation92_spill] sm:$0xff]  ;;  %v6715_v46 = vadd.f32 %v14737_v43, %v15793_v7  ;;  %v15794_v13 = vld [vmem:[#allocation86_spill] sm:$0xff] }
 0x73e   : > { %7981 = vst [vmem:[%s14759_s9 + $0x68] sm:$0xff] %v7395_v53  ;;  %v6122_v12 = vmax.f32 %v15792_v25, 0.0  ;;  %v6124_v53 = vmax.f32 %v9611_v39, 0.0  ;;  %v6750_v9 = vadd.f32 %v14737_v43, %v14198_v19 }
 0x73f   : > { %7980 = vst [vmem:[%s14759_s9 + $0x60] sm:$0xff] %v7390_v40  ;;  %v14871_v10 = vpop.f32.mrb[14].mxu1  ;;  %v8835_v0 = vpop.f32.mrb[14].mxu0  ;;  %v6123_v33 = vmax.f32 %v9610_v29, 0.0 }
 0x740   : > { %v6981_v15 = vpop.f32.mrb[15].mxu1  ;;  %7243 = vmatmul.mubr.f32.gmra.mrb[120].mxu1 %v6114_v61  ;;  %v7405_v62 = vadd.f32 %v8835_v0, %v6700_v16  ;;  %v7399_v51 = vpop.f32.mrb[15].mxu0  ;;  %8993 = vmatmul.mubr.msk.f32.gmra.mrb[120].mxu0 %vm6173_vm0, %v6107_v58  ;;  %v6125_v16 = vmax.f32 %v15794_v13, 0.0  ;;  %v6730_v61 = vadd.f32 %v14737_v43, %v14142_v45  ;;  %v6740_v45 = vadd.f32 %v14737_v43, %v14170_v28 }
 0x741   : > { %7247 = vmatprep.mubr.f32.mxu1 %v6118_v41  ;;  %v7400_v48 = vadd.f32 %v7399_v51, %v6695_v47  ;;  %8995 = vmatprep.mubr.msk.f32.mxu0 %vm6173_vm0, %v6110_v4  ;;  %v6725_v4 = vadd.f32 %v14737_v43, %v15795_v59  ;;  %v6745_v28 = vadd.f32 %v14737_v43, %v14184_v3  ;;  %v15799_v59 = vld [vmem:[#allocation105_spill] sm:$0xff] }
 0x742   : > { %7983 = vst [vmem:[%s14759_s9 + $0x78] sm:$0xff] %v7405_v62  ;;  %v6735_v62 = vadd.f32 %v14737_v43, %v14156_v63 }
 0x743   : > { %7982 = vst [vmem:[%s14759_s9 + $0x70] sm:$0xff] %v7400_v48  ;;  %v14887_v57 = vpop.f32.mrb[16].mxu1  ;;  %v8838_v21 = vpop.f32.mrb[16].mxu0 }
 0x744   : > { %v6986_v31 = vpop.f32.mrb[17].mxu1  ;;  %7248 = vmatmul.mubr.f32.gmra.mrb[122].mxu1 %v6117_v30  ;;  %v7415_v34 = vadd.f32 %v8838_v21, %v6710_v56  ;;  %v7409_v18 = vpop.f32.mrb[17].mxu0  ;;  %8996 = vmatmul.mubr.msk.f32.gmra.mrb[122].mxu0 %vm6173_vm0, %v6113_v32  ;;  %v6760_v21 = vadd.f32 %v14737_v43, %v14226_v49 }
 0x745   : > { %7252 = vmatprep.mubr.f32.mxu1 %v6121_v11  ;;  %v7410_v22 = vadd.f32 %v7409_v18, %v6705_v6  ;;  %8998 = vmatprep.mubr.msk.f32.mxu0 %vm6173_vm0, %v6116_v24  ;;  %v15796_v31 = vld [vmem:[#allocation100_spill] sm:$0xff] }
 0x746   : > { %7985 = vst [vmem:[%s14759_s9 + $0x88] sm:$0xff] %v7415_v34  ;;  %v6755_v19 = vadd.f32 %v14737_v43, %v15796_v31 }
 0x747   : > { %7984 = vst [vmem:[%s14759_s9 + $0x80] sm:$0xff] %v7410_v22  ;;  %v14901_v14 = vpop.f32.mrb[18].mxu1  ;;  %v8841_v40 = vpop.f32.mrb[18].mxu0 }
 0x748   : > { %v6991_v38 = vpop.f32.mrb[19].mxu1  ;;  %7253 = vmatmul.mubr.f32.gmra.mrb[124].mxu1 %v6120_v44  ;;  %v7425_v1 = vadd.f32 %v8841_v40, %v6720_v52  ;;  %v7419_v58 = vpop.f32.mrb[19].mxu0  ;;  %8999 = vmatmul.mubr.msk.f32.gmra.mrb[124].mxu0 %vm6173_vm0, %v6119_v35  ;;  %v6770_v52 = vadd.f32 %v14737_v43, %v14254_v26  ;;  %v15797_v44 = vld [vmem:[#allocation103_spill] sm:$0xff]  ;;  %v6780_v40 = vadd.f32 %v14737_v43, %v14282_v55 }
 0x749   : > { %7257 = vmatprep.mubr.f32.mxu1 %v6124_v53  ;;  %v7420_v60 = vadd.f32 %v7419_v58, %v6715_v46  ;;  %9001 = vmatprep.mubr.msk.f32.mxu0 %vm6173_vm0, %v6122_v12  ;;  %v6765_v49 = vadd.f32 %v14737_v43, %v15797_v44  ;;  %v15798_v38 = vld [vmem:[#allocation102_spill] sm:$0xff]  ;;  %v6785_v55 = vadd.f32 %v14737_v43, %v15799_v59 }
 0x74a   : > { %7987 = vst [vmem:[%s14759_s9 + $0x98] sm:$0xff] %v7425_v1  ;;  %v6775_v26 = vadd.f32 %v14737_v43, %v15798_v38  ;;  %v15807_v38 = vld [vmem:[#allocation111_spill] sm:$0xff]  ;;  %v15808_v59 = vld [vmem:[#allocation114_spill] sm:$0xff] }
 0x74b   : > { %7986 = vst [vmem:[%s14759_s9 + $0x90] sm:$0xff] %v7420_v60  ;;  %v14912_v8 = vpop.f32.mrb[20].mxu1  ;;  %v8844_v47 = vpop.f32.mrb[20].mxu0 }
 0x74c   : > { %v6996_v41 = vpop.f32.mrb[21].mxu1  ;;  %7258 = vmatmul.mubr.f32.gmra.mrb[126].mxu1 %v6123_v33  ;;  %v7435_v50 = vadd.f32 %v8844_v47, %v6730_v61  ;;  %v7429_v0 = vpop.f32.mrb[21].mxu0  ;;  %9002 = vmatmul.mubr.msk.f32.gmra.mrb[126].mxu0 %vm6173_vm0, %v6125_v16  ;;  %v6790_v33 = vadd.f32 %v14737_v43, %v14310_v37 }
 0x74d   : > { %v7430_v15 = vadd.f32 %v7429_v0, %v6725_v4 }
 0x74e   : > { %7989 = vst [vmem:[%s14759_s9 + $0xa8] sm:$0xff] %v7435_v50 }
 0x74f   : > { %7988 = vst [vmem:[%s14759_s9 + $0xa0] sm:$0xff] %v7430_v15  ;;  %v14921_v51 = vpop.f32.mrb[22].mxu1  ;;  %v8847_v48 = vpop.f32.mrb[22].mxu0 }
 0x750   : > { %v7001_v27 = vpop.f32.mrb[23].mxu1  ;;  %v7445_v32 = vadd.f32 %v8847_v48, %v6740_v45  ;;  %v7439_v56 = vpop.f32.mrb[23].mxu0  ;;  %v15800_v45 = vld [vmem:[#allocation106_spill] sm:$0xff]  ;;  %v15801_v48 = vld [vmem:[#allocation104_spill] sm:$0xff] }
 0x751   : > { %v7440_v30 = vadd.f32 %v7439_v56, %v6735_v62  ;;  %v6800_v62 = vadd.f32 %v14737_v43, %v15800_v45  ;;  %v6795_v37 = vadd.f32 %v14737_v43, %v15801_v48 }
 0x752   : > { %7991 = vst [vmem:[%s14759_s9 + $0xb8] sm:$0xff] %v7445_v32 }
 0x753   : > { %7990 = vst [vmem:[%s14759_s9 + $0xb0] sm:$0xff] %v7440_v30  ;;  %v14929_v20 = vpop.f32.mrb[24].mxu1  ;;  %v8850_v63 = vpop.f32.mrb[24].mxu0 }
 0x754   : > { %v7006_v24 = vpop.f32.mrb[25].mxu1  ;;  %v7455_v6 = vadd.f32 %v8850_v63, %v6750_v9  ;;  %v7449_v11 = vpop.f32.mrb[25].mxu0  ;;  %v15802_v63 = vld [vmem:[#allocation108_spill] sm:$0xff] }
 0x755   : > { %v7450_v39 = vadd.f32 %v7449_v11, %v6745_v28  ;;  %v6810_v24 = vadd.f32 %v14737_v43, %v15802_v63 }
 0x756   : > { %7993 = vst [vmem:[%s14759_s9 + $0xc8] sm:$0xff] %v7455_v6  ;;  %v15803_v6 = vld [vmem:[#allocation107_spill] sm:$0xff] }
 0x757   : > { %7992 = vst [vmem:[%s14759_s9 + $0xc0] sm:$0xff] %v7450_v39  ;;  %v14937_v34 = vpop.f32.mrb[26].mxu1  ;;  %v8853_v3 = vpop.f32.mrb[26].mxu0  ;;  %v6805_v11 = vadd.f32 %v14737_v43, %v15803_v6 }
 0x758   : > { %v7011_v18 = vpop.f32.mrb[27].mxu1  ;;  %v7465_v22 = vadd.f32 %v8853_v3, %v6760_v21  ;;  %v7459_v23 = vpop.f32.mrb[27].mxu0 }
 0x759   : > { %v7460_v35 = vadd.f32 %v7459_v23, %v6755_v19 }
 0x75a   : > { %7995 = vst [vmem:[%s14759_s9 + $0xd8] sm:$0xff] %v7465_v22  ;;  %v15804_v22 = vld [vmem:[#allocation110_spill] sm:$0xff] }
 0x75b   : > { %7994 = vst [vmem:[%s14759_s9 + $0xd0] sm:$0xff] %v7460_v35  ;;  %v14945_v29 = vpop.f32.mrb[28].mxu1  ;;  %v8856_v25 = vpop.f32.mrb[28].mxu0  ;;  %v6820_v23 = vadd.f32 %v14737_v43, %v15804_v22  ;;  %v15805_v35 = vld [vmem:[#allocation109_spill] sm:$0xff] }
 0x75c   : > { %v7016_v12 = vpop.f32.mrb[29].mxu1  ;;  %v7475_v7 = vadd.f32 %v8856_v25, %v6770_v52  ;;  %v7469_v46 = vpop.f32.mrb[29].mxu0  ;;  %v6815_v52 = vadd.f32 %v14737_v43, %v15805_v35 }
 0x75d   : > { %v7470_v53 = vadd.f32 %v7469_v46, %v6765_v49 }
 0x75e   : > { %7997 = vst [vmem:[%s14759_s9 + $0xe8] sm:$0xff] %v7475_v7 }
 0x75f   : > { %7996 = vst [vmem:[%s14759_s9 + $0xe0] sm:$0xff] %v7470_v53  ;;  %v14953_v1 = vpop.f32.mrb[30].mxu1  ;;  %v8859_v58 = vpop.f32.mrb[30].mxu0  ;;  %v15806_v53 = vld [vmem:[#allocation113_spill] sm:$0xff] }
 0x760   : > { %v7021_v60 = vpop.f32.mrb[31].mxu1  ;;  %v7485_v13 = vadd.f32 %v8859_v58, %v6780_v40  ;;  %v7479_v16 = vpop.f32.mrb[31].mxu0  ;;  %v6830_v40 = vadd.f32 %v14737_v43, %v15806_v53 }
 0x761   : > { %v7480_v61 = vadd.f32 %v7479_v16, %v6775_v26  ;;  %v6825_v26 = vadd.f32 %v14737_v43, %v15807_v38 }
 0x762   : > { %7999 = vst [vmem:[%s14759_s9 + $0xf8] sm:$0xff] %v7485_v13 }
 0x763   : > { %7998 = vst [vmem:[%s14759_s9 + $0xf0] sm:$0xff] %v7480_v61  ;;  %v14961_v4 = vpop.f32.mrb[32].mxu1  ;;  %v8862_v47 = vpop.f32.mrb[32].mxu0 }
 0x764   : > { %v7026_v41 = vpop.f32.mrb[33].mxu1  ;;  %v7495_v50 = vadd.f32 %v8862_v47, %v6790_v33  ;;  %v7489_v0 = vpop.f32.mrb[33].mxu0  ;;  %v15809_v47 = vld [vmem:[#allocation112_spill] sm:$0xff] }
 0x765   : > { %v7490_v15 = vadd.f32 %v7489_v0, %v6785_v55  ;;  %v6840_v55 = vadd.f32 %v14737_v43, %v15808_v59  ;;  %v6835_v41 = vadd.f32 %v14737_v43, %v15809_v47 }
 0x766   : > { %8001 = vst [vmem:[%s14759_s9 + $0x108] sm:$0xff] %v7495_v50 }
 0x767   : > { %8000 = vst [vmem:[%s14759_s9 + $0x100] sm:$0xff] %v7490_v15  ;;  %v14969_v27 = vpop.f32.mrb[34].mxu1  ;;  %v8865_v32 = vpop.f32.mrb[34].mxu0 }
 0x768   : > { %v7031_v56 = vpop.f32.mrb[35].mxu1  ;;  %v7505_v30 = vadd.f32 %v8865_v32, %v6800_v62  ;;  %v7499_v9 = vpop.f32.mrb[35].mxu0 }
 0x769   : > { %v7500_v28 = vadd.f32 %v7499_v9, %v6795_v37  ;;  %v15810_v37 = vld [vmem:[#allocation116_spill] sm:$0xff]  ;;  %v15811_v56 = vld [vmem:[#allocation115_spill] sm:$0xff] }
 0x76a   : > { %8003 = vst [vmem:[%s14759_s9 + $0x118] sm:$0xff] %v7505_v30  ;;  %v6850_v32 = vadd.f32 %v14737_v43, %v15810_v37  ;;  %v6845_v30 = vadd.f32 %v14737_v43, %v15811_v56  ;;  %v15819_v37 = vld [vmem:[#allocation87_spill] sm:$0xff] }
 0x76b   : > { %8002 = vst [vmem:[%s14759_s9 + $0x110] sm:$0xff] %v7500_v28  ;;  %v14977_v39 = vpop.f32.mrb[36].mxu1  ;;  %v8868_v21 = vpop.f32.mrb[36].mxu0 }
 0x76c   : > { %v7036_v31 = vpop.f32.mrb[37].mxu1  ;;  %v7515_v19 = vadd.f32 %v8868_v21, %v6810_v24  ;;  %v7509_v3 = vpop.f32.mrb[37].mxu0  ;;  %v15812_v21 = vld [vmem:[#allocation117_spill] sm:$0xff] }
 0x76d   : > { %v7510_v18 = vadd.f32 %v7509_v3, %v6805_v11  ;;  %v6860_v31 = vadd.f32 %v14737_v43, %v15812_v21 }
 0x76e   : > { %8005 = vst [vmem:[%s14759_s9 + $0x128] sm:$0xff] %v7515_v19  ;;  %v15813_v19 = vld [vmem:[#allocation118_spill] sm:$0xff] }
 0x76f   : > { %8004 = vst [vmem:[%s14759_s9 + $0x120] sm:$0xff] %v7510_v18  ;;  %v14985_v44 = vpop.f32.mrb[38].mxu1  ;;  %v8871_v49 = vpop.f32.mrb[38].mxu0  ;;  %v6855_v3 = vadd.f32 %v14737_v43, %v15813_v19 }
 0x770   : > { %v7041_v25 = vpop.f32.mrb[39].mxu1  ;;  %v7525_v12 = vadd.f32 %v8871_v49, %v6820_v23  ;;  %v7519_v7 = vpop.f32.mrb[39].mxu0 }
 0x771   : > { %v7520_v46 = vadd.f32 %v7519_v7, %v6815_v52  ;;  %v15814_v25 = vld [vmem:[#allocation2_spill] sm:$0xff]  ;;  %v15815_v7 = vld [vmem:[#allocation85_spill] sm:$0xff] }
 0x772   : > { %8007 = vst [vmem:[%s14759_s9 + $0x138] sm:$0xff] %v7525_v12  ;;  %v6870_v12 = vadd.f32 %v14737_v43, %v15814_v25  ;;  %v15822_v25 = vld [vmem:[#allocation7_spill] sm:$0xff] }
 0x773   : > { %8006 = vst [vmem:[%s14759_s9 + $0x130] sm:$0xff] %v7520_v46  ;;  %v14993_v58 = vpop.f32.mrb[40].mxu1  ;;  %v8874_v60 = vpop.f32.mrb[40].mxu0  ;;  %v6865_v46 = vadd.f32 %v14737_v43, %v15815_v7  ;;  %v15823_v7 = vld [vmem:[#allocation88_spill] sm:$0xff] }
 0x774   : > { %v7046_v13 = vpop.f32.mrb[41].mxu1  ;;  %v7535_v16 = vadd.f32 %v8874_v60, %v6830_v40  ;;  %v7529_v61 = vpop.f32.mrb[41].mxu0 }
 0x775   : > { %v7530_v33 = vadd.f32 %v7529_v61, %v6825_v26 }
 0x776   : > { %8009 = vst [vmem:[%s14759_s9 + $0x148] sm:$0xff] %v7535_v16  ;;  %v15816_v16 = vld [vmem:[#allocation3_spill] sm:$0xff] }
 0x777   : > { %8008 = vst [vmem:[%s14759_s9 + $0x140] sm:$0xff] %v7530_v33  ;;  %v15001_v50 = vpop.f32.mrb[42].mxu1  ;;  %v8877_v0 = vpop.f32.mrb[42].mxu0  ;;  %v6880_v61 = vadd.f32 %v14737_v43, %v15816_v16  ;;  %v15817_v33 = vld [vmem:[#allocation4_spill] sm:$0xff] }
 0x778   : > { %v7051_v15 = vpop.f32.mrb[43].mxu1  ;;  %v7545_v45 = vadd.f32 %v8877_v0, %v6840_v55  ;;  %v7539_v62 = vpop.f32.mrb[43].mxu0  ;;  %v6875_v59 = vadd.f32 %v14737_v43, %v15817_v33 }
 0x779   : > { %v7540_v48 = vadd.f32 %v7539_v62, %v6835_v41  ;;  %v15818_v62 = vld [vmem:[#allocation6_spill] sm:$0xff] }
 0x77a   : > { %8011 = vst [vmem:[%s14759_s9 + $0x158] sm:$0xff] %v7545_v45 }
 0x77b   : > { %8010 = vst [vmem:[%s14759_s9 + $0x150] sm:$0xff] %v7540_v48  ;;  %v15009_v9 = vpop.f32.mrb[44].mxu1  ;;  %v8880_v28 = vpop.f32.mrb[44].mxu0  ;;  %v6890_v48 = vadd.f32 %v14737_v43, %v15818_v62 }
 0x77c   : > { %v7056_v63 = vpop.f32.mrb[45].mxu1  ;;  %v7555_v24 = vadd.f32 %v8880_v28, %v6850_v32  ;;  %v7549_v6 = vpop.f32.mrb[45].mxu0  ;;  %v6885_v32 = vadd.f32 %v14737_v43, %v15819_v37  ;;  %v15826_v37 = vld [vmem:[#allocation14_spill] sm:$0xff] }
 0x77d   : > { %v7550_v11 = vadd.f32 %v7549_v6, %v6845_v30 }
 0x77e   : > { %8013 = vst [vmem:[%s14759_s9 + $0x168] sm:$0xff] %v7555_v24 }
 0x77f   : > { %8012 = vst [vmem:[%s14759_s9 + $0x160] sm:$0xff] %v7550_v11  ;;  %v15017_v18 = vpop.f32.mrb[46].mxu1  ;;  %v8883_v22 = vpop.f32.mrb[46].mxu0  ;;  %v15820_v11 = vld [vmem:[#allocation8_spill] sm:$0xff] }
 0x780   : > { %v7061_v23 = vpop.f32.mrb[47].mxu1  ;;  %v7565_v35 = vadd.f32 %v8883_v22, %v6860_v31  ;;  %v7559_v52 = vpop.f32.mrb[47].mxu0  ;;  %v6900_v21 = vadd.f32 %v14737_v43, %v15820_v11  ;;  %v15821_v31 = vld [vmem:[#allocation5_spill] sm:$0xff] }
 0x781   : > { %v7560_v49 = vadd.f32 %v7559_v52, %v6855_v3  ;;  %v6895_v19 = vadd.f32 %v14737_v43, %v15821_v31 }
 0x782   : > { %8015 = vst [vmem:[%s14759_s9 + $0x178] sm:$0xff] %v7565_v35 }
 0x783   : > { %8014 = vst [vmem:[%s14759_s9 + $0x170] sm:$0xff] %v7560_v49  ;;  %v15025_v53 = vpop.f32.mrb[48].mxu1  ;;  %v8886_v40 = vpop.f32.mrb[48].mxu0 }
 0x784   : > { %v7066_v38 = vpop.f32.mrb[49].mxu1  ;;  %v7575_v26 = vadd.f32 %v8886_v40, %v6870_v12  ;;  %v7569_v60 = vpop.f32.mrb[49].mxu0  ;;  %v6910_v12 = vadd.f32 %v14737_v43, %v15822_v25 }
 0x785   : > { %v7570_v13 = vadd.f32 %v7569_v60, %v6865_v46  ;;  %v6905_v46 = vadd.f32 %v14737_v43, %v15823_v7 }
 0x786   : > { %8017 = vst [vmem:[%s14759_s9 + $0x188] sm:$0xff] %v7575_v26 }
 0x787   : > { %8016 = vst [vmem:[%s14759_s9 + $0x180] sm:$0xff] %v7570_v13  ;;  %v15033_v55 = vpop.f32.mrb[50].mxu1  ;;  %v8889_v47 = vpop.f32.mrb[50].mxu0 }
 0x788   : > { %v7071_v41 = vpop.f32.mrb[51].mxu1  ;;  %v7585_v0 = vadd.f32 %v8889_v47, %v6880_v61  ;;  %v7579_v15 = vpop.f32.mrb[51].mxu0  ;;  %v15824_v61 = vld [vmem:[#allocation10_spill] sm:$0xff] }
 0x789   : > { %v7580_v45 = vadd.f32 %v7579_v15, %v6875_v59  ;;  %v6920_v33 = vadd.f32 %v14737_v43, %v15824_v61  ;;  %v15825_v59 = vld [vmem:[#allocation9_spill] sm:$0xff] }
 0x78a   : > { %8019 = vst [vmem:[%s14759_s9 + $0x198] sm:$0xff] %v7585_v0  ;;  %v6915_v47 = vadd.f32 %v14737_v43, %v15825_v59 }
 0x78b   : > { %8018 = vst [vmem:[%s14759_s9 + $0x190] sm:$0xff] %v7580_v45  ;;  %v15041_v56 = vpop.f32.mrb[52].mxu1  ;;  %v8892_v30 = vpop.f32.mrb[52].mxu0 }
 0x78c   : > { %v7076_v28 = vpop.f32.mrb[53].mxu1  ;;  %v7595_v63 = vadd.f32 %v8892_v30, %v6890_v48  ;;  %v7589_v24 = vpop.f32.mrb[53].mxu0  ;;  %v15827_v30 = vld [vmem:[#allocation12_spill] sm:$0xff] }
 0x78d   : > { %v7590_v6 = vadd.f32 %v7589_v24, %v6885_v32  ;;  %v6930_v32 = vadd.f32 %v14737_v43, %v15826_v37  ;;  %v6925_v28 = vadd.f32 %v14737_v43, %v15827_v30  ;;  %v6970_v30 = vadd.f32 %v14737_v43, %v14839_v5 }
 0x78e   : > { %8021 = vst [vmem:[%s14759_s9 + $0x1a8] sm:$0xff] %v7595_v63  ;;  %v6975_v5 = vadd.f32 %v14737_v43, %v14855_v2 }
 0x78f   : > { %8020 = vst [vmem:[%s14759_s9 + $0x1a0] sm:$0xff] %v7590_v6  ;;  %v15049_v3 = vpop.f32.mrb[54].mxu1  ;;  %v8895_v22 = vpop.f32.mrb[54].mxu0 }
 0x790   : > { %v7081_v23 = vpop.f32.mrb[55].mxu1  ;;  %v7605_v35 = vadd.f32 %v8895_v22, %v6900_v21  ;;  %v7599_v52 = vpop.f32.mrb[55].mxu0 }
 0x791   : > { %v7600_v49 = vadd.f32 %v7599_v52, %v6895_v19  ;;  %v15828_v19 = vld [vmem:[#allocation13_spill] sm:$0xff]  ;;  %v15829_v23 = vld [vmem:[#allocation11_spill] sm:$0xff] }
 0x792   : > { %8023 = vst [vmem:[%s14759_s9 + $0x1b8] sm:$0xff] %v7605_v35  ;;  %v6940_v22 = vadd.f32 %v14737_v43, %v15828_v19  ;;  %v6935_v35 = vadd.f32 %v14737_v43, %v15829_v23 }
 0x793   : > { %8022 = vst [vmem:[%s14759_s9 + $0x1b0] sm:$0xff] %v7600_v49  ;;  %v15057_v40 = vpop.f32.mrb[56].mxu1  ;;  %v8898_v38 = vpop.f32.mrb[56].mxu0 }
 0x794   : > { %v7086_v26 = vpop.f32.mrb[57].mxu1  ;;  %v7615_v60 = vadd.f32 %v8898_v38, %v6910_v12  ;;  %v7609_v13 = vpop.f32.mrb[57].mxu0  ;;  %v6950_v38 = vadd.f32 %v14737_v43, %v14775_v17  ;;  %v6955_v17 = vadd.f32 %v14737_v43, %v14791_v54 }
 0x795   : > { %v7610_v16 = vadd.f32 %v7609_v13, %v6905_v46  ;;  %v15830_v26 = vld [vmem:[#allocation16_spill] sm:$0xff] }
 0x796   : > { %8025 = vst [vmem:[%s14759_s9 + $0x1c8] sm:$0xff] %v7615_v60  ;;  %v6945_v60 = vadd.f32 %v14737_v43, %v15830_v26 }
 0x797   : > { %8024 = vst [vmem:[%s14759_s9 + $0x1c0] sm:$0xff] %v7610_v16  ;;  %v15065_v41 = vpop.f32.mrb[58].mxu1  ;;  %v8901_v0 = vpop.f32.mrb[58].mxu0 }
 0x798   : > { %v7091_v15 = vpop.f32.mrb[59].mxu1  ;;  %v7625_v45 = vadd.f32 %v8901_v0, %v6920_v33  ;;  %v7619_v62 = vpop.f32.mrb[59].mxu0  ;;  %v6960_v0 = vadd.f32 %v14737_v43, %v14807_v36  ;;  %v6965_v36 = vadd.f32 %v14737_v43, %v14823_v42 }
 0x799   : > { %v7620_v48 = vadd.f32 %v7619_v62, %v6915_v47 }
 0x79a   : > { %8027 = vst [vmem:[%s14759_s9 + $0x1d8] sm:$0xff] %v7625_v45 }
 0x79b   : > { %8026 = vst [vmem:[%s14759_s9 + $0x1d0] sm:$0xff] %v7620_v48  ;;  %v15073_v63 = vpop.f32.mrb[60].mxu1  ;;  %v8904_v24 = vpop.f32.mrb[60].mxu0 }
 0x79c   : > { %v7096_v6 = vpop.f32.mrb[61].mxu1  ;;  %v7635_v11 = vadd.f32 %v8904_v24, %v6930_v32  ;;  %v7629_v21 = vpop.f32.mrb[61].mxu0 }
 0x79d   : > { %v7630_v31 = vadd.f32 %v7629_v21, %v6925_v28 }
 0x79e   : > { %8029 = vst [vmem:[%s14759_s9 + $0x1e8] sm:$0xff] %v7635_v11 }
 0x79f   : > { %8028 = vst [vmem:[%s14759_s9 + $0x1e0] sm:$0xff] %v7630_v31  ;;  %v15081_v52 = vpop.f32.mrb[62].mxu1  ;;  %v8907_v49 = vpop.f32.mrb[62].mxu0  ;;  %v6980_v31 = vadd.f32 %v14737_v43, %v14871_v10  ;;  %v6985_v10 = vadd.f32 %v14737_v43, %v14887_v57 }
 0x7a0   : > { %v7101_v25 = vpop.f32.mrb[63].mxu1  ;;  %v7645_v12 = vadd.f32 %v8907_v49, %v6940_v22  ;;  %v7639_v7 = vpop.f32.mrb[63].mxu0 }
 0x7a1   : > { %v7640_v46 = vadd.f32 %v7639_v7, %v6935_v35  ;;  %v6990_v25 = vadd.f32 %v14737_v43, %v14901_v14  ;;  %v6995_v14 = vadd.f32 %v14737_v43, %v14912_v8 }
 0x7a2   : > { %8031 = vst [vmem:[%s14759_s9 + $0x1f8] sm:$0xff] %v7645_v12 }
 0x7a3   : > { %8030 = vst [vmem:[%s14759_s9 + $0x1f0] sm:$0xff] %v7640_v46  ;;  %v15089_v13 = vpop.f32.mrb[64].mxu1  ;;  %v8910_v16 = vpop.f32.mrb[64].mxu0 }
 0x7a4   : > { %v7106_v61 = vpop.f32.mrb[65].mxu1  ;;  %v7655_v33 = vadd.f32 %v8910_v16, %v6950_v38  ;;  %v7649_v59 = vpop.f32.mrb[65].mxu0 }
 0x7a5   : > { %v7650_v47 = vadd.f32 %v7649_v59, %v6945_v60  ;;  %v7000_v60 = vadd.f32 %v14737_v43, %v14921_v51  ;;  %v7005_v51 = vadd.f32 %v14737_v43, %v14929_v20 }
 0x7a6   : > { %8033 = vst [vmem:[%s14759_s9 + $0x208] sm:$0xff] %v7655_v33 }
 0x7a7   : > { %8032 = vst [vmem:[%s14759_s9 + $0x200] sm:$0xff] %v7650_v47  ;;  %v15097_v15 = vpop.f32.mrb[66].mxu1  ;;  %v8913_v45 = vpop.f32.mrb[66].mxu0 }
 0x7a8   : > { %v7111_v62 = vpop.f32.mrb[67].mxu1  ;;  %v7665_v48 = vadd.f32 %v8913_v45, %v6960_v0  ;;  %v7659_v37 = vpop.f32.mrb[67].mxu0  ;;  %v7010_v0 = vadd.f32 %v14737_v43, %v14937_v34  ;;  %v7015_v34 = vadd.f32 %v14737_v43, %v14945_v29 }
 0x7a9   : > { %v7660_v32 = vadd.f32 %v7659_v37, %v6955_v17 }
 0x7aa   : > { %8035 = vst [vmem:[%s14759_s9 + $0x218] sm:$0xff] %v7665_v48 }
 0x7ab   : > { %8034 = vst [vmem:[%s14759_s9 + $0x210] sm:$0xff] %v7660_v32  ;;  %v15105_v28 = vpop.f32.mrb[68].mxu1  ;;  %v8916_v54 = vpop.f32.mrb[68].mxu0  ;;  %v7020_v32 = vadd.f32 %v14737_v43, %v14953_v1  ;;  %v15153_v1 = vld [vmem:[%s15314_s4] ss:$0 sm:$0xff] }
 0x7ac   : > { %v7116_v24 = vpop.f32.mrb[69].mxu1  ;;  %v7675_v6 = vadd.f32 %v8916_v54, %v6970_v30  ;;  %v7669_v11 = vpop.f32.mrb[69].mxu0  ;;  %v7025_v29 = vadd.f32 %v15153_v1, %v14961_v4 }
 0x7ad   : > { %v7670_v21 = vadd.f32 %v7669_v11, %v6965_v36  ;;  %v7030_v11 = vadd.f32 %v14737_v43, %v14969_v27  ;;  %v7040_v43 = vadd.f32 %v15153_v1, %v14985_v44  ;;  %v7035_v27 = vadd.f32 %v15153_v1, %v14977_v39 }
 0x7ae   : > { %8037 = vst [vmem:[%s14759_s9 + $0x228] sm:$0xff] %v7675_v6  ;;  %v7045_v44 = vadd.f32 %v15153_v1, %v14993_v58 }
 0x7af   : > { %8036 = vst [vmem:[%s14759_s9 + $0x220] sm:$0xff] %v7670_v21  ;;  %v15113_v19 = vpop.f32.mrb[70].mxu1  ;;  %v8919_v42 = vpop.f32.mrb[70].mxu0 }
 0x7b0   : > { %v7121_v22 = vpop.f32.mrb[71].mxu1  ;;  %v7685_v23 = vadd.f32 %v8919_v42, %v6980_v31  ;;  %v7679_v35 = vpop.f32.mrb[71].mxu0 }
 0x7b1   : > { %v7680_v49 = vadd.f32 %v7679_v35, %v6975_v5 }
 0x7b2   : > { %8039 = vst [vmem:[%s14759_s9 + $0x238] sm:$0xff] %v7685_v23 }
 0x7b3   : > { %8038 = vst [vmem:[%s14759_s9 + $0x230] sm:$0xff] %v7680_v49  ;;  %v15121_v12 = vpop.f32.mrb[72].mxu1  ;;  %v8922_v2 = vpop.f32.mrb[72].mxu0 }
 0x7b4   : > { %v7126_v7 = vpop.f32.mrb[73].mxu1  ;;  %v7695_v46 = vadd.f32 %v8922_v2, %v6990_v25  ;;  %v7689_v38 = vpop.f32.mrb[73].mxu0 }
 0x7b5   : > { %v7690_v26 = vadd.f32 %v7689_v38, %v6985_v10  ;;  %v7050_v7 = vadd.f32 %v15153_v1, %v15001_v50  ;;  %v7055_v50 = vadd.f32 %v15153_v1, %v15009_v9 }
 0x7b6   : > { %8041 = vst [vmem:[%s14759_s9 + $0x248] sm:$0xff] %v7695_v46 }
 0x7b7   : > { %8040 = vst [vmem:[%s14759_s9 + $0x240] sm:$0xff] %v7690_v26  ;;  %v15129_v16 = vpop.f32.mrb[74].mxu1  ;;  %v8925_v57 = vpop.f32.mrb[74].mxu0 }
 0x7b8   : > { %v7131_v61 = vpop.f32.mrb[75].mxu1  ;;  %v7705_v33 = vadd.f32 %v8925_v57, %v7000_v60  ;;  %v7699_v59 = vpop.f32.mrb[75].mxu0  ;;  %v7060_v57 = vadd.f32 %v15153_v1, %v15017_v18  ;;  %v7065_v18 = vadd.f32 %v15153_v1, %v15025_v53 }
 0x7b9   : > { %v7700_v47 = vadd.f32 %v7699_v59, %v6995_v14 }
 0x7ba   : > { %8043 = vst [vmem:[%s14759_s9 + $0x258] sm:$0xff] %v7705_v33 }
 0x7bb   : > { %8042 = vst [vmem:[%s14759_s9 + $0x250] sm:$0xff] %v7700_v47  ;;  %v15137_v17 = vpop.f32.mrb[76].mxu1  ;;  %v8928_v8 = vpop.f32.mrb[76].mxu0 }
 0x7bc   : > { %v7136_v45 = vpop.f32.mrb[77].mxu1  ;;  %v7715_v62 = vadd.f32 %v8928_v8, %v7010_v0  ;;  %v7709_v48 = vpop.f32.mrb[77].mxu0 }
 0x7bd   : > { %v7710_v37 = vadd.f32 %v7709_v48, %v7005_v51  ;;  %v7070_v51 = vadd.f32 %v15153_v1, %v15033_v55  ;;  %v7075_v55 = vadd.f32 %v15153_v1, %v15041_v56 }
 0x7be   : > { %8045 = vst [vmem:[%s14759_s9 + $0x268] sm:$0xff] %v7715_v62 }
 0x7bf   : > { %8044 = vst [vmem:[%s14759_s9 + $0x260] sm:$0xff] %v7710_v37  ;;  %v15145_v30 = vpop.f32.mrb[78].mxu1  ;;  %v8931_v20 = vpop.f32.mrb[78].mxu0 }
 0x7c0   : > { %v7141_v36 = vpop.f32.mrb[79].mxu1  ;;  %v7725_v54 = vadd.f32 %v8931_v20, %v7020_v32  ;;  %v7719_v24 = vpop.f32.mrb[79].mxu0  ;;  %v7080_v32 = vadd.f32 %v15153_v1, %v15049_v3  ;;  %v7085_v3 = vadd.f32 %v15153_v1, %v15057_v40 }
 0x7c1   : > { %v7720_v6 = vadd.f32 %v7719_v24, %v7015_v34 }
 0x7c2   : > { %8047 = vst [vmem:[%s14759_s9 + $0x278] sm:$0xff] %v7725_v54 }
 0x7c3   : > { %8046 = vst [vmem:[%s14759_s9 + $0x270] sm:$0xff] %v7720_v6  ;;  %v15158_v21 = vpop.f32.mrb[80].mxu1  ;;  %v8934_v31 = vpop.f32.mrb[80].mxu0  ;;  %v7090_v6 = vadd.f32 %v15153_v1, %v15065_v41  ;;  %v7095_v41 = vadd.f32 %v15153_v1, %v15073_v63 }
 0x7c4   : > { %v7146_v5 = vpop.f32.mrb[81].mxu1  ;;  %v7735_v42 = vadd.f32 %v8934_v31, %v7030_v11  ;;  %v7729_v22 = vpop.f32.mrb[81].mxu0 }
 0x7c5   : > { %v7730_v23 = vadd.f32 %v7729_v22, %v7025_v29  ;;  %v7100_v22 = vadd.f32 %v15153_v1, %v15081_v52  ;;  %v7105_v52 = vadd.f32 %v15153_v1, %v15089_v13 }
 0x7c6   : > { %8049 = vst [vmem:[%s14759_s9 + $0x288] sm:$0xff] %v7735_v42 }
 0x7c7   : > { %8048 = vst [vmem:[%s14759_s9 + $0x280] sm:$0xff] %v7730_v23  ;;  %v15166_v35 = vpop.f32.mrb[82].mxu1  ;;  %v8937_v4 = vpop.f32.mrb[82].mxu0 }
 0x7c8   : > { %v7151_v49 = vpop.f32.mrb[83].mxu1  ;;  %v7745_v25 = vadd.f32 %v8937_v4, %v7040_v43  ;;  %v7739_v10 = vpop.f32.mrb[83].mxu0 }
 0x7c9   : > { %v7740_v2 = vadd.f32 %v7739_v10, %v7035_v27 }
 0x7ca   : > { %8051 = vst [vmem:[%s14759_s9 + $0x298] sm:$0xff] %v7745_v25  ;;  %v7110_v25 = vadd.f32 %v15153_v1, %v15097_v15  ;;  %v7115_v15 = vadd.f32 %v15153_v1, %v15105_v28 }
 0x7cb   : > { %8050 = vst [vmem:[%s14759_s9 + $0x290] sm:$0xff] %v7740_v2  ;;  %v15174_v46 = vpop.f32.mrb[84].mxu1  ;;  %v8940_v39 = vpop.f32.mrb[84].mxu0 }
 0x7cc   : > { %v7156_v38 = vpop.f32.mrb[85].mxu1  ;;  %v7755_v26 = vadd.f32 %v8940_v39, %v7050_v7  ;;  %v7749_v60 = vpop.f32.mrb[85].mxu0 }
 0x7cd   : > { %v7750_v14 = vadd.f32 %v7749_v60, %v7045_v44  ;;  %v7120_v38 = vadd.f32 %v15153_v1, %v15113_v19  ;;  %v7125_v19 = vadd.f32 %v15153_v1, %v15121_v12 }
 0x7ce   : > { %8053 = vst [vmem:[%s14759_s9 + $0x2a8] sm:$0xff] %v7755_v26 }
 0x7cf   : > { %8052 = vst [vmem:[%s14759_s9 + $0x2a0] sm:$0xff] %v7750_v14  ;;  %v15182_v61 = vpop.f32.mrb[86].mxu1  ;;  %v8943_v58 = vpop.f32.mrb[86].mxu0 }
 0x7d0   : > { %v7161_v33 = vpop.f32.mrb[87].mxu1  ;;  %v7765_v59 = vadd.f32 %v8943_v58, %v7060_v57  ;;  %v7759_v47 = vpop.f32.mrb[87].mxu0  ;;  %v7130_v58 = vadd.f32 %v15153_v1, %v15129_v16  ;;  %v7135_v16 = vadd.f32 %v15153_v1, %v15137_v17 }
 0x7d1   : > { %v7760_v0 = vadd.f32 %v7759_v47, %v7055_v50 }
 0x7d2   : > { %8055 = vst [vmem:[%s14759_s9 + $0x2b8] sm:$0xff] %v7765_v59 }
 0x7d3   : > { %8054 = vst [vmem:[%s14759_s9 + $0x2b0] sm:$0xff] %v7760_v0  ;;  %v15190_v8 = vpop.f32.mrb[88].mxu1  ;;  %v8946_v9 = vpop.f32.mrb[88].mxu0 }
 0x7d4   : > { %v7166_v45 = vpop.f32.mrb[89].mxu1  ;;  %v7775_v62 = vadd.f32 %v8946_v9, %v7070_v51  ;;  %v7769_v48 = vpop.f32.mrb[89].mxu0 }
 0x7d5   : > { %v7770_v37 = vadd.f32 %v7769_v48, %v7065_v18  ;;  %v7140_v18 = vadd.f32 %v15153_v1, %v15145_v30  ;;  %v7145_v30 = vadd.f32 %v15153_v1, %v15158_v21 }
 0x7d6   : > { %8057 = vst [vmem:[%s14759_s9 + $0x2c8] sm:$0xff] %v7775_v62 }
 0x7d7   : > { %8056 = vst [vmem:[%s14759_s9 + $0x2c0] sm:$0xff] %v7770_v37  ;;  %v15198_v34 = vpop.f32.mrb[90].mxu1  ;;  %v8949_v53 = vpop.f32.mrb[90].mxu0 }
 0x7d8   : > { %v7171_v20 = vpop.f32.mrb[91].mxu1  ;;  %v7785_v36 = vadd.f32 %v8949_v53, %v7080_v32  ;;  %v7779_v54 = vpop.f32.mrb[91].mxu0  ;;  %v7150_v32 = vadd.f32 %v15153_v1, %v15166_v35  ;;  %v7155_v35 = vadd.f32 %v15153_v1, %v15174_v46 }
 0x7d9   : > { %v7780_v24 = vadd.f32 %v7779_v54, %v7075_v55 }
 0x7da   : > { %8059 = vst [vmem:[%s14759_s9 + $0x2d8] sm:$0xff] %v7785_v36 }
 0x7db   : > { %8058 = vst [vmem:[%s14759_s9 + $0x2d0] sm:$0xff] %v7780_v24  ;;  %v15206_v11 = vpop.f32.mrb[92].mxu1  ;;  %v8952_v56 = vpop.f32.mrb[92].mxu0  ;;  %v7160_v24 = vadd.f32 %v15153_v1, %v15182_v61  ;;  %v7165_v61 = vadd.f32 %v15153_v1, %v15190_v8 }
 0x7dc   : > { %v7176_v29 = vpop.f32.mrb[93].mxu1  ;;  %v7795_v31 = vadd.f32 %v8952_v56, %v7090_v6  ;;  %v7789_v5 = vpop.f32.mrb[93].mxu0 }
 0x7dd   : > { %v7790_v42 = vadd.f32 %v7789_v5, %v7085_v3  ;;  %v7170_v5 = vadd.f32 %v15153_v1, %v15198_v34  ;;  %v7175_v34 = vadd.f32 %v15153_v1, %v15206_v11 }
 0x7de   : > { %8061 = vst [vmem:[%s14759_s9 + $0x2e8] sm:$0xff] %v7795_v31 }
 0x7df   : > { %8060 = vst [vmem:[%s14759_s9 + $0x2e0] sm:$0xff] %v7790_v42  ;;  %v15214_v23 = vpop.f32.mrb[94].mxu1  ;;  %v8955_v40 = vpop.f32.mrb[94].mxu0 }
 0x7e0   : > { %v7181_v43 = vpop.f32.mrb[95].mxu1  ;;  %v7805_v27 = vadd.f32 %v8955_v40, %v7100_v22  ;;  %v7799_v4 = vpop.f32.mrb[95].mxu0 }
 0x7e1   : > { %v7800_v49 = vadd.f32 %v7799_v4, %v7095_v41 }
 0x7e2   : > { %8063 = vst [vmem:[%s14759_s9 + $0x2f8] sm:$0xff] %v7805_v27  ;;  %v7180_v27 = vadd.f32 %v15153_v1, %v15214_v23 }
 0x7e3   : > { %8062 = vst [vmem:[%s14759_s9 + $0x2f0] sm:$0xff] %v7800_v49  ;;  %v15222_v10 = vpop.f32.mrb[96].mxu1  ;;  %v8958_v63 = vpop.f32.mrb[96].mxu0 }
 0x7e4   : > { %v7186_v2 = vpop.f32.mrb[97].mxu1  ;;  %v7815_v7 = vadd.f32 %v8958_v63, %v7110_v25  ;;  %v7809_v44 = vpop.f32.mrb[97].mxu0  ;;  %v7185_v23 = vadd.f32 %v15153_v1, %v15222_v10 }
 0x7e5   : > { %v7810_v39 = vadd.f32 %v7809_v44, %v7105_v52 }
 0x7e6   : > { %8065 = vst [vmem:[%s14759_s9 + $0x308] sm:$0xff] %v7815_v7 }
 0x7e7   : > { %8064 = vst [vmem:[%s14759_s9 + $0x300] sm:$0xff] %v7810_v39  ;;  %v15230_v26 = vpop.f32.mrb[98].mxu1  ;;  %v8961_v13 = vpop.f32.mrb[98].mxu0 }
 0x7e8   : > { %v7191_v60 = vpop.f32.mrb[99].mxu1  ;;  %v7825_v14 = vadd.f32 %v8961_v13, %v7120_v38  ;;  %v7819_v57 = vpop.f32.mrb[99].mxu0  ;;  %v7190_v2 = vadd.f32 %v15153_v1, %v15230_v26 }
 0x7e9   : > { %v7820_v50 = vadd.f32 %v7819_v57, %v7115_v15 }
 0x7ea   : > { %8067 = vst [vmem:[%s14759_s9 + $0x318] sm:$0xff] %v7825_v14 }
 0x7eb   : > { %8066 = vst [vmem:[%s14759_s9 + $0x310] sm:$0xff] %v7820_v50  ;;  %v15238_v33 = vpop.f32.mrb[100].mxu1  ;;  %v8964_v28 = vpop.f32.mrb[100].mxu0 }
 0x7ec   : > { %v7196_v59 = vpop.f32.mrb[101].mxu1  ;;  %v7835_v47 = vadd.f32 %v8964_v28, %v7130_v58  ;;  %v7829_v0 = vpop.f32.mrb[101].mxu0  ;;  %v7195_v60 = vadd.f32 %v15153_v1, %v15238_v33 }
 0x7ed   : > { %v7830_v51 = vadd.f32 %v7829_v0, %v7125_v19 }
 0x7ee   : > { %8069 = vst [vmem:[%s14759_s9 + $0x328] sm:$0xff] %v7835_v47 }
 0x7ef   : > { %8068 = vst [vmem:[%s14759_s9 + $0x320] sm:$0xff] %v7830_v51  ;;  %v7199_v9 = vpop.f32.mrb[102].mxu1  ;;  %v8967_v12 = vpop.f32.mrb[102].mxu0 }
 0x7f0   : > { %v7201_v45 = vpop.f32.mrb[103].mxu1  ;;  %v7845_v62 = vadd.f32 %v8967_v12, %v7140_v18  ;;  %v7839_v48 = vpop.f32.mrb[103].mxu0  ;;  %v7200_v13 = vadd.f32 %v15153_v1, %v7199_v9 }
 0x7f1   : > { %v7840_v37 = vadd.f32 %v7839_v48, %v7135_v16 }
 0x7f2   : > { %8071 = vst [vmem:[%s14759_s9 + $0x338] sm:$0xff] %v7845_v62 }
 0x7f3   : > { %8070 = vst [vmem:[%s14759_s9 + $0x330] sm:$0xff] %v7840_v37  ;;  %v7204_v55 = vpop.f32.mrb[104].mxu1  ;;  %v8970_v53 = vpop.f32.mrb[104].mxu0 }
 0x7f4   : > { %v7206_v17 = vpop.f32.mrb[105].mxu1  ;;  %v7855_v20 = vadd.f32 %v8970_v53, %v7150_v32  ;;  %v7849_v36 = vpop.f32.mrb[105].mxu0  ;;  %v7205_v28 = vadd.f32 %v15153_v1, %v7204_v55 }
 0x7f5   : > { %v7850_v54 = vadd.f32 %v7849_v36, %v7145_v30 }
 0x7f6   : > { %8073 = vst [vmem:[%s14759_s9 + $0x348] sm:$0xff] %v7855_v20 }
 0x7f7   : > { %8072 = vst [vmem:[%s14759_s9 + $0x340] sm:$0xff] %v7850_v54  ;;  %v7209_v6 = vpop.f32.mrb[106].mxu1  ;;  %v8973_v3 = vpop.f32.mrb[106].mxu0 }
 0x7f8   : > { %v7211_v21 = vpop.f32.mrb[107].mxu1  ;;  %v7865_v56 = vadd.f32 %v8973_v3, %v7160_v24  ;;  %v7859_v29 = vpop.f32.mrb[107].mxu0  ;;  %v7210_v19 = vadd.f32 %v15153_v1, %v7209_v6 }
 0x7f9   : > { %v7860_v31 = vadd.f32 %v7859_v29, %v7155_v35 }
 0x7fa   : > { %8075 = vst [vmem:[%s14759_s9 + $0x358] sm:$0xff] %v7865_v56 }
 0x7fb   : > { %8074 = vst [vmem:[%s14759_s9 + $0x350] sm:$0xff] %v7860_v31  ;;  %v7214_v42 = vpop.f32.mrb[108].mxu1  ;;  %v8976_v22 = vpop.f32.mrb[108].mxu0 }
 0x7fc   : > { %v7216_v46 = vpop.f32.mrb[109].mxu1  ;;  %v7875_v41 = vadd.f32 %v8976_v22, %v7170_v5  ;;  %v7869_v40 = vpop.f32.mrb[109].mxu0  ;;  %v7215_v9 = vadd.f32 %v15153_v1, %v7214_v42 }
 0x7fd   : > { %v7870_v43 = vadd.f32 %v7869_v40, %v7165_v61 }
 0x7fe   : > { %8077 = vst [vmem:[%s14759_s9 + $0x368] sm:$0xff] %v7875_v41 }
 0x7ff   : > { %8076 = vst [vmem:[%s14759_s9 + $0x360] sm:$0xff] %v7870_v43  ;;  %v7219_v4 = vpop.f32.mrb[110].mxu1  ;;  %v8979_v49 = vpop.f32.mrb[110].mxu0 }
 0x800   : > { %v7221_v8 = vpop.f32.mrb[111].mxu1  ;;  %v7885_v25 = vadd.f32 %v8979_v49, %v7180_v27  ;;  %v7879_v52 = vpop.f32.mrb[111].mxu0  ;;  %v7220_v16 = vadd.f32 %v15153_v1, %v7219_v4 }
 0x801   : > { %v7880_v63 = vadd.f32 %v7879_v52, %v7175_v34 }
 0x802   : > { %8079 = vst [vmem:[%s14759_s9 + $0x378] sm:$0xff] %v7885_v25 }
 0x803   : > { %8078 = vst [vmem:[%s14759_s9 + $0x370] sm:$0xff] %v7880_v63  ;;  %v7224_v7 = vpop.f32.mrb[112].mxu1  ;;  %v8982_v44 = vpop.f32.mrb[112].mxu0 }
 0x804   : > { %v7226_v11 = vpop.f32.mrb[113].mxu1  ;;  %v7895_v39 = vadd.f32 %v8982_v44, %v7190_v2  ;;  %v7889_v38 = vpop.f32.mrb[113].mxu0  ;;  %v7225_v55 = vadd.f32 %v15153_v1, %v7224_v7 }
 0x805   : > { %v7890_v15 = vadd.f32 %v7889_v38, %v7185_v23 }
 0x806   : > { %8081 = vst [vmem:[%s14759_s9 + $0x388] sm:$0xff] %v7895_v39 }
 0x807   : > { %8080 = vst [vmem:[%s14759_s9 + $0x380] sm:$0xff] %v7890_v15  ;;  %v7229_v26 = vpop.f32.mrb[114].mxu1  ;;  %v8985_v14 = vpop.f32.mrb[114].mxu0 }
 0x808   : > { %v7231_v10 = vpop.f32.mrb[115].mxu1  ;;  %v7905_v57 = vadd.f32 %v8985_v14, %v7200_v13  ;;  %v7899_v50 = vpop.f32.mrb[115].mxu0  ;;  %v7230_v30 = vadd.f32 %v15153_v1, %v7229_v26 }
 0x809   : > { %v7900_v58 = vadd.f32 %v7899_v50, %v7195_v60 }
 0x80a   : > { %8083 = vst [vmem:[%s14759_s9 + $0x398] sm:$0xff] %v7905_v57 }
 0x80b   : > { %8082 = vst [vmem:[%s14759_s9 + $0x390] sm:$0xff] %v7900_v58  ;;  %v7234_v59 = vpop.f32.mrb[116].mxu1  ;;  %v8988_v47 = vpop.f32.mrb[116].mxu0 }
 0x80c   : > { %v7236_v0 = vpop.f32.mrb[117].mxu1  ;;  %v7915_v33 = vadd.f32 %v8988_v47, %v7210_v19  ;;  %v7909_v51 = vpop.f32.mrb[117].mxu0  ;;  %v7235_v6 = vadd.f32 %v15153_v1, %v7234_v59 }
 0x80d   : > { %v7910_v18 = vadd.f32 %v7909_v51, %v7205_v28 }
 0x80e   : > { %8085 = vst [vmem:[%s14759_s9 + $0x3a8] sm:$0xff] %v7915_v33 }
 0x80f   : > { %8084 = vst [vmem:[%s14759_s9 + $0x3a0] sm:$0xff] %v7910_v18  ;;  %v7239_v12 = vpop.f32.mrb[118].mxu1  ;;  %v8991_v45 = vpop.f32.mrb[118].mxu0 }
 0x810   : > { %v7241_v62 = vpop.f32.mrb[119].mxu1  ;;  %v7925_v48 = vadd.f32 %v8991_v45, %v7220_v16  ;;  %v7919_v37 = vpop.f32.mrb[119].mxu0  ;;  %v7240_v35 = vadd.f32 %v15153_v1, %v7239_v12 }
 0x811   : > { %v7920_v32 = vadd.f32 %v7919_v37, %v7215_v9 }
 0x812   : > { %8087 = vst [vmem:[%s14759_s9 + $0x3b8] sm:$0xff] %v7925_v48 }
 0x813   : > { %8086 = vst [vmem:[%s14759_s9 + $0x3b0] sm:$0xff] %v7920_v32  ;;  %v7244_v53 = vpop.f32.mrb[120].mxu1  ;;  %v8994_v17 = vpop.f32.mrb[120].mxu0 }
 0x814   : > { %v7246_v20 = vpop.f32.mrb[121].mxu1  ;;  %v7935_v36 = vadd.f32 %v8994_v17, %v7230_v30  ;;  %v7929_v54 = vpop.f32.mrb[121].mxu0  ;;  %v7245_v42 = vadd.f32 %v15153_v1, %v7244_v53 }
 0x815   : > { %v7930_v24 = vadd.f32 %v7929_v54, %v7225_v55 }
 0x816   : > { %8089 = vst [vmem:[%s14759_s9 + $0x3c8] sm:$0xff] %v7935_v36 }
 0x817   : > { %8088 = vst [vmem:[%s14759_s9 + $0x3c0] sm:$0xff] %v7930_v24  ;;  %v7249_v3 = vpop.f32.mrb[122].mxu1  ;;  %v8997_v21 = vpop.f32.mrb[122].mxu0 }
 0x818   : > { %v7251_v56 = vpop.f32.mrb[123].mxu1  ;;  %v7945_v29 = vadd.f32 %v8997_v21, %v7240_v35  ;;  %v7939_v31 = vpop.f32.mrb[123].mxu0  ;;  %v7250_v61 = vadd.f32 %v15153_v1, %v7249_v3 }
 0x819   : > { %v7940_v5 = vadd.f32 %v7939_v31, %v7235_v6 }
 0x81a   : > { %8091 = vst [vmem:[%s14759_s9 + $0x3d8] sm:$0xff] %v7945_v29 }
 0x81b   : > { %8090 = vst [vmem:[%s14759_s9 + $0x3d0] sm:$0xff] %v7940_v5  ;;  %v7254_v22 = vpop.f32.mrb[124].mxu1  ;;  %v9000_v46 = vpop.f32.mrb[124].mxu0 }
 0x81c   : > { %v7256_v41 = vpop.f32.mrb[125].mxu1  ;;  %v7955_v40 = vadd.f32 %v9000_v46, %v7250_v61  ;;  %v7949_v43 = vpop.f32.mrb[125].mxu0  ;;  %v7255_v34 = vadd.f32 %v15153_v1, %v7254_v22 }
 0x81d   : > { %v7950_v27 = vadd.f32 %v7949_v43, %v7245_v42 }
 0x81e   : > { %8093 = vst [vmem:[%s14759_s9 + $0x3e8] sm:$0xff] %v7955_v40 }
 0x81f   : > { %8092 = vst [vmem:[%s14759_s9 + $0x3e0] sm:$0xff] %v7950_v27  ;;  %v7259_v4 = vpop.f32.mrb[126].mxu1  ;;  %v9003_v49 = vpop.f32.mrb[126].mxu0 }
 0x820   : > { %v7260_v8 = vadd.f32 %v15153_v1, %v7259_v4  ;;  %v7261_v25 = vpop.f32.mrb[127].mxu1  ;;  %v7959_v52 = vpop.f32.mrb[127].mxu0 }
 0x821   : > { %v7960_v63 = vadd.f32 %v7959_v52, %v7255_v34 }
 0x822   : > { %v7965_v2 = vadd.f32 %v9003_v49, %v7260_v8 }
 0x823   : > { %8094 = vst [vmem:[%s14759_s9 + $0x3f0] sm:$0xff] %v7960_v63 }
 0x824   : > { %8095 = vst [vmem:[%s14759_s9 + $0x3f8] sm:$0xff] %v7965_v2 }
 0x825 PF: > { %s15_s18 = sadd.s32 1, %s10576_s18  }
 0x826   : > { %p12_p4 = scmp.ge.s32.totalorder %s15_s18, 4  }
 0x828   :  { %14 = sbr.rel (!%p12_p4) target bundleno = 1 (0x1), region = 70 }

</bundles_post_ra>
